<compile_context>
chip_gen: v7x
topology: tpu7x:2x2x1
jax: 0.10.0
libtpu: 0.0.40
codegen_flags: <defaults>
</compile_context>

<pallas_src>
import functools
import math

import jax
import jax.numpy as jnp
from jax.experimental import pallas as pl
from jax.experimental.pallas import tpu as pltpu

BN_EPS = 1e-3                      # bn_param = (0.1, 0.001)
VMEM_LIMIT = 32 * 1024 * 1024      # explicit per-call scoped-VMEM budget

_VMEM_ANY = pl.BlockSpec(memory_space=pltpu.MemorySpace.VMEM)


def _round_up(v, m):
    return (v + m - 1) // m * m


def _pick_tile_m(m):
    # cdiv grid: aim for >=2 blocks (v7x megacore + pipelining), tile <= 512,
    # tile a multiple of 8 (sublane).  Partial last block is masked by Pallas.
    return min(512, max(8, _round_up((m + 1) // 2, 8)))


# ----------------------------- Pallas kernels ------------------------------

def _matmul_bn_act_kernel(x_ref, w_ref, b_ref, o_ref, *, act):
    # (TM, K) @ (K, N) on the MXU (bf16 in, f32 acc); BN scale is pre-folded
    # into w, so the epilogue is bias (+ ReLU6).
    acc = jnp.dot(x_ref[...], w_ref[...], preferred_element_type=jnp.float32)
    acc = acc + b_ref[...]
    if act == "relu6":
        acc = jnp.minimum(jnp.maximum(acc, 0.0), 6.0)
    o_ref[...] = acc.astype(o_ref.dtype)


def _matmul_bn_res_kernel(x_ref, w_ref, b_ref, r_ref, o_ref):
    # Project conv of a residual MBConv: matmul + bias (no act) + fused residual.
    acc = jnp.dot(x_ref[...], w_ref[...], preferred_element_type=jnp.float32)
    acc = acc + b_ref[...] + r_ref[...].astype(jnp.float32)
    o_ref[...] = acc.astype(o_ref.dtype)


def _dwconv_bn_act_kernel(x_ref, w_ref, b_ref, o_ref, pad_ref, *, k, h, w):
    # Depthwise KxK stride-1 for one image: the bf16 block is upcast into an
    # f32 VMEM scratch with a zeroed halo (no HBM padded copy), then K*K
    # shifted in-VMEM windows are MAC'd in f32 on the VPU, fused with BN bias
    # + ReLU6.  BN scale is pre-folded into the depthwise weights.
    p = k // 2
    hp = h + 2 * p
    wp = w + 2 * p
    c = x_ref.shape[-1]
    # Zero only the halo (cheap; done every step so "parallel" grid sharding
    # across TensorCores stays correct), then write the interior.
    zrow = jnp.zeros((p, wp, c), jnp.float32)
    zcol = jnp.zeros((hp, p, c), jnp.float32)
    pad_ref[0:p, :, :] = zrow
    pad_ref[h + p:hp, :, :] = zrow
    pad_ref[:, 0:p, :] = zcol
    pad_ref[:, w + p:wp, :] = zcol
    pad_ref[p:p + h, p:p + w, :] = x_ref[0].astype(jnp.float32)

    acc = pad_ref[0:h, 0:w, :] * w_ref[0]
    for t in range(1, k * k):
        ky, kx = divmod(t, k)
        acc = acc + pad_ref[ky:ky + h, kx:kx + w, :] * w_ref[t]
    acc = acc + b_ref[...]
    acc = jnp.minimum(jnp.maximum(acc, 0.0), 6.0)
    o_ref[0] = acc.astype(o_ref.dtype)


def _fmix_gap_kernel(x_ref, w_ref, b_ref, o_ref, *, inv_hw, hw, ts, mask_rows):
    # feature_mix 1x1 conv (+bias+ReLU6) fused with global average pooling:
    # per-spatial-tile partial sums accumulate into the (1, 1, Cout) output,
    # so the full (M, 1280) activation never goes to HBM.
    s = pl.program_id(1)

    @pl.when(s == 0)
    def _():
        o_ref[...] = jnp.zeros_like(o_ref)

    y = jnp.dot(x_ref[0], w_ref[...], preferred_element_type=jnp.float32)
    y = y + b_ref[...]
    y = jnp.minimum(jnp.maximum(y, 0.0), 6.0)
    if mask_rows:
        row = jax.lax.broadcasted_iota(jnp.int32, (ts, 1), 0) + s * ts
        y = jnp.where(row < hw, y, 0.0)
    part = jnp.sum(y, axis=0, keepdims=True) * inv_hw          # (1, Cout)
    o_ref[...] = o_ref[...] + part[None, :, :]


def _classifier_kernel(x_ref, w_ref, b_ref, o_ref):
    acc = jnp.dot(x_ref[...], w_ref[...], preferred_element_type=jnp.float32)
    o_ref[...] = (acc + b_ref[...]).astype(o_ref.dtype)


# --------------------------- Pallas call wrappers ---------------------------

def _pallas_matmul_bn_act(x2d, w, bias, act, residual=None,
                          out_dtype=jnp.bfloat16):
    m, kdim = x2d.shape
    n = w.shape[1]
    tm = _pick_tile_m(m)
    grid = (pl.cdiv(m, tm),)
    in_specs = [
        pl.BlockSpec((tm, kdim), lambda i: (i, 0)),   # activations: tiled over M
        pl.BlockSpec((kdim, n), lambda i: (0, 0)),    # weights: resident
        pl.BlockSpec((1, n), lambda i: (0, 0)),       # BN bias
    ]
    args = [x2d, w, bias]
    if residual is None:
        kernel = functools.partial(_matmul_bn_act_kernel, act=act)
    else:
        kernel = _matmul_bn_res_kernel
        in_specs.append(pl.BlockSpec((tm, n), lambda i: (i, 0)))
        args.append(residual)
    return pl.pallas_call(
        kernel,
        out_shape=jax.ShapeDtypeStruct((m, n), out_dtype),
        grid=grid,
        in_specs=in_specs,
        out_specs=pl.BlockSpec((tm, n), lambda i: (i, 0)),
        compiler_params=pltpu.CompilerParams(
            dimension_semantics=("parallel",),
            vmem_limit_bytes=VMEM_LIMIT),
    )(*args)


def _pallas_dwconv_bn_act(x, w, bias, k):
    n, h, wdim, c = x.shape
    pad = k // 2
    return pl.pallas_call(
        functools.partial(_dwconv_bn_act_kernel, k=k, h=h, w=wdim),
        out_shape=jax.ShapeDtypeStruct((n, h, wdim, c), jnp.bfloat16),
        grid=(n,),
        in_specs=[
            pl.BlockSpec((1, h, wdim, c), lambda i: (i, 0, 0, 0)),
            pl.BlockSpec((k * k, 1, c), lambda i: (0, 0, 0)),
            pl.BlockSpec((1, 1, c), lambda i: (0, 0, 0)),
        ],
        out_specs=pl.BlockSpec((1, h, wdim, c), lambda i: (i, 0, 0, 0)),
        scratch_shapes=[pltpu.VMEM((h + 2 * pad, wdim + 2 * pad, c),
                                   jnp.float32)],
        compiler_params=pltpu.CompilerParams(
            dimension_semantics=("parallel",),
            vmem_limit_bytes=VMEM_LIMIT),
    )(x, w, bias)


def _pallas_fmix_gap(x3, w, bias, hw):
    n, _, cin = x3.shape
    cout = w.shape[1]
    ts = hw if hw <= 256 else 256
    gs = pl.cdiv(hw, ts)
    kernel = functools.partial(_fmix_gap_kernel, inv_hw=1.0 / hw, hw=hw, ts=ts,
                               mask_rows=(gs * ts != hw))
    return pl.pallas_call(
        kernel,
        out_shape=jax.ShapeDtypeStruct((n, 1, cout), jnp.float32),
        grid=(n, gs),
        in_specs=[
            pl.BlockSpec((1, ts, cin), lambda i, s: (i, s, 0)),
            pl.BlockSpec((cin, cout), lambda i, s: (0, 0)),
            pl.BlockSpec((1, cout), lambda i, s: (0, 0)),
        ],
        out_specs=pl.BlockSpec((1, 1, cout), lambda i, s: (i, 0, 0)),
        compiler_params=pltpu.CompilerParams(
            dimension_semantics=("parallel", "arbitrary"),
            vmem_limit_bytes=VMEM_LIMIT),
    )(x3, w, bias)


def _pallas_classifier(x2, w, bias):
    n = x2.shape[0]
    cout = w.shape[1]
    return pl.pallas_call(
        _classifier_kernel,
        out_shape=jax.ShapeDtypeStruct((n, cout), jnp.float32),
        in_specs=[_VMEM_ANY, _VMEM_ANY, _VMEM_ANY],
        out_specs=_VMEM_ANY,
        compiler_params=pltpu.CompilerParams(vmem_limit_bytes=VMEM_LIMIT),
    )(x2, w, bias)


# ------------------------------ conv helpers -------------------------------

def _im2col(x, k, stride, pad, kdim_pad):
    # Only used for the 3-channel stem conv (27 values / output pixel; tiny).
    n, h, w, c = x.shape
    xp = jnp.pad(x, ((0, 0), (pad, pad), (pad, pad), (0, 0)))
    oh = (h + 2 * pad - k) // stride + 1
    ow = (w + 2 * pad - k) // stride + 1
    cols = [xp[:, ky:ky + stride * oh:stride, kx:kx + stride * ow:stride, :]
            for ky in range(k) for kx in range(k)]
    extra = kdim_pad - k * k * c
    if extra > 0:                                    # pad K 27 -> 32 (aligned)
        cols.append(jnp.zeros((n, oh, ow, extra), x.dtype))
    patches = jnp.concatenate(cols, axis=-1)         # (N, oh, ow, kdim_pad)
    return patches.reshape(n * oh * ow, kdim_pad), (n, oh, ow)


def first_conv_bn_act(x, p):
    # 3x3 stride-2 stem conv + BN + ReLU6.
    patches, (n, oh, ow) = _im2col(x, p["k"], 2, p["k"] // 2, p["w"].shape[0])
    y = _pallas_matmul_bn_act(patches.astype(jnp.bfloat16),
                              p["w"], p["bias"], "relu6")
    return y.reshape(n, oh, ow, -1)


def conv1x1_bn_act(x, p, stride, act, residual=None):
    if stride > 1:
        # TODO(synk): stride-2 selection could be folded into the Pallas
        # index_map to avoid this XLA strided-slice copy (it is bf16 & 1/4
        # size on the write side, so kept simple here).
        x = x[:, ::stride, ::stride, :]
    n, h, w, c = x.shape
    x2 = x.reshape(n * h * w, c)
    r2 = None if residual is None else residual.reshape(n * h * w, -1)
    y = _pallas_matmul_bn_act(x2, p["w"], p["bias"], act, residual=r2)
    return y.reshape(n, h, w, -1)


def dwconv_bn_act(x, p):
    return _pallas_dwconv_bn_act(x, p["w"], p["bias"], p["k"])


# ------------------------------ parameter init ------------------------------

def make_divisible(v, divisor, min_value=None):
    if min_value is None:
        min_value = divisor
    new_v = max(min_value, int(v + divisor / 2) // divisor * divisor)
    if new_v < 0.9 * v:
        new_v += divisor
    return new_v


class _Keys:
    def __init__(self, seed):
        self._key = jax.random.PRNGKey(seed)

    def next(self):
        self._key, sub = jax.random.split(self._key)
        return sub


def _init_conv(keys, cin, cout, k, kdim_pad=None):
    # Eval-mode BN folded: gamma=1, beta=0, mean=0, var=1 -> scale=1/sqrt(1+eps),
    # bias=0.  The scale is folded into the weight columns so the kernel
    # epilogue is just a bias add.
    kk = k * k * cin
    kk_pad = kk if kdim_pad is None else kdim_pad
    n = k * k * cout                                   # he_fout
    w = jax.random.normal(keys.next(), (kk, cout), jnp.float32)
    w = w * math.sqrt(2.0 / n)
    w = w * (1.0 / math.sqrt(1.0 + BN_EPS))            # fold BN scale
    if kk_pad != kk:
        w = jnp.concatenate([w, jnp.zeros((kk_pad - kk, cout), jnp.float32)], 0)
    bias = jnp.zeros((1, cout), jnp.float32)
    return {"w": w.astype(jnp.bfloat16), "k": k, "bias": bias}


def _init_dwconv(keys, c, k):
    n = k * k * c                                      # he_fout (depthwise)
    w = jax.random.normal(keys.next(), (k * k, c), jnp.float32) * math.sqrt(2.0 / n)
    w = w * (1.0 / math.sqrt(1.0 + BN_EPS))            # fold BN scale
    w = w.reshape(k * k, 1, c)
    bias = jnp.zeros((1, 1, c), jnp.float32)
    return {"w": w, "k": k, "bias": bias}


def _init_mbconv(keys, cin, cout, k, expand):
    mid = cin * expand
    return {
        "expand": None if expand == 1 else _init_conv(keys, cin, mid, 1),
        "dw": _init_dwconv(keys, mid, k),
        "project": _init_conv(keys, mid, cout, 1),
    }


def _init_linear(keys, cin, cout):
    stdv = 1.0 / math.sqrt(cin)
    w = jax.random.uniform(keys.next(), (cin, cout), jnp.float32, -stdv, stdv)
    b = jnp.zeros((1, cout), jnp.float32)
    return {"w": w.astype(jnp.bfloat16), "b": b}


def build_params(seed, width_stages, n_cell_stages, stride_stages,
                 width_mult=1, classes=1000):
    keys = _Keys(seed)
    input_channel = make_divisible(32 * width_mult, 8)
    first_cell_width = make_divisible(16 * width_mult, 8)
    width_stages = [make_divisible(w * width_mult, 8) for w in width_stages]

    params = {}
    # 3x3 s2 stem: im2col K padded 27 -> 32.
    params["first_conv"] = _init_conv(keys, 3, input_channel, 3, kdim_pad=32)
    params["first_block"] = _init_mbconv(keys, input_channel, first_cell_width, 3, 1)
    input_channel = first_cell_width

    blocks = []
    for width, n_cell, s in zip(width_stages, n_cell_stages, stride_stages):
        for i in range(n_cell):
            stride = s if i == 0 else 1
            residual = (stride == 1 and input_channel == width)
            if residual:
                calib = None  # CalibrationLayer degenerates to identity
            else:
                # TODO(synk): exact CalibrationLayer definition not in source;
                # modeled as a 1x1 conv (stride) + BN + ReLU6 channel/stride adapter.
                calib = _init_conv(keys, input_channel, width, 1)
            # TODO(synk): nas.mutables.LayerChoice has no Pallas equivalent;
            # deterministically select the first candidate (3x3_MBConv3).
            mbconv = _init_mbconv(keys, width, width, 3, 3)
            blocks.append({"calib": calib, "calib_stride": stride,
                           "mbconv": mbconv, "residual": residual})
            input_channel = width
    params["blocks"] = blocks

    last_channel = make_divisible(1280 * width_mult, 8) if width_mult > 1.0 else 1280
    params["feature_mix"] = _init_conv(keys, input_channel, last_channel, 1)
    params["classifier"] = _init_linear(keys, last_channel, classes)
    return params


# --------------------------------- forward ---------------------------------

def mobilenet_forward(params, x_nchw):
    x = jnp.transpose(x_nchw, (0, 2, 3, 1)).astype(jnp.float32)  # NCHW -> NHWC

    # first_conv: 3x3 stride-2 conv + BN + ReLU6
    x = first_conv_bn_act(x, params["first_conv"])

    # first block: 3x3_MBConv1 (depthwise 3x3 + BN + ReLU6, 1x1 project + BN)
    fb = params["first_block"]
    x = dwconv_bn_act(x, fb["dw"])
    x = conv1x1_bn_act(x, fb["project"], 1, None)

    # stages: CalibrationLayer + MobileInvertedResidualBlock (first LayerChoice cand.)
    for blk in params["blocks"]:
        if blk["calib"] is not None:
            x = conv1x1_bn_act(x, blk["calib"], blk["calib_stride"], "relu6")
        mb = blk["mbconv"]
        inp = x if blk["residual"] else None
        y = conv1x1_bn_act(x, mb["expand"], 1, "relu6")
        y = dwconv_bn_act(y, mb["dw"])
        # project conv: BN (no act); residual add fused into the kernel epilogue.
        x = conv1x1_bn_act(y, mb["project"], 1, None, residual=inp)

    # feature mix (1x1 -> 1280 + BN + ReLU6) fused with global average pooling
    n, h, w, c = x.shape
    fm = params["feature_mix"]
    pooled = _pallas_fmix_gap(x.reshape(n, h * w, c), fm["w"], fm["bias"], h * w)

    # classifier on the pooled features (dropout_rate = 0)
    cls = params["classifier"]
    logits = _pallas_classifier(pooled.reshape(n, -1).astype(jnp.bfloat16),
                                cls["w"], cls["b"])
    return logits


# ----------------------------------- main -----------------------------------

if __name__ == "__main__":
    # Small but structurally faithful configuration.
    params = build_params(
        seed=0,
        width_stages=[24, 40, 80],
        n_cell_stages=[2, 2, 1],
        stride_stages=[2, 2, 1],
        width_mult=1,
        classes=1000,
    )

    x = jax.random.normal(jax.random.PRNGKey(0), (2, 3, 32, 32), jnp.float32)

    fwd = jax.jit(lambda inp: mobilenet_forward(params, inp))
    out = fwd(x)
    jax.block_until_ready(out)
    assert out.shape == (2, 1000) and out.dtype == jnp.float32
    print("KERNEL_OK")
</pallas_src>

<mosaic_0001>
module attributes {stable_mosaic.version = 11 : i64} {
  func.func @_matmul_bn_act_kernel(%arg0: i32, %arg1: memref<256x32xbf16, #tpu.memory_space<vmem>>, %arg2: memref<32x32xbf16, #tpu.memory_space<vmem>>, %arg3: memref<1x32xf32, #tpu.memory_space<vmem>>, %arg4: memref<256x32xbf16, #tpu.memory_space<vmem>>) attributes {dimension_semantics = [#tpu.dimension_semantics<parallel>], iteration_bounds = array<i64: 2>, scalar_prefetch = 0 : i64, scratch_operands = 0 : i64, tpu.core_type = #tpu.core_type<tc>, window_params = [{transform_indices = @transform_0, window_bounds = array<i64: 256, 32>}, {pipeline_mode = #tpu.pipeline_mode<synchronous>, transform_indices = @transform_1, window_bounds = array<i64: 32, 32>}, {pipeline_mode = #tpu.pipeline_mode<synchronous>, transform_indices = @transform_2, window_bounds = array<i64: 1, 32>}, {transform_indices = @transform_3, window_bounds = array<i64: 256, 32>}]} {
    %c0 = arith.constant 0 : index
    %c0_0 = arith.constant 0 : index
    %0 = vector.load %arg1[%c0, %c0_0] : memref<256x32xbf16, #tpu.memory_space<vmem>>, vector<256x32xbf16>
    %c0_1 = arith.constant 0 : index
    %c0_2 = arith.constant 0 : index
    %1 = vector.load %arg2[%c0_1, %c0_2] : memref<32x32xbf16, #tpu.memory_space<vmem>>, vector<32x32xbf16>
    %cst = arith.constant dense<0.000000e+00> : vector<256x32xf32>
    %2 = tpu.matmul %0, %1, %cst {dimension_numbers = #tpu.dot_dimension_numbers<[1], [0], [0], [1], [0, 0, 1, 1], [], []>} : vector<256x32xbf16>, vector<32x32xbf16>, vector<256x32xf32> -> vector<256x32xf32>
    %c0_3 = arith.constant 0 : index
    %c0_4 = arith.constant 0 : index
    %3 = vector.load %arg3[%c0_3, %c0_4] : memref<1x32xf32, #tpu.memory_space<vmem>>, vector<1x32xf32>
    %4 = vector.broadcast %3 : vector<1x32xf32> to vector<256x32xf32>
    %5 = arith.addf %2, %4 : vector<256x32xf32>
    %cst_5 = arith.constant 0.000000e+00 : f32
    %6 = vector.broadcast %cst_5 : f32 to vector<256x32xf32>
    %7 = arith.maximumf %5, %6 : vector<256x32xf32>
    %cst_6 = arith.constant 6.000000e+00 : f32
    %8 = vector.broadcast %cst_6 : f32 to vector<256x32xf32>
    %9 = arith.minimumf %7, %8 : vector<256x32xf32>
    %10 = arith.truncf %9 : vector<256x32xf32> to vector<256x32xbf16>
    %c0_7 = arith.constant 0 : index
    %c0_8 = arith.constant 0 : index
    %11 = vector.load %arg4[%c0_7, %c0_8] : memref<256x32xbf16, #tpu.memory_space<vmem>>, vector<256x32xbf16>
    tpu.vector_store %arg4[%c0_7, %c0_8], %10 {strides = array<i32>} : memref<256x32xbf16, #tpu.memory_space<vmem>>, vector<256x32xbf16>,
    return
  }
  func.func @transform_0(%arg0: i32) -> (i32, i32) {
    %c0_i32 = arith.constant 0 : i32
    %c0_i32_0 = arith.constant 0 : i32
    return %arg0, %c0_i32 : i32, i32
  }
  func.func @transform_1(%arg0: i32) -> (i32, i32) {
    %c0_i32 = arith.constant 0 : i32
    %c0_i32_0 = arith.constant 0 : i32
    %c0_i32_1 = arith.constant 0 : i32
    return %c0_i32, %c0_i32_0 : i32, i32
  }
  func.func @transform_2(%arg0: i32) -> (i32, i32) {
    %c0_i32 = arith.constant 0 : i32
    %c0_i32_0 = arith.constant 0 : i32
    %c0_i32_1 = arith.constant 0 : i32
    return %c0_i32, %c0_i32_0 : i32, i32
  }
  func.func @transform_3(%arg0: i32) -> (i32, i32) {
    %c0_i32 = arith.constant 0 : i32
    %c0_i32_0 = arith.constant 0 : i32
    return %arg0, %c0_i32 : i32, i32
  }
}

module attributes {stable_mosaic.version = 11 : i64} {
  func.func @_matmul_bn_act_kernel(%arg0: i32, %arg1: memref<256x32xbf16, #tpu.memory_space<vmem>>, %arg2: memref<32x16xbf16, #tpu.memory_space<vmem>>, %arg3: memref<1x16xf32, #tpu.memory_space<vmem>>, %arg4: memref<256x16xbf16, #tpu.memory_space<vmem>>) attributes {dimension_semantics = [#tpu.dimension_semantics<parallel>], iteration_bounds = array<i64: 2>, scalar_prefetch = 0 : i64, scratch_operands = 0 : i64, tpu.core_type = #tpu.core_type<tc>, window_params = [{transform_indices = @transform_0, window_bounds = array<i64: 256, 32>}, {pipeline_mode = #tpu.pipeline_mode<synchronous>, transform_indices = @transform_1, window_bounds = array<i64: 32, 16>}, {pipeline_mode = #tpu.pipeline_mode<synchronous>, transform_indices = @transform_2, window_bounds = array<i64: 1, 16>}, {transform_indices = @transform_3, window_bounds = array<i64: 256, 16>}]} {
    %c0 = arith.constant 0 : index
    %c0_0 = arith.constant 0 : index
    %0 = vector.load %arg1[%c0, %c0_0] : memref<256x32xbf16, #tpu.memory_space<vmem>>, vector<256x32xbf16>
    %c0_1 = arith.constant 0 : index
    %c0_2 = arith.constant 0 : index
    %1 = vector.load %arg2[%c0_1, %c0_2] : memref<32x16xbf16, #tpu.memory_space<vmem>>, vector<32x16xbf16>
    %cst = arith.constant dense<0.000000e+00> : vector<256x16xf32>
    %2 = tpu.matmul %0, %1, %cst {dimension_numbers = #tpu.dot_dimension_numbers<[1], [0], [0], [1], [0, 0, 1, 1], [], []>} : vector<256x32xbf16>, vector<32x16xbf16>, vector<256x16xf32> -> vector<256x16xf32>
    %c0_3 = arith.constant 0 : index
    %c0_4 = arith.constant 0 : index
    %3 = vector.load %arg3[%c0_3, %c0_4] : memref<1x16xf32, #tpu.memory_space<vmem>>, vector<1x16xf32>
    %4 = vector.broadcast %3 : vector<1x16xf32> to vector<256x16xf32>
    %5 = arith.addf %2, %4 : vector<256x16xf32>
    %6 = arith.truncf %5 : vector<256x16xf32> to vector<256x16xbf16>
    %c0_5 = arith.constant 0 : index
    %c0_6 = arith.constant 0 : index
    %7 = vector.load %arg4[%c0_5, %c0_6] : memref<256x16xbf16, #tpu.memory_space<vmem>>, vector<256x16xbf16>
    tpu.vector_store %arg4[%c0_5, %c0_6], %6 {strides = array<i32>} : memref<256x16xbf16, #tpu.memory_space<vmem>>, vector<256x16xbf16>,
    return
  }
  func.func @transform_0(%arg0: i32) -> (i32, i32) {
    %c0_i32 = arith.constant 0 : i32
    %c0_i32_0 = arith.constant 0 : i32
    return %arg0, %c0_i32 : i32, i32
  }
  func.func @transform_1(%arg0: i32) -> (i32, i32) {
    %c0_i32 = arith.constant 0 : i32
    %c0_i32_0 = arith.constant 0 : i32
    %c0_i32_1 = arith.constant 0 : i32
    return %c0_i32, %c0_i32_0 : i32, i32
  }
  func.func @transform_2(%arg0: i32) -> (i32, i32) {
    %c0_i32 = arith.constant 0 : i32
    %c0_i32_0 = arith.constant 0 : i32
    %c0_i32_1 = arith.constant 0 : i32
    return %c0_i32, %c0_i32_0 : i32, i32
  }
  func.func @transform_3(%arg0: i32) -> (i32, i32) {
    %c0_i32 = arith.constant 0 : i32
    %c0_i32_0 = arith.constant 0 : i32
    return %arg0, %c0_i32 : i32, i32
  }
}

module attributes {stable_mosaic.version = 11 : i64} {
  func.func @_dwconv_bn_act_kernel(%arg0: i32, %arg1: memref<1x16x16x32xbf16, #tpu.memory_space<vmem>>, %arg2: memref<9x1x32xf32, #tpu.memory_space<vmem>>, %arg3: memref<1x1x32xf32, #tpu.memory_space<vmem>>, %arg4: memref<1x16x16x32xbf16, #tpu.memory_space<vmem>>, %arg5: memref<18x18x32xf32, #tpu.memory_space<vmem>>) attributes {dimension_semantics = [#tpu.dimension_semantics<parallel>], iteration_bounds = array<i64: 2>, scalar_prefetch = 0 : i64, scratch_operands = 1 : i64, tpu.core_type = #tpu.core_type<tc>, window_params = [{transform_indices = @transform_0, window_bounds = array<i64: 1, 16, 16, 32>}, {pipeline_mode = #tpu.pipeline_mode<synchronous>, transform_indices = @transform_1, window_bounds = array<i64: 9, 1, 32>}, {pipeline_mode = #tpu.pipeline_mode<synchronous>, transform_indices = @transform_2, window_bounds = array<i64: 1, 1, 32>}, {transform_indices = @transform_3, window_bounds = array<i64: 1, 16, 16, 32>}]} {
    %cst = arith.constant 0.000000e+00 : f32
    %0 = vector.broadcast %cst : f32 to vector<1x18x32xf32>
    %cst_0 = arith.constant 0.000000e+00 : f32
    %1 = vector.broadcast %cst_0 : f32 to vector<18x1x32xf32>
    %c0 = arith.constant 0 : index
    %c0_1 = arith.constant 0 : index
    %c0_2 = arith.constant 0 : index
    %2 = vector.load %arg5[%c0, %c0_1, %c0_2] : memref<18x18x32xf32, #tpu.memory_space<vmem>>, vector<1x18x32xf32>
    tpu.vector_store %arg5[%c0, %c0_1, %c0_2], %0 {strides = array<i32>} : memref<18x18x32xf32, #tpu.memory_space<vmem>>, vector<1x18x32xf32>,
    %c17 = arith.constant 17 : index
    %c0_3 = arith.constant 0 : index
    %c0_4 = arith.constant 0 : index
    %3 = vector.load %arg5[%c17, %c0_3, %c0_4] : memref<18x18x32xf32, #tpu.memory_space<vmem>>, vector<1x18x32xf32>
    tpu.vector_store %arg5[%c17, %c0_3, %c0_4], %0 {strides = array<i32>} : memref<18x18x32xf32, #tpu.memory_space<vmem>>, vector<1x18x32xf32>,
    %c0_5 = arith.constant 0 : index
    %c0_6 = arith.constant 0 : index
    %c0_7 = arith.constant 0 : index
    %4 = vector.load %arg5[%c0_5, %c0_6, %c0_7] : memref<18x18x32xf32, #tpu.memory_space<vmem>>, vector<18x1x32xf32>
    tpu.vector_store %arg5[%c0_5, %c0_6, %c0_7], %1 {strides = array<i32>} : memref<18x18x32xf32, #tpu.memory_space<vmem>>, vector<18x1x32xf32>,
    %c0_8 = arith.constant 0 : index
    %c17_9 = arith.constant 17 : index
    %c0_10 = arith.constant 0 : index
    %5 = vector.load %arg5[%c0_8, %c17_9, %c0_10] : memref<18x18x32xf32, #tpu.memory_space<vmem>>, vector<18x1x32xf32>
    tpu.vector_store %arg5[%c0_8, %c17_9, %c0_10], %1 {strides = array<i32>} : memref<18x18x32xf32, #tpu.memory_space<vmem>>, vector<18x1x32xf32>,
    %c0_11 = arith.constant 0 : index
    %c0_12 = arith.constant 0 : index
    %c0_13 = arith.constant 0 : index
    %c0_14 = arith.constant 0 : index
    %6 = vector.load %arg1[%c0_11, %c0_12, %c0_13, %c0_14] : memref<1x16x16x32xbf16, #tpu.memory_space<vmem>>, vector<1x16x16x32xbf16>
    %7 = vector.shape_cast %6 : vector<1x16x16x32xbf16> to vector<16x16x32xbf16>
    %8 = arith.extf %7 : vector<16x16x32xbf16> to vector<16x16x32xf32>
    %c1 = arith.constant 1 : index
    %c1_15 = arith.constant 1 : index
    %c0_16 = arith.constant 0 : index
    %9 = vector.load %arg5[%c1, %c1_15, %c0_16] : memref<18x18x32xf32, #tpu.memory_space<vmem>>, vector<16x16x32xf32>
    tpu.vector_store %arg5[%c1, %c1_15, %c0_16], %8 {strides = array<i32>} : memref<18x18x32xf32, #tpu.memory_space<vmem>>, vector<16x16x32xf32>,
    %c0_17 = arith.constant 0 : index
    %c0_18 = arith.constant 0 : index
    %c0_19 = arith.constant 0 : index
    %10 = vector.load %arg5[%c0_17, %c0_18, %c0_19] : memref<18x18x32xf32, #tpu.memory_space<vmem>>, vector<16x16x32xf32>
    %c0_20 = arith.constant 0 : index
    %c0_21 = arith.constant 0 : index
    %c0_22 = arith.constant 0 : index
    %11 = vector.load %arg2[%c0_20, %c0_21, %c0_22] : memref<9x1x32xf32, #tpu.memory_space<vmem>>, vector<1x1x32xf32>
    %12 = vector.shape_cast %11 : vector<1x1x32xf32> to vector<1x32xf32>
    %13 = vector.shape_cast %12 : vector<1x32xf32> to vector<1x1x32xf32>
    %14 = vector.broadcast %13 : vector<1x1x32xf32> to vector<16x16x32xf32>
    %15 = arith.mulf %10, %14 : vector<16x16x32xf32>
    %c0_23 = arith.constant 0 : index
    %c1_24 = arith.constant 1 : index
    %c0_25 = arith.constant 0 : index
    %16 = vector.load %arg5[%c0_23, %c1_24, %c0_25] : memref<18x18x32xf32, #tpu.memory_space<vmem>>, vector<16x16x32xf32>
    %c1_26 = arith.constant 1 : index
    %c0_27 = arith.constant 0 : index
    %c0_28 = arith.constant 0 : index
    %17 = vector.load %arg2[%c1_26, %c0_27, %c0_28] : memref<9x1x32xf32, #tpu.memory_space<vmem>>, vector<1x1x32xf32>
    %18 = vector.shape_cast %17 : vector<1x1x32xf32> to vector<1x32xf32>
    %19 = vector.shape_cast %18 : vector<1x32xf32> to vector<1x1x32xf32>
    %20 = vector.broadcast %19 : vector<1x1x32xf32> to vector<16x16x32xf32>
    %21 = arith.mulf %16, %20 : vector<16x16x32xf32>
    %22 = arith.addf %15, %21 : vector<16x16x32xf32>
    %c0_29 = arith.constant 0 : index
    %c2 = arith.constant 2 : index
    %c0_30 = arith.constant 0 : index
    %23 = vector.load %arg5[%c0_29, %c2, %c0_30] : memref<18x18x32xf32, #tpu.memory_space<vmem>>, vector<16x16x32xf32>
    %c2_31 = arith.constant 2 : index
    %c0_32 = arith.constant 0 : index
    %c0_33 = arith.constant 0 : index
    %24 = vector.load %arg2[%c2_31, %c0_32, %c0_33] : memref<9x1x32xf32, #tpu.memory_space<vmem>>, vector<1x1x32xf32>
    %25 = vector.shape_cast %24 : vector<1x1x32xf32> to vector<1x32xf32>
    %26 = vector.shape_cast %25 : vector<1x32xf32> to vector<1x1x32xf32>
    %27 = vector.broadcast %26 : vector<1x1x32xf32> to vector<16x16x32xf32>
    %28 = arith.mulf %23, %27 : vector<16x16x32xf32>
    %29 = arith.addf %22, %28 : vector<16x16x32xf32>
    %c1_34 = arith.constant 1 : index
    %c0_35 = arith.constant 0 : index
    %c0_36 = arith.constant 0 : index
    %30 = vector.load %arg5[%c1_34, %c0_35, %c0_36] : memref<18x18x32xf32, #tpu.memory_space<vmem>>, vector<16x16x32xf32>
    %c3 = arith.constant 3 : index
    %c0_37 = arith.constant 0 : index
    %c0_38 = arith.constant 0 : index
    %31 = vector.load %arg2[%c3, %c0_37, %c0_38] : memref<9x1x32xf32, #tpu.memory_space<vmem>>, vector<1x1x32xf32>
    %32 = vector.shape_cast %31 : vector<1x1x32xf32> to vector<1x32xf32>
    %33 = vector.shape_cast %32 : vector<1x32xf32> to vector<1x1x32xf32>
    %34 = vector.broadcast %33 : vector<1x1x32xf32> to vector<16x16x32xf32>
    %35 = arith.mulf %30, %34 : vector<16x16x32xf32>
    %36 = arith.addf %29, %35 : vector<16x16x32xf32>
    %c1_39 = arith.constant 1 : index
    %c1_40 = arith.constant 1 : index
    %c0_41 = arith.constant 0 : index
    %37 = vector.load %arg5[%c1_39, %c1_40, %c0_41] : memref<18x18x32xf32, #tpu.memory_space<vmem>>, vector<16x16x32xf32>
    %c4 = arith.constant 4 : index
    %c0_42 = arith.constant 0 : index
    %c0_43 = arith.constant 0 : index
    %38 = vector.load %arg2[%c4, %c0_42, %c0_43] : memref<9x1x32xf32, #tpu.memory_space<vmem>>, vector<1x1x32xf32>
    %39 = vector.shape_cast %38 : vector<1x1x32xf32> to vector<1x32xf32>
    %40 = vector.shape_cast %39 : vector<1x32xf32> to vector<1x1x32xf32>
    %41 = vector.broadcast %40 : vector<1x1x32xf32> to vector<16x16x32xf32>
    %42 = arith.mulf %37, %41 : vector<16x16x32xf32>
    %43 = arith.addf %36, %42 : vector<16x16x32xf32>
    %c1_44 = arith.constant 1 : index
    %c2_45 = arith.constant 2 : index
    %c0_46 = arith.constant 0 : index
    %44 = vector.load %arg5[%c1_44, %c2_45, %c0_46] : memref<18x18x32xf32, #tpu.memory_space<vmem>>, vector<16x16x32xf32>
    %c5 = arith.constant 5 : index
    %c0_47 = arith.constant 0 : index
    %c0_48 = arith.constant 0 : index
    %45 = vector.load %arg2[%c5, %c0_47, %c0_48] : memref<9x1x32xf32, #tpu.memory_space<vmem>>, vector<1x1x32xf32>
    %46 = vector.shape_cast %45 : vector<1x1x32xf32> to vector<1x32xf32>
    %47 = vector.shape_cast %46 : vector<1x32xf32> to vector<1x1x32xf32>
    %48 = vector.broadcast %47 : vector<1x1x32xf32> to vector<16x16x32xf32>
    %49 = arith.mulf %44, %48 : vector<16x16x32xf32>
    %50 = arith.addf %43, %49 : vector<16x16x32xf32>
    %c2_49 = arith.constant 2 : index
    %c0_50 = arith.constant 0 : index
    %c0_51 = arith.constant 0 : index
    %51 = vector.load %arg5[%c2_49, %c0_50, %c0_51] : memref<18x18x32xf32, #tpu.memory_space<vmem>>, vector<16x16x32xf32>
    %c6 = arith.constant 6 : index
    %c0_52 = arith.constant 0 : index
    %c0_53 = arith.constant 0 : index
    %52 = vector.load %arg2[%c6, %c0_52, %c0_53] : memref<9x1x32xf32, #tpu.memory_space<vmem>>, vector<1x1x32xf32>
    %53 = vector.shape_cast %52 : vector<1x1x32xf32> to vector<1x32xf32>
    %54 = vector.shape_cast %53 : vector<1x32xf32> to vector<1x1x32xf32>
    %55 = vector.broadcast %54 : vector<1x1x32xf32> to vector<16x16x32xf32>
    %56 = arith.mulf %51, %55 : vector<16x16x32xf32>
    %57 = arith.addf %50, %56 : vector<16x16x32xf32>
    %c2_54 = arith.constant 2 : index
    %c1_55 = arith.constant 1 : index
    %c0_56 = arith.constant 0 : index
    %58 = vector.load %arg5[%c2_54, %c1_55, %c0_56] : memref<18x18x32xf32, #tpu.memory_space<vmem>>, vector<16x16x32xf32>
    %c7 = arith.constant 7 : index
    %c0_57 = arith.constant 0 : index
    %c0_58 = arith.constant 0 : index
    %59 = vector.load %arg2[%c7, %c0_57, %c0_58] : memref<9x1x32xf32, #tpu.memory_space<vmem>>, vector<1x1x32xf32>
    %60 = vector.shape_cast %59 : vector<1x1x32xf32> to vector<1x32xf32>
    %61 = vector.shape_cast %60 : vector<1x32xf32> to vector<1x1x32xf32>
    %62 = vector.broadcast %61 : vector<1x1x32xf32> to vector<16x16x32xf32>
    %63 = arith.mulf %58, %62 : vector<16x16x32xf32>
    %64 = arith.addf %57, %63 : vector<16x16x32xf32>
    %c2_59 = arith.constant 2 : index
    %c2_60 = arith.constant 2 : index
    %c0_61 = arith.constant 0 : index
    %65 = vector.load %arg5[%c2_59, %c2_60, %c0_61] : memref<18x18x32xf32, #tpu.memory_space<vmem>>, vector<16x16x32xf32>
    %c8 = arith.constant 8 : index
    %c0_62 = arith.constant 0 : index
    %c0_63 = arith.constant 0 : index
    %66 = vector.load %arg2[%c8, %c0_62, %c0_63] : memref<9x1x32xf32, #tpu.memory_space<vmem>>, vector<1x1x32xf32>
    %67 = vector.shape_cast %66 : vector<1x1x32xf32> to vector<1x32xf32>
    %68 = vector.shape_cast %67 : vector<1x32xf32> to vector<1x1x32xf32>
    %69 = vector.broadcast %68 : vector<1x1x32xf32> to vector<16x16x32xf32>
    %70 = arith.mulf %65, %69 : vector<16x16x32xf32>
    %71 = arith.addf %64, %70 : vector<16x16x32xf32>
    %c0_64 = arith.constant 0 : index
    %c0_65 = arith.constant 0 : index
    %c0_66 = arith.constant 0 : index
    %72 = vector.load %arg3[%c0_64, %c0_65, %c0_66] : memref<1x1x32xf32, #tpu.memory_space<vmem>>, vector<1x1x32xf32>
    %73 = vector.broadcast %72 : vector<1x1x32xf32> to vector<16x16x32xf32>
    %74 = arith.addf %71, %73 : vector<16x16x32xf32>
    %cst_67 = arith.constant 0.000000e+00 : f32
    %75 = vector.broadcast %cst_67 : f32 to vector<16x16x32xf32>
    %76 = arith.maximumf %74, %75 : vector<16x16x32xf32>
    %cst_68 = arith.constant 6.000000e+00 : f32
    %77 = vector.broadcast %cst_68 : f32 to vector<16x16x32xf32>
    %78 = arith.minimumf %76, %77 : vector<16x16x32xf32>
    %79 = arith.truncf %78 : vector<16x16x32xf32> to vector<16x16x32xbf16>
    %c0_69 = arith.constant 0 : index
    %c0_70 = arith.constant 0 : index
    %c0_71 = arith.constant 0 : index
    %c0_72 = arith.constant 0 : index
    %80 = vector.load %arg4[%c0_69, %c0_70, %c0_71, %c0_72] : memref<1x16x16x32xbf16, #tpu.memory_space<vmem>>, vector<1x16x16x32xbf16>
    %81 = vector.shape_cast %80 : vector<1x16x16x32xbf16> to vector<16x16x32xbf16>
    %82 = vector.shape_cast %79 : vector<16x16x32xbf16> to vector<1x16x16x32xbf16>
    tpu.vector_store %arg4[%c0_69, %c0_70, %c0_71, %c0_72], %82 {strides = array<i32>} : memref<1x16x16x32xbf16, #tpu.memory_space<vmem>>, vector<1x16x16x32xbf16>,
    return
  }
  func.func @transform_0(%arg0: i32) -> (i32, i32, i32, i32) {
    %c0_i32 = arith.constant 0 : i32
    %c0_i32_0 = arith.constant 0 : i32
    %c0_i32_1 = arith.constant 0 : i32
    %c0_i32_2 = arith.constant 0 : i32
    return %arg0, %c0_i32, %c0_i32_0, %c0_i32_1 : i32, i32, i32, i32
  }
  func.func @transform_1(%arg0: i32) -> (i32, i32, i32) {
    %c0_i32 = arith.constant 0 : i32
    %c0_i32_0 = arith.constant 0 : i32
    %c0_i32_1 = arith.constant 0 : i32
    %c0_i32_2 = arith.constant 0 : i32
    return %c0_i32, %c0_i32_0, %c0_i32_1 : i32, i32, i32
  }
  func.func @transform_2(%arg0: i32) -> (i32, i32, i32) {
    %c0_i32 = arith.constant 0 : i32
    %c0_i32_0 = arith.constant 0 : i32
    %c0_i32_1 = arith.constant 0 : i32
    %c0_i32_2 = arith.constant 0 : i32
    return %c0_i32, %c0_i32_0, %c0_i32_1 : i32, i32, i32
  }
  func.func @transform_3(%arg0: i32) -> (i32, i32, i32, i32) {
    %c0_i32 = arith.constant 0 : i32
    %c0_i32_0 = arith.constant 0 : i32
    %c0_i32_1 = arith.constant 0 : i32
    %c0_i32_2 = arith.constant 0 : i32
    return %arg0, %c0_i32, %c0_i32_0, %c0_i32_1 : i32, i32, i32, i32
  }
}

module attributes {stable_mosaic.version = 11 : i64} {
  func.func @_matmul_bn_act_kernel(%arg0: i32, %arg1: memref<64x16xbf16, #tpu.memory_space<vmem>>, %arg2: memref<16x24xbf16, #tpu.memory_space<vmem>>, %arg3: memref<1x24xf32, #tpu.memory_space<vmem>>, %arg4: memref<64x24xbf16, #tpu.memory_space<vmem>>) attributes {dimension_semantics = [#tpu.dimension_semantics<parallel>], iteration_bounds = array<i64: 2>, scalar_prefetch = 0 : i64, scratch_operands = 0 : i64, tpu.core_type = #tpu.core_type<tc>, window_params = [{transform_indices = @transform_0, window_bounds = array<i64: 64, 16>}, {pipeline_mode = #tpu.pipeline_mode<synchronous>, transform_indices = @transform_1, window_bounds = array<i64: 16, 24>}, {pipeline_mode = #tpu.pipeline_mode<synchronous>, transform_indices = @transform_2, window_bounds = array<i64: 1, 24>}, {transform_indices = @transform_3, window_bounds = array<i64: 64, 24>}]} {
    %c0 = arith.constant 0 : index
    %c0_0 = arith.constant 0 : index
    %0 = vector.load %arg1[%c0, %c0_0] : memref<64x16xbf16, #tpu.memory_space<vmem>>, vector<64x16xbf16>
    %c0_1 = arith.constant 0 : index
    %c0_2 = arith.constant 0 : index
    %1 = vector.load %arg2[%c0_1, %c0_2] : memref<16x24xbf16, #tpu.memory_space<vmem>>, vector<16x24xbf16>
    %cst = arith.constant dense<0.000000e+00> : vector<64x24xf32>
    %2 = tpu.matmul %0, %1, %cst {dimension_numbers = #tpu.dot_dimension_numbers<[1], [0], [0], [1], [0, 0, 1, 1], [], []>} : vector<64x16xbf16>, vector<16x24xbf16>, vector<64x24xf32> -> vector<64x24xf32>
    %c0_3 = arith.constant 0 : index
    %c0_4 = arith.constant 0 : index
    %3 = vector.load %arg3[%c0_3, %c0_4] : memref<1x24xf32, #tpu.memory_space<vmem>>, vector<1x24xf32>
    %4 = vector.broadcast %3 : vector<1x24xf32> to vector<64x24xf32>
    %5 = arith.addf %2, %4 : vector<64x24xf32>
    %cst_5 = arith.constant 0.000000e+00 : f32
    %6 = vector.broadcast %cst_5 : f32 to vector<64x24xf32>
    %7 = arith.maximumf %5, %6 : vector<64x24xf32>
    %cst_6 = arith.constant 6.000000e+00 : f32
    %8 = vector.broadcast %cst_6 : f32 to vector<64x24xf32>
    %9 = arith.minimumf %7, %8 : vector<64x24xf32>
    %10 = arith.truncf %9 : vector<64x24xf32> to vector<64x24xbf16>
    %c0_7 = arith.constant 0 : index
    %c0_8 = arith.constant 0 : index
    %11 = vector.load %arg4[%c0_7, %c0_8] : memref<64x24xbf16, #tpu.memory_space<vmem>>, vector<64x24xbf16>
    tpu.vector_store %arg4[%c0_7, %c0_8], %10 {strides = array<i32>} : memref<64x24xbf16, #tpu.memory_space<vmem>>, vector<64x24xbf16>,
    return
  }
  func.func @transform_0(%arg0: i32) -> (i32, i32) {
    %c0_i32 = arith.constant 0 : i32
    %c0_i32_0 = arith.constant 0 : i32
    return %arg0, %c0_i32 : i32, i32
  }
  func.func @transform_1(%arg0: i32) -> (i32, i32) {
    %c0_i32 = arith.constant 0 : i32
    %c0_i32_0 = arith.constant 0 : i32
    %c0_i32_1 = arith.constant 0 : i32
    return %c0_i32, %c0_i32_0 : i32, i32
  }
  func.func @transform_2(%arg0: i32) -> (i32, i32) {
    %c0_i32 = arith.constant 0 : i32
    %c0_i32_0 = arith.constant 0 : i32
    %c0_i32_1 = arith.constant 0 : i32
    return %c0_i32, %c0_i32_0 : i32, i32
  }
  func.func @transform_3(%arg0: i32) -> (i32, i32) {
    %c0_i32 = arith.constant 0 : i32
    %c0_i32_0 = arith.constant 0 : i32
    return %arg0, %c0_i32 : i32, i32
  }
}

module attributes {stable_mosaic.version = 11 : i64} {
  func.func @_matmul_bn_act_kernel(%arg0: i32, %arg1: memref<64x24xbf16, #tpu.memory_space<vmem>>, %arg2: memref<24x72xbf16, #tpu.memory_space<vmem>>, %arg3: memref<1x72xf32, #tpu.memory_space<vmem>>, %arg4: memref<64x72xbf16, #tpu.memory_space<vmem>>) attributes {dimension_semantics = [#tpu.dimension_semantics<parallel>], iteration_bounds = array<i64: 2>, scalar_prefetch = 0 : i64, scratch_operands = 0 : i64, tpu.core_type = #tpu.core_type<tc>, window_params = [{transform_indices = @transform_0, window_bounds = array<i64: 64, 24>}, {pipeline_mode = #tpu.pipeline_mode<synchronous>, transform_indices = @transform_1, window_bounds = array<i64: 24, 72>}, {pipeline_mode = #tpu.pipeline_mode<synchronous>, transform_indices = @transform_2, window_bounds = array<i64: 1, 72>}, {transform_indices = @transform_3, window_bounds = array<i64: 64, 72>}]} {
    %c0 = arith.constant 0 : index
    %c0_0 = arith.constant 0 : index
    %0 = vector.load %arg1[%c0, %c0_0] : memref<64x24xbf16, #tpu.memory_space<vmem>>, vector<64x24xbf16>
    %c0_1 = arith.constant 0 : index
    %c0_2 = arith.constant 0 : index
    %1 = vector.load %arg2[%c0_1, %c0_2] : memref<24x72xbf16, #tpu.memory_space<vmem>>, vector<24x72xbf16>
    %cst = arith.constant dense<0.000000e+00> : vector<64x72xf32>
    %2 = tpu.matmul %0, %1, %cst {dimension_numbers = #tpu.dot_dimension_numbers<[1], [0], [0], [1], [0, 0, 1, 1], [], []>} : vector<64x24xbf16>, vector<24x72xbf16>, vector<64x72xf32> -> vector<64x72xf32>
    %c0_3 = arith.constant 0 : index
    %c0_4 = arith.constant 0 : index
    %3 = vector.load %arg3[%c0_3, %c0_4] : memref<1x72xf32, #tpu.memory_space<vmem>>, vector<1x72xf32>
    %4 = vector.broadcast %3 : vector<1x72xf32> to vector<64x72xf32>
    %5 = arith.addf %2, %4 : vector<64x72xf32>
    %cst_5 = arith.constant 0.000000e+00 : f32
    %6 = vector.broadcast %cst_5 : f32 to vector<64x72xf32>
    %7 = arith.maximumf %5, %6 : vector<64x72xf32>
    %cst_6 = arith.constant 6.000000e+00 : f32
    %8 = vector.broadcast %cst_6 : f32 to vector<64x72xf32>
    %9 = arith.minimumf %7, %8 : vector<64x72xf32>
    %10 = arith.truncf %9 : vector<64x72xf32> to vector<64x72xbf16>
    %c0_7 = arith.constant 0 : index
    %c0_8 = arith.constant 0 : index
    %11 = vector.load %arg4[%c0_7, %c0_8] : memref<64x72xbf16, #tpu.memory_space<vmem>>, vector<64x72xbf16>
    tpu.vector_store %arg4[%c0_7, %c0_8], %10 {strides = array<i32>} : memref<64x72xbf16, #tpu.memory_space<vmem>>, vector<64x72xbf16>,
    return
  }
  func.func @transform_0(%arg0: i32) -> (i32, i32) {
    %c0_i32 = arith.constant 0 : i32
    %c0_i32_0 = arith.constant 0 : i32
    return %arg0, %c0_i32 : i32, i32
  }
  func.func @transform_1(%arg0: i32) -> (i32, i32) {
    %c0_i32 = arith.constant 0 : i32
    %c0_i32_0 = arith.constant 0 : i32
    %c0_i32_1 = arith.constant 0 : i32
    return %c0_i32, %c0_i32_0 : i32, i32
  }
  func.func @transform_2(%arg0: i32) -> (i32, i32) {
    %c0_i32 = arith.constant 0 : i32
    %c0_i32_0 = arith.constant 0 : i32
    %c0_i32_1 = arith.constant 0 : i32
    return %c0_i32, %c0_i32_0 : i32, i32
  }
  func.func @transform_3(%arg0: i32) -> (i32, i32) {
    %c0_i32 = arith.constant 0 : i32
    %c0_i32_0 = arith.constant 0 : i32
    return %arg0, %c0_i32 : i32, i32
  }
}

module attributes {stable_mosaic.version = 11 : i64} {
  func.func @_dwconv_bn_act_kernel(%arg0: i32, %arg1: memref<1x8x8x72xbf16, #tpu.memory_space<vmem>>, %arg2: memref<9x1x72xf32, #tpu.memory_space<vmem>>, %arg3: memref<1x1x72xf32, #tpu.memory_space<vmem>>, %arg4: memref<1x8x8x72xbf16, #tpu.memory_space<vmem>>, %arg5: memref<10x10x72xf32, #tpu.memory_space<vmem>>) attributes {dimension_semantics = [#tpu.dimension_semantics<parallel>], iteration_bounds = array<i64: 2>, scalar_prefetch = 0 : i64, scratch_operands = 1 : i64, tpu.core_type = #tpu.core_type<tc>, window_params = [{transform_indices = @transform_0, window_bounds = array<i64: 1, 8, 8, 72>}, {pipeline_mode = #tpu.pipeline_mode<synchronous>, transform_indices = @transform_1, window_bounds = array<i64: 9, 1, 72>}, {pipeline_mode = #tpu.pipeline_mode<synchronous>, transform_indices = @transform_2, window_bounds = array<i64: 1, 1, 72>}, {transform_indices = @transform_3, window_bounds = array<i64: 1, 8, 8, 72>}]} {
    %cst = arith.constant 0.000000e+00 : f32
    %0 = vector.broadcast %cst : f32 to vector<1x10x72xf32>
    %cst_0 = arith.constant 0.000000e+00 : f32
    %1 = vector.broadcast %cst_0 : f32 to vector<10x1x72xf32>
    %c0 = arith.constant 0 : index
    %c0_1 = arith.constant 0 : index
    %c0_2 = arith.constant 0 : index
    %2 = vector.load %arg5[%c0, %c0_1, %c0_2] : memref<10x10x72xf32, #tpu.memory_space<vmem>>, vector<1x10x72xf32>
    tpu.vector_store %arg5[%c0, %c0_1, %c0_2], %0 {strides = array<i32>} : memref<10x10x72xf32, #tpu.memory_space<vmem>>, vector<1x10x72xf32>,
    %c9 = arith.constant 9 : index
    %c0_3 = arith.constant 0 : index
    %c0_4 = arith.constant 0 : index
    %3 = vector.load %arg5[%c9, %c0_3, %c0_4] : memref<10x10x72xf32, #tpu.memory_space<vmem>>, vector<1x10x72xf32>
    tpu.vector_store %arg5[%c9, %c0_3, %c0_4], %0 {strides = array<i32>} : memref<10x10x72xf32, #tpu.memory_space<vmem>>, vector<1x10x72xf32>,
    %c0_5 = arith.constant 0 : index
    %c0_6 = arith.constant 0 : index
    %c0_7 = arith.constant 0 : index
    %4 = vector.load %arg5[%c0_5, %c0_6, %c0_7] : memref<10x10x72xf32, #tpu.memory_space<vmem>>, vector<10x1x72xf32>
    tpu.vector_store %arg5[%c0_5, %c0_6, %c0_7], %1 {strides = array<i32>} : memref<10x10x72xf32, #tpu.memory_space<vmem>>, vector<10x1x72xf32>,
    %c0_8 = arith.constant 0 : index
    %c9_9 = arith.constant 9 : index
    %c0_10 = arith.constant 0 : index
    %5 = vector.load %arg5[%c0_8, %c9_9, %c0_10] : memref<10x10x72xf32, #tpu.memory_space<vmem>>, vector<10x1x72xf32>
    tpu.vector_store %arg5[%c0_8, %c9_9, %c0_10], %1 {strides = array<i32>} : memref<10x10x72xf32, #tpu.memory_space<vmem>>, vector<10x1x72xf32>,
    %c0_11 = arith.constant 0 : index
    %c0_12 = arith.constant 0 : index
    %c0_13 = arith.constant 0 : index
    %c0_14 = arith.constant 0 : index
    %6 = vector.load %arg1[%c0_11, %c0_12, %c0_13, %c0_14] : memref<1x8x8x72xbf16, #tpu.memory_space<vmem>>, vector<1x8x8x72xbf16>
    %7 = vector.shape_cast %6 : vector<1x8x8x72xbf16> to vector<8x8x72xbf16>
    %8 = arith.extf %7 : vector<8x8x72xbf16> to vector<8x8x72xf32>
    %c1 = arith.constant 1 : index
    %c1_15 = arith.constant 1 : index
    %c0_16 = arith.constant 0 : index
    %9 = vector.load %arg5[%c1, %c1_15, %c0_16] : memref<10x10x72xf32, #tpu.memory_space<vmem>>, vector<8x8x72xf32>
    tpu.vector_store %arg5[%c1, %c1_15, %c0_16], %8 {strides = array<i32>} : memref<10x10x72xf32, #tpu.memory_space<vmem>>, vector<8x8x72xf32>,
    %c0_17 = arith.constant 0 : index
    %c0_18 = arith.constant 0 : index
    %c0_19 = arith.constant 0 : index
    %10 = vector.load %arg5[%c0_17, %c0_18, %c0_19] : memref<10x10x72xf32, #tpu.memory_space<vmem>>, vector<8x8x72xf32>
    %c0_20 = arith.constant 0 : index
    %c0_21 = arith.constant 0 : index
    %c0_22 = arith.constant 0 : index
    %11 = vector.load %arg2[%c0_20, %c0_21, %c0_22] : memref<9x1x72xf32, #tpu.memory_space<vmem>>, vector<1x1x72xf32>
    %12 = vector.shape_cast %11 : vector<1x1x72xf32> to vector<1x72xf32>
    %13 = vector.shape_cast %12 : vector<1x72xf32> to vector<1x1x72xf32>
    %14 = vector.broadcast %13 : vector<1x1x72xf32> to vector<8x8x72xf32>
    %15 = arith.mulf %10, %14 : vector<8x8x72xf32>
    %c0_23 = arith.constant 0 : index
    %c1_24 = arith.constant 1 : index
    %c0_25 = arith.constant 0 : index
    %16 = vector.load %arg5[%c0_23, %c1_24, %c0_25] : memref<10x10x72xf32, #tpu.memory_space<vmem>>, vector<8x8x72xf32>
    %c1_26 = arith.constant 1 : index
    %c0_27 = arith.constant 0 : index
    %c0_28 = arith.constant 0 : index
    %17 = vector.load %arg2[%c1_26, %c0_27, %c0_28] : memref<9x1x72xf32, #tpu.memory_space<vmem>>, vector<1x1x72xf32>
    %18 = vector.shape_cast %17 : vector<1x1x72xf32> to vector<1x72xf32>
    %19 = vector.shape_cast %18 : vector<1x72xf32> to vector<1x1x72xf32>
    %20 = vector.broadcast %19 : vector<1x1x72xf32> to vector<8x8x72xf32>
    %21 = arith.mulf %16, %20 : vector<8x8x72xf32>
    %22 = arith.addf %15, %21 : vector<8x8x72xf32>
    %c0_29 = arith.constant 0 : index
    %c2 = arith.constant 2 : index
    %c0_30 = arith.constant 0 : index
    %23 = vector.load %arg5[%c0_29, %c2, %c0_30] : memref<10x10x72xf32, #tpu.memory_space<vmem>>, vector<8x8x72xf32>
    %c2_31 = arith.constant 2 : index
    %c0_32 = arith.constant 0 : index
    %c0_33 = arith.constant 0 : index
    %24 = vector.load %arg2[%c2_31, %c0_32, %c0_33] : memref<9x1x72xf32, #tpu.memory_space<vmem>>, vector<1x1x72xf32>
    %25 = vector.shape_cast %24 : vector<1x1x72xf32> to vector<1x72xf32>
    %26 = vector.shape_cast %25 : vector<1x72xf32> to vector<1x1x72xf32>
    %27 = vector.broadcast %26 : vector<1x1x72xf32> to vector<8x8x72xf32>
    %28 = arith.mulf %23, %27 : vector<8x8x72xf32>
    %29 = arith.addf %22, %28 : vector<8x8x72xf32>
    %c1_34 = arith.constant 1 : index
    %c0_35 = arith.constant 0 : index
    %c0_36 = arith.constant 0 : index
    %30 = vector.load %arg5[%c1_34, %c0_35, %c0_36] : memref<10x10x72xf32, #tpu.memory_space<vmem>>, vector<8x8x72xf32>
    %c3 = arith.constant 3 : index
    %c0_37 = arith.constant 0 : index
    %c0_38 = arith.constant 0 : index
    %31 = vector.load %arg2[%c3, %c0_37, %c0_38] : memref<9x1x72xf32, #tpu.memory_space<vmem>>, vector<1x1x72xf32>
    %32 = vector.shape_cast %31 : vector<1x1x72xf32> to vector<1x72xf32>
    %33 = vector.shape_cast %32 : vector<1x72xf32> to vector<1x1x72xf32>
    %34 = vector.broadcast %33 : vector<1x1x72xf32> to vector<8x8x72xf32>
    %35 = arith.mulf %30, %34 : vector<8x8x72xf32>
    %36 = arith.addf %29, %35 : vector<8x8x72xf32>
    %c1_39 = arith.constant 1 : index
    %c1_40 = arith.constant 1 : index
    %c0_41 = arith.constant 0 : index
    %37 = vector.load %arg5[%c1_39, %c1_40, %c0_41] : memref<10x10x72xf32, #tpu.memory_space<vmem>>, vector<8x8x72xf32>
    %c4 = arith.constant 4 : index
    %c0_42 = arith.constant 0 : index
    %c0_43 = arith.constant 0 : index
    %38 = vector.load %arg2[%c4, %c0_42, %c0_43] : memref<9x1x72xf32, #tpu.memory_space<vmem>>, vector<1x1x72xf32>
    %39 = vector.shape_cast %38 : vector<1x1x72xf32> to vector<1x72xf32>
    %40 = vector.shape_cast %39 : vector<1x72xf32> to vector<1x1x72xf32>
    %41 = vector.broadcast %40 : vector<1x1x72xf32> to vector<8x8x72xf32>
    %42 = arith.mulf %37, %41 : vector<8x8x72xf32>
    %43 = arith.addf %36, %42 : vector<8x8x72xf32>
    %c1_44 = arith.constant 1 : index
    %c2_45 = arith.constant 2 : index
    %c0_46 = arith.constant 0 : index
    %44 = vector.load %arg5[%c1_44, %c2_45, %c0_46] : memref<10x10x72xf32, #tpu.memory_space<vmem>>, vector<8x8x72xf32>
    %c5 = arith.constant 5 : index
    %c0_47 = arith.constant 0 : index
    %c0_48 = arith.constant 0 : index
    %45 = vector.load %arg2[%c5, %c0_47, %c0_48] : memref<9x1x72xf32, #tpu.memory_space<vmem>>, vector<1x1x72xf32>
    %46 = vector.shape_cast %45 : vector<1x1x72xf32> to vector<1x72xf32>
    %47 = vector.shape_cast %46 : vector<1x72xf32> to vector<1x1x72xf32>
    %48 = vector.broadcast %47 : vector<1x1x72xf32> to vector<8x8x72xf32>
    %49 = arith.mulf %44, %48 : vector<8x8x72xf32>
    %50 = arith.addf %43, %49 : vector<8x8x72xf32>
    %c2_49 = arith.constant 2 : index
    %c0_50 = arith.constant 0 : index
    %c0_51 = arith.constant 0 : index
    %51 = vector.load %arg5[%c2_49, %c0_50, %c0_51] : memref<10x10x72xf32, #tpu.memory_space<vmem>>, vector<8x8x72xf32>
    %c6 = arith.constant 6 : index
    %c0_52 = arith.constant 0 : index
    %c0_53 = arith.constant 0 : index
    %52 = vector.load %arg2[%c6, %c0_52, %c0_53] : memref<9x1x72xf32, #tpu.memory_space<vmem>>, vector<1x1x72xf32>
    %53 = vector.shape_cast %52 : vector<1x1x72xf32> to vector<1x72xf32>
    %54 = vector.shape_cast %53 : vector<1x72xf32> to vector<1x1x72xf32>
    %55 = vector.broadcast %54 : vector<1x1x72xf32> to vector<8x8x72xf32>
    %56 = arith.mulf %51, %55 : vector<8x8x72xf32>
    %57 = arith.addf %50, %56 : vector<8x8x72xf32>
    %c2_54 = arith.constant 2 : index
    %c1_55 = arith.constant 1 : index
    %c0_56 = arith.constant 0 : index
    %58 = vector.load %arg5[%c2_54, %c1_55, %c0_56] : memref<10x10x72xf32, #tpu.memory_space<vmem>>, vector<8x8x72xf32>
    %c7 = arith.constant 7 : index
    %c0_57 = arith.constant 0 : index
    %c0_58 = arith.constant 0 : index
    %59 = vector.load %arg2[%c7, %c0_57, %c0_58] : memref<9x1x72xf32, #tpu.memory_space<vmem>>, vector<1x1x72xf32>
    %60 = vector.shape_cast %59 : vector<1x1x72xf32> to vector<1x72xf32>
    %61 = vector.shape_cast %60 : vector<1x72xf32> to vector<1x1x72xf32>
    %62 = vector.broadcast %61 : vector<1x1x72xf32> to vector<8x8x72xf32>
    %63 = arith.mulf %58, %62 : vector<8x8x72xf32>
    %64 = arith.addf %57, %63 : vector<8x8x72xf32>
    %c2_59 = arith.constant 2 : index
    %c2_60 = arith.constant 2 : index
    %c0_61 = arith.constant 0 : index
    %65 = vector.load %arg5[%c2_59, %c2_60, %c0_61] : memref<10x10x72xf32, #tpu.memory_space<vmem>>, vector<8x8x72xf32>
    %c8 = arith.constant 8 : index
    %c0_62 = arith.constant 0 : index
    %c0_63 = arith.constant 0 : index
    %66 = vector.load %arg2[%c8, %c0_62, %c0_63] : memref<9x1x72xf32, #tpu.memory_space<vmem>>, vector<1x1x72xf32>
    %67 = vector.shape_cast %66 : vector<1x1x72xf32> to vector<1x72xf32>
    %68 = vector.shape_cast %67 : vector<1x72xf32> to vector<1x1x72xf32>
    %69 = vector.broadcast %68 : vector<1x1x72xf32> to vector<8x8x72xf32>
    %70 = arith.mulf %65, %69 : vector<8x8x72xf32>
    %71 = arith.addf %64, %70 : vector<8x8x72xf32>
    %c0_64 = arith.constant 0 : index
    %c0_65 = arith.constant 0 : index
    %c0_66 = arith.constant 0 : index
    %72 = vector.load %arg3[%c0_64, %c0_65, %c0_66] : memref<1x1x72xf32, #tpu.memory_space<vmem>>, vector<1x1x72xf32>
    %73 = vector.broadcast %72 : vector<1x1x72xf32> to vector<8x8x72xf32>
    %74 = arith.addf %71, %73 : vector<8x8x72xf32>
    %cst_67 = arith.constant 0.000000e+00 : f32
    %75 = vector.broadcast %cst_67 : f32 to vector<8x8x72xf32>
    %76 = arith.maximumf %74, %75 : vector<8x8x72xf32>
    %cst_68 = arith.constant 6.000000e+00 : f32
    %77 = vector.broadcast %cst_68 : f32 to vector<8x8x72xf32>
    %78 = arith.minimumf %76, %77 : vector<8x8x72xf32>
    %79 = arith.truncf %78 : vector<8x8x72xf32> to vector<8x8x72xbf16>
    %c0_69 = arith.constant 0 : index
    %c0_70 = arith.constant 0 : index
    %c0_71 = arith.constant 0 : index
    %c0_72 = arith.constant 0 : index
    %80 = vector.load %arg4[%c0_69, %c0_70, %c0_71, %c0_72] : memref<1x8x8x72xbf16, #tpu.memory_space<vmem>>, vector<1x8x8x72xbf16>
    %81 = vector.shape_cast %80 : vector<1x8x8x72xbf16> to vector<8x8x72xbf16>
    %82 = vector.shape_cast %79 : vector<8x8x72xbf16> to vector<1x8x8x72xbf16>
    tpu.vector_store %arg4[%c0_69, %c0_70, %c0_71, %c0_72], %82 {strides = array<i32>} : memref<1x8x8x72xbf16, #tpu.memory_space<vmem>>, vector<1x8x8x72xbf16>,
    return
  }
  func.func @transform_0(%arg0: i32) -> (i32, i32, i32, i32) {
    %c0_i32 = arith.constant 0 : i32
    %c0_i32_0 = arith.constant 0 : i32
    %c0_i32_1 = arith.constant 0 : i32
    %c0_i32_2 = arith.constant 0 : i32
    return %arg0, %c0_i32, %c0_i32_0, %c0_i32_1 : i32, i32, i32, i32
  }
  func.func @transform_1(%arg0: i32) -> (i32, i32, i32) {
    %c0_i32 = arith.constant 0 : i32
    %c0_i32_0 = arith.constant 0 : i32
    %c0_i32_1 = arith.constant 0 : i32
    %c0_i32_2 = arith.constant 0 : i32
    return %c0_i32, %c0_i32_0, %c0_i32_1 : i32, i32, i32
  }
  func.func @transform_2(%arg0: i32) -> (i32, i32, i32) {
    %c0_i32 = arith.constant 0 : i32
    %c0_i32_0 = arith.constant 0 : i32
    %c0_i32_1 = arith.constant 0 : i32
    %c0_i32_2 = arith.constant 0 : i32
    return %c0_i32, %c0_i32_0, %c0_i32_1 : i32, i32, i32
  }
  func.func @transform_3(%arg0: i32) -> (i32, i32, i32, i32) {
    %c0_i32 = arith.constant 0 : i32
    %c0_i32_0 = arith.constant 0 : i32
    %c0_i32_1 = arith.constant 0 : i32
    %c0_i32_2 = arith.constant 0 : i32
    return %arg0, %c0_i32, %c0_i32_0, %c0_i32_1 : i32, i32, i32, i32
  }
}

module attributes {stable_mosaic.version = 11 : i64} {
  func.func @_matmul_bn_act_kernel(%arg0: i32, %arg1: memref<64x72xbf16, #tpu.memory_space<vmem>>, %arg2: memref<72x24xbf16, #tpu.memory_space<vmem>>, %arg3: memref<1x24xf32, #tpu.memory_space<vmem>>, %arg4: memref<64x24xbf16, #tpu.memory_space<vmem>>) attributes {dimension_semantics = [#tpu.dimension_semantics<parallel>], iteration_bounds = array<i64: 2>, scalar_prefetch = 0 : i64, scratch_operands = 0 : i64, tpu.core_type = #tpu.core_type<tc>, window_params = [{transform_indices = @transform_0, window_bounds = array<i64: 64, 72>}, {pipeline_mode = #tpu.pipeline_mode<synchronous>, transform_indices = @transform_1, window_bounds = array<i64: 72, 24>}, {pipeline_mode = #tpu.pipeline_mode<synchronous>, transform_indices = @transform_2, window_bounds = array<i64: 1, 24>}, {transform_indices = @transform_3, window_bounds = array<i64: 64, 24>}]} {
    %c0 = arith.constant 0 : index
    %c0_0 = arith.constant 0 : index
    %0 = vector.load %arg1[%c0, %c0_0] : memref<64x72xbf16, #tpu.memory_space<vmem>>, vector<64x72xbf16>
    %c0_1 = arith.constant 0 : index
    %c0_2 = arith.constant 0 : index
    %1 = vector.load %arg2[%c0_1, %c0_2] : memref<72x24xbf16, #tpu.memory_space<vmem>>, vector<72x24xbf16>
    %cst = arith.constant dense<0.000000e+00> : vector<64x24xf32>
    %2 = tpu.matmul %0, %1, %cst {dimension_numbers = #tpu.dot_dimension_numbers<[1], [0], [0], [1], [0, 0, 1, 1], [], []>} : vector<64x72xbf16>, vector<72x24xbf16>, vector<64x24xf32> -> vector<64x24xf32>
    %c0_3 = arith.constant 0 : index
    %c0_4 = arith.constant 0 : index
    %3 = vector.load %arg3[%c0_3, %c0_4] : memref<1x24xf32, #tpu.memory_space<vmem>>, vector<1x24xf32>
    %4 = vector.broadcast %3 : vector<1x24xf32> to vector<64x24xf32>
    %5 = arith.addf %2, %4 : vector<64x24xf32>
    %6 = arith.truncf %5 : vector<64x24xf32> to vector<64x24xbf16>
    %c0_5 = arith.constant 0 : index
    %c0_6 = arith.constant 0 : index
    %7 = vector.load %arg4[%c0_5, %c0_6] : memref<64x24xbf16, #tpu.memory_space<vmem>>, vector<64x24xbf16>
    tpu.vector_store %arg4[%c0_5, %c0_6], %6 {strides = array<i32>} : memref<64x24xbf16, #tpu.memory_space<vmem>>, vector<64x24xbf16>,
    return
  }
  func.func @transform_0(%arg0: i32) -> (i32, i32) {
    %c0_i32 = arith.constant 0 : i32
    %c0_i32_0 = arith.constant 0 : i32
    return %arg0, %c0_i32 : i32, i32
  }
  func.func @transform_1(%arg0: i32) -> (i32, i32) {
    %c0_i32 = arith.constant 0 : i32
    %c0_i32_0 = arith.constant 0 : i32
    %c0_i32_1 = arith.constant 0 : i32
    return %c0_i32, %c0_i32_0 : i32, i32
  }
  func.func @transform_2(%arg0: i32) -> (i32, i32) {
    %c0_i32 = arith.constant 0 : i32
    %c0_i32_0 = arith.constant 0 : i32
    %c0_i32_1 = arith.constant 0 : i32
    return %c0_i32, %c0_i32_0 : i32, i32
  }
  func.func @transform_3(%arg0: i32) -> (i32, i32) {
    %c0_i32 = arith.constant 0 : i32
    %c0_i32_0 = arith.constant 0 : i32
    return %arg0, %c0_i32 : i32, i32
  }
}

module attributes {stable_mosaic.version = 11 : i64} {
  func.func @_matmul_bn_res_kernel(%arg0: i32, %arg1: memref<64x72xbf16, #tpu.memory_space<vmem>>, %arg2: memref<72x24xbf16, #tpu.memory_space<vmem>>, %arg3: memref<1x24xf32, #tpu.memory_space<vmem>>, %arg4: memref<64x24xbf16, #tpu.memory_space<vmem>>, %arg5: memref<64x24xbf16, #tpu.memory_space<vmem>>) attributes {dimension_semantics = [#tpu.dimension_semantics<parallel>], iteration_bounds = array<i64: 2>, scalar_prefetch = 0 : i64, scratch_operands = 0 : i64, tpu.core_type = #tpu.core_type<tc>, window_params = [{transform_indices = @transform_0, window_bounds = array<i64: 64, 72>}, {pipeline_mode = #tpu.pipeline_mode<synchronous>, transform_indices = @transform_1, window_bounds = array<i64: 72, 24>}, {pipeline_mode = #tpu.pipeline_mode<synchronous>, transform_indices = @transform_2, window_bounds = array<i64: 1, 24>}, {transform_indices = @transform_3, window_bounds = array<i64: 64, 24>}, {transform_indices = @transform_4, window_bounds = array<i64: 64, 24>}]} {
    %c0 = arith.constant 0 : index
    %c0_0 = arith.constant 0 : index
    %0 = vector.load %arg1[%c0, %c0_0] : memref<64x72xbf16, #tpu.memory_space<vmem>>, vector<64x72xbf16>
    %c0_1 = arith.constant 0 : index
    %c0_2 = arith.constant 0 : index
    %1 = vector.load %arg2[%c0_1, %c0_2] : memref<72x24xbf16, #tpu.memory_space<vmem>>, vector<72x24xbf16>
    %cst = arith.constant dense<0.000000e+00> : vector<64x24xf32>
    %2 = tpu.matmul %0, %1, %cst {dimension_numbers = #tpu.dot_dimension_numbers<[1], [0], [0], [1], [0, 0, 1, 1], [], []>} : vector<64x72xbf16>, vector<72x24xbf16>, vector<64x24xf32> -> vector<64x24xf32>
    %c0_3 = arith.constant 0 : index
    %c0_4 = arith.constant 0 : index
    %3 = vector.load %arg3[%c0_3, %c0_4] : memref<1x24xf32, #tpu.memory_space<vmem>>, vector<1x24xf32>
    %4 = vector.broadcast %3 : vector<1x24xf32> to vector<64x24xf32>
    %5 = arith.addf %2, %4 : vector<64x24xf32>
    %c0_5 = arith.constant 0 : index
    %c0_6 = arith.constant 0 : index
    %6 = vector.load %arg4[%c0_5, %c0_6] : memref<64x24xbf16, #tpu.memory_space<vmem>>, vector<64x24xbf16>
    %7 = arith.extf %6 : vector<64x24xbf16> to vector<64x24xf32>
    %8 = arith.addf %5, %7 : vector<64x24xf32>
    %9 = arith.truncf %8 : vector<64x24xf32> to vector<64x24xbf16>
    %c0_7 = arith.constant 0 : index
    %c0_8 = arith.constant 0 : index
    %10 = vector.load %arg5[%c0_7, %c0_8] : memref<64x24xbf16, #tpu.memory_space<vmem>>, vector<64x24xbf16>
    tpu.vector_store %arg5[%c0_7, %c0_8], %9 {strides = array<i32>} : memref<64x24xbf16, #tpu.memory_space<vmem>>, vector<64x24xbf16>,
    return
  }
  func.func @transform_0(%arg0: i32) -> (i32, i32) {
    %c0_i32 = arith.constant 0 : i32
    %c0_i32_0 = arith.constant 0 : i32
    return %arg0, %c0_i32 : i32, i32
  }
  func.func @transform_1(%arg0: i32) -> (i32, i32) {
    %c0_i32 = arith.constant 0 : i32
    %c0_i32_0 = arith.constant 0 : i32
    %c0_i32_1 = arith.constant 0 : i32
    return %c0_i32, %c0_i32_0 : i32, i32
  }
  func.func @transform_2(%arg0: i32) -> (i32, i32) {
    %c0_i32 = arith.constant 0 : i32
    %c0_i32_0 = arith.constant 0 : i32
    %c0_i32_1 = arith.constant 0 : i32
    return %c0_i32, %c0_i32_0 : i32, i32
  }
  func.func @transform_3(%arg0: i32) -> (i32, i32) {
    %c0_i32 = arith.constant 0 : i32
    %c0_i32_0 = arith.constant 0 : i32
    return %arg0, %c0_i32 : i32, i32
  }
  func.func @transform_4(%arg0: i32) -> (i32, i32) {
    %c0_i32 = arith.constant 0 : i32
    %c0_i32_0 = arith.constant 0 : i32
    return %arg0, %c0_i32 : i32, i32
  }
}

module attributes {stable_mosaic.version = 11 : i64} {
  func.func @_matmul_bn_act_kernel(%arg0: i32, %arg1: memref<16x24xbf16, #tpu.memory_space<vmem>>, %arg2: memref<24x40xbf16, #tpu.memory_space<vmem>>, %arg3: memref<1x40xf32, #tpu.memory_space<vmem>>, %arg4: memref<16x40xbf16, #tpu.memory_space<vmem>>) attributes {dimension_semantics = [#tpu.dimension_semantics<parallel>], iteration_bounds = array<i64: 2>, scalar_prefetch = 0 : i64, scratch_operands = 0 : i64, tpu.core_type = #tpu.core_type<tc>, window_params = [{transform_indices = @transform_0, window_bounds = array<i64: 16, 24>}, {pipeline_mode = #tpu.pipeline_mode<synchronous>, transform_indices = @transform_1, window_bounds = array<i64: 24, 40>}, {pipeline_mode = #tpu.pipeline_mode<synchronous>, transform_indices = @transform_2, window_bounds = array<i64: 1, 40>}, {transform_indices = @transform_3, window_bounds = array<i64: 16, 40>}]} {
    %c0 = arith.constant 0 : index
    %c0_0 = arith.constant 0 : index
    %0 = vector.load %arg1[%c0, %c0_0] : memref<16x24xbf16, #tpu.memory_space<vmem>>, vector<16x24xbf16>
    %c0_1 = arith.constant 0 : index
    %c0_2 = arith.constant 0 : index
    %1 = vector.load %arg2[%c0_1, %c0_2] : memref<24x40xbf16, #tpu.memory_space<vmem>>, vector<24x40xbf16>
    %cst = arith.constant dense<0.000000e+00> : vector<16x40xf32>
    %2 = tpu.matmul %0, %1, %cst {dimension_numbers = #tpu.dot_dimension_numbers<[1], [0], [0], [1], [0, 0, 1, 1], [], []>} : vector<16x24xbf16>, vector<24x40xbf16>, vector<16x40xf32> -> vector<16x40xf32>
    %c0_3 = arith.constant 0 : index
    %c0_4 = arith.constant 0 : index
    %3 = vector.load %arg3[%c0_3, %c0_4] : memref<1x40xf32, #tpu.memory_space<vmem>>, vector<1x40xf32>
    %4 = vector.broadcast %3 : vector<1x40xf32> to vector<16x40xf32>
    %5 = arith.addf %2, %4 : vector<16x40xf32>
    %cst_5 = arith.constant 0.000000e+00 : f32
    %6 = vector.broadcast %cst_5 : f32 to vector<16x40xf32>
    %7 = arith.maximumf %5, %6 : vector<16x40xf32>
    %cst_6 = arith.constant 6.000000e+00 : f32
    %8 = vector.broadcast %cst_6 : f32 to vector<16x40xf32>
    %9 = arith.minimumf %7, %8 : vector<16x40xf32>
    %10 = arith.truncf %9 : vector<16x40xf32> to vector<16x40xbf16>
    %c0_7 = arith.constant 0 : index
    %c0_8 = arith.constant 0 : index
    %11 = vector.load %arg4[%c0_7, %c0_8] : memref<16x40xbf16, #tpu.memory_space<vmem>>, vector<16x40xbf16>
    tpu.vector_store %arg4[%c0_7, %c0_8], %10 {strides = array<i32>} : memref<16x40xbf16, #tpu.memory_space<vmem>>, vector<16x40xbf16>,
    return
  }
  func.func @transform_0(%arg0: i32) -> (i32, i32) {
    %c0_i32 = arith.constant 0 : i32
    %c0_i32_0 = arith.constant 0 : i32
    return %arg0, %c0_i32 : i32, i32
  }
  func.func @transform_1(%arg0: i32) -> (i32, i32) {
    %c0_i32 = arith.constant 0 : i32
    %c0_i32_0 = arith.constant 0 : i32
    %c0_i32_1 = arith.constant 0 : i32
    return %c0_i32, %c0_i32_0 : i32, i32
  }
  func.func @transform_2(%arg0: i32) -> (i32, i32) {
    %c0_i32 = arith.constant 0 : i32
    %c0_i32_0 = arith.constant 0 : i32
    %c0_i32_1 = arith.constant 0 : i32
    return %c0_i32, %c0_i32_0 : i32, i32
  }
  func.func @transform_3(%arg0: i32) -> (i32, i32) {
    %c0_i32 = arith.constant 0 : i32
    %c0_i32_0 = arith.constant 0 : i32
    return %arg0, %c0_i32 : i32, i32
  }
}

module attributes {stable_mosaic.version = 11 : i64} {
  func.func @_matmul_bn_act_kernel(%arg0: i32, %arg1: memref<16x40xbf16, #tpu.memory_space<vmem>>, %arg2: memref<40x120xbf16, #tpu.memory_space<vmem>>, %arg3: memref<1x120xf32, #tpu.memory_space<vmem>>, %arg4: memref<16x120xbf16, #tpu.memory_space<vmem>>) attributes {dimension_semantics = [#tpu.dimension_semantics<parallel>], iteration_bounds = array<i64: 2>, scalar_prefetch = 0 : i64, scratch_operands = 0 : i64, tpu.core_type = #tpu.core_type<tc>, window_params = [{transform_indices = @transform_0, window_bounds = array<i64: 16, 40>}, {pipeline_mode = #tpu.pipeline_mode<synchronous>, transform_indices = @transform_1, window_bounds = array<i64: 40, 120>}, {pipeline_mode = #tpu.pipeline_mode<synchronous>, transform_indices = @transform_2, window_bounds = array<i64: 1, 120>}, {transform_indices = @transform_3, window_bounds = array<i64: 16, 120>}]} {
    %c0 = arith.constant 0 : index
    %c0_0 = arith.constant 0 : index
    %0 = vector.load %arg1[%c0, %c0_0] : memref<16x40xbf16, #tpu.memory_space<vmem>>, vector<16x40xbf16>
    %c0_1 = arith.constant 0 : index
    %c0_2 = arith.constant 0 : index
    %1 = vector.load %arg2[%c0_1, %c0_2] : memref<40x120xbf16, #tpu.memory_space<vmem>>, vector<40x120xbf16>
    %cst = arith.constant dense<0.000000e+00> : vector<16x120xf32>
    %2 = tpu.matmul %0, %1, %cst {dimension_numbers = #tpu.dot_dimension_numbers<[1], [0], [0], [1], [0, 0, 1, 1], [], []>} : vector<16x40xbf16>, vector<40x120xbf16>, vector<16x120xf32> -> vector<16x120xf32>
    %c0_3 = arith.constant 0 : index
    %c0_4 = arith.constant 0 : index
    %3 = vector.load %arg3[%c0_3, %c0_4] : memref<1x120xf32, #tpu.memory_space<vmem>>, vector<1x120xf32>
    %4 = vector.broadcast %3 : vector<1x120xf32> to vector<16x120xf32>
    %5 = arith.addf %2, %4 : vector<16x120xf32>
    %cst_5 = arith.constant 0.000000e+00 : f32
    %6 = vector.broadcast %cst_5 : f32 to vector<16x120xf32>
    %7 = arith.maximumf %5, %6 : vector<16x120xf32>
    %cst_6 = arith.constant 6.000000e+00 : f32
    %8 = vector.broadcast %cst_6 : f32 to vector<16x120xf32>
    %9 = arith.minimumf %7, %8 : vector<16x120xf32>
    %10 = arith.truncf %9 : vector<16x120xf32> to vector<16x120xbf16>
    %c0_7 = arith.constant 0 : index
    %c0_8 = arith.constant 0 : index
    %11 = vector.load %arg4[%c0_7, %c0_8] : memref<16x120xbf16, #tpu.memory_space<vmem>>, vector<16x120xbf16>
    tpu.vector_store %arg4[%c0_7, %c0_8], %10 {strides = array<i32>} : memref<16x120xbf16, #tpu.memory_space<vmem>>, vector<16x120xbf16>,
    return
  }
  func.func @transform_0(%arg0: i32) -> (i32, i32) {
    %c0_i32 = arith.constant 0 : i32
    %c0_i32_0 = arith.constant 0 : i32
    return %arg0, %c0_i32 : i32, i32
  }
  func.func @transform_1(%arg0: i32) -> (i32, i32) {
    %c0_i32 = arith.constant 0 : i32
    %c0_i32_0 = arith.constant 0 : i32
    %c0_i32_1 = arith.constant 0 : i32
    return %c0_i32, %c0_i32_0 : i32, i32
  }
  func.func @transform_2(%arg0: i32) -> (i32, i32) {
    %c0_i32 = arith.constant 0 : i32
    %c0_i32_0 = arith.constant 0 : i32
    %c0_i32_1 = arith.constant 0 : i32
    return %c0_i32, %c0_i32_0 : i32, i32
  }
  func.func @transform_3(%arg0: i32) -> (i32, i32) {
    %c0_i32 = arith.constant 0 : i32
    %c0_i32_0 = arith.constant 0 : i32
    return %arg0, %c0_i32 : i32, i32
  }
}

module attributes {stable_mosaic.version = 11 : i64} {
  func.func @_dwconv_bn_act_kernel(%arg0: i32, %arg1: memref<1x4x4x120xbf16, #tpu.memory_space<vmem>>, %arg2: memref<9x1x120xf32, #tpu.memory_space<vmem>>, %arg3: memref<1x1x120xf32, #tpu.memory_space<vmem>>, %arg4: memref<1x4x4x120xbf16, #tpu.memory_space<vmem>>, %arg5: memref<6x6x120xf32, #tpu.memory_space<vmem>>) attributes {dimension_semantics = [#tpu.dimension_semantics<parallel>], iteration_bounds = array<i64: 2>, scalar_prefetch = 0 : i64, scratch_operands = 1 : i64, tpu.core_type = #tpu.core_type<tc>, window_params = [{transform_indices = @transform_0, window_bounds = array<i64: 1, 4, 4, 120>}, {pipeline_mode = #tpu.pipeline_mode<synchronous>, transform_indices = @transform_1, window_bounds = array<i64: 9, 1, 120>}, {pipeline_mode = #tpu.pipeline_mode<synchronous>, transform_indices = @transform_2, window_bounds = array<i64: 1, 1, 120>}, {transform_indices = @transform_3, window_bounds = array<i64: 1, 4, 4, 120>}]} {
    %cst = arith.constant 0.000000e+00 : f32
    %0 = vector.broadcast %cst : f32 to vector<1x6x120xf32>
    %cst_0 = arith.constant 0.000000e+00 : f32
    %1 = vector.broadcast %cst_0 : f32 to vector<6x1x120xf32>
    %c0 = arith.constant 0 : index
    %c0_1 = arith.constant 0 : index
    %c0_2 = arith.constant 0 : index
    %2 = vector.load %arg5[%c0, %c0_1, %c0_2] : memref<6x6x120xf32, #tpu.memory_space<vmem>>, vector<1x6x120xf32>
    tpu.vector_store %arg5[%c0, %c0_1, %c0_2], %0 {strides = array<i32>} : memref<6x6x120xf32, #tpu.memory_space<vmem>>, vector<1x6x120xf32>,
    %c5 = arith.constant 5 : index
    %c0_3 = arith.constant 0 : index
    %c0_4 = arith.constant 0 : index
    %3 = vector.load %arg5[%c5, %c0_3, %c0_4] : memref<6x6x120xf32, #tpu.memory_space<vmem>>, vector<1x6x120xf32>
    tpu.vector_store %arg5[%c5, %c0_3, %c0_4], %0 {strides = array<i32>} : memref<6x6x120xf32, #tpu.memory_space<vmem>>, vector<1x6x120xf32>,
    %c0_5 = arith.constant 0 : index
    %c0_6 = arith.constant 0 : index
    %c0_7 = arith.constant 0 : index
    %4 = vector.load %arg5[%c0_5, %c0_6, %c0_7] : memref<6x6x120xf32, #tpu.memory_space<vmem>>, vector<6x1x120xf32>
    tpu.vector_store %arg5[%c0_5, %c0_6, %c0_7], %1 {strides = array<i32>} : memref<6x6x120xf32, #tpu.memory_space<vmem>>, vector<6x1x120xf32>,
    %c0_8 = arith.constant 0 : index
    %c5_9 = arith.constant 5 : index
    %c0_10 = arith.constant 0 : index
    %5 = vector.load %arg5[%c0_8, %c5_9, %c0_10] : memref<6x6x120xf32, #tpu.memory_space<vmem>>, vector<6x1x120xf32>
    tpu.vector_store %arg5[%c0_8, %c5_9, %c0_10], %1 {strides = array<i32>} : memref<6x6x120xf32, #tpu.memory_space<vmem>>, vector<6x1x120xf32>,
    %c0_11 = arith.constant 0 : index
    %c0_12 = arith.constant 0 : index
    %c0_13 = arith.constant 0 : index
    %c0_14 = arith.constant 0 : index
    %6 = vector.load %arg1[%c0_11, %c0_12, %c0_13, %c0_14] : memref<1x4x4x120xbf16, #tpu.memory_space<vmem>>, vector<1x4x4x120xbf16>
    %7 = vector.shape_cast %6 : vector<1x4x4x120xbf16> to vector<4x4x120xbf16>
    %8 = arith.extf %7 : vector<4x4x120xbf16> to vector<4x4x120xf32>
    %c1 = arith.constant 1 : index
    %c1_15 = arith.constant 1 : index
    %c0_16 = arith.constant 0 : index
    %9 = vector.load %arg5[%c1, %c1_15, %c0_16] : memref<6x6x120xf32, #tpu.memory_space<vmem>>, vector<4x4x120xf32>
    tpu.vector_store %arg5[%c1, %c1_15, %c0_16], %8 {strides = array<i32>} : memref<6x6x120xf32, #tpu.memory_space<vmem>>, vector<4x4x120xf32>,
    %c0_17 = arith.constant 0 : index
    %c0_18 = arith.constant 0 : index
    %c0_19 = arith.constant 0 : index
    %10 = vector.load %arg5[%c0_17, %c0_18, %c0_19] : memref<6x6x120xf32, #tpu.memory_space<vmem>>, vector<4x4x120xf32>
    %c0_20 = arith.constant 0 : index
    %c0_21 = arith.constant 0 : index
    %c0_22 = arith.constant 0 : index
    %11 = vector.load %arg2[%c0_20, %c0_21, %c0_22] : memref<9x1x120xf32, #tpu.memory_space<vmem>>, vector<1x1x120xf32>
    %12 = vector.shape_cast %11 : vector<1x1x120xf32> to vector<1x120xf32>
    %13 = vector.shape_cast %12 : vector<1x120xf32> to vector<1x1x120xf32>
    %14 = vector.broadcast %13 : vector<1x1x120xf32> to vector<4x4x120xf32>
    %15 = arith.mulf %10, %14 : vector<4x4x120xf32>
    %c0_23 = arith.constant 0 : index
    %c1_24 = arith.constant 1 : index
    %c0_25 = arith.constant 0 : index
    %16 = vector.load %arg5[%c0_23, %c1_24, %c0_25] : memref<6x6x120xf32, #tpu.memory_space<vmem>>, vector<4x4x120xf32>
    %c1_26 = arith.constant 1 : index
    %c0_27 = arith.constant 0 : index
    %c0_28 = arith.constant 0 : index
    %17 = vector.load %arg2[%c1_26, %c0_27, %c0_28] : memref<9x1x120xf32, #tpu.memory_space<vmem>>, vector<1x1x120xf32>
    %18 = vector.shape_cast %17 : vector<1x1x120xf32> to vector<1x120xf32>
    %19 = vector.shape_cast %18 : vector<1x120xf32> to vector<1x1x120xf32>
    %20 = vector.broadcast %19 : vector<1x1x120xf32> to vector<4x4x120xf32>
    %21 = arith.mulf %16, %20 : vector<4x4x120xf32>
    %22 = arith.addf %15, %21 : vector<4x4x120xf32>
    %c0_29 = arith.constant 0 : index
    %c2 = arith.constant 2 : index
    %c0_30 = arith.constant 0 : index
    %23 = vector.load %arg5[%c0_29, %c2, %c0_30] : memref<6x6x120xf32, #tpu.memory_space<vmem>>, vector<4x4x120xf32>
    %c2_31 = arith.constant 2 : index
    %c0_32 = arith.constant 0 : index
    %c0_33 = arith.constant 0 : index
    %24 = vector.load %arg2[%c2_31, %c0_32, %c0_33] : memref<9x1x120xf32, #tpu.memory_space<vmem>>, vector<1x1x120xf32>
    %25 = vector.shape_cast %24 : vector<1x1x120xf32> to vector<1x120xf32>
    %26 = vector.shape_cast %25 : vector<1x120xf32> to vector<1x1x120xf32>
    %27 = vector.broadcast %26 : vector<1x1x120xf32> to vector<4x4x120xf32>
    %28 = arith.mulf %23, %27 : vector<4x4x120xf32>
    %29 = arith.addf %22, %28 : vector<4x4x120xf32>
    %c1_34 = arith.constant 1 : index
    %c0_35 = arith.constant 0 : index
    %c0_36 = arith.constant 0 : index
    %30 = vector.load %arg5[%c1_34, %c0_35, %c0_36] : memref<6x6x120xf32, #tpu.memory_space<vmem>>, vector<4x4x120xf32>
    %c3 = arith.constant 3 : index
    %c0_37 = arith.constant 0 : index
    %c0_38 = arith.constant 0 : index
    %31 = vector.load %arg2[%c3, %c0_37, %c0_38] : memref<9x1x120xf32, #tpu.memory_space<vmem>>, vector<1x1x120xf32>
    %32 = vector.shape_cast %31 : vector<1x1x120xf32> to vector<1x120xf32>
    %33 = vector.shape_cast %32 : vector<1x120xf32> to vector<1x1x120xf32>
    %34 = vector.broadcast %33 : vector<1x1x120xf32> to vector<4x4x120xf32>
    %35 = arith.mulf %30, %34 : vector<4x4x120xf32>
    %36 = arith.addf %29, %35 : vector<4x4x120xf32>
    %c1_39 = arith.constant 1 : index
    %c1_40 = arith.constant 1 : index
    %c0_41 = arith.constant 0 : index
    %37 = vector.load %arg5[%c1_39, %c1_40, %c0_41] : memref<6x6x120xf32, #tpu.memory_space<vmem>>, vector<4x4x120xf32>
    %c4 = arith.constant 4 : index
    %c0_42 = arith.constant 0 : index
    %c0_43 = arith.constant 0 : index
    %38 = vector.load %arg2[%c4, %c0_42, %c0_43] : memref<9x1x120xf32, #tpu.memory_space<vmem>>, vector<1x1x120xf32>
    %39 = vector.shape_cast %38 : vector<1x1x120xf32> to vector<1x120xf32>
    %40 = vector.shape_cast %39 : vector<1x120xf32> to vector<1x1x120xf32>
    %41 = vector.broadcast %40 : vector<1x1x120xf32> to vector<4x4x120xf32>
    %42 = arith.mulf %37, %41 : vector<4x4x120xf32>
    %43 = arith.addf %36, %42 : vector<4x4x120xf32>
    %c1_44 = arith.constant 1 : index
    %c2_45 = arith.constant 2 : index
    %c0_46 = arith.constant 0 : index
    %44 = vector.load %arg5[%c1_44, %c2_45, %c0_46] : memref<6x6x120xf32, #tpu.memory_space<vmem>>, vector<4x4x120xf32>
    %c5_47 = arith.constant 5 : index
    %c0_48 = arith.constant 0 : index
    %c0_49 = arith.constant 0 : index
    %45 = vector.load %arg2[%c5_47, %c0_48, %c0_49] : memref<9x1x120xf32, #tpu.memory_space<vmem>>, vector<1x1x120xf32>
    %46 = vector.shape_cast %45 : vector<1x1x120xf32> to vector<1x120xf32>
    %47 = vector.shape_cast %46 : vector<1x120xf32> to vector<1x1x120xf32>
    %48 = vector.broadcast %47 : vector<1x1x120xf32> to vector<4x4x120xf32>
    %49 = arith.mulf %44, %48 : vector<4x4x120xf32>
    %50 = arith.addf %43, %49 : vector<4x4x120xf32>
    %c2_50 = arith.constant 2 : index
    %c0_51 = arith.constant 0 : index
    %c0_52 = arith.constant 0 : index
    %51 = vector.load %arg5[%c2_50, %c0_51, %c0_52] : memref<6x6x120xf32, #tpu.memory_space<vmem>>, vector<4x4x120xf32>
    %c6 = arith.constant 6 : index
    %c0_53 = arith.constant 0 : index
    %c0_54 = arith.constant 0 : index
    %52 = vector.load %arg2[%c6, %c0_53, %c0_54] : memref<9x1x120xf32, #tpu.memory_space<vmem>>, vector<1x1x120xf32>
    %53 = vector.shape_cast %52 : vector<1x1x120xf32> to vector<1x120xf32>
    %54 = vector.shape_cast %53 : vector<1x120xf32> to vector<1x1x120xf32>
    %55 = vector.broadcast %54 : vector<1x1x120xf32> to vector<4x4x120xf32>
    %56 = arith.mulf %51, %55 : vector<4x4x120xf32>
    %57 = arith.addf %50, %56 : vector<4x4x120xf32>
    %c2_55 = arith.constant 2 : index
    %c1_56 = arith.constant 1 : index
    %c0_57 = arith.constant 0 : index
    %58 = vector.load %arg5[%c2_55, %c1_56, %c0_57] : memref<6x6x120xf32, #tpu.memory_space<vmem>>, vector<4x4x120xf32>
    %c7 = arith.constant 7 : index
    %c0_58 = arith.constant 0 : index
    %c0_59 = arith.constant 0 : index
    %59 = vector.load %arg2[%c7, %c0_58, %c0_59] : memref<9x1x120xf32, #tpu.memory_space<vmem>>, vector<1x1x120xf32>
    %60 = vector.shape_cast %59 : vector<1x1x120xf32> to vector<1x120xf32>
    %61 = vector.shape_cast %60 : vector<1x120xf32> to vector<1x1x120xf32>
    %62 = vector.broadcast %61 : vector<1x1x120xf32> to vector<4x4x120xf32>
    %63 = arith.mulf %58, %62 : vector<4x4x120xf32>
    %64 = arith.addf %57, %63 : vector<4x4x120xf32>
    %c2_60 = arith.constant 2 : index
    %c2_61 = arith.constant 2 : index
    %c0_62 = arith.constant 0 : index
    %65 = vector.load %arg5[%c2_60, %c2_61, %c0_62] : memref<6x6x120xf32, #tpu.memory_space<vmem>>, vector<4x4x120xf32>
    %c8 = arith.constant 8 : index
    %c0_63 = arith.constant 0 : index
    %c0_64 = arith.constant 0 : index
    %66 = vector.load %arg2[%c8, %c0_63, %c0_64] : memref<9x1x120xf32, #tpu.memory_space<vmem>>, vector<1x1x120xf32>
    %67 = vector.shape_cast %66 : vector<1x1x120xf32> to vector<1x120xf32>
    %68 = vector.shape_cast %67 : vector<1x120xf32> to vector<1x1x120xf32>
    %69 = vector.broadcast %68 : vector<1x1x120xf32> to vector<4x4x120xf32>
    %70 = arith.mulf %65, %69 : vector<4x4x120xf32>
    %71 = arith.addf %64, %70 : vector<4x4x120xf32>
    %c0_65 = arith.constant 0 : index
    %c0_66 = arith.constant 0 : index
    %c0_67 = arith.constant 0 : index
    %72 = vector.load %arg3[%c0_65, %c0_66, %c0_67] : memref<1x1x120xf32, #tpu.memory_space<vmem>>, vector<1x1x120xf32>
    %73 = vector.broadcast %72 : vector<1x1x120xf32> to vector<4x4x120xf32>
    %74 = arith.addf %71, %73 : vector<4x4x120xf32>
    %cst_68 = arith.constant 0.000000e+00 : f32
    %75 = vector.broadcast %cst_68 : f32 to vector<4x4x120xf32>
    %76 = arith.maximumf %74, %75 : vector<4x4x120xf32>
    %cst_69 = arith.constant 6.000000e+00 : f32
    %77 = vector.broadcast %cst_69 : f32 to vector<4x4x120xf32>
    %78 = arith.minimumf %76, %77 : vector<4x4x120xf32>
    %79 = arith.truncf %78 : vector<4x4x120xf32> to vector<4x4x120xbf16>
    %c0_70 = arith.constant 0 : index
    %c0_71 = arith.constant 0 : index
    %c0_72 = arith.constant 0 : index
    %c0_73 = arith.constant 0 : index
    %80 = vector.load %arg4[%c0_70, %c0_71, %c0_72, %c0_73] : memref<1x4x4x120xbf16, #tpu.memory_space<vmem>>, vector<1x4x4x120xbf16>
    %81 = vector.shape_cast %80 : vector<1x4x4x120xbf16> to vector<4x4x120xbf16>
    %82 = vector.shape_cast %79 : vector<4x4x120xbf16> to vector<1x4x4x120xbf16>
    tpu.vector_store %arg4[%c0_70, %c0_71, %c0_72, %c0_73], %82 {strides = array<i32>} : memref<1x4x4x120xbf16, #tpu.memory_space<vmem>>, vector<1x4x4x120xbf16>,
    return
  }
  func.func @transform_0(%arg0: i32) -> (i32, i32, i32, i32) {
    %c0_i32 = arith.constant 0 : i32
    %c0_i32_0 = arith.constant 0 : i32
    %c0_i32_1 = arith.constant 0 : i32
    %c0_i32_2 = arith.constant 0 : i32
    return %arg0, %c0_i32, %c0_i32_0, %c0_i32_1 : i32, i32, i32, i32
  }
  func.func @transform_1(%arg0: i32) -> (i32, i32, i32) {
    %c0_i32 = arith.constant 0 : i32
    %c0_i32_0 = arith.constant 0 : i32
    %c0_i32_1 = arith.constant 0 : i32
    %c0_i32_2 = arith.constant 0 : i32
    return %c0_i32, %c0_i32_0, %c0_i32_1 : i32, i32, i32
  }
  func.func @transform_2(%arg0: i32) -> (i32, i32, i32) {
    %c0_i32 = arith.constant 0 : i32
    %c0_i32_0 = arith.constant 0 : i32
    %c0_i32_1 = arith.constant 0 : i32
    %c0_i32_2 = arith.constant 0 : i32
    return %c0_i32, %c0_i32_0, %c0_i32_1 : i32, i32, i32
  }
  func.func @transform_3(%arg0: i32) -> (i32, i32, i32, i32) {
    %c0_i32 = arith.constant 0 : i32
    %c0_i32_0 = arith.constant 0 : i32
    %c0_i32_1 = arith.constant 0 : i32
    %c0_i32_2 = arith.constant 0 : i32
    return %arg0, %c0_i32, %c0_i32_0, %c0_i32_1 : i32, i32, i32, i32
  }
}

module attributes {stable_mosaic.version = 11 : i64} {
  func.func @_matmul_bn_act_kernel(%arg0: i32, %arg1: memref<16x120xbf16, #tpu.memory_space<vmem>>, %arg2: memref<120x40xbf16, #tpu.memory_space<vmem>>, %arg3: memref<1x40xf32, #tpu.memory_space<vmem>>, %arg4: memref<16x40xbf16, #tpu.memory_space<vmem>>) attributes {dimension_semantics = [#tpu.dimension_semantics<parallel>], iteration_bounds = array<i64: 2>, scalar_prefetch = 0 : i64, scratch_operands = 0 : i64, tpu.core_type = #tpu.core_type<tc>, window_params = [{transform_indices = @transform_0, window_bounds = array<i64: 16, 120>}, {pipeline_mode = #tpu.pipeline_mode<synchronous>, transform_indices = @transform_1, window_bounds = array<i64: 120, 40>}, {pipeline_mode = #tpu.pipeline_mode<synchronous>, transform_indices = @transform_2, window_bounds = array<i64: 1, 40>}, {transform_indices = @transform_3, window_bounds = array<i64: 16, 40>}]} {
    %c0 = arith.constant 0 : index
    %c0_0 = arith.constant 0 : index
    %0 = vector.load %arg1[%c0, %c0_0] : memref<16x120xbf16, #tpu.memory_space<vmem>>, vector<16x120xbf16>
    %c0_1 = arith.constant 0 : index
    %c0_2 = arith.constant 0 : index
    %1 = vector.load %arg2[%c0_1, %c0_2] : memref<120x40xbf16, #tpu.memory_space<vmem>>, vector<120x40xbf16>
    %cst = arith.constant dense<0.000000e+00> : vector<16x40xf32>
    %2 = tpu.matmul %0, %1, %cst {dimension_numbers = #tpu.dot_dimension_numbers<[1], [0], [0], [1], [0, 0, 1, 1], [], []>} : vector<16x120xbf16>, vector<120x40xbf16>, vector<16x40xf32> -> vector<16x40xf32>
    %c0_3 = arith.constant 0 : index
    %c0_4 = arith.constant 0 : index
    %3 = vector.load %arg3[%c0_3, %c0_4] : memref<1x40xf32, #tpu.memory_space<vmem>>, vector<1x40xf32>
    %4 = vector.broadcast %3 : vector<1x40xf32> to vector<16x40xf32>
    %5 = arith.addf %2, %4 : vector<16x40xf32>
    %6 = arith.truncf %5 : vector<16x40xf32> to vector<16x40xbf16>
    %c0_5 = arith.constant 0 : index
    %c0_6 = arith.constant 0 : index
    %7 = vector.load %arg4[%c0_5, %c0_6] : memref<16x40xbf16, #tpu.memory_space<vmem>>, vector<16x40xbf16>
    tpu.vector_store %arg4[%c0_5, %c0_6], %6 {strides = array<i32>} : memref<16x40xbf16, #tpu.memory_space<vmem>>, vector<16x40xbf16>,
    return
  }
  func.func @transform_0(%arg0: i32) -> (i32, i32) {
    %c0_i32 = arith.constant 0 : i32
    %c0_i32_0 = arith.constant 0 : i32
    return %arg0, %c0_i32 : i32, i32
  }
  func.func @transform_1(%arg0: i32) -> (i32, i32) {
    %c0_i32 = arith.constant 0 : i32
    %c0_i32_0 = arith.constant 0 : i32
    %c0_i32_1 = arith.constant 0 : i32
    return %c0_i32, %c0_i32_0 : i32, i32
  }
  func.func @transform_2(%arg0: i32) -> (i32, i32) {
    %c0_i32 = arith.constant 0 : i32
    %c0_i32_0 = arith.constant 0 : i32
    %c0_i32_1 = arith.constant 0 : i32
    return %c0_i32, %c0_i32_0 : i32, i32
  }
  func.func @transform_3(%arg0: i32) -> (i32, i32) {
    %c0_i32 = arith.constant 0 : i32
    %c0_i32_0 = arith.constant 0 : i32
    return %arg0, %c0_i32 : i32, i32
  }
}

module attributes {stable_mosaic.version = 11 : i64} {
  func.func @_matmul_bn_res_kernel(%arg0: i32, %arg1: memref<16x120xbf16, #tpu.memory_space<vmem>>, %arg2: memref<120x40xbf16, #tpu.memory_space<vmem>>, %arg3: memref<1x40xf32, #tpu.memory_space<vmem>>, %arg4: memref<16x40xbf16, #tpu.memory_space<vmem>>, %arg5: memref<16x40xbf16, #tpu.memory_space<vmem>>) attributes {dimension_semantics = [#tpu.dimension_semantics<parallel>], iteration_bounds = array<i64: 2>, scalar_prefetch = 0 : i64, scratch_operands = 0 : i64, tpu.core_type = #tpu.core_type<tc>, window_params = [{transform_indices = @transform_0, window_bounds = array<i64: 16, 120>}, {pipeline_mode = #tpu.pipeline_mode<synchronous>, transform_indices = @transform_1, window_bounds = array<i64: 120, 40>}, {pipeline_mode = #tpu.pipeline_mode<synchronous>, transform_indices = @transform_2, window_bounds = array<i64: 1, 40>}, {transform_indices = @transform_3, window_bounds = array<i64: 16, 40>}, {transform_indices = @transform_4, window_bounds = array<i64: 16, 40>}]} {
    %c0 = arith.constant 0 : index
    %c0_0 = arith.constant 0 : index
    %0 = vector.load %arg1[%c0, %c0_0] : memref<16x120xbf16, #tpu.memory_space<vmem>>, vector<16x120xbf16>
    %c0_1 = arith.constant 0 : index
    %c0_2 = arith.constant 0 : index
    %1 = vector.load %arg2[%c0_1, %c0_2] : memref<120x40xbf16, #tpu.memory_space<vmem>>, vector<120x40xbf16>
    %cst = arith.constant dense<0.000000e+00> : vector<16x40xf32>
    %2 = tpu.matmul %0, %1, %cst {dimension_numbers = #tpu.dot_dimension_numbers<[1], [0], [0], [1], [0, 0, 1, 1], [], []>} : vector<16x120xbf16>, vector<120x40xbf16>, vector<16x40xf32> -> vector<16x40xf32>
    %c0_3 = arith.constant 0 : index
    %c0_4 = arith.constant 0 : index
    %3 = vector.load %arg3[%c0_3, %c0_4] : memref<1x40xf32, #tpu.memory_space<vmem>>, vector<1x40xf32>
    %4 = vector.broadcast %3 : vector<1x40xf32> to vector<16x40xf32>
    %5 = arith.addf %2, %4 : vector<16x40xf32>
    %c0_5 = arith.constant 0 : index
    %c0_6 = arith.constant 0 : index
    %6 = vector.load %arg4[%c0_5, %c0_6] : memref<16x40xbf16, #tpu.memory_space<vmem>>, vector<16x40xbf16>
    %7 = arith.extf %6 : vector<16x40xbf16> to vector<16x40xf32>
    %8 = arith.addf %5, %7 : vector<16x40xf32>
    %9 = arith.truncf %8 : vector<16x40xf32> to vector<16x40xbf16>
    %c0_7 = arith.constant 0 : index
    %c0_8 = arith.constant 0 : index
    %10 = vector.load %arg5[%c0_7, %c0_8] : memref<16x40xbf16, #tpu.memory_space<vmem>>, vector<16x40xbf16>
    tpu.vector_store %arg5[%c0_7, %c0_8], %9 {strides = array<i32>} : memref<16x40xbf16, #tpu.memory_space<vmem>>, vector<16x40xbf16>,
    return
  }
  func.func @transform_0(%arg0: i32) -> (i32, i32) {
    %c0_i32 = arith.constant 0 : i32
    %c0_i32_0 = arith.constant 0 : i32
    return %arg0, %c0_i32 : i32, i32
  }
  func.func @transform_1(%arg0: i32) -> (i32, i32) {
    %c0_i32 = arith.constant 0 : i32
    %c0_i32_0 = arith.constant 0 : i32
    %c0_i32_1 = arith.constant 0 : i32
    return %c0_i32, %c0_i32_0 : i32, i32
  }
  func.func @transform_2(%arg0: i32) -> (i32, i32) {
    %c0_i32 = arith.constant 0 : i32
    %c0_i32_0 = arith.constant 0 : i32
    %c0_i32_1 = arith.constant 0 : i32
    return %c0_i32, %c0_i32_0 : i32, i32
  }
  func.func @transform_3(%arg0: i32) -> (i32, i32) {
    %c0_i32 = arith.constant 0 : i32
    %c0_i32_0 = arith.constant 0 : i32
    return %arg0, %c0_i32 : i32, i32
  }
  func.func @transform_4(%arg0: i32) -> (i32, i32) {
    %c0_i32 = arith.constant 0 : i32
    %c0_i32_0 = arith.constant 0 : i32
    return %arg0, %c0_i32 : i32, i32
  }
}

module attributes {stable_mosaic.version = 11 : i64} {
  func.func @_matmul_bn_act_kernel(%arg0: i32, %arg1: memref<16x40xbf16, #tpu.memory_space<vmem>>, %arg2: memref<40x80xbf16, #tpu.memory_space<vmem>>, %arg3: memref<1x80xf32, #tpu.memory_space<vmem>>, %arg4: memref<16x80xbf16, #tpu.memory_space<vmem>>) attributes {dimension_semantics = [#tpu.dimension_semantics<parallel>], iteration_bounds = array<i64: 2>, scalar_prefetch = 0 : i64, scratch_operands = 0 : i64, tpu.core_type = #tpu.core_type<tc>, window_params = [{transform_indices = @transform_0, window_bounds = array<i64: 16, 40>}, {pipeline_mode = #tpu.pipeline_mode<synchronous>, transform_indices = @transform_1, window_bounds = array<i64: 40, 80>}, {pipeline_mode = #tpu.pipeline_mode<synchronous>, transform_indices = @transform_2, window_bounds = array<i64: 1, 80>}, {transform_indices = @transform_3, window_bounds = array<i64: 16, 80>}]} {
    %c0 = arith.constant 0 : index
    %c0_0 = arith.constant 0 : index
    %0 = vector.load %arg1[%c0, %c0_0] : memref<16x40xbf16, #tpu.memory_space<vmem>>, vector<16x40xbf16>
    %c0_1 = arith.constant 0 : index
    %c0_2 = arith.constant 0 : index
    %1 = vector.load %arg2[%c0_1, %c0_2] : memref<40x80xbf16, #tpu.memory_space<vmem>>, vector<40x80xbf16>
    %cst = arith.constant dense<0.000000e+00> : vector<16x80xf32>
    %2 = tpu.matmul %0, %1, %cst {dimension_numbers = #tpu.dot_dimension_numbers<[1], [0], [0], [1], [0, 0, 1, 1], [], []>} : vector<16x40xbf16>, vector<40x80xbf16>, vector<16x80xf32> -> vector<16x80xf32>
    %c0_3 = arith.constant 0 : index
    %c0_4 = arith.constant 0 : index
    %3 = vector.load %arg3[%c0_3, %c0_4] : memref<1x80xf32, #tpu.memory_space<vmem>>, vector<1x80xf32>
    %4 = vector.broadcast %3 : vector<1x80xf32> to vector<16x80xf32>
    %5 = arith.addf %2, %4 : vector<16x80xf32>
    %cst_5 = arith.constant 0.000000e+00 : f32
    %6 = vector.broadcast %cst_5 : f32 to vector<16x80xf32>
    %7 = arith.maximumf %5, %6 : vector<16x80xf32>
    %cst_6 = arith.constant 6.000000e+00 : f32
    %8 = vector.broadcast %cst_6 : f32 to vector<16x80xf32>
    %9 = arith.minimumf %7, %8 : vector<16x80xf32>
    %10 = arith.truncf %9 : vector<16x80xf32> to vector<16x80xbf16>
    %c0_7 = arith.constant 0 : index
    %c0_8 = arith.constant 0 : index
    %11 = vector.load %arg4[%c0_7, %c0_8] : memref<16x80xbf16, #tpu.memory_space<vmem>>, vector<16x80xbf16>
    tpu.vector_store %arg4[%c0_7, %c0_8], %10 {strides = array<i32>} : memref<16x80xbf16, #tpu.memory_space<vmem>>, vector<16x80xbf16>,
    return
  }
  func.func @transform_0(%arg0: i32) -> (i32, i32) {
    %c0_i32 = arith.constant 0 : i32
    %c0_i32_0 = arith.constant 0 : i32
    return %arg0, %c0_i32 : i32, i32
  }
  func.func @transform_1(%arg0: i32) -> (i32, i32) {
    %c0_i32 = arith.constant 0 : i32
    %c0_i32_0 = arith.constant 0 : i32
    %c0_i32_1 = arith.constant 0 : i32
    return %c0_i32, %c0_i32_0 : i32, i32
  }
  func.func @transform_2(%arg0: i32) -> (i32, i32) {
    %c0_i32 = arith.constant 0 : i32
    %c0_i32_0 = arith.constant 0 : i32
    %c0_i32_1 = arith.constant 0 : i32
    return %c0_i32, %c0_i32_0 : i32, i32
  }
  func.func @transform_3(%arg0: i32) -> (i32, i32) {
    %c0_i32 = arith.constant 0 : i32
    %c0_i32_0 = arith.constant 0 : i32
    return %arg0, %c0_i32 : i32, i32
  }
}

module attributes {stable_mosaic.version = 11 : i64} {
  func.func @_matmul_bn_act_kernel(%arg0: i32, %arg1: memref<16x80xbf16, #tpu.memory_space<vmem>>, %arg2: memref<80x240xbf16, #tpu.memory_space<vmem>>, %arg3: memref<1x240xf32, #tpu.memory_space<vmem>>, %arg4: memref<16x240xbf16, #tpu.memory_space<vmem>>) attributes {dimension_semantics = [#tpu.dimension_semantics<parallel>], iteration_bounds = array<i64: 2>, scalar_prefetch = 0 : i64, scratch_operands = 0 : i64, tpu.core_type = #tpu.core_type<tc>, window_params = [{transform_indices = @transform_0, window_bounds = array<i64: 16, 80>}, {pipeline_mode = #tpu.pipeline_mode<synchronous>, transform_indices = @transform_1, window_bounds = array<i64: 80, 240>}, {pipeline_mode = #tpu.pipeline_mode<synchronous>, transform_indices = @transform_2, window_bounds = array<i64: 1, 240>}, {transform_indices = @transform_3, window_bounds = array<i64: 16, 240>}]} {
    %c0 = arith.constant 0 : index
    %c0_0 = arith.constant 0 : index
    %0 = vector.load %arg1[%c0, %c0_0] : memref<16x80xbf16, #tpu.memory_space<vmem>>, vector<16x80xbf16>
    %c0_1 = arith.constant 0 : index
    %c0_2 = arith.constant 0 : index
    %1 = vector.load %arg2[%c0_1, %c0_2] : memref<80x240xbf16, #tpu.memory_space<vmem>>, vector<80x240xbf16>
    %cst = arith.constant dense<0.000000e+00> : vector<16x240xf32>
    %2 = tpu.matmul %0, %1, %cst {dimension_numbers = #tpu.dot_dimension_numbers<[1], [0], [0], [1], [0, 0, 1, 1], [], []>} : vector<16x80xbf16>, vector<80x240xbf16>, vector<16x240xf32> -> vector<16x240xf32>
    %c0_3 = arith.constant 0 : index
    %c0_4 = arith.constant 0 : index
    %3 = vector.load %arg3[%c0_3, %c0_4] : memref<1x240xf32, #tpu.memory_space<vmem>>, vector<1x240xf32>
    %4 = vector.broadcast %3 : vector<1x240xf32> to vector<16x240xf32>
    %5 = arith.addf %2, %4 : vector<16x240xf32>
    %cst_5 = arith.constant 0.000000e+00 : f32
    %6 = vector.broadcast %cst_5 : f32 to vector<16x240xf32>
    %7 = arith.maximumf %5, %6 : vector<16x240xf32>
    %cst_6 = arith.constant 6.000000e+00 : f32
    %8 = vector.broadcast %cst_6 : f32 to vector<16x240xf32>
    %9 = arith.minimumf %7, %8 : vector<16x240xf32>
    %10 = arith.truncf %9 : vector<16x240xf32> to vector<16x240xbf16>
    %c0_7 = arith.constant 0 : index
    %c0_8 = arith.constant 0 : index
    %11 = vector.load %arg4[%c0_7, %c0_8] : memref<16x240xbf16, #tpu.memory_space<vmem>>, vector<16x240xbf16>
    tpu.vector_store %arg4[%c0_7, %c0_8], %10 {strides = array<i32>} : memref<16x240xbf16, #tpu.memory_space<vmem>>, vector<16x240xbf16>,
    return
  }
  func.func @transform_0(%arg0: i32) -> (i32, i32) {
    %c0_i32 = arith.constant 0 : i32
    %c0_i32_0 = arith.constant 0 : i32
    return %arg0, %c0_i32 : i32, i32
  }
  func.func @transform_1(%arg0: i32) -> (i32, i32) {
    %c0_i32 = arith.constant 0 : i32
    %c0_i32_0 = arith.constant 0 : i32
    %c0_i32_1 = arith.constant 0 : i32
    return %c0_i32, %c0_i32_0 : i32, i32
  }
  func.func @transform_2(%arg0: i32) -> (i32, i32) {
    %c0_i32 = arith.constant 0 : i32
    %c0_i32_0 = arith.constant 0 : i32
    %c0_i32_1 = arith.constant 0 : i32
    return %c0_i32, %c0_i32_0 : i32, i32
  }
  func.func @transform_3(%arg0: i32) -> (i32, i32) {
    %c0_i32 = arith.constant 0 : i32
    %c0_i32_0 = arith.constant 0 : i32
    return %arg0, %c0_i32 : i32, i32
  }
}

module attributes {stable_mosaic.version = 11 : i64} {
  func.func @_matmul_bn_act_kernel(%arg0: i32, %arg1: memref<16x240xbf16, #tpu.memory_space<vmem>>, %arg2: memref<240x80xbf16, #tpu.memory_space<vmem>>, %arg3: memref<1x80xf32, #tpu.memory_space<vmem>>, %arg4: memref<16x80xbf16, #tpu.memory_space<vmem>>) attributes {dimension_semantics = [#tpu.dimension_semantics<parallel>], iteration_bounds = array<i64: 2>, scalar_prefetch = 0 : i64, scratch_operands = 0 : i64, tpu.core_type = #tpu.core_type<tc>, window_params = [{transform_indices = @transform_0, window_bounds = array<i64: 16, 240>}, {pipeline_mode = #tpu.pipeline_mode<synchronous>, transform_indices = @transform_1, window_bounds = array<i64: 240, 80>}, {pipeline_mode = #tpu.pipeline_mode<synchronous>, transform_indices = @transform_2, window_bounds = array<i64: 1, 80>}, {transform_indices = @transform_3, window_bounds = array<i64: 16, 80>}]} {
    %c0 = arith.constant 0 : index
    %c0_0 = arith.constant 0 : index
    %0 = vector.load %arg1[%c0, %c0_0] : memref<16x240xbf16, #tpu.memory_space<vmem>>, vector<16x240xbf16>
    %c0_1 = arith.constant 0 : index
    %c0_2 = arith.constant 0 : index
    %1 = vector.load %arg2[%c0_1, %c0_2] : memref<240x80xbf16, #tpu.memory_space<vmem>>, vector<240x80xbf16>
    %cst = arith.constant dense<0.000000e+00> : vector<16x80xf32>
    %2 = tpu.matmul %0, %1, %cst {dimension_numbers = #tpu.dot_dimension_numbers<[1], [0], [0], [1], [0, 0, 1, 1], [], []>} : vector<16x240xbf16>, vector<240x80xbf16>, vector<16x80xf32> -> vector<16x80xf32>
    %c0_3 = arith.constant 0 : index
    %c0_4 = arith.constant 0 : index
    %3 = vector.load %arg3[%c0_3, %c0_4] : memref<1x80xf32, #tpu.memory_space<vmem>>, vector<1x80xf32>
    %4 = vector.broadcast %3 : vector<1x80xf32> to vector<16x80xf32>
    %5 = arith.addf %2, %4 : vector<16x80xf32>
    %6 = arith.truncf %5 : vector<16x80xf32> to vector<16x80xbf16>
    %c0_5 = arith.constant 0 : index
    %c0_6 = arith.constant 0 : index
    %7 = vector.load %arg4[%c0_5, %c0_6] : memref<16x80xbf16, #tpu.memory_space<vmem>>, vector<16x80xbf16>
    tpu.vector_store %arg4[%c0_5, %c0_6], %6 {strides = array<i32>} : memref<16x80xbf16, #tpu.memory_space<vmem>>, vector<16x80xbf16>,
    return
  }
  func.func @transform_0(%arg0: i32) -> (i32, i32) {
    %c0_i32 = arith.constant 0 : i32
    %c0_i32_0 = arith.constant 0 : i32
    return %arg0, %c0_i32 : i32, i32
  }
  func.func @transform_1(%arg0: i32) -> (i32, i32) {
    %c0_i32 = arith.constant 0 : i32
    %c0_i32_0 = arith.constant 0 : i32
    %c0_i32_1 = arith.constant 0 : i32
    return %c0_i32, %c0_i32_0 : i32, i32
  }
  func.func @transform_2(%arg0: i32) -> (i32, i32) {
    %c0_i32 = arith.constant 0 : i32
    %c0_i32_0 = arith.constant 0 : i32
    %c0_i32_1 = arith.constant 0 : i32
    return %c0_i32, %c0_i32_0 : i32, i32
  }
  func.func @transform_3(%arg0: i32) -> (i32, i32) {
    %c0_i32 = arith.constant 0 : i32
    %c0_i32_0 = arith.constant 0 : i32
    return %arg0, %c0_i32 : i32, i32
  }
}

module attributes {stable_mosaic.version = 11 : i64} {
  func.func @_dwconv_bn_act_kernel(%arg0: i32, %arg1: memref<1x4x4x240xbf16, #tpu.memory_space<vmem>>, %arg2: memref<9x1x240xf32, #tpu.memory_space<vmem>>, %arg3: memref<1x1x240xf32, #tpu.memory_space<vmem>>, %arg4: memref<1x4x4x240xbf16, #tpu.memory_space<vmem>>, %arg5: memref<6x6x240xf32, #tpu.memory_space<vmem>>) attributes {dimension_semantics = [#tpu.dimension_semantics<parallel>], iteration_bounds = array<i64: 2>, scalar_prefetch = 0 : i64, scratch_operands = 1 : i64, tpu.core_type = #tpu.core_type<tc>, window_params = [{transform_indices = @transform_0, window_bounds = array<i64: 1, 4, 4, 240>}, {pipeline_mode = #tpu.pipeline_mode<synchronous>, transform_indices = @transform_1, window_bounds = array<i64: 9, 1, 240>}, {pipeline_mode = #tpu.pipeline_mode<synchronous>, transform_indices = @transform_2, window_bounds = array<i64: 1, 1, 240>}, {transform_indices = @transform_3, window_bounds = array<i64: 1, 4, 4, 240>}]} {
    %cst = arith.constant 0.000000e+00 : f32
    %0 = vector.broadcast %cst : f32 to vector<1x6x240xf32>
    %cst_0 = arith.constant 0.000000e+00 : f32
    %1 = vector.broadcast %cst_0 : f32 to vector<6x1x240xf32>
    %c0 = arith.constant 0 : index
    %c0_1 = arith.constant 0 : index
    %c0_2 = arith.constant 0 : index
    %2 = vector.load %arg5[%c0, %c0_1, %c0_2] : memref<6x6x240xf32, #tpu.memory_space<vmem>>, vector<1x6x240xf32>
    tpu.vector_store %arg5[%c0, %c0_1, %c0_2], %0 {strides = array<i32>} : memref<6x6x240xf32, #tpu.memory_space<vmem>>, vector<1x6x240xf32>,
    %c5 = arith.constant 5 : index
    %c0_3 = arith.constant 0 : index
    %c0_4 = arith.constant 0 : index
    %3 = vector.load %arg5[%c5, %c0_3, %c0_4] : memref<6x6x240xf32, #tpu.memory_space<vmem>>, vector<1x6x240xf32>
    tpu.vector_store %arg5[%c5, %c0_3, %c0_4], %0 {strides = array<i32>} : memref<6x6x240xf32, #tpu.memory_space<vmem>>, vector<1x6x240xf32>,
    %c0_5 = arith.constant 0 : index
    %c0_6 = arith.constant 0 : index
    %c0_7 = arith.constant 0 : index
    %4 = vector.load %arg5[%c0_5, %c0_6, %c0_7] : memref<6x6x240xf32, #tpu.memory_space<vmem>>, vector<6x1x240xf32>
    tpu.vector_store %arg5[%c0_5, %c0_6, %c0_7], %1 {strides = array<i32>} : memref<6x6x240xf32, #tpu.memory_space<vmem>>, vector<6x1x240xf32>,
    %c0_8 = arith.constant 0 : index
    %c5_9 = arith.constant 5 : index
    %c0_10 = arith.constant 0 : index
    %5 = vector.load %arg5[%c0_8, %c5_9, %c0_10] : memref<6x6x240xf32, #tpu.memory_space<vmem>>, vector<6x1x240xf32>
    tpu.vector_store %arg5[%c0_8, %c5_9, %c0_10], %1 {strides = array<i32>} : memref<6x6x240xf32, #tpu.memory_space<vmem>>, vector<6x1x240xf32>,
    %c0_11 = arith.constant 0 : index
    %c0_12 = arith.constant 0 : index
    %c0_13 = arith.constant 0 : index
    %c0_14 = arith.constant 0 : index
    %6 = vector.load %arg1[%c0_11, %c0_12, %c0_13, %c0_14] : memref<1x4x4x240xbf16, #tpu.memory_space<vmem>>, vector<1x4x4x240xbf16>
    %7 = vector.shape_cast %6 : vector<1x4x4x240xbf16> to vector<4x4x240xbf16>
    %8 = arith.extf %7 : vector<4x4x240xbf16> to vector<4x4x240xf32>
    %c1 = arith.constant 1 : index
    %c1_15 = arith.constant 1 : index
    %c0_16 = arith.constant 0 : index
    %9 = vector.load %arg5[%c1, %c1_15, %c0_16] : memref<6x6x240xf32, #tpu.memory_space<vmem>>, vector<4x4x240xf32>
    tpu.vector_store %arg5[%c1, %c1_15, %c0_16], %8 {strides = array<i32>} : memref<6x6x240xf32, #tpu.memory_space<vmem>>, vector<4x4x240xf32>,
    %c0_17 = arith.constant 0 : index
    %c0_18 = arith.constant 0 : index
    %c0_19 = arith.constant 0 : index
    %10 = vector.load %arg5[%c0_17, %c0_18, %c0_19] : memref<6x6x240xf32, #tpu.memory_space<vmem>>, vector<4x4x240xf32>
    %c0_20 = arith.constant 0 : index
    %c0_21 = arith.constant 0 : index
    %c0_22 = arith.constant 0 : index
    %11 = vector.load %arg2[%c0_20, %c0_21, %c0_22] : memref<9x1x240xf32, #tpu.memory_space<vmem>>, vector<1x1x240xf32>
    %12 = vector.shape_cast %11 : vector<1x1x240xf32> to vector<1x240xf32>
    %13 = vector.shape_cast %12 : vector<1x240xf32> to vector<1x1x240xf32>
    %14 = vector.broadcast %13 : vector<1x1x240xf32> to vector<4x4x240xf32>
    %15 = arith.mulf %10, %14 : vector<4x4x240xf32>
    %c0_23 = arith.constant 0 : index
    %c1_24 = arith.constant 1 : index
    %c0_25 = arith.constant 0 : index
    %16 = vector.load %arg5[%c0_23, %c1_24, %c0_25] : memref<6x6x240xf32, #tpu.memory_space<vmem>>, vector<4x4x240xf32>
    %c1_26 = arith.constant 1 : index
    %c0_27 = arith.constant 0 : index
    %c0_28 = arith.constant 0 : index
    %17 = vector.load %arg2[%c1_26, %c0_27, %c0_28] : memref<9x1x240xf32, #tpu.memory_space<vmem>>, vector<1x1x240xf32>
    %18 = vector.shape_cast %17 : vector<1x1x240xf32> to vector<1x240xf32>
    %19 = vector.shape_cast %18 : vector<1x240xf32> to vector<1x1x240xf32>
    %20 = vector.broadcast %19 : vector<1x1x240xf32> to vector<4x4x240xf32>
    %21 = arith.mulf %16, %20 : vector<4x4x240xf32>
    %22 = arith.addf %15, %21 : vector<4x4x240xf32>
    %c0_29 = arith.constant 0 : index
    %c2 = arith.constant 2 : index
    %c0_30 = arith.constant 0 : index
    %23 = vector.load %arg5[%c0_29, %c2, %c0_30] : memref<6x6x240xf32, #tpu.memory_space<vmem>>, vector<4x4x240xf32>
    %c2_31 = arith.constant 2 : index
    %c0_32 = arith.constant 0 : index
    %c0_33 = arith.constant 0 : index
    %24 = vector.load %arg2[%c2_31, %c0_32, %c0_33] : memref<9x1x240xf32, #tpu.memory_space<vmem>>, vector<1x1x240xf32>
    %25 = vector.shape_cast %24 : vector<1x1x240xf32> to vector<1x240xf32>
    %26 = vector.shape_cast %25 : vector<1x240xf32> to vector<1x1x240xf32>
    %27 = vector.broadcast %26 : vector<1x1x240xf32> to vector<4x4x240xf32>
    %28 = arith.mulf %23, %27 : vector<4x4x240xf32>
    %29 = arith.addf %22, %28 : vector<4x4x240xf32>
    %c1_34 = arith.constant 1 : index
    %c0_35 = arith.constant 0 : index
    %c0_36 = arith.constant 0 : index
    %30 = vector.load %arg5[%c1_34, %c0_35, %c0_36] : memref<6x6x240xf32, #tpu.memory_space<vmem>>, vector<4x4x240xf32>
    %c3 = arith.constant 3 : index
    %c0_37 = arith.constant 0 : index
    %c0_38 = arith.constant 0 : index
    %31 = vector.load %arg2[%c3, %c0_37, %c0_38] : memref<9x1x240xf32, #tpu.memory_space<vmem>>, vector<1x1x240xf32>
    %32 = vector.shape_cast %31 : vector<1x1x240xf32> to vector<1x240xf32>
    %33 = vector.shape_cast %32 : vector<1x240xf32> to vector<1x1x240xf32>
    %34 = vector.broadcast %33 : vector<1x1x240xf32> to vector<4x4x240xf32>
    %35 = arith.mulf %30, %34 : vector<4x4x240xf32>
    %36 = arith.addf %29, %35 : vector<4x4x240xf32>
    %c1_39 = arith.constant 1 : index
    %c1_40 = arith.constant 1 : index
    %c0_41 = arith.constant 0 : index
    %37 = vector.load %arg5[%c1_39, %c1_40, %c0_41] : memref<6x6x240xf32, #tpu.memory_space<vmem>>, vector<4x4x240xf32>
    %c4 = arith.constant 4 : index
    %c0_42 = arith.constant 0 : index
    %c0_43 = arith.constant 0 : index
    %38 = vector.load %arg2[%c4, %c0_42, %c0_43] : memref<9x1x240xf32, #tpu.memory_space<vmem>>, vector<1x1x240xf32>
    %39 = vector.shape_cast %38 : vector<1x1x240xf32> to vector<1x240xf32>
    %40 = vector.shape_cast %39 : vector<1x240xf32> to vector<1x1x240xf32>
    %41 = vector.broadcast %40 : vector<1x1x240xf32> to vector<4x4x240xf32>
    %42 = arith.mulf %37, %41 : vector<4x4x240xf32>
    %43 = arith.addf %36, %42 : vector<4x4x240xf32>
    %c1_44 = arith.constant 1 : index
    %c2_45 = arith.constant 2 : index
    %c0_46 = arith.constant 0 : index
    %44 = vector.load %arg5[%c1_44, %c2_45, %c0_46] : memref<6x6x240xf32, #tpu.memory_space<vmem>>, vector<4x4x240xf32>
    %c5_47 = arith.constant 5 : index
    %c0_48 = arith.constant 0 : index
    %c0_49 = arith.constant 0 : index
    %45 = vector.load %arg2[%c5_47, %c0_48, %c0_49] : memref<9x1x240xf32, #tpu.memory_space<vmem>>, vector<1x1x240xf32>
    %46 = vector.shape_cast %45 : vector<1x1x240xf32> to vector<1x240xf32>
    %47 = vector.shape_cast %46 : vector<1x240xf32> to vector<1x1x240xf32>
    %48 = vector.broadcast %47 : vector<1x1x240xf32> to vector<4x4x240xf32>
    %49 = arith.mulf %44, %48 : vector<4x4x240xf32>
    %50 = arith.addf %43, %49 : vector<4x4x240xf32>
    %c2_50 = arith.constant 2 : index
    %c0_51 = arith.constant 0 : index
    %c0_52 = arith.constant 0 : index
    %51 = vector.load %arg5[%c2_50, %c0_51, %c0_52] : memref<6x6x240xf32, #tpu.memory_space<vmem>>, vector<4x4x240xf32>
    %c6 = arith.constant 6 : index
    %c0_53 = arith.constant 0 : index
    %c0_54 = arith.constant 0 : index
    %52 = vector.load %arg2[%c6, %c0_53, %c0_54] : memref<9x1x240xf32, #tpu.memory_space<vmem>>, vector<1x1x240xf32>
    %53 = vector.shape_cast %52 : vector<1x1x240xf32> to vector<1x240xf32>
    %54 = vector.shape_cast %53 : vector<1x240xf32> to vector<1x1x240xf32>
    %55 = vector.broadcast %54 : vector<1x1x240xf32> to vector<4x4x240xf32>
    %56 = arith.mulf %51, %55 : vector<4x4x240xf32>
    %57 = arith.addf %50, %56 : vector<4x4x240xf32>
    %c2_55 = arith.constant 2 : index
    %c1_56 = arith.constant 1 : index
    %c0_57 = arith.constant 0 : index
    %58 = vector.load %arg5[%c2_55, %c1_56, %c0_57] : memref<6x6x240xf32, #tpu.memory_space<vmem>>, vector<4x4x240xf32>
    %c7 = arith.constant 7 : index
    %c0_58 = arith.constant 0 : index
    %c0_59 = arith.constant 0 : index
    %59 = vector.load %arg2[%c7, %c0_58, %c0_59] : memref<9x1x240xf32, #tpu.memory_space<vmem>>, vector<1x1x240xf32>
    %60 = vector.shape_cast %59 : vector<1x1x240xf32> to vector<1x240xf32>
    %61 = vector.shape_cast %60 : vector<1x240xf32> to vector<1x1x240xf32>
    %62 = vector.broadcast %61 : vector<1x1x240xf32> to vector<4x4x240xf32>
    %63 = arith.mulf %58, %62 : vector<4x4x240xf32>
    %64 = arith.addf %57, %63 : vector<4x4x240xf32>
    %c2_60 = arith.constant 2 : index
    %c2_61 = arith.constant 2 : index
    %c0_62 = arith.constant 0 : index
    %65 = vector.load %arg5[%c2_60, %c2_61, %c0_62] : memref<6x6x240xf32, #tpu.memory_space<vmem>>, vector<4x4x240xf32>
    %c8 = arith.constant 8 : index
    %c0_63 = arith.constant 0 : index
    %c0_64 = arith.constant 0 : index
    %66 = vector.load %arg2[%c8, %c0_63, %c0_64] : memref<9x1x240xf32, #tpu.memory_space<vmem>>, vector<1x1x240xf32>
    %67 = vector.shape_cast %66 : vector<1x1x240xf32> to vector<1x240xf32>
    %68 = vector.shape_cast %67 : vector<1x240xf32> to vector<1x1x240xf32>
    %69 = vector.broadcast %68 : vector<1x1x240xf32> to vector<4x4x240xf32>
    %70 = arith.mulf %65, %69 : vector<4x4x240xf32>
    %71 = arith.addf %64, %70 : vector<4x4x240xf32>
    %c0_65 = arith.constant 0 : index
    %c0_66 = arith.constant 0 : index
    %c0_67 = arith.constant 0 : index
    %72 = vector.load %arg3[%c0_65, %c0_66, %c0_67] : memref<1x1x240xf32, #tpu.memory_space<vmem>>, vector<1x1x240xf32>
    %73 = vector.broadcast %72 : vector<1x1x240xf32> to vector<4x4x240xf32>
    %74 = arith.addf %71, %73 : vector<4x4x240xf32>
    %cst_68 = arith.constant 0.000000e+00 : f32
    %75 = vector.broadcast %cst_68 : f32 to vector<4x4x240xf32>
    %76 = arith.maximumf %74, %75 : vector<4x4x240xf32>
    %cst_69 = arith.constant 6.000000e+00 : f32
    %77 = vector.broadcast %cst_69 : f32 to vector<4x4x240xf32>
    %78 = arith.minimumf %76, %77 : vector<4x4x240xf32>
    %79 = arith.truncf %78 : vector<4x4x240xf32> to vector<4x4x240xbf16>
    %c0_70 = arith.constant 0 : index
    %c0_71 = arith.constant 0 : index
    %c0_72 = arith.constant 0 : index
    %c0_73 = arith.constant 0 : index
    %80 = vector.load %arg4[%c0_70, %c0_71, %c0_72, %c0_73] : memref<1x4x4x240xbf16, #tpu.memory_space<vmem>>, vector<1x4x4x240xbf16>
    %81 = vector.shape_cast %80 : vector<1x4x4x240xbf16> to vector<4x4x240xbf16>
    %82 = vector.shape_cast %79 : vector<4x4x240xbf16> to vector<1x4x4x240xbf16>
    tpu.vector_store %arg4[%c0_70, %c0_71, %c0_72, %c0_73], %82 {strides = array<i32>} : memref<1x4x4x240xbf16, #tpu.memory_space<vmem>>, vector<1x4x4x240xbf16>,
    return
  }
  func.func @transform_0(%arg0: i32) -> (i32, i32, i32, i32) {
    %c0_i32 = arith.constant 0 : i32
    %c0_i32_0 = arith.constant 0 : i32
    %c0_i32_1 = arith.constant 0 : i32
    %c0_i32_2 = arith.constant 0 : i32
    return %arg0, %c0_i32, %c0_i32_0, %c0_i32_1 : i32, i32, i32, i32
  }
  func.func @transform_1(%arg0: i32) -> (i32, i32, i32) {
    %c0_i32 = arith.constant 0 : i32
    %c0_i32_0 = arith.constant 0 : i32
    %c0_i32_1 = arith.constant 0 : i32
    %c0_i32_2 = arith.constant 0 : i32
    return %c0_i32, %c0_i32_0, %c0_i32_1 : i32, i32, i32
  }
  func.func @transform_2(%arg0: i32) -> (i32, i32, i32) {
    %c0_i32 = arith.constant 0 : i32
    %c0_i32_0 = arith.constant 0 : i32
    %c0_i32_1 = arith.constant 0 : i32
    %c0_i32_2 = arith.constant 0 : i32
    return %c0_i32, %c0_i32_0, %c0_i32_1 : i32, i32, i32
  }
  func.func @transform_3(%arg0: i32) -> (i32, i32, i32, i32) {
    %c0_i32 = arith.constant 0 : i32
    %c0_i32_0 = arith.constant 0 : i32
    %c0_i32_1 = arith.constant 0 : i32
    %c0_i32_2 = arith.constant 0 : i32
    return %arg0, %c0_i32, %c0_i32_0, %c0_i32_1 : i32, i32, i32, i32
  }
}

module attributes {stable_mosaic.version = 11 : i64} {
  func.func @_fmix_gap_kernel(%arg0: i32, %arg1: i32, %arg2: memref<1x16x80xbf16, #tpu.memory_space<vmem>>, %arg3: memref<80x1280xbf16, #tpu.memory_space<vmem>>, %arg4: memref<1x1280xf32, #tpu.memory_space<vmem>>, %arg5: memref<1x1x1280xf32, #tpu.memory_space<vmem>>) attributes {dimension_semantics = [#tpu.dimension_semantics<parallel>, #tpu.dimension_semantics<arbitrary>], iteration_bounds = array<i64: 2, 1>, scalar_prefetch = 0 : i64, scratch_operands = 0 : i64, tpu.core_type = #tpu.core_type<tc>, window_params = [{transform_indices = @transform_0, window_bounds = array<i64: 1, 16, 80>}, {pipeline_mode = #tpu.pipeline_mode<synchronous>, transform_indices = @transform_1, window_bounds = array<i64: 80, 1280>}, {pipeline_mode = #tpu.pipeline_mode<synchronous>, transform_indices = @transform_2, window_bounds = array<i64: 1, 1280>}, {transform_indices = @transform_3, window_bounds = array<i64: 1, 1, 1280>}]} {
    %c0_i32 = arith.constant 0 : i32
    %0 = arith.cmpi eq, %arg1, %c0_i32 : i32
    %1 = arith.extui %0 : i1 to i32
    %c0_i32_0 = arith.constant 0 : i32
    %2 = arith.cmpi ne, %1, %c0_i32_0 : i32
    scf.if %2 {
      %cst_17 = arith.constant 0.000000e+00 : f32
      %22 = vector.broadcast %cst_17 : f32 to vector<1x1x1280xf32>
      %c0_18 = arith.constant 0 : index
      %c0_19 = arith.constant 0 : index
      %c0_20 = arith.constant 0 : index
      %23 = vector.load %arg5[%c0_18, %c0_19, %c0_20] : memref<1x1x1280xf32, #tpu.memory_space<vmem>>, vector<1x1x1280xf32>
      tpu.vector_store %arg5[%c0_18, %c0_19, %c0_20], %22 {strides = array<i32>} : memref<1x1x1280xf32, #tpu.memory_space<vmem>>, vector<1x1x1280xf32>,
    } else {
    }
    %c0 = arith.constant 0 : index
    %c0_1 = arith.constant 0 : index
    %c0_2 = arith.constant 0 : index
    %3 = vector.load %arg2[%c0, %c0_1, %c0_2] : memref<1x16x80xbf16, #tpu.memory_space<vmem>>, vector<1x16x80xbf16>
    %4 = vector.shape_cast %3 : vector<1x16x80xbf16> to vector<16x80xbf16>
    %c0_3 = arith.constant 0 : index
    %c0_4 = arith.constant 0 : index
    %5 = vector.load %arg3[%c0_3, %c0_4] : memref<80x1280xbf16, #tpu.memory_space<vmem>>, vector<80x1280xbf16>
    %cst = arith.constant dense<0.000000e+00> : vector<16x1280xf32>
    %6 = tpu.matmul %4, %5, %cst {dimension_numbers = #tpu.dot_dimension_numbers<[1], [0], [0], [1], [0, 0, 1, 1], [], []>} : vector<16x80xbf16>, vector<80x1280xbf16>, vector<16x1280xf32> -> vector<16x1280xf32>
    %c0_5 = arith.constant 0 : index
    %c0_6 = arith.constant 0 : index
    %7 = vector.load %arg4[%c0_5, %c0_6] : memref<1x1280xf32, #tpu.memory_space<vmem>>, vector<1x1280xf32>
    %8 = vector.broadcast %7 : vector<1x1280xf32> to vector<16x1280xf32>
    %9 = arith.addf %6, %8 : vector<16x1280xf32>
    %cst_7 = arith.constant 0.000000e+00 : f32
    %10 = vector.broadcast %cst_7 : f32 to vector<16x1280xf32>
    %11 = arith.maximumf %9, %10 : vector<16x1280xf32>
    %cst_8 = arith.constant 6.000000e+00 : f32
    %12 = vector.broadcast %cst_8 : f32 to vector<16x1280xf32>
    %13 = arith.minimumf %11, %12 : vector<16x1280xf32>
    %cst_9 = arith.constant dense<0.000000e+00> : vector<1280xf32>
    %14 = vector.multi_reduction <add>, %13, %cst_9 [0] : vector<16x1280xf32> to vector<1280xf32>
    %15 = vector.shape_cast %14 : vector<1280xf32> to vector<1x1280xf32>
    %cst_10 = arith.constant 6.250000e-02 : f32
    %16 = vector.broadcast %cst_10 : f32 to vector<1x1280xf32>
    %17 = arith.mulf %15, %16 : vector<1x1280xf32>
    %c0_11 = arith.constant 0 : index
    %c0_12 = arith.constant 0 : index
    %c0_13 = arith.constant 0 : index
    %18 = vector.load %arg5[%c0_11, %c0_12, %c0_13] : memref<1x1x1280xf32, #tpu.memory_space<vmem>>, vector<1x1x1280xf32>
    %19 = vector.shape_cast %17 : vector<1x1280xf32> to vector<1x1x1280xf32>
    %20 = arith.addf %18, %19 : vector<1x1x1280xf32>
    %c0_14 = arith.constant 0 : index
    %c0_15 = arith.constant 0 : index
    %c0_16 = arith.constant 0 : index
    %21 = vector.load %arg5[%c0_14, %c0_15, %c0_16] : memref<1x1x1280xf32, #tpu.memory_space<vmem>>, vector<1x1x1280xf32>
    tpu.vector_store %arg5[%c0_14, %c0_15, %c0_16], %20 {strides = array<i32>} : memref<1x1x1280xf32, #tpu.memory_space<vmem>>, vector<1x1x1280xf32>,
    return
  }
  func.func @transform_0(%arg0: i32, %arg1: i32) -> (i32, i32, i32) {
    %c0_i32 = arith.constant 0 : i32
    %c0_i32_0 = arith.constant 0 : i32
    return %arg0, %arg1, %c0_i32 : i32, i32, i32
  }
  func.func @transform_1(%arg0: i32, %arg1: i32) -> (i32, i32) {
    %c0_i32 = arith.constant 0 : i32
    %c0_i32_0 = arith.constant 0 : i32
    %c0_i32_1 = arith.constant 0 : i32
    return %c0_i32, %c0_i32_0 : i32, i32
  }
  func.func @transform_2(%arg0: i32, %arg1: i32) -> (i32, i32) {
    %c0_i32 = arith.constant 0 : i32
    %c0_i32_0 = arith.constant 0 : i32
    %c0_i32_1 = arith.constant 0 : i32
    return %c0_i32, %c0_i32_0 : i32, i32
  }
  func.func @transform_3(%arg0: i32, %arg1: i32) -> (i32, i32, i32) {
    %c0_i32 = arith.constant 0 : i32
    %c0_i32_0 = arith.constant 0 : i32
    %c0_i32_1 = arith.constant 0 : i32
    return %arg0, %c0_i32, %c0_i32_0 : i32, i32, i32
  }
}

module attributes {stable_mosaic.version = 11 : i64} {
  func.func @_classifier_kernel(%arg0: memref<2x1280xbf16, #tpu.memory_space<vmem>>, %arg1: memref<1280x1000xbf16, #tpu.memory_space<vmem>>, %arg2: memref<1x1000xf32, #tpu.memory_space<vmem>>, %arg3: memref<2x1000xf32, #tpu.memory_space<vmem>>) attributes {dimension_semantics = [], scalar_prefetch = 0 : i64, scratch_operands = 0 : i64, tpu.core_type = #tpu.core_type<tc>} {
    %c0 = arith.constant 0 : index
    %c0_0 = arith.constant 0 : index
    %0 = vector.load %arg0[%c0, %c0_0] : memref<2x1280xbf16, #tpu.memory_space<vmem>>, vector<2x1280xbf16>
    %c0_1 = arith.constant 0 : index
    %c0_2 = arith.constant 0 : index
    %1 = vector.load %arg1[%c0_1, %c0_2] : memref<1280x1000xbf16, #tpu.memory_space<vmem>>, vector<1280x1000xbf16>
    %cst = arith.constant dense<0.000000e+00> : vector<2x1000xf32>
    %2 = tpu.matmul %0, %1, %cst {dimension_numbers = #tpu.dot_dimension_numbers<[1], [0], [0], [1], [0, 0, 1, 1], [], []>} : vector<2x1280xbf16>, vector<1280x1000xbf16>, vector<2x1000xf32> -> vector<2x1000xf32>
    %c0_3 = arith.constant 0 : index
    %c0_4 = arith.constant 0 : index
    %3 = vector.load %arg2[%c0_3, %c0_4] : memref<1x1000xf32, #tpu.memory_space<vmem>>, vector<1x1000xf32>
    %4 = vector.broadcast %3 : vector<1x1000xf32> to vector<2x1000xf32>
    %5 = arith.addf %2, %4 : vector<2x1000xf32>
    %c0_5 = arith.constant 0 : index
    %c0_6 = arith.constant 0 : index
    %6 = vector.load %arg3[%c0_5, %c0_6] : memref<2x1000xf32, #tpu.memory_space<vmem>>, vector<2x1000xf32>
    tpu.vector_store %arg3[%c0_5, %c0_6], %5 {strides = array<i32>} : memref<2x1000xf32, #tpu.memory_space<vmem>>, vector<2x1000xf32>,
    return
  }
}

</mosaic_0001>

<bundles_post_ra>
// kernel: _lambda_.25
= control target key start
LH: loop header
LB: loop body
LE: loop exit
PB: predicated region body
PF: predicated region fallthrough
CT: control target
= control target key end

     0   :  { %s959_s12 = smov 0   ;;  %s1126_s0 = inlined_call_operand.vmem [shape: bf16[512,32], index: 0, kind: input, shape index: {}]   ;;  %s1127_s1 = inlined_call_operand.vmem [shape: bf16[32,16], index: 1, kind: input, shape index: {}]   ;;  %s1128_s2 = inlined_call_operand.vmem [shape: f32[1,16], index: 2, kind: input, shape index: {}]   ;;  %s1129_s3 = inlined_call_operand.vmem [shape: bf16[512,16], index: 3, kind: output, shape index: {}]  }
   0x1 LB: > { %s737_s13 = sadd.s32 4294967295, %s937_s12   ;;  %p741_p0 = scmp.ge.s32.totalorder %s937_s12, 1  ;;  %s937_s12 = sphi %s959_s12, %s13_s12  }
   0x2   : > { %p138_p1 = scmp.lt.s32.totalorder %s937_s12, 3 }
   0x4   : > { %p139_p2 = pnand %p741_p0, %p138_p1 }
   0x5   : > { %v913_v0 = vld [vmem:[%s1127_s1] sm:$0xff] (!%p139_p2)   ;;  %s742_s16 = sshll.u32 (!%p139_p2), %s737_s13, 5  ;;  %v914_v1 = vld [vmem:[%s1127_s1 + $0x8] sm:$0xff] (!%p139_p2)   ;;  %vm310_vm0 = vcmask (!%p139_p2), 261120   ;;  %vm648_vm1 = vcmask (!%p139_p2), 125952  }
   0x6   : > { %142 = sbr.rel (%p139_p2) target bundleno = 263 (0x107), region = 32  ;;  %p163_p3 = scmp.lt.s32.totalorder (!%p139_p2), %s742_s16, 63  ;;  %865 = vmatprep.subr.bf16.mxu0 (!%p139_p2), %v913_v0  ;;  %901 = vmatprep.subr.bf16.mxu1 (!%p139_p2), %v913_v0  ;;  %v1018_v18 = vld [vmem:[%s1128_s2] ss:$0 sm:$0xff] (!%p139_p2) }
   0x7   : > { %866 = vmatpush3.bf16.msra.mxu0 (!%p139_p2), %v913_v0  ;;  %903 = vmatpush3.bf16.msra.mxu1 (!%p139_p2), %v913_v0 }
   0x8   : > { %867 = vmatprep.subr.bf16.mxu0 (!%p139_p2), %v914_v1  ;;  %902 = vmatprep.subr.bf16.mxu1 (!%p139_p2), %v914_v1 }
   0xb   : > { %868 = vmatpush3.bf16.msra.mxu0 (!%p139_p2), %v914_v1  ;;  %904 = vmatpush3.bf16.msra.mxu1 (!%p139_p2), %v914_v1 }
   0xd   : > { %s1131_s16 = smov (!%p163_p3, %s742_s16), 63 }
   0xe   : > { %s743_s19 = sshll.u32 %s1131_s16, 2 }
   0xf   : > { %s981_s22 = scalar_lea.vmem %s1126_s0, %s743_s19  ;;  %s1026_s27 = scalar_lea.vmem %s1129_s3, %s743_s19 }
  0x10   : > { %v915_v2 = vld [vmem:[%s981_s22] sm:$0xff]   ;;  %v917_v4 = vld [vmem:[%s981_s22 + $0x8] sm:$0xff]   ;;  %v919_v6 = vld [vmem:[%s981_s22 + $0x10] sm:$0xff]  }
  0x11   : > { %v916_v3 = vld [vmem:[%s981_s22 + $0x40] sm:$0xff]   ;;  %869 = vmatprep.mubr.msk.bf16.mxu0 %vm310_vm0, %v915_v2  ;;  %v918_v5 = vld [vmem:[%s981_s22 + $0x48] sm:$0xff]   ;;  %v920_v7 = vld [vmem:[%s981_s22 + $0x50] sm:$0xff]  }
  0x12   : > { %885 = vmatprep.mubr.msk.bf16.mxu1 %vm310_vm0, %v916_v3  ;;  %870 = vmatmul.mubr.msk.bf16.vlgmr.msra.gmra.mrb[0].mxu0 %vm310_vm0, %v917_v4  ;;  %v921_v8 = vld [vmem:[%s981_s22 + $0x18] sm:$0xff]   ;;  %v923_v10 = vld [vmem:[%s981_s22 + $0x20] sm:$0xff]   ;;  %v925_v12 = vld [vmem:[%s981_s22 + $0x28] sm:$0xff]  }
  0x13   : > { %886 = vmatmul.mubr.msk.bf16.vlgmr.msra.gmra.mrb[0].mxu1 %vm310_vm0, %v918_v5  ;;  %873 = vmatprep.mubr.msk.bf16.mxu0 %vm310_vm0, %v919_v6  ;;  %v922_v9 = vld [vmem:[%s981_s22 + $0x58] sm:$0xff]   ;;  %v924_v11 = vld [vmem:[%s981_s22 + $0x60] sm:$0xff]   ;;  %v926_v13 = vld [vmem:[%s981_s22 + $0x68] sm:$0xff]  }
  0x14   : > { %889 = vmatprep.mubr.msk.bf16.mxu1 %vm310_vm0, %v920_v7  ;;  %v927_v14 = vld [vmem:[%s981_s22 + $0x30] sm:$0xff]   ;;  %v929_v16 = vld [vmem:[%s981_s22 + $0x38] sm:$0xff]  }
  0x15   : > { %v928_v15 = vld [vmem:[%s981_s22 + $0x70] sm:$0xff]   ;;  %v930_v17 = vld [vmem:[%s981_s22 + $0x78] sm:$0xff]  }
  0x1a   : > { %874 = vmatmul.mubr.msk.bf16.gmra.mrb[4].mxu0 %vm310_vm0, %v921_v8 }
  0x1b   : > { %890 = vmatmul.mubr.msk.bf16.gmra.mrb[4].mxu1 %vm310_vm0, %v922_v9  ;;  %877 = vmatprep.mubr.msk.bf16.mxu0 %vm310_vm0, %v923_v10 }
  0x1c   : > { %893 = vmatprep.mubr.msk.bf16.mxu1 %vm310_vm0, %v924_v11 }
  0x22   : > { %878 = vmatmul.mubr.msk.bf16.gmra.mrb[8].mxu0 %vm310_vm0, %v925_v12 }
  0x23   : > { %894 = vmatmul.mubr.msk.bf16.gmra.mrb[8].mxu1 %vm310_vm0, %v926_v13  ;;  %881 = vmatprep.mubr.msk.bf16.mxu0 %vm310_vm0, %v927_v14 }
  0x24   : > { %897 = vmatprep.mubr.msk.bf16.mxu1 %vm310_vm0, %v928_v15 }
  0x2a   : > { %882 = vmatmul.mubr.msk.bf16.gmra.mrb[12].mxu0 %vm310_vm0, %v929_v16 }
  0x2b   : > { %898 = vmatmul.mubr.msk.bf16.gmra.mrb[12].mxu1 %vm310_vm0, %v930_v17 }
  0xe5   : > { %v871_v19 = vpop.f32.mrb[0].mxu0 }
  0xe6   : > { %v402_v20 = vadd.f32 %v871_v19, %v1018_v18  ;;  %v887_v21 = vpop.f32.mrb[0].mxu1  ;;  %v393_v22 = vpop.f32.mrb[1].mxu0 }
  0xe7   : > { %v466_v23 = vadd.f32 %v887_v21, %v1018_v18  ;;  %v394_v24 = vadd.f32 %v1018_v18, %v393_v22  ;;  %v457_v25 = vpop.f32.mrb[1].mxu1  ;;  %v872_v26 = vpop.f32.mrb[2].mxu0 }
  0xe8   : > { %v817_v27 = vpack.c.bf16 %v402_v20, %v402_v20  ;;  %v458_v28 = vadd.f32 %v1018_v18, %v457_v25  ;;  %v405_v29 = vadd.f32 %v872_v26, %v1018_v18  ;;  %v888_v30 = vpop.f32.mrb[2].mxu1  ;;  %v396_v31 = vpop.f32.mrb[3].mxu0 }
  0xe9   : > { %v833_v32 = vpack.c.bf16 %v466_v23, %v466_v23  ;;  %v815_v33 = vpack.c.bf16 %v394_v24, %v394_v24  ;;  %v469_v34 = vadd.f32 %v888_v30, %v1018_v18  ;;  %v397_v35 = vadd.f32 %v1018_v18, %v396_v31  ;;  %v460_v36 = vpop.f32.mrb[3].mxu1 }
  0xea   : > { %651 = vst.msk [vmem:[%s1026_s27 + $0x8] sm:$0xf] %vm648_vm1, %v817_v27  ;;  %v831_v37 = vpack.c.bf16 %v458_v28, %v458_v28  ;;  %v818_v38 = vpack.c.bf16 %v405_v29, %v405_v29  ;;  %v461_v39 = vadd.f32 %v1018_v18, %v460_v36 }
  0xeb   : > { %667 = vst.msk [vmem:[%s1026_s27 + $0x48] sm:$0xf] %vm648_vm1, %v833_v32  ;;  %649 = vst.msk [vmem:[%s1026_s27] sm:$0xf] %vm648_vm1, %v815_v33  ;;  %v834_v40 = vpack.c.bf16 %v469_v34, %v469_v34  ;;  %v816_v41 = vpack.c.bf16 %v397_v35, %v397_v35 }
  0xec   : > { %665 = vst.msk [vmem:[%s1026_s27 + $0x40] sm:$0xf] %vm648_vm1, %v831_v37  ;;  %652 = vst.msk [vmem:[%s1026_s27 + $0xc] sm:$0xf] %vm648_vm1, %v818_v38  ;;  %v832_v42 = vpack.c.bf16 %v461_v39, %v461_v39 }
  0xed   : > { %668 = vst.msk [vmem:[%s1026_s27 + $0x4c] sm:$0xf] %vm648_vm1, %v834_v40  ;;  %650 = vst.msk [vmem:[%s1026_s27 + $0x4] sm:$0xf] %vm648_vm1, %v816_v41  ;;  %v875_v43 = vpop.f32.mrb[4].mxu0 }
  0xee   : > { %666 = vst.msk [vmem:[%s1026_s27 + $0x44] sm:$0xf] %vm648_vm1, %v832_v42  ;;  %v418_v44 = vadd.f32 %v875_v43, %v1018_v18  ;;  %v891_v45 = vpop.f32.mrb[4].mxu1  ;;  %v409_v46 = vpop.f32.mrb[5].mxu0 }
  0xef   : > { %v482_v47 = vadd.f32 %v891_v45, %v1018_v18  ;;  %v410_v48 = vadd.f32 %v1018_v18, %v409_v46  ;;  %v473_v49 = vpop.f32.mrb[5].mxu1  ;;  %v876_v50 = vpop.f32.mrb[6].mxu0 }
  0xf0   : > { %v821_v51 = vpack.c.bf16 %v418_v44, %v418_v44  ;;  %v474_v52 = vadd.f32 %v1018_v18, %v473_v49  ;;  %v421_v53 = vadd.f32 %v876_v50, %v1018_v18  ;;  %v892_v54 = vpop.f32.mrb[6].mxu1  ;;  %v412_v55 = vpop.f32.mrb[7].mxu0 }
  0xf1   : > { %v837_v56 = vpack.c.bf16 %v482_v47, %v482_v47  ;;  %v819_v57 = vpack.c.bf16 %v410_v48, %v410_v48  ;;  %v485_v58 = vadd.f32 %v892_v54, %v1018_v18  ;;  %v413_v59 = vadd.f32 %v1018_v18, %v412_v55  ;;  %v476_v60 = vpop.f32.mrb[7].mxu1 }
  0xf2   : > { %655 = vst.msk [vmem:[%s1026_s27 + $0x18] sm:$0xf] %vm648_vm1, %v821_v51  ;;  %v835_v61 = vpack.c.bf16 %v474_v52, %v474_v52  ;;  %v822_v62 = vpack.c.bf16 %v421_v53, %v421_v53  ;;  %v477_v63 = vadd.f32 %v1018_v18, %v476_v60 }
  0xf3   : > { %671 = vst.msk [vmem:[%s1026_s27 + $0x58] sm:$0xf] %vm648_vm1, %v837_v56  ;;  %653 = vst.msk [vmem:[%s1026_s27 + $0x10] sm:$0xf] %vm648_vm1, %v819_v57  ;;  %v838_v0 = vpack.c.bf16 %v485_v58, %v485_v58  ;;  %v820_v1 = vpack.c.bf16 %v413_v59, %v413_v59 }
  0xf4   : > { %669 = vst.msk [vmem:[%s1026_s27 + $0x50] sm:$0xf] %vm648_vm1, %v835_v61  ;;  %656 = vst.msk [vmem:[%s1026_s27 + $0x1c] sm:$0xf] %vm648_vm1, %v822_v62  ;;  %v836_v2 = vpack.c.bf16 %v477_v63, %v477_v63 }
  0xf5   : > { %672 = vst.msk [vmem:[%s1026_s27 + $0x5c] sm:$0xf] %vm648_vm1, %v838_v0  ;;  %654 = vst.msk [vmem:[%s1026_s27 + $0x14] sm:$0xf] %vm648_vm1, %v820_v1  ;;  %v879_v3 = vpop.f32.mrb[8].mxu0 }
  0xf6   : > { %670 = vst.msk [vmem:[%s1026_s27 + $0x54] sm:$0xf] %vm648_vm1, %v836_v2  ;;  %v434_v4 = vadd.f32 %v879_v3, %v1018_v18  ;;  %v895_v5 = vpop.f32.mrb[8].mxu1  ;;  %v425_v6 = vpop.f32.mrb[9].mxu0 }
  0xf7   : > { %v498_v7 = vadd.f32 %v895_v5, %v1018_v18  ;;  %v426_v8 = vadd.f32 %v1018_v18, %v425_v6  ;;  %v489_v9 = vpop.f32.mrb[9].mxu1  ;;  %v880_v10 = vpop.f32.mrb[10].mxu0 }
  0xf8   : > { %v825_v11 = vpack.c.bf16 %v434_v4, %v434_v4  ;;  %v490_v12 = vadd.f32 %v1018_v18, %v489_v9  ;;  %v437_v13 = vadd.f32 %v880_v10, %v1018_v18  ;;  %v896_v14 = vpop.f32.mrb[10].mxu1  ;;  %v428_v15 = vpop.f32.mrb[11].mxu0 }
  0xf9   : > { %v841_v16 = vpack.c.bf16 %v498_v7, %v498_v7  ;;  %v823_v17 = vpack.c.bf16 %v426_v8, %v426_v8  ;;  %v501_v19 = vadd.f32 %v896_v14, %v1018_v18  ;;  %v429_v20 = vadd.f32 %v1018_v18, %v428_v15  ;;  %v492_v21 = vpop.f32.mrb[11].mxu1 }
  0xfa   : > { %659 = vst.msk [vmem:[%s1026_s27 + $0x28] sm:$0xf] %vm648_vm1, %v825_v11  ;;  %v839_v22 = vpack.c.bf16 %v490_v12, %v490_v12  ;;  %v826_v23 = vpack.c.bf16 %v437_v13, %v437_v13  ;;  %v493_v24 = vadd.f32 %v1018_v18, %v492_v21 }
  0xfb   : > { %675 = vst.msk [vmem:[%s1026_s27 + $0x68] sm:$0xf] %vm648_vm1, %v841_v16  ;;  %657 = vst.msk [vmem:[%s1026_s27 + $0x20] sm:$0xf] %vm648_vm1, %v823_v17  ;;  %v842_v25 = vpack.c.bf16 %v501_v19, %v501_v19  ;;  %v824_v26 = vpack.c.bf16 %v429_v20, %v429_v20 }
  0xfc   : > { %673 = vst.msk [vmem:[%s1026_s27 + $0x60] sm:$0xf] %vm648_vm1, %v839_v22  ;;  %660 = vst.msk [vmem:[%s1026_s27 + $0x2c] sm:$0xf] %vm648_vm1, %v826_v23  ;;  %v840_v27 = vpack.c.bf16 %v493_v24, %v493_v24 }
  0xfd   : > { %676 = vst.msk [vmem:[%s1026_s27 + $0x6c] sm:$0xf] %vm648_vm1, %v842_v25  ;;  %658 = vst.msk [vmem:[%s1026_s27 + $0x24] sm:$0xf] %vm648_vm1, %v824_v26  ;;  %v883_v28 = vpop.f32.mrb[12].mxu0 }
  0xfe   : > { %674 = vst.msk [vmem:[%s1026_s27 + $0x64] sm:$0xf] %vm648_vm1, %v840_v27  ;;  %v450_v29 = vadd.f32 %v883_v28, %v1018_v18  ;;  %v899_v30 = vpop.f32.mrb[12].mxu1  ;;  %v441_v31 = vpop.f32.mrb[13].mxu0 }
  0xff   : > { %v514_v32 = vadd.f32 %v899_v30, %v1018_v18  ;;  %v442_v33 = vadd.f32 %v1018_v18, %v441_v31  ;;  %v505_v34 = vpop.f32.mrb[13].mxu1  ;;  %v884_v35 = vpop.f32.mrb[14].mxu0 }
 0x100   : > { %v829_v36 = vpack.c.bf16 %v450_v29, %v450_v29  ;;  %v506_v37 = vadd.f32 %v1018_v18, %v505_v34  ;;  %v453_v38 = vadd.f32 %v884_v35, %v1018_v18  ;;  %v900_v39 = vpop.f32.mrb[14].mxu1  ;;  %v444_v40 = vpop.f32.mrb[15].mxu0 }
 0x101   : > { %v845_v41 = vpack.c.bf16 %v514_v32, %v514_v32  ;;  %v827_v42 = vpack.c.bf16 %v442_v33, %v442_v33  ;;  %v517_v43 = vadd.f32 %v900_v39, %v1018_v18  ;;  %v445_v44 = vadd.f32 %v1018_v18, %v444_v40  ;;  %v508_v45 = vpop.f32.mrb[15].mxu1 }
 0x102   : > { %663 = vst.msk [vmem:[%s1026_s27 + $0x38] sm:$0xf] %vm648_vm1, %v829_v36  ;;  %v843_v46 = vpack.c.bf16 %v506_v37, %v506_v37  ;;  %v830_v47 = vpack.c.bf16 %v453_v38, %v453_v38  ;;  %v509_v48 = vadd.f32 %v1018_v18, %v508_v45 }
 0x103   : > { %679 = vst.msk [vmem:[%s1026_s27 + $0x78] sm:$0xf] %vm648_vm1, %v845_v41  ;;  %661 = vst.msk [vmem:[%s1026_s27 + $0x30] sm:$0xf] %vm648_vm1, %v827_v42  ;;  %v846_v49 = vpack.c.bf16 %v517_v43, %v517_v43  ;;  %v828_v50 = vpack.c.bf16 %v445_v44, %v445_v44 }
 0x104   : > { %677 = vst.msk [vmem:[%s1026_s27 + $0x70] sm:$0xf] %vm648_vm1, %v843_v46  ;;  %664 = vst.msk [vmem:[%s1026_s27 + $0x3c] sm:$0xf] %vm648_vm1, %v830_v47  ;;  %v844_v51 = vpack.c.bf16 %v509_v48, %v509_v48 }
 0x105   : > { %680 = vst.msk [vmem:[%s1026_s27 + $0x7c] sm:$0xf] %vm648_vm1, %v846_v49  ;;  %662 = vst.msk [vmem:[%s1026_s27 + $0x34] sm:$0xf] %vm648_vm1, %v828_v50 }
 0x106   : > { %678 = vst.msk [vmem:[%s1026_s27 + $0x74] sm:$0xf] %vm648_vm1, %v844_v51 }
 0x107 PF: > { %s13_s12 = sadd.s32 1, %s937_s12  }
 0x108   : > { %p10_p4 = scmp.ge.s32.totalorder %s13_s12, 4  }
 0x10a   :  { %12 = sbr.rel (!%p10_p4) target bundleno = 1 (0x1), region = 62 }

// kernel: _lambda_.23
= control target key start
LH: loop header
LB: loop body
LE: loop exit
PB: predicated region body
PF: predicated region fallthrough
CT: control target
= control target key end

     0   :  { %s1023_s12 = smov 0   ;;  %s1190_s0 = inlined_call_operand.vmem [shape: bf16[512,32], index: 0, kind: input, shape index: {}]   ;;  %s1191_s1 = inlined_call_operand.vmem [shape: bf16[32,32], index: 1, kind: input, shape index: {}]   ;;  %s1192_s2 = inlined_call_operand.vmem [shape: f32[1,32], index: 2, kind: input, shape index: {}]   ;;  %s1193_s3 = inlined_call_operand.vmem [shape: bf16[512,32], index: 3, kind: output, shape index: {}]  }
   0x1 LB: > { %s801_s13 = sadd.s32 4294967295, %s1001_s12   ;;  %p805_p0 = scmp.ge.s32.totalorder %s1001_s12, 1  ;;  %s1001_s12 = sphi %s1023_s12, %s13_s12  }
   0x2   : > { %p138_p1 = scmp.lt.s32.totalorder %s1001_s12, 3 }
   0x4   : > { %p139_p2 = pnand %p805_p0, %p138_p1 }
   0x5   : > { %v977_v0 = vld [vmem:[%s1191_s1] sm:$0xff] (!%p139_p2)   ;;  %s806_s16 = sshll.u32 (!%p139_p2), %s801_s13, 5  ;;  %v978_v1 = vld [vmem:[%s1191_s1 + $0x8] sm:$0xff] (!%p139_p2)   ;;  %vm310_vm0 = vcmask (!%p139_p2), 261120   ;;  %vm712_vm1 = vcmask (!%p139_p2), 257024  }
   0x6   : > { %142 = sbr.rel (%p139_p2) target bundleno = 268 (0x10c), region = 32  ;;  %p163_p3 = scmp.lt.s32.totalorder (!%p139_p2), %s806_s16, 63  ;;  %929 = vmatprep.subr.bf16.mxu0 (!%p139_p2), %v977_v0  ;;  %965 = vmatprep.subr.bf16.mxu1 (!%p139_p2), %v977_v0  ;;  %v1082_v18 = vld [vmem:[%s1192_s2] ss:$0 sm:$0xff] (!%p139_p2) }
   0x7   : > { %930 = vmatpush3.bf16.msra.mxu0 (!%p139_p2), %v977_v0  ;;  %967 = vmatpush3.bf16.msra.mxu1 (!%p139_p2), %v977_v0 }
   0x8   : > { %931 = vmatprep.subr.bf16.mxu0 (!%p139_p2), %v978_v1  ;;  %966 = vmatprep.subr.bf16.mxu1 (!%p139_p2), %v978_v1 }
   0xb   : > { %932 = vmatpush3.bf16.msra.mxu0 (!%p139_p2), %v978_v1  ;;  %968 = vmatpush3.bf16.msra.mxu1 (!%p139_p2), %v978_v1 }
   0xd   : > { %s1195_s16 = smov (!%p163_p3, %s806_s16), 63 }
   0xe   : > { %s807_s19 = sshll.u32 %s1195_s16, 2 }
   0xf   : > { %s1045_s22 = scalar_lea.vmem %s1190_s0, %s807_s19  ;;  %s1097_s27 = scalar_lea.vmem %s1193_s3, %s807_s19 }
  0x10   : > { %v979_v2 = vld [vmem:[%s1045_s22] sm:$0xff]   ;;  %v981_v4 = vld [vmem:[%s1045_s22 + $0x8] sm:$0xff]   ;;  %v983_v6 = vld [vmem:[%s1045_s22 + $0x10] sm:$0xff]  }
  0x11   : > { %v980_v3 = vld [vmem:[%s1045_s22 + $0x40] sm:$0xff]   ;;  %933 = vmatprep.mubr.msk.bf16.mxu0 %vm310_vm0, %v979_v2  ;;  %v982_v5 = vld [vmem:[%s1045_s22 + $0x48] sm:$0xff]   ;;  %v984_v7 = vld [vmem:[%s1045_s22 + $0x50] sm:$0xff]  }
  0x12   : > { %949 = vmatprep.mubr.msk.bf16.mxu1 %vm310_vm0, %v980_v3  ;;  %934 = vmatmul.mubr.msk.bf16.vlgmr.msra.gmra.mrb[0].mxu0 %vm310_vm0, %v981_v4  ;;  %v985_v8 = vld [vmem:[%s1045_s22 + $0x18] sm:$0xff]   ;;  %v987_v10 = vld [vmem:[%s1045_s22 + $0x20] sm:$0xff]   ;;  %v989_v12 = vld [vmem:[%s1045_s22 + $0x28] sm:$0xff]  }
  0x13   : > { %950 = vmatmul.mubr.msk.bf16.vlgmr.msra.gmra.mrb[0].mxu1 %vm310_vm0, %v982_v5  ;;  %937 = vmatprep.mubr.msk.bf16.mxu0 %vm310_vm0, %v983_v6  ;;  %v986_v9 = vld [vmem:[%s1045_s22 + $0x58] sm:$0xff]   ;;  %v988_v11 = vld [vmem:[%s1045_s22 + $0x60] sm:$0xff]   ;;  %v990_v13 = vld [vmem:[%s1045_s22 + $0x68] sm:$0xff]  }
  0x14   : > { %953 = vmatprep.mubr.msk.bf16.mxu1 %vm310_vm0, %v984_v7  ;;  %v991_v14 = vld [vmem:[%s1045_s22 + $0x30] sm:$0xff]   ;;  %v993_v16 = vld [vmem:[%s1045_s22 + $0x38] sm:$0xff]  }
  0x15   : > { %v992_v15 = vld [vmem:[%s1045_s22 + $0x70] sm:$0xff]   ;;  %v994_v17 = vld [vmem:[%s1045_s22 + $0x78] sm:$0xff]  }
  0x1a   : > { %938 = vmatmul.mubr.msk.bf16.gmra.mrb[4].mxu0 %vm310_vm0, %v985_v8 }
  0x1b   : > { %954 = vmatmul.mubr.msk.bf16.gmra.mrb[4].mxu1 %vm310_vm0, %v986_v9  ;;  %941 = vmatprep.mubr.msk.bf16.mxu0 %vm310_vm0, %v987_v10 }
  0x1c   : > { %957 = vmatprep.mubr.msk.bf16.mxu1 %vm310_vm0, %v988_v11 }
  0x22   : > { %942 = vmatmul.mubr.msk.bf16.gmra.mrb[8].mxu0 %vm310_vm0, %v989_v12 }
  0x23   : > { %958 = vmatmul.mubr.msk.bf16.gmra.mrb[8].mxu1 %vm310_vm0, %v990_v13  ;;  %945 = vmatprep.mubr.msk.bf16.mxu0 %vm310_vm0, %v991_v14 }
  0x24   : > { %961 = vmatprep.mubr.msk.bf16.mxu1 %vm310_vm0, %v992_v15 }
  0x2a   : > { %946 = vmatmul.mubr.msk.bf16.gmra.mrb[12].mxu0 %vm310_vm0, %v993_v16 }
  0x2b   : > { %962 = vmatmul.mubr.msk.bf16.gmra.mrb[12].mxu1 %vm310_vm0, %v994_v17 }
  0xe5   : > { %v935_v19 = vpop.f32.mrb[0].mxu0 }
  0xe6   : > { %v402_v20 = vadd.f32 %v935_v19, %v1082_v18  ;;  %v951_v21 = vpop.f32.mrb[0].mxu1  ;;  %v393_v22 = vpop.f32.mrb[1].mxu0 }
  0xe7   : > { %v466_v23 = vadd.f32 %v951_v21, %v1082_v18  ;;  %v394_v24 = vadd.f32 %v1082_v18, %v393_v22  ;;  %v457_v25 = vpop.f32.mrb[1].mxu1  ;;  %v936_v26 = vpop.f32.mrb[2].mxu0 }
  0xe8   : > { %v522_v27 = vmax.f32 %v402_v20, 0.0  ;;  %v458_v28 = vadd.f32 %v1082_v18, %v457_v25  ;;  %v405_v29 = vadd.f32 %v936_v26, %v1082_v18  ;;  %v952_v30 = vpop.f32.mrb[2].mxu1  ;;  %v396_v31 = vpop.f32.mrb[3].mxu0 }
  0xe9   : > { %v538_v32 = vmax.f32 %v466_v23, 0.0  ;;  %v520_v33 = vmax.f32 %v394_v24, 0.0  ;;  %v469_v34 = vadd.f32 %v952_v30, %v1082_v18  ;;  %v397_v35 = vadd.f32 %v1082_v18, %v396_v31  ;;  %v460_v36 = vpop.f32.mrb[3].mxu1 }
  0xea   : > { %v554_v37 = vmin.f32 %v522_v27, 6.0  ;;  %v536_v38 = vmax.f32 %v458_v28, 0.0  ;;  %v523_v39 = vmax.f32 %v405_v29, 0.0  ;;  %v461_v40 = vadd.f32 %v1082_v18, %v460_v36 }
  0xeb   : > { %v570_v41 = vmin.f32 %v538_v32, 6.0  ;;  %v552_v42 = vmin.f32 %v520_v33, 6.0  ;;  %v539_v43 = vmax.f32 %v469_v34, 0.0  ;;  %v521_v44 = vmax.f32 %v397_v35, 0.0 }
  0xec   : > { %v881_v45 = vpack.c.bf16 %v554_v37, %v554_v37  ;;  %v568_v46 = vmin.f32 %v536_v38, 6.0  ;;  %v555_v47 = vmin.f32 %v523_v39, 6.0  ;;  %v537_v48 = vmax.f32 %v461_v40, 0.0 }
  0xed   : > { %v897_v49 = vpack.c.bf16 %v570_v41, %v570_v41  ;;  %v879_v50 = vpack.c.bf16 %v552_v42, %v552_v42  ;;  %v571_v51 = vmin.f32 %v539_v43, 6.0  ;;  %v553_v52 = vmin.f32 %v521_v44, 6.0  ;;  %v939_v53 = vpop.f32.mrb[4].mxu0 }
  0xee   : > { %715 = vst.msk [vmem:[%s1097_s27 + $0x8] sm:$0xf] %vm712_vm1, %v881_v45  ;;  %v895_v54 = vpack.c.bf16 %v568_v46, %v568_v46  ;;  %v882_v55 = vpack.c.bf16 %v555_v47, %v555_v47  ;;  %v569_v56 = vmin.f32 %v537_v48, 6.0  ;;  %v418_v57 = vadd.f32 %v939_v53, %v1082_v18  ;;  %v955_v58 = vpop.f32.mrb[4].mxu1  ;;  %v409_v59 = vpop.f32.mrb[5].mxu0 }
  0xef   : > { %731 = vst.msk [vmem:[%s1097_s27 + $0x48] sm:$0xf] %vm712_vm1, %v897_v49  ;;  %713 = vst.msk [vmem:[%s1097_s27] sm:$0xf] %vm712_vm1, %v879_v50  ;;  %v898_v60 = vpack.c.bf16 %v571_v51, %v571_v51  ;;  %v880_v61 = vpack.c.bf16 %v553_v52, %v553_v52  ;;  %v482_v62 = vadd.f32 %v955_v58, %v1082_v18  ;;  %v473_v0 = vpop.f32.mrb[5].mxu1  ;;  %v940_v1 = vpop.f32.mrb[6].mxu0 }
  0xf0   : > { %v410_v63 = vadd.f32 %v1082_v18, %v409_v59  ;;  %729 = vst.msk [vmem:[%s1097_s27 + $0x40] sm:$0xf] %vm712_vm1, %v895_v54  ;;  %716 = vst.msk [vmem:[%s1097_s27 + $0xc] sm:$0xf] %vm712_vm1, %v882_v55  ;;  %v896_v2 = vpack.c.bf16 %v569_v56, %v569_v56  ;;  %v526_v3 = vmax.f32 %v418_v57, 0.0  ;;  %v474_v4 = vadd.f32 %v1082_v18, %v473_v0  ;;  %v956_v6 = vpop.f32.mrb[6].mxu1 }
  0xf1   : > { %v421_v5 = vadd.f32 %v940_v1, %v1082_v18  ;;  %v412_v7 = vpop.f32.mrb[7].mxu0  ;;  %732 = vst.msk [vmem:[%s1097_s27 + $0x4c] sm:$0xf] %vm712_vm1, %v898_v60  ;;  %714 = vst.msk [vmem:[%s1097_s27 + $0x4] sm:$0xf] %vm712_vm1, %v880_v61  ;;  %v542_v8 = vmax.f32 %v482_v62, 0.0  ;;  %v485_v10 = vadd.f32 %v956_v6, %v1082_v18 }
  0xf2   : > { %v524_v9 = vmax.f32 %v410_v63, 0.0  ;;  %v413_v11 = vadd.f32 %v1082_v18, %v412_v7  ;;  %v476_v12 = vpop.f32.mrb[7].mxu1  ;;  %730 = vst.msk [vmem:[%s1097_s27 + $0x44] sm:$0xf] %vm712_vm1, %v896_v2  ;;  %v558_v13 = vmin.f32 %v526_v3, 6.0  ;;  %v540_v14 = vmax.f32 %v474_v4, 0.0 }
  0xf3   : > { %v527_v15 = vmax.f32 %v421_v5, 0.0  ;;  %v477_v16 = vadd.f32 %v1082_v18, %v476_v12  ;;  %v574_v17 = vmin.f32 %v542_v8, 6.0  ;;  %v543_v20 = vmax.f32 %v485_v10, 0.0 }
  0xf4   : > { %v556_v19 = vmin.f32 %v524_v9, 6.0  ;;  %v525_v21 = vmax.f32 %v413_v11, 0.0  ;;  %v885_v22 = vpack.c.bf16 %v558_v13, %v558_v13  ;;  %v572_v23 = vmin.f32 %v540_v14, 6.0 }
  0xf5   : > { %v559_v24 = vmin.f32 %v527_v15, 6.0  ;;  %v541_v25 = vmax.f32 %v477_v16, 0.0  ;;  %v901_v26 = vpack.c.bf16 %v574_v17, %v574_v17  ;;  %v575_v28 = vmin.f32 %v543_v20, 6.0  ;;  %v943_v30 = vpop.f32.mrb[8].mxu0 }
  0xf6   : > { %v883_v27 = vpack.c.bf16 %v556_v19, %v556_v19  ;;  %v557_v29 = vmin.f32 %v525_v21, 6.0  ;;  %719 = vst.msk [vmem:[%s1097_s27 + $0x18] sm:$0xf] %vm712_vm1, %v885_v22  ;;  %v899_v31 = vpack.c.bf16 %v572_v23, %v572_v23  ;;  %v434_v34 = vadd.f32 %v943_v30, %v1082_v18  ;;  %v959_v35 = vpop.f32.mrb[8].mxu1  ;;  %v425_v36 = vpop.f32.mrb[9].mxu0 }
  0xf7   : > { %v886_v32 = vpack.c.bf16 %v559_v24, %v559_v24  ;;  %v573_v33 = vmin.f32 %v541_v25, 6.0  ;;  %735 = vst.msk [vmem:[%s1097_s27 + $0x58] sm:$0xf] %vm712_vm1, %v901_v26  ;;  %v902_v37 = vpack.c.bf16 %v575_v28, %v575_v28  ;;  %v498_v39 = vadd.f32 %v959_v35, %v1082_v18  ;;  %v489_v41 = vpop.f32.mrb[9].mxu1  ;;  %v944_v42 = vpop.f32.mrb[10].mxu0 }
  0xf8   : > { %717 = vst.msk [vmem:[%s1097_s27 + $0x10] sm:$0xf] %vm712_vm1, %v883_v27  ;;  %v884_v38 = vpack.c.bf16 %v557_v29, %v557_v29  ;;  %v426_v40 = vadd.f32 %v1082_v18, %v425_v36  ;;  %733 = vst.msk [vmem:[%s1097_s27 + $0x50] sm:$0xf] %vm712_vm1, %v899_v31  ;;  %v530_v44 = vmax.f32 %v434_v34, 0.0  ;;  %v490_v45 = vadd.f32 %v1082_v18, %v489_v41  ;;  %v960_v47 = vpop.f32.mrb[10].mxu1 }
  0xf9   : > { %720 = vst.msk [vmem:[%s1097_s27 + $0x1c] sm:$0xf] %vm712_vm1, %v886_v32  ;;  %v900_v43 = vpack.c.bf16 %v573_v33, %v573_v33  ;;  %v437_v46 = vadd.f32 %v944_v42, %v1082_v18  ;;  %v428_v48 = vpop.f32.mrb[11].mxu0  ;;  %736 = vst.msk [vmem:[%s1097_s27 + $0x5c] sm:$0xf] %vm712_vm1, %v902_v37  ;;  %v546_v49 = vmax.f32 %v498_v39, 0.0  ;;  %v501_v51 = vadd.f32 %v960_v47, %v1082_v18 }
  0xfa   : > { %718 = vst.msk [vmem:[%s1097_s27 + $0x14] sm:$0xf] %vm712_vm1, %v884_v38  ;;  %v528_v50 = vmax.f32 %v426_v40, 0.0  ;;  %v429_v52 = vadd.f32 %v1082_v18, %v428_v48  ;;  %v492_v53 = vpop.f32.mrb[11].mxu1  ;;  %v562_v54 = vmin.f32 %v530_v44, 6.0  ;;  %v544_v55 = vmax.f32 %v490_v45, 0.0 }
  0xfb   : > { %734 = vst.msk [vmem:[%s1097_s27 + $0x54] sm:$0xf] %vm712_vm1, %v900_v43  ;;  %v531_v56 = vmax.f32 %v437_v46, 0.0  ;;  %v493_v57 = vadd.f32 %v1082_v18, %v492_v53  ;;  %v578_v58 = vmin.f32 %v546_v49, 6.0  ;;  %v547_v60 = vmax.f32 %v501_v51, 0.0 }
  0xfc   : > { %v560_v59 = vmin.f32 %v528_v50, 6.0  ;;  %v529_v61 = vmax.f32 %v429_v52, 0.0  ;;  %v889_v62 = vpack.c.bf16 %v562_v54, %v562_v54  ;;  %v576_v63 = vmin.f32 %v544_v55, 6.0 }
  0xfd   : > { %v563_v0 = vmin.f32 %v531_v56, 6.0  ;;  %v545_v1 = vmax.f32 %v493_v57, 0.0  ;;  %v905_v2 = vpack.c.bf16 %v578_v58, %v578_v58  ;;  %v579_v4 = vmin.f32 %v547_v60, 6.0  ;;  %v947_v6 = vpop.f32.mrb[12].mxu0 }
  0xfe   : > { %v887_v3 = vpack.c.bf16 %v560_v59, %v560_v59  ;;  %v561_v5 = vmin.f32 %v529_v61, 6.0  ;;  %723 = vst.msk [vmem:[%s1097_s27 + $0x28] sm:$0xf] %vm712_vm1, %v889_v62  ;;  %v903_v7 = vpack.c.bf16 %v576_v63, %v576_v63  ;;  %v450_v10 = vadd.f32 %v947_v6, %v1082_v18  ;;  %v963_v11 = vpop.f32.mrb[12].mxu1  ;;  %v441_v12 = vpop.f32.mrb[13].mxu0 }
  0xff   : > { %v890_v8 = vpack.c.bf16 %v563_v0, %v563_v0  ;;  %v577_v9 = vmin.f32 %v545_v1, 6.0  ;;  %739 = vst.msk [vmem:[%s1097_s27 + $0x68] sm:$0xf] %vm712_vm1, %v905_v2  ;;  %v906_v13 = vpack.c.bf16 %v579_v4, %v579_v4  ;;  %v514_v15 = vadd.f32 %v963_v11, %v1082_v18  ;;  %v505_v17 = vpop.f32.mrb[13].mxu1  ;;  %v948_v19 = vpop.f32.mrb[14].mxu0 }
 0x100   : > { %721 = vst.msk [vmem:[%s1097_s27 + $0x20] sm:$0xf] %vm712_vm1, %v887_v3  ;;  %v888_v14 = vpack.c.bf16 %v561_v5, %v561_v5  ;;  %v442_v16 = vadd.f32 %v1082_v18, %v441_v12  ;;  %737 = vst.msk [vmem:[%s1097_s27 + $0x60] sm:$0xf] %vm712_vm1, %v903_v7  ;;  %v534_v21 = vmax.f32 %v450_v10, 0.0  ;;  %v506_v22 = vadd.f32 %v1082_v18, %v505_v17  ;;  %v964_v24 = vpop.f32.mrb[14].mxu1 }
 0x101   : > { %724 = vst.msk [vmem:[%s1097_s27 + $0x2c] sm:$0xf] %vm712_vm1, %v890_v8  ;;  %v904_v20 = vpack.c.bf16 %v577_v9, %v577_v9  ;;  %v453_v23 = vadd.f32 %v948_v19, %v1082_v18  ;;  %v444_v25 = vpop.f32.mrb[15].mxu0  ;;  %740 = vst.msk [vmem:[%s1097_s27 + $0x6c] sm:$0xf] %vm712_vm1, %v906_v13  ;;  %v550_v26 = vmax.f32 %v514_v15, 0.0  ;;  %v517_v28 = vadd.f32 %v964_v24, %v1082_v18 }
 0x102   : > { %722 = vst.msk [vmem:[%s1097_s27 + $0x24] sm:$0xf] %vm712_vm1, %v888_v14  ;;  %v532_v27 = vmax.f32 %v442_v16, 0.0  ;;  %v445_v29 = vadd.f32 %v1082_v18, %v444_v25  ;;  %v508_v30 = vpop.f32.mrb[15].mxu1  ;;  %v566_v31 = vmin.f32 %v534_v21, 6.0  ;;  %v548_v32 = vmax.f32 %v506_v22, 0.0 }
 0x103   : > { %738 = vst.msk [vmem:[%s1097_s27 + $0x64] sm:$0xf] %vm712_vm1, %v904_v20  ;;  %v535_v33 = vmax.f32 %v453_v23, 0.0  ;;  %v509_v34 = vadd.f32 %v1082_v18, %v508_v30  ;;  %v582_v35 = vmin.f32 %v550_v26, 6.0  ;;  %v551_v37 = vmax.f32 %v517_v28, 0.0 }
 0x104   : > { %v564_v36 = vmin.f32 %v532_v27, 6.0  ;;  %v533_v38 = vmax.f32 %v445_v29, 0.0  ;;  %v893_v39 = vpack.c.bf16 %v566_v31, %v566_v31  ;;  %v580_v40 = vmin.f32 %v548_v32, 6.0 }
 0x105   : > { %v567_v41 = vmin.f32 %v535_v33, 6.0  ;;  %v549_v42 = vmax.f32 %v509_v34, 0.0  ;;  %v909_v43 = vpack.c.bf16 %v582_v35, %v582_v35  ;;  %v583_v45 = vmin.f32 %v551_v37, 6.0 }
 0x106   : > { %v891_v44 = vpack.c.bf16 %v564_v36, %v564_v36  ;;  %v565_v46 = vmin.f32 %v533_v38, 6.0  ;;  %727 = vst.msk [vmem:[%s1097_s27 + $0x38] sm:$0xf] %vm712_vm1, %v893_v39  ;;  %v907_v18 = vpack.c.bf16 %v580_v40, %v580_v40 }
 0x107   : > { %v894_v47 = vpack.c.bf16 %v567_v41, %v567_v41  ;;  %v581_v48 = vmin.f32 %v549_v42, 6.0  ;;  %743 = vst.msk [vmem:[%s1097_s27 + $0x78] sm:$0xf] %vm712_vm1, %v909_v43  ;;  %v910_v49 = vpack.c.bf16 %v583_v45, %v583_v45 }
 0x108   : > { %725 = vst.msk [vmem:[%s1097_s27 + $0x30] sm:$0xf] %vm712_vm1, %v891_v44  ;;  %v892_v50 = vpack.c.bf16 %v565_v46, %v565_v46  ;;  %741 = vst.msk [vmem:[%s1097_s27 + $0x70] sm:$0xf] %vm712_vm1, %v907_v18 }
 0x109   : > { %728 = vst.msk [vmem:[%s1097_s27 + $0x3c] sm:$0xf] %vm712_vm1, %v894_v47  ;;  %v908_v51 = vpack.c.bf16 %v581_v48, %v581_v48  ;;  %744 = vst.msk [vmem:[%s1097_s27 + $0x7c] sm:$0xf] %vm712_vm1, %v910_v49 }
 0x10a   : > { %726 = vst.msk [vmem:[%s1097_s27 + $0x34] sm:$0xf] %vm712_vm1, %v892_v50 }
 0x10b   : > { %742 = vst.msk [vmem:[%s1097_s27 + $0x74] sm:$0xf] %vm712_vm1, %v908_v51 }
 0x10c PF: > { %s13_s12 = sadd.s32 1, %s1001_s12  }
 0x10d   : > { %p10_p4 = scmp.ge.s32.totalorder %s13_s12, 4  }
 0x10f   :  { %12 = sbr.rel (!%p10_p4) target bundleno = 1 (0x1), region = 62 }

// kernel: _lambda_.24
= control target key start
LH: loop header
LB: loop body
LE: loop exit
PB: predicated region body
PF: predicated region fallthrough
CT: control target
= control target key end

     0   :  { %s1759_s12 = smov 0   ;;  %s2779_s0 = inlined_call_operand.vmem [shape: bf16[2,16,16,32], index: 0, kind: input, shape index: {}]   ;;  %s2780_s1 = inlined_call_operand.vmem [shape: f32[9,1,32], index: 1, kind: input, shape index: {}]   ;;  %s2781_s2 = inlined_call_operand.vmem [shape: f32[1,1,32], index: 2, kind: input, shape index: {}]   ;;  %s2782_s3 = inlined_call_operand.vmem [shape: bf16[2,16,16,32], index: 3, kind: output, shape index: {}]  }
   0x1 LB: > { %s1537_s13 = sadd.s32 4294967295, %s1736_s12   ;;  %p1541_p0 = scmp.ge.s32.totalorder %s1736_s12, 1  ;;  %s1736_s12 = sphi %s1759_s12, %s13_s12  }
   0x2   : > { %p137_p1 = scmp.lt.s32.totalorder %s1736_s12, 3 }
   0x4   : > { %p138_p2 = pnand %p1541_p0, %p137_p1 }
   0x5   : > { %vm171_vm0 = vcmask (!%p138_p2), 261120   ;;  %vm174_vm1 = vcmask (!%p138_p2), 254976   ;;  %vm180_vm2 = vcmask (!%p138_p2), 253952   ;;  %p1769_p3 = scmp.lt.s32.totalorder (!%p138_p2), %s1537_s13, 1  ;;  %v1738_v0 = vmov (!%p138_p2), 0.0  }
   0x6   : > { %141 = sbr.rel (%p138_p2) target bundleno = 217 (0xd9), region = 32  ;;  %172 = vst.msk [vmem:[#allocation2] sm:$0xff] (!%p138_p2), %vm171_vm0, %v1738_v0  ;;  %173 = vst.msk [vmem:[#allocation2 + $0x8] sm:$0xff] (!%p138_p2), %vm171_vm0, %v1738_v0  ;;  %v1852_v31 = vld [vmem:[%s2780_s1] ss:$0 sm:$0xff] (!%p138_p2)  ;;  %vm1449_vm3 = vcmask (!%p138_p2), 257024  }
   0x7   : > { %177 = vst.msk [vmem:[#allocation2 + $0x198] sm:$0xff] (!%p138_p2), %vm171_vm0, %v1738_v0  ;;  %178 = vst.msk [vmem:[#allocation2 + $0x1a0] sm:$0xff] (!%p138_p2), %vm171_vm0, %v1738_v0  ;;  %v1857_v32 = vld [vmem:[%s2780_s1 + $0x1] ss:$0 sm:$0xff] (!%p138_p2)  ;;  %v1862_v33 = vld [vmem:[%s2780_s1 + $0x2] ss:$0 sm:$0xff] (!%p138_p2) }
   0x8   : > { %175 = vst.msk [vmem:[#allocation2 + $0x10] sm:$0x3] (!%p138_p2), %vm174_vm1, %v1738_v0  ;;  %179 = vst.msk [vmem:[#allocation2 + $0x1a8] sm:$0x3] (!%p138_p2), %vm174_vm1, %v1738_v0  ;;  %v1885_v58 = vld [vmem:[%s2780_s1 + $0x3] ss:$0 sm:$0xff] (!%p138_p2) }
   0x9   : > { %182 = vst.msk [vmem:[#allocation2 + $0x18] sm:$0x1] (!%p138_p2), %vm180_vm2, %v1738_v0  ;;  %183 = vst.msk [vmem:[#allocation2 + $0x30] sm:$0x1] (!%p138_p2), %vm180_vm2, %v1738_v0  ;;  %v1890_v59 = vld [vmem:[%s2780_s1 + $0x4] ss:$0 sm:$0xff] (!%p138_p2) }
   0xa   : > { %184 = vst.msk [vmem:[#allocation2 + $0x48] sm:$0x1] (!%p138_p2), %vm180_vm2, %v1738_v0  ;;  %185 = vst.msk [vmem:[#allocation2 + $0x60] sm:$0x1] (!%p138_p2), %vm180_vm2, %v1738_v0  ;;  %v1895_v60 = vld [vmem:[%s2780_s1 + $0x5] ss:$0 sm:$0xff] (!%p138_p2) }
   0xb   : > { %186 = vst.msk [vmem:[#allocation2 + $0x78] sm:$0x1] (!%p138_p2), %vm180_vm2, %v1738_v0  ;;  %187 = vst.msk [vmem:[#allocation2 + $0x90] sm:$0x1] (!%p138_p2), %vm180_vm2, %v1738_v0 }
   0xc   : > { %188 = vst.msk [vmem:[#allocation2 + $0xa8] sm:$0x1] (!%p138_p2), %vm180_vm2, %v1738_v0  ;;  %189 = vst.msk [vmem:[#allocation2 + $0xc0] sm:$0x1] (!%p138_p2), %vm180_vm2, %v1738_v0 }
   0xd   : > { %190 = vst.msk [vmem:[#allocation2 + $0xd8] sm:$0x1] %vm180_vm2, %v1738_v0  ;;  %191 = vst.msk [vmem:[#allocation2 + $0xf0] sm:$0x1] %vm180_vm2, %v1738_v0  ;;  %s2785_s13 = smov (!%p1769_p3, %s1537_s13), 1  ;;  %v385_v45 = vld [vmem:[#allocation2 + $0x1] sm:$0xff] }
   0xe   : > { %192 = vst.msk [vmem:[#allocation2 + $0x108] sm:$0x1] %vm180_vm2, %v1738_v0  ;;  %193 = vst.msk [vmem:[#allocation2 + $0x120] sm:$0x1] %vm180_vm2, %v1738_v0  ;;  %s1598_s15 = sshll.u32 %s2785_s13, 7  ;;  %v489_v46 = vld [vmem:[#allocation2 + $0x2] sm:$0xff]  ;;  %v425_v62 = vmul.f32 %v1857_v32, %v385_v45 }
   0xf   : > { %194 = vst.msk [vmem:[#allocation2 + $0x138] sm:$0x1] %vm180_vm2, %v1738_v0  ;;  %195 = vst.msk [vmem:[#allocation2 + $0x150] sm:$0x1] %vm180_vm2, %v1738_v0  ;;  %s1825_s18 = scalar_lea.vmem %s2779_s0, %s1598_s15  ;;  %v315_v47 = vld [vmem:[#allocation2 + $0x8] sm:$0xff]  ;;  %v529_v63 = vmul.f32 %v1862_v33, %v489_v46  ;;  %s2020_s17 = scalar_lea.vmem %s2782_s3, %s1598_s15 }
  0x10   : > { %196 = vst.msk [vmem:[#allocation2 + $0x168] sm:$0x1] %vm180_vm2, %v1738_v0  ;;  %197 = vst.msk [vmem:[#allocation2 + $0x180] sm:$0x1] %vm180_vm2, %v1738_v0  ;;  %v1633_v1 = vld [vmem:[%s1825_s18] sm:$0xff]   ;;  %v1696_v2 = vld [vmem:[%s1825_s18 + $0x8] sm:$0xff]  }
  0x11   : > { %200 = vst.msk [vmem:[#allocation2 + $0x29] sm:$0x1] %vm180_vm2, %v1738_v0  ;;  %201 = vst.msk [vmem:[#allocation2 + $0x41] sm:$0x1] %vm180_vm2, %v1738_v0  ;;  %v1697_v3 = vld [vmem:[%s1825_s18 + $0x10] sm:$0xff]   ;;  %v1634_v4 = vunpack.c.l.bf16 %v1633_v1  ;;  %v1635_v5 = vunpack.c.h.bf16 %v1633_v1  ;;  %v1638_v6 = vunpack.c.l.bf16 %v1696_v2  ;;  %v1639_v7 = vunpack.c.h.bf16 %v1696_v2  ;;  %v1698_v8 = vld [vmem:[%s1825_s18 + $0x18] sm:$0xff]  }
  0x12   : > { %202 = vst.msk [vmem:[#allocation2 + $0x59] sm:$0x1] %vm180_vm2, %v1738_v0  ;;  %203 = vst.msk [vmem:[#allocation2 + $0x71] sm:$0x1] %vm180_vm2, %v1738_v0  ;;  %v1699_v9 = vld [vmem:[%s1825_s18 + $0x20] sm:$0xff]   ;;  %v1700_v10 = vld [vmem:[%s1825_s18 + $0x28] sm:$0xff]   ;;  %v1642_v11 = vunpack.c.l.bf16 %v1697_v3  ;;  %v1643_v12 = vunpack.c.h.bf16 %v1697_v3  ;;  %v1646_v13 = vunpack.c.l.bf16 %v1698_v8  ;;  %v1647_v14 = vunpack.c.h.bf16 %v1698_v8 }
  0x13   : > { %204 = vst.msk [vmem:[#allocation2 + $0x89] sm:$0x1] %vm180_vm2, %v1738_v0  ;;  %205 = vst.msk [vmem:[#allocation2 + $0xa1] sm:$0x1] %vm180_vm2, %v1738_v0  ;;  %v1701_v15 = vld [vmem:[%s1825_s18 + $0x30] sm:$0xff]   ;;  %v1702_v16 = vld [vmem:[%s1825_s18 + $0x38] sm:$0xff]   ;;  %v1650_v18 = vunpack.c.l.bf16 %v1699_v9  ;;  %v1651_v19 = vunpack.c.h.bf16 %v1699_v9  ;;  %v1654_v20 = vunpack.c.l.bf16 %v1700_v10  ;;  %v1655_v21 = vunpack.c.h.bf16 %v1700_v10 }
  0x14   : > { %206 = vst.msk [vmem:[#allocation2 + $0xb9] sm:$0x1] %vm180_vm2, %v1738_v0  ;;  %207 = vst.msk [vmem:[#allocation2 + $0xd1] sm:$0x1] %vm180_vm2, %v1738_v0  ;;  %v1703_v17 = vld [vmem:[%s1825_s18 + $0x40] sm:$0xff]   ;;  %v1704_v22 = vld [vmem:[%s1825_s18 + $0x48] sm:$0xff]   ;;  %v1658_v25 = vunpack.c.l.bf16 %v1701_v15  ;;  %v1659_v26 = vunpack.c.h.bf16 %v1701_v15  ;;  %v1662_v27 = vunpack.c.l.bf16 %v1702_v16  ;;  %v1663_v28 = vunpack.c.h.bf16 %v1702_v16 }
  0x15   : > { %208 = vst.msk [vmem:[#allocation2 + $0xe9] sm:$0x1] %vm180_vm2, %v1738_v0  ;;  %209 = vst.msk [vmem:[#allocation2 + $0x101] sm:$0x1] %vm180_vm2, %v1738_v0  ;;  %v1705_v23 = vld [vmem:[%s1825_s18 + $0x50] sm:$0xff]   ;;  %v1706_v24 = vld [vmem:[%s1825_s18 + $0x58] sm:$0xff]   ;;  %v1666_v34 = vunpack.c.l.bf16 %v1703_v17  ;;  %v1667_v35 = vunpack.c.h.bf16 %v1703_v17  ;;  %v1670_v36 = vunpack.c.l.bf16 %v1704_v22  ;;  %v1671_v37 = vunpack.c.h.bf16 %v1704_v22 }
  0x16   : > { %210 = vst.msk [vmem:[#allocation2 + $0x119] sm:$0x1] %vm180_vm2, %v1738_v0  ;;  %211 = vst.msk [vmem:[#allocation2 + $0x131] sm:$0x1] %vm180_vm2, %v1738_v0  ;;  %v1707_v29 = vld [vmem:[%s1825_s18 + $0x60] sm:$0xff]   ;;  %v1708_v30 = vld [vmem:[%s1825_s18 + $0x68] sm:$0xff]   ;;  %v1674_v41 = vunpack.c.l.bf16 %v1705_v23  ;;  %v1675_v42 = vunpack.c.h.bf16 %v1705_v23  ;;  %v1678_v43 = vunpack.c.l.bf16 %v1706_v24  ;;  %v1679_v44 = vunpack.c.h.bf16 %v1706_v24 }
  0x17   : > { %212 = vst.msk [vmem:[#allocation2 + $0x149] sm:$0x1] %vm180_vm2, %v1738_v0  ;;  %213 = vst.msk [vmem:[#allocation2 + $0x161] sm:$0x1] %vm180_vm2, %v1738_v0  ;;  %v1709_v38 = vld [vmem:[%s1825_s18 + $0x70] sm:$0xff]   ;;  %v1710_v39 = vld [vmem:[%s1825_s18 + $0x78] sm:$0xff]   ;;  %v1682_v48 = vunpack.c.l.bf16 %v1707_v29  ;;  %v1683_v49 = vunpack.c.h.bf16 %v1707_v29  ;;  %v1686_v50 = vunpack.c.l.bf16 %v1708_v30  ;;  %v1687_v51 = vunpack.c.h.bf16 %v1708_v30 }
  0x18   : > { %214 = vst.msk [vmem:[#allocation2 + $0x179] sm:$0x1] %vm180_vm2, %v1738_v0  ;;  %215 = vst.msk [vmem:[#allocation2 + $0x191] sm:$0x1] %vm180_vm2, %v1738_v0  ;;  %v386_v52 = vld [vmem:[#allocation2 + $0x9] sm:$0xff]  ;;  %v1690_v54 = vunpack.c.l.bf16 %v1709_v38  ;;  %v1691_v55 = vunpack.c.h.bf16 %v1709_v38  ;;  %v1694_v56 = vunpack.c.l.bf16 %v1710_v39  ;;  %v1695_v57 = vunpack.c.h.bf16 %v1710_v39 }
  0x19   : > { %181 = vst.msk [vmem:[#allocation2] sm:$0x1] %vm180_vm2, %v1738_v0  ;;  %198 = vst.msk [vmem:[#allocation2 + $0x198] sm:$0x1] %vm180_vm2, %v1738_v0  ;;  %v1912_v1 = vld [vmem:[%s2780_s1 + $0x7] ss:$0 sm:$0xff]  ;;  %v354_v3 = vmul.f32 %v1852_v31, %v315_v47 }
  0x1a   : > { %199 = vst.msk [vmem:[#allocation2 + $0x11] sm:$0x1] %vm180_vm2, %v1738_v0  ;;  %216 = vst.msk [vmem:[#allocation2 + $0x1a9] sm:$0x1] %vm180_vm2, %v1738_v0  ;;  %v1907_v0 = vld [vmem:[%s2780_s1 + $0x6] ss:$0 sm:$0xff] }
  0x1b   : > { %282 = vst.msk [vmem:[#allocation2 + $0x19] sm:$0xff] %vm171_vm0, %v1634_v4  ;;  %283 = vst.msk [vmem:[#allocation2 + $0x21] sm:$0xff] %vm171_vm0, %v1635_v5  ;;  %v1917_v2 = vld [vmem:[%s2780_s1 + $0x8] ss:$0 sm:$0xff] }
  0x1c   : > { %284 = vst.msk [vmem:[#allocation2 + $0x31] sm:$0xff] %vm171_vm0, %v1638_v6  ;;  %285 = vst.msk [vmem:[#allocation2 + $0x39] sm:$0xff] %vm171_vm0, %v1639_v7  ;;  %v426_v7 = vmul.f32 %v1857_v32, %v386_v52 }
  0x1d   : > { %286 = vst.msk [vmem:[#allocation2 + $0x49] sm:$0xff] %vm171_vm0, %v1642_v11  ;;  %287 = vst.msk [vmem:[#allocation2 + $0x51] sm:$0xff] %vm171_vm0, %v1643_v12 }
  0x1e   : > { %288 = vst.msk [vmem:[#allocation2 + $0x61] sm:$0xff] %vm171_vm0, %v1646_v13  ;;  %289 = vst.msk [vmem:[#allocation2 + $0x69] sm:$0xff] %vm171_vm0, %v1647_v14  ;;  %v458_v14 = vadd.f32 %v426_v7, %v354_v3 }
  0x1f   : > { %290 = vst.msk [vmem:[#allocation2 + $0x79] sm:$0xff] %vm171_vm0, %v1650_v18  ;;  %291 = vst.msk [vmem:[#allocation2 + $0x81] sm:$0xff] %vm171_vm0, %v1651_v19 }
  0x20   : > { %292 = vst.msk [vmem:[#allocation2 + $0x91] sm:$0xff] %vm171_vm0, %v1654_v20  ;;  %293 = vst.msk [vmem:[#allocation2 + $0x99] sm:$0xff] %vm171_vm0, %v1655_v21  ;;  %v314_v40 = vld [vmem:[#allocation2] sm:$0xff] }
  0x21   : > { %294 = vst.msk [vmem:[#allocation2 + $0xa9] sm:$0xff] %vm171_vm0, %v1658_v25  ;;  %295 = vst.msk [vmem:[#allocation2 + $0xb1] sm:$0xff] %vm171_vm0, %v1659_v26  ;;  %v490_v53 = vld [vmem:[#allocation2 + $0xa] sm:$0xff]  ;;  %v353_v61 = vmul.f32 %v1852_v31, %v314_v40 }
  0x22   : > { %296 = vst.msk [vmem:[#allocation2 + $0xc1] sm:$0xff] %vm171_vm0, %v1662_v27  ;;  %297 = vst.msk [vmem:[#allocation2 + $0xc9] sm:$0xff] %vm171_vm0, %v1663_v28  ;;  %v593_v4 = vld [vmem:[#allocation2 + $0x18] sm:$0xff]  ;;  %v530_v8 = vmul.f32 %v1862_v33, %v490_v53  ;;  %v594_v15 = vld [vmem:[#allocation2 + $0x20] sm:$0xff] }
  0x23   : > { %298 = vst.msk [vmem:[#allocation2 + $0xd9] sm:$0xff] %vm171_vm0, %v1666_v34  ;;  %299 = vst.msk [vmem:[#allocation2 + $0xe1] sm:$0xff] %vm171_vm0, %v1667_v35  ;;  %v697_v5 = vld [vmem:[#allocation2 + $0x19] sm:$0xff]  ;;  %v457_v9 = vadd.f32 %v425_v62, %v353_v61  ;;  %v633_v10 = vmul.f32 %v1885_v58, %v593_v4  ;;  %v906_v11 = vld [vmem:[#allocation2 + $0x30] sm:$0xff]  ;;  %v634_v20 = vmul.f32 %v1885_v58, %v594_v15 }
  0x24   : > { %300 = vst.msk [vmem:[#allocation2 + $0xf1] sm:$0xff] %vm171_vm0, %v1670_v36  ;;  %301 = vst.msk [vmem:[#allocation2 + $0xf9] sm:$0xff] %vm171_vm0, %v1671_v37  ;;  %v801_v6 = vld [vmem:[#allocation2 + $0x1a] sm:$0xff]  ;;  %v1010_v12 = vld [vmem:[#allocation2 + $0x31] sm:$0xff]  ;;  %v737_v18 = vmul.f32 %v1890_v59, %v697_v5  ;;  %v946_v24 = vmul.f32 %v1907_v0, %v906_v11  ;;  %v562_v27 = vadd.f32 %v530_v8, %v458_v14 }
  0x25   : > { %302 = vst.msk [vmem:[#allocation2 + $0x109] sm:$0xff] %vm171_vm0, %v1674_v41  ;;  %303 = vst.msk [vmem:[#allocation2 + $0x111] sm:$0xff] %vm171_vm0, %v1675_v42  ;;  %v1927_v13 = vld [vmem:[#allocation2 + $0x32] sm:$0xff]  ;;  %v698_v16 = vld [vmem:[#allocation2 + $0x21] sm:$0xff]  ;;  %v561_v17 = vadd.f32 %v529_v63, %v457_v9  ;;  %v841_v19 = vmul.f32 %v1895_v60, %v801_v6  ;;  %v1050_v25 = vmul.f32 %v1912_v1, %v1010_v12 }
  0x26   : > { %304 = vst.msk [vmem:[#allocation2 + $0x121] sm:$0xff] %vm171_vm0, %v1678_v43  ;;  %305 = vst.msk [vmem:[#allocation2 + $0x129] sm:$0xff] %vm171_vm0, %v1679_v44  ;;  %v802_v21 = vld [vmem:[#allocation2 + $0x22] sm:$0xff]  ;;  %v1932_v22 = vld [vmem:[#allocation2 + $0x38] sm:$0xff]  ;;  %v1154_v26 = vmul.f32 %v1917_v2, %v1927_v13  ;;  %v738_v30 = vmul.f32 %v1890_v59, %v698_v16  ;;  %v355_v34 = vmul.f32 %v1852_v31, %v593_v4 }
  0x27   : > { %306 = vst.msk [vmem:[#allocation2 + $0x139] sm:$0xff] %vm171_vm0, %v1682_v48  ;;  %307 = vst.msk [vmem:[#allocation2 + $0x141] sm:$0xff] %vm171_vm0, %v1683_v49  ;;  %v1934_v23 = vld [vmem:[#allocation2 + $0x39] sm:$0xff]  ;;  %v665_v29 = vadd.f32 %v633_v10, %v561_v17  ;;  %v427_v35 = vmul.f32 %v1857_v32, %v697_v5  ;;  %v666_v36 = vadd.f32 %v634_v20, %v562_v27  ;;  %v1953_v44 = vld [vmem:[#allocation2 + $0x48] sm:$0xff] }
  0x28   : > { %308 = vst.msk [vmem:[#allocation2 + $0x151] sm:$0xff] %vm171_vm0, %v1686_v50  ;;  %309 = vst.msk [vmem:[#allocation2 + $0x159] sm:$0xff] %vm171_vm0, %v1687_v51  ;;  %v1940_v28 = vld [vmem:[#allocation2 + $0x3a] sm:$0xff]  ;;  %v842_v37 = vmul.f32 %v1895_v60, %v802_v21  ;;  %v947_v38 = vmul.f32 %v1907_v0, %v1932_v22  ;;  %v1051_v39 = vmul.f32 %v1912_v1, %v1934_v23  ;;  %v1956_v47 = vld [vmem:[#allocation2 + $0x49] sm:$0xff] }
  0x29   : > { %310 = vst.msk [vmem:[#allocation2 + $0x169] sm:$0xff] %vm171_vm0, %v1690_v54  ;;  %311 = vst.msk [vmem:[#allocation2 + $0x171] sm:$0xff] %vm171_vm0, %v1691_v55  ;;  %v769_v40 = vadd.f32 %v737_v18, %v665_v29  ;;  %v1155_v41 = vmul.f32 %v1917_v2, %v1940_v28  ;;  %v459_v42 = vadd.f32 %v427_v35, %v355_v34  ;;  %v1958_v48 = vld [vmem:[#allocation2 + $0x4a] sm:$0xff]  ;;  %v1981_v17 = vld [vmem:[#allocation2 + $0x52] sm:$0xff] }
  0x2a   : > { %312 = vst.msk [vmem:[#allocation2 + $0x181] sm:$0xff] %vm171_vm0, %v1694_v56  ;;  %313 = vst.msk [vmem:[#allocation2 + $0x189] sm:$0xff] %vm171_vm0, %v1695_v57  ;;  %v531_v43 = vmul.f32 %v1862_v33, %v801_v6  ;;  %v770_v45 = vadd.f32 %v738_v30, %v666_v36  ;;  %v635_v46 = vmul.f32 %v1885_v58, %v906_v11  ;;  %v1972_v5 = vld [vmem:[#allocation2 + $0x50] sm:$0xff] }
  0x2b   : > { %v356_v49 = vmul.f32 %v1852_v31, %v594_v15  ;;  %v428_v50 = vmul.f32 %v1857_v32, %v698_v16  ;;  %v873_v51 = vadd.f32 %v841_v19, %v769_v40  ;;  %v739_v53 = vmul.f32 %v1890_v59, %v1010_v12  ;;  %v1979_v16 = vld [vmem:[#allocation2 + $0x51] sm:$0xff]  ;;  %v1987_v19 = vld [vmem:[%s2781_s2] ss:$0 sm:$0xff] }
  0x2c   : > { %v563_v52 = vadd.f32 %v531_v43, %v459_v42  ;;  %v843_v54 = vmul.f32 %v1895_v60, %v1927_v13  ;;  %v874_v55 = vadd.f32 %v842_v37, %v770_v45  ;;  %v948_v56 = vmul.f32 %v1907_v0, %v1953_v44 }
  0x2d   : > { %v460_v57 = vadd.f32 %v428_v50, %v356_v49  ;;  %v532_v61 = vmul.f32 %v1862_v33, %v802_v21  ;;  %v978_v62 = vadd.f32 %v946_v24, %v873_v51  ;;  %v1052_v3 = vmul.f32 %v1912_v1, %v1956_v47 }
  0x2e   : > { %v667_v63 = vadd.f32 %v635_v46, %v563_v52  ;;  %v1156_v4 = vmul.f32 %v1917_v2, %v1958_v48  ;;  %v979_v6 = vadd.f32 %v947_v38, %v874_v55  ;;  %v636_v8 = vmul.f32 %v1885_v58, %v1932_v22  ;;  %v2009_v52 = vld [vmem:[#allocation2 + $0x60] sm:$0xff] }
  0x2f   : > { %v564_v7 = vadd.f32 %v532_v61, %v460_v57  ;;  %v357_v9 = vmul.f32 %v1852_v31, %v906_v11  ;;  %v1082_v10 = vadd.f32 %v1050_v25, %v978_v62  ;;  %v740_v15 = vmul.f32 %v1890_v59, %v1934_v23  ;;  %v2022_v62 = vld [vmem:[#allocation2 + $0x61] sm:$0xff] }
  0x30   : > { %v771_v14 = vadd.f32 %v739_v53, %v667_v63  ;;  %v429_v18 = vmul.f32 %v1857_v32, %v1010_v12  ;;  %v1083_v20 = vadd.f32 %v1051_v39, %v979_v6  ;;  %v844_v11 = vmul.f32 %v1895_v60, %v1940_v28 }
  0x31   : > { %v668_v21 = vadd.f32 %v636_v8, %v564_v7  ;;  %v949_v24 = vmul.f32 %v1907_v0, %v1972_v5  ;;  %v1186_v25 = vadd.f32 %v1154_v26, %v1082_v10  ;;  %v533_v12 = vmul.f32 %v1862_v33, %v1927_v13  ;;  %v2029_v10 = vld [vmem:[#allocation2 + $0x62] sm:$0xff] }
  0x32   : > { %v875_v27 = vadd.f32 %v843_v54, %v771_v14  ;;  %v461_v29 = vadd.f32 %v429_v18, %v357_v9  ;;  %v1187_v30 = vadd.f32 %v1155_v41, %v1083_v20  ;;  %v1053_v35 = vmul.f32 %v1912_v1, %v1979_v16  ;;  %v2033_v18 = vld [vmem:[#allocation2 + $0x68] sm:$0xff] }
  0x33   : > { %v772_v34 = vadd.f32 %v740_v15, %v668_v21  ;;  %v1157_v36 = vmul.f32 %v1917_v2, %v1981_v17  ;;  %v1225_v37 = vadd.f32 %v1987_v19, %v1186_v25  ;;  %v637_v26 = vmul.f32 %v1885_v58, %v1953_v44 }
  0x34   : > { %v980_v38 = vadd.f32 %v948_v56, %v875_v27  ;;  %v565_v39 = vadd.f32 %v533_v12, %v461_v29  ;;  %v1226_v40 = vadd.f32 %v1987_v19, %v1187_v30  ;;  %v358_v13 = vmul.f32 %v1852_v31, %v1932_v22  ;;  %v2046_v12 = vld [vmem:[#allocation2 + $0x69] sm:$0xff] }
  0x35   : > { %v876_v42 = vadd.f32 %v844_v11, %v772_v34  ;;  %v430_v41 = vmul.f32 %v1857_v32, %v1934_v23  ;;  %v1257_v43 = vmax.f32 %v1225_v37, 0.0  ;;  %v741_v49 = vmul.f32 %v1890_v59, %v1956_v47 }
  0x36   : > { %v1084_v45 = vadd.f32 %v1052_v3, %v980_v38  ;;  %v669_v46 = vadd.f32 %v637_v26, %v565_v39  ;;  %v1258_v50 = vmax.f32 %v1226_v40, 0.0  ;;  %v534_v54 = vmul.f32 %v1862_v33, %v1940_v28  ;;  %v2054_v39 = vld [vmem:[#allocation2 + $0x6a] sm:$0xff] }
  0x37   : > { %v981_v51 = vadd.f32 %v949_v24, %v876_v42  ;;  %v462_v53 = vadd.f32 %v430_v41, %v358_v13  ;;  %v1289_v55 = vmin.f32 %v1257_v43, 6.0  ;;  %v845_v23 = vmul.f32 %v1895_v60, %v1958_v48 }
  0x38   : > { %v1188_v56 = vadd.f32 %v1156_v4, %v1084_v45  ;;  %v773_v22 = vadd.f32 %v741_v49, %v669_v46  ;;  %v1290_v57 = vmin.f32 %v1258_v50, 6.0  ;;  %v638_v28 = vmul.f32 %v1885_v58, %v1972_v5 }
  0x39   : > { %v1085_v61 = vadd.f32 %v1053_v35, %v981_v51  ;;  %v566_v63 = vadd.f32 %v534_v54, %v462_v53  ;;  %v1600_v3 = vpack.c.bf16 %v1289_v55, %v1289_v55  ;;  %v950_v7 = vmul.f32 %v1907_v0, %v2009_v52  ;;  %v2069_v51 = vld [vmem:[#allocation2 + $0x79] sm:$0xff] }
  0x3a   : > { %v1227_v4 = vadd.f32 %v1987_v19, %v1188_v56  ;;  %v877_v6 = vadd.f32 %v845_v23, %v773_v22  ;;  %v1601_v8 = vpack.c.bf16 %v1290_v57, %v1290_v57  ;;  %v742_v15 = vmul.f32 %v1890_v59, %v1979_v16 }
  0x3b   : > { %v1189_v9 = vadd.f32 %v1157_v36, %v1085_v61  ;;  %v670_v14 = vadd.f32 %v638_v28, %v566_v63  ;;  %1450 = vst.msk [vmem:[%s2020_s17] sm:$0xf] %vm1449_vm3, %v1600_v3  ;;  %v1054_v11 = vmul.f32 %v1912_v1, %v2022_v62  ;;  %v359_v24 = vmul.f32 %v1852_v31, %v1953_v44  ;;  %v2079_v63 = vld [vmem:[#allocation2 + $0x7a] sm:$0xff] }
  0x3c   : > { %v1259_v20 = vmax.f32 %v1227_v4, 0.0  ;;  %v982_v21 = vadd.f32 %v950_v7, %v877_v6  ;;  %1451 = vst.msk [vmem:[%s2020_s17 + $0x4] sm:$0xf] %vm1449_vm3, %v1601_v8  ;;  %v846_v29 = vmul.f32 %v1895_v60, %v1981_v17  ;;  %v431_v30 = vmul.f32 %v1857_v32, %v1956_v47 }
  0x3d   : > { %v1228_v25 = vadd.f32 %v1987_v19, %v1189_v9  ;;  %v774_v27 = vadd.f32 %v742_v15, %v670_v14  ;;  %v1158_v36 = vmul.f32 %v1917_v2, %v2029_v10  ;;  %v951_v44 = vmul.f32 %v1907_v0, %v2033_v18 }
  0x3e   : > { %v1291_v34 = vmin.f32 %v1259_v20, 6.0  ;;  %v1086_v35 = vadd.f32 %v1054_v11, %v982_v21  ;;  %v463_v26 = vadd.f32 %v431_v30, %v359_v24  ;;  %v535_v40 = vmul.f32 %v1862_v33, %v1958_v48  ;;  %v2067_v48 = vld [vmem:[#allocation2 + $0x78] sm:$0xff]  ;;  %v2096_v21 = vld [vmem:[#allocation2 + $0x80] sm:$0xff] }
  0x3f   : > { %v1260_v37 = vmax.f32 %v1228_v25, 0.0  ;;  %v878_v38 = vadd.f32 %v846_v29, %v774_v27  ;;  %v1055_v47 = vmul.f32 %v1912_v1, %v2046_v12  ;;  %v639_v46 = vmul.f32 %v1885_v58, %v2009_v52  ;;  %v2098_v11 = vld [vmem:[#allocation2 + $0x81] sm:$0xff] }
  0x40   : > { %v1602_v42 = vpack.c.bf16 %v1291_v34, %v1291_v34  ;;  %v1190_v13 = vadd.f32 %v1158_v36, %v1086_v35  ;;  %v567_v45 = vadd.f32 %v535_v40, %v463_v26  ;;  %v1159_v50 = vmul.f32 %v1917_v2, %v2054_v39  ;;  %v2106_v35 = vld [vmem:[#allocation2 + $0x82] sm:$0xff] }
  0x41   : > { %v1292_v41 = vmin.f32 %v1260_v37, 6.0  ;;  %v983_v43 = vadd.f32 %v951_v44, %v878_v38  ;;  %v360_v53 = vmul.f32 %v1852_v31, %v1972_v5  ;;  %v432_v54 = vmul.f32 %v1857_v32, %v1979_v16 }
  0x42   : > { %1452 = vst.msk [vmem:[%s2020_s17 + $0x8] sm:$0xf] %vm1449_vm3, %v1602_v42  ;;  %v1229_v49 = vadd.f32 %v1987_v19, %v1190_v13  ;;  %v671_v22 = vadd.f32 %v639_v46, %v567_v45  ;;  %v743_v23 = vmul.f32 %v1890_v59, %v2022_v62  ;;  %v847_v61 = vmul.f32 %v1895_v60, %v2029_v10  ;;  %v2126_v46 = vld [vmem:[#allocation2 + $0x91] sm:$0xff] }
  0x43   : > { %v1603_v55 = vpack.c.bf16 %v1292_v41, %v1292_v41  ;;  %v1087_v56 = vadd.f32 %v1055_v47, %v983_v43  ;;  %v464_v28 = vadd.f32 %v432_v54, %v360_v53  ;;  %v536_v3 = vmul.f32 %v1862_v33, %v1981_v17  ;;  %v2118_v47 = vld [vmem:[#allocation2 + $0x90] sm:$0xff] }
  0x44   : > { %v1261_v57 = vmax.f32 %v1229_v49, 0.0  ;;  %v775_v16 = vadd.f32 %v743_v23, %v671_v22  ;;  %v952_v4 = vmul.f32 %v1907_v0, %v2067_v48  ;;  %v1056_v6 = vmul.f32 %v1912_v1, %v2069_v51  ;;  %v2134_v22 = vld [vmem:[#allocation2 + $0x92] sm:$0xff] }
  0x45   : > { %1453 = vst.msk [vmem:[%s2020_s17 + $0xc] sm:$0xf] %vm1449_vm3, %v1603_v55  ;;  %v1191_v5 = vadd.f32 %v1159_v50, %v1087_v56  ;;  %v568_v8 = vadd.f32 %v536_v3, %v464_v28  ;;  %v640_v9 = vmul.f32 %v1885_v58, %v2033_v18  ;;  %v361_v14 = vmul.f32 %v1852_v31, %v2009_v52 }
  0x46   : > { %v1293_v7 = vmin.f32 %v1261_v57, 6.0  ;;  %v879_v15 = vadd.f32 %v847_v61, %v775_v16  ;;  %v1160_v20 = vmul.f32 %v1917_v2, %v2079_v63  ;;  %v433_v24 = vmul.f32 %v1857_v32, %v2022_v62 }
  0x47   : > { %v1230_v17 = vadd.f32 %v1987_v19, %v1191_v5  ;;  %v672_v27 = vadd.f32 %v640_v9, %v568_v8  ;;  %v744_v29 = vmul.f32 %v1890_v59, %v2046_v12  ;;  %v848_v52 = vmul.f32 %v1895_v60, %v2054_v39 }
  0x48   : > { %v1604_v25 = vpack.c.bf16 %v1293_v7, %v1293_v7  ;;  %v984_v34 = vadd.f32 %v952_v4, %v879_v15  ;;  %v465_v36 = vadd.f32 %v433_v24, %v361_v14  ;;  %v537_v44 = vmul.f32 %v1862_v33, %v2029_v10  ;;  %v2145_v4 = vld [vmem:[#allocation2 + $0x98] sm:$0xff] }
  0x49   : > { %v1262_v30 = vmax.f32 %v1230_v17, 0.0  ;;  %v776_v37 = vadd.f32 %v744_v29, %v672_v27  ;;  %v953_v62 = vmul.f32 %v1907_v0, %v2096_v21  ;;  %v1057_v38 = vmul.f32 %v1912_v1, %v2098_v11 }
  0x4a   : > { %1454 = vst.msk [vmem:[%s2020_s17 + $0x10] sm:$0xf] %vm1449_vm3, %v1604_v25  ;;  %v641_v26 = vmul.f32 %v1885_v58, %v2067_v48  ;;  %v1088_v42 = vadd.f32 %v1056_v6, %v984_v34  ;;  %v569_v13 = vadd.f32 %v537_v44, %v465_v36  ;;  %v362_v10 = vmul.f32 %v1852_v31, %v2033_v18 }
  0x4b   : > { %v1294_v40 = vmin.f32 %v1262_v30, 6.0  ;;  %v880_v41 = vadd.f32 %v848_v52, %v776_v37  ;;  %v1161_v43 = vmul.f32 %v1917_v2, %v2106_v35  ;;  %v745_v45 = vmul.f32 %v1890_v59, %v2069_v51  ;;  %v2162_v30 = vld [vmem:[#allocation2 + $0x99] sm:$0xff] }
  0x4c   : > { %v434_v49 = vmul.f32 %v1857_v32, %v2046_v12  ;;  %v1192_v53 = vadd.f32 %v1160_v20, %v1088_v42  ;;  %v673_v54 = vadd.f32 %v641_v26, %v569_v13  ;;  %v849_v55 = vmul.f32 %v1895_v60, %v2079_v63  ;;  %v2172_v13 = vld [vmem:[#allocation2 + $0xa8] sm:$0xff] }
  0x4d   : > { %v1605_v50 = vpack.c.bf16 %v1294_v40, %v1294_v40  ;;  %v985_v56 = vadd.f32 %v953_v62, %v880_v41  ;;  %v954_v18 = vmul.f32 %v1907_v0, %v2118_v47  ;;  %v538_v57 = vmul.f32 %v1862_v33, %v2054_v39  ;;  %v2170_v40 = vld [vmem:[#allocation2 + $0x9a] sm:$0xff] }
  0x4e   : > { %v466_v23 = vadd.f32 %v434_v49, %v362_v10  ;;  %v1231_v12 = vadd.f32 %v1987_v19, %v1192_v53  ;;  %v777_v61 = vadd.f32 %v745_v45, %v673_v54  ;;  %v1058_v28 = vmul.f32 %v1912_v1, %v2126_v46  ;;  %v2184_v54 = vld [vmem:[#allocation2 + $0xa9] sm:$0xff] }
  0x4f   : > { %1455 = vst.msk [vmem:[%s2020_s17 + $0x14] sm:$0xf] %vm1449_vm3, %v1605_v50  ;;  %v642_v3 = vmul.f32 %v1885_v58, %v2096_v21  ;;  %v1089_v5 = vadd.f32 %v1057_v38, %v985_v56  ;;  %v363_v6 = vmul.f32 %v1852_v31, %v2067_v48  ;;  %v435_v39 = vmul.f32 %v1857_v32, %v2069_v51 }
  0x50   : > { %v570_v16 = vadd.f32 %v538_v57, %v466_v23  ;;  %v1263_v7 = vmax.f32 %v1231_v12, 0.0  ;;  %v881_v8 = vadd.f32 %v849_v55, %v777_v61  ;;  %v1162_v9 = vmul.f32 %v1917_v2, %v2134_v22  ;;  %v2193_v61 = vld [vmem:[#allocation2 + $0xaa] sm:$0xff] }
  0x51   : > { %v746_v14 = vmul.f32 %v1890_v59, %v2098_v11  ;;  %v1193_v17 = vadd.f32 %v1161_v43, %v1089_v5  ;;  %v467_v20 = vadd.f32 %v435_v39, %v363_v6  ;;  %v539_v24 = vmul.f32 %v1862_v33, %v2079_v63 }
  0x52   : > { %v674_v15 = vadd.f32 %v642_v3, %v570_v16  ;;  %v1295_v25 = vmin.f32 %v1263_v7, 6.0  ;;  %v986_v27 = vadd.f32 %v954_v18, %v881_v8  ;;  %v850_v48 = vmul.f32 %v1895_v60, %v2106_v35 }
  0x53   : > { %v955_v51 = vmul.f32 %v1907_v0, %v2145_v4  ;;  %v1232_v29 = vadd.f32 %v1987_v19, %v1193_v17  ;;  %v571_v34 = vadd.f32 %v539_v24, %v467_v20  ;;  %v643_v36 = vmul.f32 %v1885_v58, %v2118_v47  ;;  %v2209_v20 = vld [vmem:[#allocation2 + $0xb1] sm:$0xff] }
  0x54   : > { %v778_v52 = vadd.f32 %v746_v14, %v674_v15  ;;  %v1606_v44 = vpack.c.bf16 %v1295_v25, %v1295_v25  ;;  %v1090_v63 = vadd.f32 %v1058_v28, %v986_v27  ;;  %v747_v37 = vmul.f32 %v1890_v59, %v2126_v46  ;;  %v2205_v14 = vld [vmem:[#allocation2 + $0xb0] sm:$0xff] }
  0x55   : > { %v364_v62 = vmul.f32 %v1852_v31, %v2096_v21  ;;  %v1264_v38 = vmax.f32 %v1232_v29, 0.0  ;;  %v675_v42 = vadd.f32 %v643_v36, %v571_v34  ;;  %v436_v10 = vmul.f32 %v1857_v32, %v2098_v11 }
  0x56   : > { %v882_v26 = vadd.f32 %v850_v48, %v778_v52  ;;  %1456 = vst.msk [vmem:[%s2020_s17 + $0x18] sm:$0xf] %vm1449_vm3, %v1606_v44  ;;  %v1194_v41 = vadd.f32 %v1162_v9, %v1090_v63  ;;  %v1059_v43 = vmul.f32 %v1912_v1, %v2162_v30  ;;  %v851_v45 = vmul.f32 %v1895_v60, %v2134_v22  ;;  %v2218_v52 = vld [vmem:[#allocation2 + $0xb2] sm:$0xff] }
  0x57   : > { %v540_v21 = vmul.f32 %v1862_v33, %v2106_v35  ;;  %v1296_v49 = vmin.f32 %v1264_v38, 6.0  ;;  %v779_v53 = vadd.f32 %v747_v37, %v675_v42  ;;  %v468_v55 = vadd.f32 %v436_v10, %v364_v62 }
  0x58   : > { %v987_v50 = vadd.f32 %v955_v51, %v882_v26  ;;  %v1233_v11 = vadd.f32 %v1987_v19, %v1194_v41  ;;  %v1163_v56 = vmul.f32 %v1917_v2, %v2170_v40  ;;  %v956_v18 = vmul.f32 %v1907_v0, %v2172_v13  ;;  %v2228_v26 = vld [vmem:[#allocation2 + $0xc0] sm:$0xff] }
  0x59   : > { %v644_v23 = vmul.f32 %v1885_v58, %v2145_v4  ;;  %v1607_v57 = vpack.c.bf16 %v1296_v49, %v1296_v49  ;;  %v883_v12 = vadd.f32 %v851_v45, %v779_v53  ;;  %v572_v28 = vadd.f32 %v540_v21, %v468_v55  ;;  %v2237_v49 = vld [vmem:[#allocation2 + $0xc1] sm:$0xff] }
  0x5a   : > { %v1091_v35 = vadd.f32 %v1059_v43, %v987_v50  ;;  %v1265_v3 = vmax.f32 %v1233_v11, 0.0  ;;  %v1060_v5 = vmul.f32 %v1912_v1, %v2184_v54  ;;  %v365_v16 = vmul.f32 %v1852_v31, %v2118_v47 }
  0x5b   : > { %v437_v6 = vmul.f32 %v1857_v32, %v2126_v46  ;;  %1457 = vst.msk [vmem:[%s2020_s17 + $0x1c] sm:$0xf] %vm1449_vm3, %v1607_v57  ;;  %v988_v7 = vadd.f32 %v956_v18, %v883_v12  ;;  %v676_v8 = vadd.f32 %v644_v23, %v572_v28  ;;  %v748_v9 = vmul.f32 %v1890_v59, %v2162_v30  ;;  %v2245_v23 = vld [vmem:[#allocation2 + $0xc2] sm:$0xff] }
  0x5c   : > { %v1195_v39 = vadd.f32 %v1163_v56, %v1091_v35  ;;  %v1297_v17 = vmin.f32 %v1265_v3, 6.0  ;;  %v1164_v15 = vmul.f32 %v1917_v2, %v2193_v61  ;;  %v541_v46 = vmul.f32 %v1862_v33, %v2134_v22 }
  0x5d   : > { %v469_v47 = vadd.f32 %v437_v6, %v365_v16  ;;  %v1092_v25 = vadd.f32 %v1060_v5, %v988_v7  ;;  %v780_v27 = vadd.f32 %v748_v9, %v676_v8  ;;  %v852_v48 = vmul.f32 %v1895_v60, %v2170_v40  ;;  %v2253_v5 = vld [vmem:[#allocation2 + $0xc8] sm:$0xff] }
  0x5e   : > { %v1234_v24 = vadd.f32 %v1987_v19, %v1195_v39  ;;  %v1608_v51 = vpack.c.bf16 %v1297_v17, %v1297_v17  ;;  %v957_v29 = vmul.f32 %v1907_v0, %v2205_v14  ;;  %v645_v36 = vmul.f32 %v1885_v58, %v2172_v13  ;;  %v2263_v17 = vld [vmem:[#allocation2 + $0xc9] sm:$0xff] }
  0x5f   : > { %v573_v34 = vadd.f32 %v541_v46, %v469_v47  ;;  %v1196_v63 = vadd.f32 %v1164_v15, %v1092_v25  ;;  %v884_v22 = vadd.f32 %v852_v48, %v780_v27  ;;  %v1061_v37 = vmul.f32 %v1912_v1, %v2209_v20  ;;  %v2272_v48 = vld [vmem:[#allocation2 + $0xca] sm:$0xff] }
  0x60   : > { %v1266_v44 = vmax.f32 %v1234_v24, 0.0  ;;  %1458 = vst.msk [vmem:[%s2020_s17 + $0x20] sm:$0xf] %vm1449_vm3, %v1608_v51  ;;  %v749_v38 = vmul.f32 %v1890_v59, %v2184_v54  ;;  %v366_v42 = vmul.f32 %v1852_v31, %v2145_v4  ;;  %v438_v10 = vmul.f32 %v1857_v32, %v2162_v30 }
  0x61   : > { %v677_v62 = vadd.f32 %v645_v36, %v573_v34  ;;  %v1235_v43 = vadd.f32 %v1987_v19, %v1196_v63  ;;  %v989_v45 = vadd.f32 %v957_v29, %v884_v22  ;;  %v1165_v21 = vmul.f32 %v1917_v2, %v2218_v52  ;;  %v2280_v63 = vld [vmem:[#allocation2 + $0xd8] sm:$0xff] }
  0x62   : > { %v1298_v41 = vmin.f32 %v1266_v44, 6.0  ;;  %v853_v53 = vmul.f32 %v1895_v60, %v2193_v61  ;;  %v470_v55 = vadd.f32 %v438_v10, %v366_v42  ;;  %v542_v4 = vmul.f32 %v1862_v33, %v2170_v40 }
  0x63   : > { %v781_v50 = vadd.f32 %v749_v38, %v677_v62  ;;  %v1267_v30 = vmax.f32 %v1235_v43, 0.0  ;;  %v1093_v56 = vadd.f32 %v1061_v37, %v989_v45  ;;  %v958_v18 = vmul.f32 %v1907_v0, %v2228_v26  ;;  %v2291_v45 = vld [vmem:[#allocation2 + $0xd9] sm:$0xff] }
  0x64   : > { %v1609_v11 = vpack.c.bf16 %v1298_v41, %v1298_v41  ;;  %v1062_v35 = vmul.f32 %v1912_v1, %v2237_v49  ;;  %v574_v12 = vadd.f32 %v542_v4, %v470_v55  ;;  %v646_v28 = vmul.f32 %v1885_v58, %v2205_v14 }
  0x65   : > { %v885_v57 = vadd.f32 %v853_v53, %v781_v50  ;;  %v1299_v3 = vmin.f32 %v1267_v30, 6.0  ;;  %v1197_v40 = vadd.f32 %v1165_v21, %v1093_v56  ;;  %v367_v16 = vmul.f32 %v1852_v31, %v2172_v13  ;;  %v2299_v30 = vld [vmem:[#allocation2 + $0xda] sm:$0xff] }
  0x66   : > { %1459 = vst.msk [vmem:[%s2020_s17 + $0x24] sm:$0xf] %vm1449_vm3, %v1609_v11  ;;  %v439_v6 = vmul.f32 %v1857_v32, %v2184_v54  ;;  %v1166_v7 = vmul.f32 %v1917_v2, %v2245_v23  ;;  %v678_v8 = vadd.f32 %v646_v28, %v574_v12  ;;  %v750_v9 = vmul.f32 %v1890_v59, %v2209_v20 }
  0x67   : > { %v990_v39 = vadd.f32 %v958_v18, %v885_v57  ;;  %v1610_v15 = vpack.c.bf16 %v1299_v3, %v1299_v3  ;;  %v1236_v47 = vadd.f32 %v1987_v19, %v1197_v40  ;;  %v543_v13 = vmul.f32 %v1862_v33, %v2193_v61 }
  0x68   : > { %v471_v46 = vadd.f32 %v439_v6, %v367_v16  ;;  %v782_v25 = vadd.f32 %v750_v9, %v678_v8  ;;  %v854_v54 = vmul.f32 %v1895_v60, %v2218_v52  ;;  %v959_v27 = vmul.f32 %v1907_v0, %v2253_v5  ;;  %v2313_v6 = vld [vmem:[#allocation2 + $0xe0] sm:$0xff] }
  0x69   : > { %v1094_v24 = vadd.f32 %v1062_v35, %v990_v39  ;;  %1460 = vst.msk [vmem:[%s2020_s17 + $0x28] sm:$0xf] %vm1449_vm3, %v1610_v15  ;;  %v1268_v51 = vmax.f32 %v1236_v47, 0.0  ;;  %v1063_v29 = vmul.f32 %v1912_v1, %v2263_v17  ;;  %v647_v61 = vmul.f32 %v1885_v58, %v2228_v26  ;;  %v2317_v8 = vld [vmem:[#allocation2 + $0xe1] sm:$0xff] }
  0x6a   : > { %v575_v34 = vadd.f32 %v543_v13, %v471_v46  ;;  %v886_v44 = vadd.f32 %v854_v54, %v782_v25  ;;  %v368_v22 = vmul.f32 %v1852_v31, %v2205_v14  ;;  %v440_v37 = vmul.f32 %v1857_v32, %v2209_v20  ;;  %v2326_v25 = vld [vmem:[#allocation2 + $0xe2] sm:$0xff] }
  0x6b   : > { %v1198_v36 = vadd.f32 %v1166_v7, %v1094_v24  ;;  %v1300_v62 = vmin.f32 %v1268_v51, 6.0  ;;  %v1167_v38 = vmul.f32 %v1917_v2, %v2272_v48  ;;  %v751_v10 = vmul.f32 %v1890_v59, %v2237_v49 }
  0x6c   : > { %v679_v42 = vadd.f32 %v647_v61, %v575_v34  ;;  %v991_v43 = vadd.f32 %v959_v27, %v886_v44  ;;  %v472_v21 = vadd.f32 %v440_v37, %v368_v22  ;;  %v544_v14 = vmul.f32 %v1862_v33, %v2218_v52  ;;  %v2338_v22 = vld [vmem:[#allocation2 + $0xf0] sm:$0xff] }
  0x6d   : > { %v1237_v41 = vadd.f32 %v1987_v19, %v1198_v36  ;;  %v1611_v50 = vpack.c.bf16 %v1300_v62, %v1300_v62  ;;  %v855_v53 = vmul.f32 %v1895_v60, %v2245_v23  ;;  %v960_v55 = vmul.f32 %v1907_v0, %v2280_v63  ;;  %v2340_v37 = vld [vmem:[#allocation2 + $0xf1] sm:$0xff] }
  0x6e   : > { %v783_v20 = vadd.f32 %v751_v10, %v679_v42  ;;  %v1095_v11 = vadd.f32 %v1063_v29, %v991_v43  ;;  %v576_v56 = vadd.f32 %v544_v14, %v472_v21  ;;  %v648_v18 = vmul.f32 %v1885_v58, %v2253_v5  ;;  %v2349_v21 = vld [vmem:[#allocation2 + $0xf2] sm:$0xff] }
  0x6f   : > { %v1269_v4 = vmax.f32 %v1237_v41, 0.0  ;;  %1461 = vst.msk [vmem:[%s2020_s17 + $0x2c] sm:$0xf] %vm1449_vm3, %v1611_v50  ;;  %v1064_v52 = vmul.f32 %v1912_v1, %v2291_v45  ;;  %v369_v35 = vmul.f32 %v1852_v31, %v2228_v26  ;;  %v441_v12 = vmul.f32 %v1857_v32, %v2237_v49 }
  0x70   : > { %v887_v57 = vadd.f32 %v855_v53, %v783_v20  ;;  %v1199_v3 = vadd.f32 %v1167_v38, %v1095_v11  ;;  %v680_v40 = vadd.f32 %v648_v18, %v576_v56  ;;  %v752_v16 = vmul.f32 %v1890_v59, %v2263_v17 }
  0x71   : > { %v1301_v28 = vmin.f32 %v1269_v4, 6.0  ;;  %v1168_v7 = vmul.f32 %v1917_v2, %v2299_v30  ;;  %v473_v9 = vadd.f32 %v441_v12, %v369_v35  ;;  %v545_v26 = vmul.f32 %v1862_v33, %v2245_v23 }
  0x72   : > { %v992_v39 = vadd.f32 %v960_v55, %v887_v57  ;;  %v1238_v15 = vadd.f32 %v1987_v19, %v1199_v3  ;;  %v784_v47 = vadd.f32 %v752_v16, %v680_v40  ;;  %v856_v46 = vmul.f32 %v1895_v60, %v2272_v48 }
  0x73   : > { %v1612_v49 = vpack.c.bf16 %v1301_v28, %v1301_v28  ;;  %v961_v24 = vmul.f32 %v1907_v0, %v2313_v6  ;;  %v577_v54 = vadd.f32 %v545_v26, %v473_v9  ;;  %v649_v27 = vmul.f32 %v1885_v58, %v2280_v63 }
  0x74   : > { %v1096_v13 = vadd.f32 %v1064_v52, %v992_v39  ;;  %v1270_v23 = vmax.f32 %v1238_v15, 0.0  ;;  %v888_v51 = vadd.f32 %v856_v46, %v784_v47  ;;  %v1065_v29 = vmul.f32 %v1912_v1, %v2317_v8  ;;  %v2363_v52 = vld [vmem:[#allocation2 + $0xf8] sm:$0xff] }
  0x75   : > { %1462 = vst.msk [vmem:[%s2020_s17 + $0x30] sm:$0xf] %vm1449_vm3, %v1612_v49  ;;  %v370_v34 = vmul.f32 %v1852_v31, %v2253_v5  ;;  %v681_v36 = vadd.f32 %v649_v27, %v577_v54  ;;  %v753_v44 = vmul.f32 %v1890_v59, %v2291_v45  ;;  %v442_v62 = vmul.f32 %v1857_v32, %v2263_v17  ;;  %v2371_v39 = vld [vmem:[#allocation2 + $0xf9] sm:$0xff] }
  0x76   : > { %v1200_v61 = vadd.f32 %v1168_v7, %v1096_v13  ;;  %v1302_v38 = vmin.f32 %v1270_v23, 6.0  ;;  %v993_v42 = vadd.f32 %v961_v24, %v888_v51  ;;  %v1169_v10 = vmul.f32 %v1917_v2, %v2326_v25  ;;  %v2380_v46 = vld [vmem:[#allocation2 + $0xfa] sm:$0xff] }
  0x77   : > { %v857_v5 = vmul.f32 %v1895_v60, %v2299_v30  ;;  %v785_v43 = vadd.f32 %v753_v44, %v681_v36  ;;  %v474_v14 = vadd.f32 %v442_v62, %v370_v34  ;;  %v546_v50 = vmul.f32 %v1862_v33, %v2272_v48 }
  0x78   : > { %v1239_v41 = vadd.f32 %v1987_v19, %v1200_v61  ;;  %v1613_v20 = vpack.c.bf16 %v1302_v38, %v1302_v38  ;;  %v1097_v17 = vadd.f32 %v1065_v29, %v993_v42  ;;  %v962_v53 = vmul.f32 %v1907_v0, %v2338_v22  ;;  %v2399_v42 = vld [vmem:[#allocation2 + $0x109] sm:$0xff] }
  0x79   : > { %v1066_v55 = vmul.f32 %v1912_v1, %v2340_v37  ;;  %v889_v11 = vadd.f32 %v857_v5, %v785_v43  ;;  %v578_v56 = vadd.f32 %v546_v50, %v474_v14  ;;  %v650_v18 = vmul.f32 %v1885_v58, %v2313_v6  ;;  %v2412_v50 = vld [vmem:[#allocation2 + $0x10a] sm:$0xff] }
  0x7a   : > { %v1271_v4 = vmax.f32 %v1239_v41, 0.0  ;;  %1463 = vst.msk [vmem:[%s2020_s17 + $0x34] sm:$0xf] %vm1449_vm3, %v1613_v20  ;;  %v1201_v57 = vadd.f32 %v1169_v10, %v1097_v17  ;;  %v1170_v48 = vmul.f32 %v1917_v2, %v2349_v21  ;;  %v371_v35 = vmul.f32 %v1852_v31, %v2280_v63 }
  0x7b   : > { %v443_v12 = vmul.f32 %v1857_v32, %v2291_v45  ;;  %v994_v3 = vadd.f32 %v962_v53, %v889_v11  ;;  %v682_v40 = vadd.f32 %v650_v18, %v578_v56  ;;  %v754_v16 = vmul.f32 %v1890_v59, %v2317_v8  ;;  %v2430_v11 = vld [vmem:[%s2780_s1 + $0x1] ss:$0 sm:$0xff] }
  0x7c   : > { %v1303_v28 = vmin.f32 %v1271_v4, 6.0  ;;  %v1240_v7 = vadd.f32 %v1987_v19, %v1201_v57  ;;  %v858_v9 = vmul.f32 %v1895_v60, %v2326_v25  ;;  %v547_v63 = vmul.f32 %v1862_v33, %v2299_v30  ;;  %v2388_v30 = vld [vmem:[#allocation2 + $0x108] sm:$0xff] }
  0x7d   : > { %v475_v26 = vadd.f32 %v443_v12, %v371_v35  ;;  %v1098_v45 = vadd.f32 %v1066_v55, %v994_v3  ;;  %v786_v15 = vadd.f32 %v754_v16, %v682_v40  ;;  %v963_v47 = vmul.f32 %v1907_v0, %v2363_v52  ;;  %v2423_v55 = vld [vmem:[%s2780_s1] ss:$0 sm:$0xff]  ;;  %v2436_v12 = vld [vmem:[#allocation2 + $0x110] sm:$0xff] }
  0x7e   : > { %v1614_v49 = vpack.c.bf16 %v1303_v28, %v1303_v28  ;;  %v1272_v13 = vmax.f32 %v1240_v7, 0.0  ;;  %v1067_v24 = vmul.f32 %v1912_v1, %v2371_v39  ;;  %v651_v27 = vmul.f32 %v1885_v58, %v2338_v22  ;;  %v2440_v3 = vld [vmem:[#allocation2 + $0x111] sm:$0xff] }
  0x7f   : > { %v579_v54 = vadd.f32 %v547_v63, %v475_v26  ;;  %v1202_v23 = vadd.f32 %v1170_v48, %v1098_v45  ;;  %v890_v33 = vadd.f32 %v858_v9, %v786_v15  ;;  %v372_v51 = vmul.f32 %v1852_v31, %v2313_v6  ;;  %v2404_v31 = vld [vmem:[%s2780_s1 + $0x2] ss:$0 sm:$0xff] }
  0x80   : > { %1464 = vst.msk [vmem:[%s2020_s17 + $0x38] sm:$0xf] %vm1449_vm3, %v1614_v49  ;;  %v444_v29 = vmul.f32 %v1857_v32, %v2317_v8  ;;  %v1304_v34 = vmin.f32 %v1272_v13, 6.0  ;;  %v1171_v61 = vmul.f32 %v1917_v2, %v2380_v46  ;;  %v755_v44 = vmul.f32 %v1890_v59, %v2340_v37  ;;  %v2449_v49 = vld [vmem:[#allocation2 + $0x112] sm:$0xff] }
  0x81   : > { %v683_v36 = vadd.f32 %v651_v27, %v579_v54  ;;  %v1241_v62 = vadd.f32 %v1987_v19, %v1202_v23  ;;  %v995_v38 = vadd.f32 %v963_v47, %v890_v33  ;;  %v548_v32 = vmul.f32 %v2404_v31, %v2326_v25  ;;  %v2466_v27 = vld [vmem:[#allocation2 + $0x120] sm:$0xff] }
  0x82   : > { %v476_v10 = vadd.f32 %v444_v29, %v372_v51  ;;  %v1615_v6 = vpack.c.bf16 %v1304_v34, %v1304_v34  ;;  %v859_v5 = vmul.f32 %v1895_v60, %v2349_v21  ;;  %v964_v41 = vmul.f32 %v1907_v0, %v2388_v30  ;;  %v2468_v23 = vld [vmem:[#allocation2 + $0x121] sm:$0xff] }
  0x83   : > { %v787_v8 = vadd.f32 %v755_v44, %v683_v36  ;;  %v1273_v43 = vmax.f32 %v1241_v62, 0.0  ;;  %v1099_v14 = vadd.f32 %v1067_v24, %v995_v38  ;;  %v652_v17 = vmul.f32 %v1885_v58, %v2363_v52  ;;  %v2477_v29 = vld [vmem:[%s2780_s1 + $0x5] ss:$0 sm:$0xff] }
  0x84   : > { %v580_v20 = vadd.f32 %v548_v32, %v476_v10  ;;  %1465 = vst.msk [vmem:[%s2020_s17 + $0x3c] sm:$0xf] %vm1449_vm3, %v1615_v6  ;;  %v1068_v25 = vmul.f32 %v1912_v1, %v2399_v42  ;;  %v373_v4 = vmul.f32 %v2423_v55, %v2338_v22  ;;  %v445_v56 = vmul.f32 %v2430_v11, %v2340_v37  ;;  %v2482_v44 = vld [vmem:[#allocation2 + $0x122] sm:$0xff] }
  0x85   : > { %v891_v53 = vadd.f32 %v859_v5, %v787_v8  ;;  %v1305_v18 = vmin.f32 %v1273_v43, 6.0  ;;  %v1203_v57 = vadd.f32 %v1171_v61, %v1099_v14  ;;  %v756_v35 = vmul.f32 %v1890_v59, %v2371_v39  ;;  %v2489_v10 = vld [vmem:[%s2780_s1 + $0x6] ss:$0 sm:$0xff]  ;;  %v2496_v6 = vld [vmem:[%s2780_s1 + $0x7] ss:$0 sm:$0xff] }
  0x86   : > { %v684_v48 = vadd.f32 %v652_v17, %v580_v20  ;;  %v1172_v22 = vmul.f32 %v1917_v2, %v2412_v50  ;;  %v477_v40 = vadd.f32 %v445_v56, %v373_v4  ;;  %v549_v16 = vmul.f32 %v2404_v31, %v2349_v21  ;;  %v2503_v43 = vld [vmem:[%s2780_s1 + $0x3] ss:$0 sm:$0xff]  ;;  %v2512_v17 = vld [vmem:[%s2780_s1 + $0x8] ss:$0 sm:$0xff] }
  0x87   : > { %v996_v28 = vadd.f32 %v964_v41, %v891_v53  ;;  %v1616_v37 = vpack.c.bf16 %v1305_v18, %v1305_v18  ;;  %v1242_v7 = vadd.f32 %v1987_v19, %v1203_v57  ;;  %v860_v59 = vmul.f32 %v1895_v60, %v2380_v46 }
  0x88   : > { %v788_v9 = vadd.f32 %v756_v35, %v684_v48  ;;  %v965_v63 = vmul.f32 %v1907_v0, %v2436_v12  ;;  %v581_v45 = vadd.f32 %v549_v16, %v477_v40  ;;  %v653_v15 = vmul.f32 %v1885_v58, %v2388_v30  ;;  %v2462_v0 = vld [vmem:[%s2780_s1 + $0x4] ss:$0 sm:$0xff] }
  0x89   : > { %v1100_v26 = vadd.f32 %v1068_v25, %v996_v28  ;;  %1466 = vst.msk [vmem:[%s2020_s17 + $0x40] sm:$0xf] %vm1449_vm3, %v1616_v37  ;;  %v1274_v21 = vmax.f32 %v1242_v7, 0.0  ;;  %v1069_v13 = vmul.f32 %v1912_v1, %v2440_v3  ;;  %v374_v60 = vmul.f32 %v2423_v55, %v2363_v52  ;;  %v2516_v25 = vld [vmem:[#allocation2 + $0x128] sm:$0xff] }
  0x8a   : > { %v892_v47 = vadd.f32 %v860_v59, %v788_v9  ;;  %v685_v54 = vadd.f32 %v653_v15, %v581_v45  ;;  %v757_v58 = vmul.f32 %v2462_v0, %v2399_v42  ;;  %v446_v1 = vmul.f32 %v2430_v11, %v2371_v39  ;;  %v2524_v28 = vld [vmem:[#allocation2 + $0x129] sm:$0xff] }
  0x8b   : > { %v1204_v24 = vadd.f32 %v1172_v22, %v1100_v26  ;;  %v1306_v33 = vmin.f32 %v1274_v21, 6.0  ;;  %v1173_v52 = vmul.f32 %v1917_v2, %v2449_v49  ;;  %v861_v34 = vmul.f32 %v2477_v29, %v2412_v50  ;;  %v2533_v59 = vld [vmem:[#allocation2 + $0x12a] sm:$0xff] }
  0x8c   : > { %v997_v51 = vadd.f32 %v965_v63, %v892_v47  ;;  %v789_v36 = vadd.f32 %v757_v58, %v685_v54  ;;  %v478_v39 = vadd.f32 %v446_v1, %v374_v60  ;;  %v550_v62 = vmul.f32 %v2404_v31, %v2380_v46  ;;  %v2541_v47 = vld [vmem:[#allocation2 + $0x138] sm:$0xff] }
  0x8d   : > { %v1243_v61 = vadd.f32 %v1987_v19, %v1204_v24  ;;  %v1617_v38 = vpack.c.bf16 %v1306_v33, %v1306_v33  ;;  %v966_v32 = vmul.f32 %v2489_v10, %v2466_v27  ;;  %v1070_v8 = vmul.f32 %v2496_v6, %v2468_v23 }
  0x8e   : > { %v1101_v2 = vadd.f32 %v1069_v13, %v997_v51  ;;  %v893_v46 = vadd.f32 %v861_v34, %v789_v36  ;;  %v582_v41 = vadd.f32 %v550_v62, %v478_v39  ;;  %v654_v14 = vmul.f32 %v2503_v43, %v2436_v12 }
  0x8f   : > { %v1275_v5 = vmax.f32 %v1243_v61, 0.0  ;;  %1467 = vst.msk [vmem:[%s2020_s17 + $0x44] sm:$0xf] %vm1449_vm3, %v1617_v38  ;;  %v1174_v53 = vmul.f32 %v2512_v17, %v2482_v44  ;;  %v375_v4 = vmul.f32 %v2423_v55, %v2388_v30  ;;  %v447_v56 = vmul.f32 %v2430_v11, %v2399_v42 }
  0x90   : > { %v1205_v20 = vadd.f32 %v1173_v52, %v1101_v2  ;;  %v998_v57 = vadd.f32 %v966_v32, %v893_v46  ;;  %v686_v48 = vadd.f32 %v654_v14, %v582_v41  ;;  %v758_v35 = vmul.f32 %v2462_v0, %v2440_v3  ;;  %v2552_v52 = vld [vmem:[#allocation2 + $0x139] sm:$0xff] }
  0x91   : > { %v1307_v18 = vmin.f32 %v1275_v5, 6.0  ;;  %v862_v40 = vmul.f32 %v2477_v29, %v2449_v49  ;;  %v479_v16 = vadd.f32 %v447_v56, %v375_v4  ;;  %v551_v30 = vmul.f32 %v2404_v31, %v2412_v50  ;;  %v2560_v2 = vld [vmem:[#allocation2 + $0x13a] sm:$0xff] }
  0x92   : > { %v1244_v22 = vadd.f32 %v1987_v19, %v1205_v20  ;;  %v1102_v42 = vadd.f32 %v1070_v8, %v998_v57  ;;  %v790_v7 = vadd.f32 %v758_v35, %v686_v48  ;;  %v967_v9 = vmul.f32 %v2489_v10, %v2516_v25  ;;  %v2574_v4 = vld [vmem:[#allocation2 + $0x140] sm:$0xff] }
  0x93   : > { %v1618_v37 = vpack.c.bf16 %v1307_v18, %v1307_v18  ;;  %v1071_v63 = vmul.f32 %v2496_v6, %v2524_v28  ;;  %v583_v45 = vadd.f32 %v551_v30, %v479_v16  ;;  %v655_v15 = vmul.f32 %v2503_v43, %v2466_v27  ;;  %v2578_v57 = vld [vmem:[#allocation2 + $0x141] sm:$0xff]  ;;  %v2585_v35 = vld [vmem:[%s2781_s2] ss:$0 sm:$0xff] }
  0x94   : > { %v1276_v26 = vmax.f32 %v1244_v22, 0.0  ;;  %v1206_v21 = vadd.f32 %v1174_v53, %v1102_v42  ;;  %v894_v50 = vadd.f32 %v862_v40, %v790_v7  ;;  %v376_v13 = vmul.f32 %v2423_v55, %v2436_v12  ;;  %v2592_v42 = vld [vmem:[#allocation2 + $0x142] sm:$0xff] }
  0x95   : > { %1468 = vst.msk [vmem:[%s2020_s17 + $0x48] sm:$0xf] %vm1449_vm3, %v1618_v37  ;;  %v448_v60 = vmul.f32 %v2430_v11, %v2440_v3  ;;  %v1175_v54 = vmul.f32 %v2512_v17, %v2533_v59  ;;  %v687_v58 = vadd.f32 %v655_v15, %v583_v45  ;;  %v759_v1 = vmul.f32 %v2462_v0, %v2468_v23 }
  0x96   : > { %v1308_v24 = vmin.f32 %v1276_v26, 6.0  ;;  %v1245_v33 = vadd.f32 %v1987_v19, %v1206_v21  ;;  %v999_v51 = vadd.f32 %v967_v9, %v894_v50  ;;  %v552_v12 = vmul.f32 %v2404_v31, %v2449_v49 }
  0x97   : > { %v480_v34 = vadd.f32 %v448_v60, %v376_v13  ;;  %v791_v3 = vadd.f32 %v759_v1, %v687_v58  ;;  %v863_v36 = vmul.f32 %v2477_v29, %v2482_v44  ;;  %v968_v39 = vmul.f32 %v2489_v10, %v2541_v47  ;;  %v2604_v13 = vld [vmem:[#allocation2 + $0x150] sm:$0xff] }
  0x98   : > { %v1619_v61 = vpack.c.bf16 %v1308_v24, %v1308_v24  ;;  %v1277_v62 = vmax.f32 %v1245_v33, 0.0  ;;  %v1103_v38 = vadd.f32 %v1071_v63, %v999_v51  ;;  %v656_v32 = vmul.f32 %v2503_v43, %v2516_v25  ;;  %v2606_v60 = vld [vmem:[#allocation2 + $0x151] sm:$0xff] }
  0x99   : > { %v584_v19 = vadd.f32 %v552_v12, %v480_v34  ;;  %v895_v8 = vadd.f32 %v863_v36, %v791_v3  ;;  %v1072_v49 = vmul.f32 %v2496_v6, %v2552_v52  ;;  %v377_v5 = vmul.f32 %v2423_v55, %v2466_v27  ;;  %v2615_v34 = vld [vmem:[#allocation2 + $0x152] sm:$0xff] }
  0x9a   : > { %1469 = vst.msk [vmem:[%s2020_s17 + $0x4c] sm:$0xf] %vm1449_vm3, %v1619_v61  ;;  %v449_v46 = vmul.f32 %v2430_v11, %v2468_v23  ;;  %v1309_v41 = vmin.f32 %v1277_v62, 6.0  ;;  %v1207_v14 = vadd.f32 %v1175_v54, %v1103_v38  ;;  %v760_v53 = vmul.f32 %v2462_v0, %v2524_v28 }
  0x9b   : > { %v688_v20 = vadd.f32 %v656_v32, %v584_v19  ;;  %v1000_v56 = vadd.f32 %v968_v39, %v895_v8  ;;  %v1176_v18 = vmul.f32 %v2512_v17, %v2560_v2  ;;  %v553_v27 = vmul.f32 %v2404_v31, %v2482_v44 }
  0x9c   : > { %v481_v48 = vadd.f32 %v449_v46, %v377_v5  ;;  %v1620_v23 = vpack.c.bf16 %v1309_v41, %v1309_v41  ;;  %v1246_v22 = vadd.f32 %v2585_v35, %v1207_v14  ;;  %v864_v16 = vmul.f32 %v2477_v29, %v2533_v59 }
  0x9d   : > { %v792_v40 = vadd.f32 %v760_v53, %v688_v20  ;;  %v1104_v30 = vadd.f32 %v1072_v49, %v1000_v56  ;;  %v969_v37 = vmul.f32 %v2489_v10, %v2574_v4  ;;  %v657_v44 = vmul.f32 %v2503_v43, %v2541_v47  ;;  %v2629_v49 = vld [vmem:[#allocation2 + $0x158] sm:$0xff] }
  0x9e   : > { %v585_v7 = vadd.f32 %v553_v27, %v481_v48  ;;  %1470 = vst.msk [vmem:[%s2020_s17 + $0x50] sm:$0xf] %vm1449_vm3, %v1620_v23  ;;  %v1278_v9 = vmax.f32 %v1246_v22, 0.0  ;;  %v1073_v63 = vmul.f32 %v2496_v6, %v2578_v57  ;;  %v378_v45 = vmul.f32 %v2423_v55, %v2516_v25  ;;  %v2637_v56 = vld [vmem:[#allocation2 + $0x159] sm:$0xff] }
  0x9f   : > { %v896_v26 = vadd.f32 %v864_v16, %v792_v40  ;;  %v1208_v15 = vadd.f32 %v1176_v18, %v1104_v30  ;;  %v761_v50 = vmul.f32 %v2462_v0, %v2552_v52  ;;  %v450_v24 = vmul.f32 %v2430_v11, %v2524_v28  ;;  %v2646_v16 = vld [vmem:[#allocation2 + $0x15a] sm:$0xff] }
  0xa0   : > { %v689_v21 = vadd.f32 %v657_v44, %v585_v7  ;;  %v1310_v54 = vmin.f32 %v1278_v9, 6.0  ;;  %v1177_v1 = vmul.f32 %v2512_v17, %v2592_v42  ;;  %v865_v25 = vmul.f32 %v2477_v29, %v2560_v2 }
  0xa1   : > { %v1001_v58 = vadd.f32 %v969_v37, %v896_v26  ;;  %v1247_v33 = vadd.f32 %v2585_v35, %v1208_v15  ;;  %v482_v12 = vadd.f32 %v450_v24, %v378_v45  ;;  %v554_v61 = vmul.f32 %v2404_v31, %v2533_v59  ;;  %v2654_v26 = vld [vmem:[#allocation2 + $0x168] sm:$0xff] }
  0xa2   : > { %v793_v51 = vadd.f32 %v761_v50, %v689_v21  ;;  %v1621_v3 = vpack.c.bf16 %v1310_v54, %v1310_v54  ;;  %v970_v36 = vmul.f32 %v2489_v10, %v2604_v13  ;;  %v1074_v39 = vmul.f32 %v2496_v6, %v2606_v60 }
  0xa3   : > { %v1105_v28 = vadd.f32 %v1073_v63, %v1001_v58  ;;  %v1279_v62 = vmax.f32 %v1247_v33, 0.0  ;;  %v586_v19 = vadd.f32 %v554_v61, %v482_v12  ;;  %v658_v32 = vmul.f32 %v2503_v43, %v2574_v4 }
  0xa4   : > { %v897_v38 = vadd.f32 %v865_v25, %v793_v51  ;;  %1471 = vst.msk [vmem:[%s2020_s17 + $0x54] sm:$0xf] %vm1449_vm3, %v1621_v3  ;;  %v1178_v59 = vmul.f32 %v2512_v17, %v2615_v34  ;;  %v379_v5 = vmul.f32 %v2423_v55, %v2541_v47  ;;  %v451_v46 = vmul.f32 %v2430_v11, %v2552_v52 }
  0xa5   : > { %v1209_v8 = vadd.f32 %v1177_v1, %v1105_v28  ;;  %v1311_v41 = vmin.f32 %v1279_v62, 6.0  ;;  %v690_v20 = vadd.f32 %v658_v32, %v586_v19  ;;  %v762_v53 = vmul.f32 %v2462_v0, %v2578_v57  ;;  %v2665_v1 = vld [vmem:[#allocation2 + $0x169] sm:$0xff] }
  0xa6   : > { %v1002_v14 = vadd.f32 %v970_v36, %v897_v38  ;;  %v866_v48 = vmul.f32 %v2477_v29, %v2592_v42  ;;  %v483_v27 = vadd.f32 %v451_v46, %v379_v5  ;;  %v555_v47 = vmul.f32 %v2404_v31, %v2560_v2  ;;  %v2673_v28 = vld [vmem:[#allocation2 + $0x16a] sm:$0xff] }
  0xa7   : > { %v1248_v18 = vadd.f32 %v2585_v35, %v1209_v8  ;;  %v1622_v23 = vpack.c.bf16 %v1311_v41, %v1311_v41  ;;  %v794_v22 = vadd.f32 %v762_v53, %v690_v20  ;;  %v971_v40 = vmul.f32 %v2489_v10, %v2629_v49  ;;  %v2687_v46 = vld [vmem:[#allocation2 + $0x170] sm:$0xff] }
  0xa8   : > { %v1106_v52 = vadd.f32 %v1074_v39, %v1002_v14  ;;  %v1075_v37 = vmul.f32 %v2496_v6, %v2637_v56  ;;  %v587_v7 = vadd.f32 %v555_v47, %v483_v27  ;;  %v659_v44 = vmul.f32 %v2503_v43, %v2604_v13  ;;  %v2691_v20 = vld [vmem:[#allocation2 + $0x171] sm:$0xff] }
  0xa9   : > { %v1280_v30 = vmax.f32 %v1248_v18, 0.0  ;;  %1472 = vst.msk [vmem:[%s2020_s17 + $0x58] sm:$0xf] %vm1449_vm3, %v1622_v23  ;;  %v898_v2 = vadd.f32 %v866_v48, %v794_v22  ;;  %v380_v63 = vmul.f32 %v2423_v55, %v2574_v4  ;;  %v452_v45 = vmul.f32 %v2430_v11, %v2578_v57 }
  0xaa   : > { %v1210_v9 = vadd.f32 %v1178_v59, %v1106_v52  ;;  %v1179_v21 = vmul.f32 %v2512_v17, %v2646_v16  ;;  %v691_v50 = vadd.f32 %v659_v44, %v587_v7  ;;  %v763_v24 = vmul.f32 %v2462_v0, %v2606_v60  ;;  %v2700_v52 = vld [vmem:[#allocation2 + $0x172] sm:$0xff] }
  0xab   : > { %v1312_v15 = vmin.f32 %v1280_v30, 6.0  ;;  %v1003_v58 = vadd.f32 %v971_v40, %v898_v2  ;;  %v484_v25 = vadd.f32 %v452_v45, %v380_v63  ;;  %v556_v4 = vmul.f32 %v2404_v31, %v2592_v42  ;;  %v934_v63 = vld [vmem:[#allocation2 + $0x180] sm:$0xff] }
  0xac   : > { %v1249_v54 = vadd.f32 %v2585_v35, %v1210_v9  ;;  %v795_v57 = vadd.f32 %v763_v24, %v691_v50  ;;  %v867_v51 = vmul.f32 %v2477_v29, %v2615_v34  ;;  %v972_v12 = vmul.f32 %v2489_v10, %v2654_v26  ;;  %v1038_v45 = vld [vmem:[#allocation2 + $0x181] sm:$0xff] }
  0xad   : > { %v1623_v33 = vpack.c.bf16 %v1312_v15, %v1312_v15  ;;  %v1107_v3 = vadd.f32 %v1075_v37, %v1003_v58  ;;  %v588_v36 = vadd.f32 %v556_v4, %v484_v25  ;;  %v660_v39 = vmul.f32 %v2503_v43, %v2629_v49  ;;  %v1142_v25 = vld [vmem:[#allocation2 + $0x182] sm:$0xff] }
  0xae   : > { %v1281_v61 = vmax.f32 %v1249_v54, 0.0  ;;  %v899_v62 = vadd.f32 %v867_v51, %v795_v57  ;;  %v1076_v42 = vmul.f32 %v2496_v6, %v2665_v1  ;;  %v381_v38 = vmul.f32 %v2423_v55, %v2604_v13 }
  0xaf   : > { %1473 = vst.msk [vmem:[%s2020_s17 + $0x5c] sm:$0xf] %vm1449_vm3, %v1623_v33  ;;  %v453_v19 = vmul.f32 %v2430_v11, %v2606_v60  ;;  %v1211_v8 = vadd.f32 %v1179_v21, %v1107_v3  ;;  %v692_v59 = vadd.f32 %v660_v39, %v588_v36  ;;  %v764_v5 = vmul.f32 %v2462_v0, %v2637_v56 }
  0xb0   : > { %v1313_v32 = vmin.f32 %v1281_v61, 6.0  ;;  %v1004_v41 = vadd.f32 %v972_v12, %v899_v62  ;;  %v1180_v14 = vmul.f32 %v2512_v17, %v2673_v28  ;;  %v557_v13 = vmul.f32 %v2404_v31, %v2615_v34 }
  0xb1   : > { %v485_v53 = vadd.f32 %v453_v19, %v381_v38  ;;  %v1250_v18 = vadd.f32 %v2585_v35, %v1211_v8  ;;  %v796_v48 = vadd.f32 %v764_v5, %v692_v59  ;;  %v868_v27 = vmul.f32 %v2477_v29, %v2646_v16  ;;  %v935_v5 = vld [vmem:[#allocation2 + $0x188] sm:$0xff] }
  0xb2   : > { %v1624_v60 = vpack.c.bf16 %v1313_v32, %v1313_v32  ;;  %v1108_v47 = vadd.f32 %v1076_v42, %v1004_v41  ;;  %v973_v23 = vmul.f32 %v2489_v10, %v2687_v46  ;;  %v661_v40 = vmul.f32 %v2503_v43, %v2654_v26  ;;  %v1039_v41 = vld [vmem:[#allocation2 + $0x189] sm:$0xff] }
  0xb3   : > { %v589_v22 = vadd.f32 %v557_v13, %v485_v53  ;;  %v1282_v34 = vmax.f32 %v1250_v18, 0.0  ;;  %v900_v30 = vadd.f32 %v868_v27, %v796_v48  ;;  %v1077_v37 = vmul.f32 %v2496_v6, %v2691_v20 }
  0xb4   : > { %1474 = vst.msk [vmem:[%s2020_s17 + $0x60] sm:$0xf] %vm1449_vm3, %v1624_v60  ;;  %v382_v7 = vmul.f32 %v2423_v55, %v2629_v49  ;;  %v1212_v44 = vadd.f32 %v1180_v14, %v1108_v47  ;;  %v765_v2 = vmul.f32 %v2462_v0, %v2665_v1  ;;  %v454_v15 = vmul.f32 %v2430_v11, %v2637_v56 }
  0xb5   : > { %v693_v9 = vadd.f32 %v661_v40, %v589_v22  ;;  %v1314_v21 = vmin.f32 %v1282_v34, 6.0  ;;  %v1005_v50 = vadd.f32 %v973_v23, %v900_v30  ;;  %v1181_v24 = vmul.f32 %v2512_v17, %v2700_v52  ;;  %v936_v30 = vld [vmem:[#allocation2 + $0x198] sm:$0xff] }
  0xb6   : > { %v869_v54 = vmul.f32 %v2477_v29, %v2673_v28  ;;  %v1251_v49 = vadd.f32 %v2585_v35, %v1212_v44  ;;  %v486_v4 = vadd.f32 %v454_v15, %v382_v7  ;;  %v558_v33 = vmul.f32 %v2404_v31, %v2646_v16  ;;  %v1143_v44 = vld [vmem:[#allocation2 + $0x18a] sm:$0xff] }
  0xb7   : > { %v797_v58 = vadd.f32 %v765_v2, %v693_v9  ;;  %v1625_v57 = vpack.c.bf16 %v1314_v21, %v1314_v21  ;;  %v1109_v51 = vadd.f32 %v1077_v37, %v1005_v50  ;;  %v974_v56 = vmul.f32 %v2489_v10, %v934_v63 }
  0xb8   : > { %v1078_v12 = vmul.f32 %v2496_v6, %v1038_v45  ;;  %v1283_v61 = vmax.f32 %v1251_v49, 0.0  ;;  %v590_v36 = vadd.f32 %v558_v33, %v486_v4  ;;  %v662_v39 = vmul.f32 %v2503_v43, %v2687_v46 }
  0xb9   : > { %v901_v3 = vadd.f32 %v869_v54, %v797_v58  ;;  %1475 = vst.msk [vmem:[%s2020_s17 + $0x64] sm:$0xf] %vm1449_vm3, %v1625_v57  ;;  %v1213_v62 = vadd.f32 %v1181_v24, %v1109_v51  ;;  %v1182_v42 = vmul.f32 %v2512_v17, %v1142_v25  ;;  %v383_v16 = vmul.f32 %v2423_v55, %v2654_v26 }
  0xba   : > { %v455_v38 = vmul.f32 %v2430_v11, %v2665_v1  ;;  %v1315_v19 = vmin.f32 %v1283_v61, 6.0  ;;  %v694_v8 = vadd.f32 %v662_v39, %v590_v36  ;;  %v766_v59 = vmul.f32 %v2462_v0, %v2691_v20 }
  0xbb   : > { %v1006_v32 = vadd.f32 %v974_v56, %v901_v3  ;;  %v1252_v14 = vadd.f32 %v2585_v35, %v1213_v62  ;;  %v559_v13 = vmul.f32 %v2404_v31, %v2673_v28  ;;  %v663_v26 = vmul.f32 %v2503_v43, %v934_v63 }
  0xbc   : > { %v487_v53 = vadd.f32 %v455_v38, %v383_v16  ;;  %v1626_v60 = vpack.c.bf16 %v1315_v19, %v1315_v19  ;;  %v798_v1 = vadd.f32 %v766_v59, %v694_v8  ;;  %v870_v48 = vmul.f32 %v2477_v29, %v2700_v52  ;;  %v1041_v38 = vld [vmem:[#allocation2 + $0x1a1] sm:$0xff] }
  0xbd   : > { %v1110_v18 = vadd.f32 %v1078_v12, %v1006_v32  ;;  %v1284_v27 = vmax.f32 %v1252_v14, 0.0  ;;  %v975_v47 = vmul.f32 %v2489_v10, %v935_v5  ;;  %v1079_v23 = vmul.f32 %v2496_v6, %v1039_v41  ;;  %v1145_v8 = vld [vmem:[#allocation2 + $0x1a2] sm:$0xff] }
  0xbe   : > { %v591_v22 = vadd.f32 %v559_v13, %v487_v53  ;;  %1476 = vst.msk [vmem:[%s2020_s17 + $0x68] sm:$0xf] %vm1449_vm3, %v1626_v60  ;;  %v902_v34 = vadd.f32 %v870_v48, %v798_v1  ;;  %v384_v28 = vmul.f32 %v2423_v55, %v2687_v46  ;;  %v456_v37 = vmul.f32 %v2430_v11, %v2691_v20 }
  0xbf   : > { %v1214_v40 = vadd.f32 %v1182_v42, %v1110_v18  ;;  %v1316_v7 = vmin.f32 %v1284_v27, 6.0  ;;  %v767_v2 = vmul.f32 %v2462_v0, %v1038_v45  ;;  %v560_v63 = vmul.f32 %v2404_v31, %v2700_v52  ;;  %v1040_v45 = vld [vmem:[#allocation2 + $0x199] sm:$0xff] }
  0xc0   : > { %v695_v9 = vadd.f32 %v663_v26, %v591_v22  ;;  %v1007_v21 = vadd.f32 %v975_v47, %v902_v34  ;;  %v488_v50 = vadd.f32 %v456_v37, %v384_v28  ;;  %v664_v24 = vmul.f32 %v2503_v43, %v935_v5  ;;  %v937_v52 = vld [vmem:[#allocation2 + $0x1a0] sm:$0xff] }
  0xc1   : > { %v1253_v15 = vadd.f32 %v2585_v35, %v1214_v40  ;;  %v1627_v54 = vpack.c.bf16 %v1316_v7, %v1316_v7  ;;  %v871_v46 = vmul.f32 %v2477_v29, %v1142_v25  ;;  %v976_v11 = vmul.f32 %v2489_v10, %v936_v30  ;;  %v1144_v43 = vld [vmem:[#allocation2 + $0x19a] sm:$0xff] }
  0xc2   : > { %v799_v55 = vadd.f32 %v767_v2, %v695_v9  ;;  %v1111_v49 = vadd.f32 %v1079_v23, %v1007_v21  ;;  %v1183_v58 = vmul.f32 %v2512_v17, %v1143_v44  ;;  %v592_v4 = vadd.f32 %v560_v63, %v488_v50 }
  0xc3   : > { %v1285_v20 = vmax.f32 %v1253_v15, 0.0  ;;  %1477 = vst.msk [vmem:[%s2020_s17 + $0x6c] sm:$0xf] %vm1449_vm3, %v1627_v54  ;;  %v768_v56 = vmul.f32 %v2462_v0, %v1039_v41  ;;  %v1080_v12 = vmul.f32 %v2496_v6, %v1040_v45  ;;  %v872_v61 = vmul.f32 %v2477_v29, %v1143_v44 }
  0xc4   : > { %v903_v31 = vadd.f32 %v871_v46, %v799_v55  ;;  %v1215_v57 = vadd.f32 %v1183_v58, %v1111_v49  ;;  %v696_v51 = vadd.f32 %v664_v24, %v592_v4  ;;  %v977_v62 = vmul.f32 %v2489_v10, %v937_v52 }
  0xc5   : > { %v1317_v33 = vmin.f32 %v1285_v20, 6.0  ;;  %v1184_v16 = vmul.f32 %v2512_v17, %v1144_v43  ;;  %v1081_v5 = vmul.f32 %v2496_v6, %v1041_v38  ;;  %v1185_v53 = vmul.f32 %v2512_v17, %v1145_v8 }
  0xc6   : > { %v1008_v25 = vadd.f32 %v976_v11, %v903_v31  ;;  %v1254_v36 = vadd.f32 %v2585_v35, %v1215_v57  ;;  %v800_v39 = vadd.f32 %v768_v56, %v696_v51 }
  0xc7   : > { %v1628_v3 = vpack.c.bf16 %v1317_v33, %v1317_v33 }
  0xc8   : > { %v1112_v42 = vadd.f32 %v1080_v12, %v1008_v25  ;;  %v1286_v19 = vmax.f32 %v1254_v36, 0.0  ;;  %v904_v0 = vadd.f32 %v872_v61, %v800_v39 }
  0xc9   : > { %1478 = vst.msk [vmem:[%s2020_s17 + $0x70] sm:$0xf] %vm1449_vm3, %v1628_v3 }
  0xca   : > { %v1216_v32 = vadd.f32 %v1184_v16, %v1112_v42  ;;  %v1318_v59 = vmin.f32 %v1286_v19, 6.0  ;;  %v1009_v29 = vadd.f32 %v977_v62, %v904_v0 }
  0xcc   : > { %v1255_v41 = vadd.f32 %v2585_v35, %v1216_v32  ;;  %v1629_v10 = vpack.c.bf16 %v1318_v59, %v1318_v59  ;;  %v1113_v14 = vadd.f32 %v1081_v5, %v1009_v29 }
  0xce   : > { %v1287_v13 = vmax.f32 %v1255_v41, 0.0  ;;  %1479 = vst.msk [vmem:[%s2020_s17 + $0x74] sm:$0xf] %vm1449_vm3, %v1629_v10  ;;  %v1217_v26 = vadd.f32 %v1185_v53, %v1113_v14 }
  0xd0   : > { %v1319_v60 = vmin.f32 %v1287_v13, 6.0  ;;  %v1256_v18 = vadd.f32 %v2585_v35, %v1217_v26 }
  0xd2   : > { %v1630_v1 = vpack.c.bf16 %v1319_v60, %v1319_v60  ;;  %v1288_v48 = vmax.f32 %v1256_v18, 0.0 }
  0xd4   : > { %1480 = vst.msk [vmem:[%s2020_s17 + $0x78] sm:$0xf] %vm1449_vm3, %v1630_v1  ;;  %v1320_v27 = vmin.f32 %v1288_v48, 6.0 }
  0xd6   : > { %v1631_v47 = vpack.c.bf16 %v1320_v27, %v1320_v27 }
  0xd8   : > { %1481 = vst.msk [vmem:[%s2020_s17 + $0x7c] sm:$0xf] %vm1449_vm3, %v1631_v47 }
  0xd9 PF: > { %s13_s12 = sadd.s32 1, %s1736_s12  }
  0xda   : > { %p10_p4 = scmp.ge.s32.totalorder %s13_s12, 4  }
  0xdc   :  { %12 = sbr.rel (!%p10_p4) target bundleno = 1 (0x1), region = 73 }

// kernel: _lambda_.26
= control target key start
LH: loop header
LB: loop body
LE: loop exit
PB: predicated region body
PF: predicated region fallthrough
CT: control target
= control target key end

     0   :  { %s504_s12 = smov 0   ;;  %s542_s0 = inlined_call_operand.vmem [shape: bf16[128,16], index: 0, kind: input, shape index: {}]   ;;  %s543_s1 = inlined_call_operand.vmem [shape: bf16[16,24], index: 1, kind: input, shape index: {}]   ;;  %s544_s2 = inlined_call_operand.vmem [shape: f32[1,24], index: 2, kind: input, shape index: {}]   ;;  %s545_s3 = inlined_call_operand.vmem [shape: bf16[128,24], index: 3, kind: output, shape index: {}]  }
   0x1 LB: > { %s409_s13 = sadd.s32 4294967295, %s482_s12   ;;  %p413_p0 = scmp.ge.s32.totalorder %s482_s12, 1  ;;  %s482_s12 = sphi %s504_s12, %s13_s12  }
   0x2   : > { %p138_p1 = scmp.lt.s32.totalorder %s482_s12, 3 }
   0x4   : > { %p139_p2 = pnand %p413_p0, %p138_p1 }
   0x5   : > { %v471_v0 = vld [vmem:[%s543_s1] sm:$0xff] (!%p139_p2)   ;;  %s414_s16 = sshll.u32 (!%p139_p2), %s409_s13, 3  ;;  %vm218_vm0 = vcmask (!%p139_p2), 130048   ;;  %vm344_vm1 = vcmask (!%p139_p2), 191488  }
   0x6   : > { %142 = sbr.rel (%p139_p2) target bundleno = 242 (0xf2), region = 32  ;;  %p163_p3 = scmp.lt.s32.totalorder (!%p139_p2), %s414_s16, 15  ;;  %451 = vmatprep.subr.bf16.mxu0 (!%p139_p2), %v471_v0  ;;  %461 = vmatprep.subr.bf16.mxu1 (!%p139_p2), %v471_v0  ;;  %v418_v5 = vld [vmem:[%s544_s2] ss:$0 sm:$0xff] (!%p139_p2) }
   0x7   : > { %452 = vmatpush3.bf16.msra.mxu0 (!%p139_p2), %v471_v0  ;;  %462 = vmatpush3.bf16.msra.mxu1 (!%p139_p2), %v471_v0 }
   0xd   : > { %s547_s16 = smov (!%p163_p3, %s414_s16), 15 }
   0xe   : > { %s415_s17 = sshll.u32 %s547_s16, 2 }
   0xf   : > { %s166_s20 = scalar_lea.vmem %s542_s0, %s415_s17  ;;  %s172_s25 = scalar_lea.vmem %s545_s3, %s415_s17 }
  0x10   : > { %v472_v1 = vld [vmem:[%s166_s20] sm:$0xff]   ;;  %v473_v2 = vld [vmem:[%s166_s20 + $0x10] sm:$0xff]   ;;  %v474_v3 = vld [vmem:[%s166_s20 + $0x8] sm:$0xff]  }
  0x11   : > { %453 = vmatprep.mubr.msk.bf16.mxu0 %vm218_vm0, %v472_v1  ;;  %457 = vmatprep.mubr.msk.bf16.mxu1 %vm218_vm0, %v473_v2  ;;  %v475_v4 = vld [vmem:[%s166_s20 + $0x18] sm:$0xff]  }
  0x12   : > { %454 = vmatmul.mubr.msk.bf16.vlgmr.msra.gmra.mrb[0].mxu0 %vm218_vm0, %v474_v3  ;;  %458 = vmatmul.mubr.msk.bf16.vlgmr.msra.gmra.mrb[0].mxu1 %vm218_vm0, %v475_v4 }
  0xe5   : > { %v455_v6 = vpop.f32.mrb[0].mxu0  ;;  %v459_v8 = vpop.f32.mrb[0].mxu1 }
  0xe6   : > { %v274_v7 = vadd.f32 %v455_v6, %v418_v5  ;;  %v265_v9 = vpop.f32.mrb[1].mxu0  ;;  %v290_v10 = vadd.f32 %v459_v8, %v418_v5  ;;  %v281_v12 = vpop.f32.mrb[1].mxu1 }
  0xe7   : > { %v266_v11 = vadd.f32 %v418_v5, %v265_v9  ;;  %v456_v13 = vpop.f32.mrb[2].mxu0  ;;  %v282_v15 = vadd.f32 %v418_v5, %v281_v12  ;;  %v460_v17 = vpop.f32.mrb[2].mxu1 }
  0xe8   : > { %v298_v14 = vmax.f32 %v274_v7, 0.0  ;;  %v277_v16 = vadd.f32 %v456_v13, %v418_v5  ;;  %v268_v18 = vpop.f32.mrb[3].mxu0  ;;  %v302_v19 = vmax.f32 %v290_v10, 0.0  ;;  %v293_v21 = vadd.f32 %v460_v17, %v418_v5  ;;  %v284_v23 = vpop.f32.mrb[3].mxu1 }
  0xe9   : > { %v296_v20 = vmax.f32 %v266_v11, 0.0  ;;  %v269_v22 = vadd.f32 %v418_v5, %v268_v18  ;;  %v300_v25 = vmax.f32 %v282_v15, 0.0  ;;  %v285_v27 = vadd.f32 %v418_v5, %v284_v23 }
  0xea   : > { %v306_v24 = vmin.f32 %v298_v14, 6.0  ;;  %v299_v26 = vmax.f32 %v277_v16, 0.0  ;;  %v310_v28 = vmin.f32 %v302_v19, 6.0  ;;  %v303_v30 = vmax.f32 %v293_v21, 0.0 }
  0xeb   : > { %v304_v29 = vmin.f32 %v296_v20, 6.0  ;;  %v297_v31 = vmax.f32 %v269_v22, 0.0  ;;  %v308_v33 = vmin.f32 %v300_v25, 6.0  ;;  %v301_v35 = vmax.f32 %v285_v27, 0.0 }
  0xec   : > { %v440_v32 = vpack.c.bf16 %v306_v24, %v306_v24  ;;  %v307_v34 = vmin.f32 %v299_v26, 6.0  ;;  %v444_v36 = vpack.c.bf16 %v310_v28, %v310_v28  ;;  %v311_v38 = vmin.f32 %v303_v30, 6.0 }
  0xed   : > { %v438_v37 = vpack.c.bf16 %v304_v29, %v304_v29  ;;  %v305_v39 = vmin.f32 %v297_v31, 6.0  ;;  %v442_v40 = vpack.c.bf16 %v308_v33, %v308_v33  ;;  %v309_v42 = vmin.f32 %v301_v35, 6.0 }
  0xee   : > { %347 = vst.msk [vmem:[%s172_s25 + $0x8] sm:$0xf] %vm344_vm1, %v440_v32  ;;  %v441_v41 = vpack.c.bf16 %v307_v34, %v307_v34  ;;  %351 = vst.msk [vmem:[%s172_s25 + $0x18] sm:$0xf] %vm344_vm1, %v444_v36  ;;  %v445_v43 = vpack.c.bf16 %v311_v38, %v311_v38 }
  0xef   : > { %345 = vst.msk [vmem:[%s172_s25] sm:$0xf] %vm344_vm1, %v438_v37  ;;  %v439_v44 = vpack.c.bf16 %v305_v39, %v305_v39  ;;  %349 = vst.msk [vmem:[%s172_s25 + $0x10] sm:$0xf] %vm344_vm1, %v442_v40  ;;  %v443_v45 = vpack.c.bf16 %v309_v42, %v309_v42 }
  0xf0   : > { %348 = vst.msk [vmem:[%s172_s25 + $0xc] sm:$0xf] %vm344_vm1, %v441_v41  ;;  %352 = vst.msk [vmem:[%s172_s25 + $0x1c] sm:$0xf] %vm344_vm1, %v445_v43 }
  0xf1   : > { %346 = vst.msk [vmem:[%s172_s25 + $0x4] sm:$0xf] %vm344_vm1, %v439_v44  ;;  %350 = vst.msk [vmem:[%s172_s25 + $0x14] sm:$0xf] %vm344_vm1, %v443_v45 }
  0xf2 PF: > { %s13_s12 = sadd.s32 1, %s482_s12  }
  0xf3   : > { %p10_p4 = scmp.ge.s32.totalorder %s13_s12, 4  }
  0xf5   :  { %12 = sbr.rel (!%p10_p4) target bundleno = 1 (0x1), region = 62 }

// kernel: _lambda_.27
= control target key start
LH: loop header
LB: loop body
LE: loop exit
PB: predicated region body
PF: predicated region fallthrough
CT: control target
= control target key end

     0   :  { %s521_s12 = smov 0   ;;  %s562_s0 = inlined_call_operand.vmem [shape: bf16[128,24], index: 0, kind: input, shape index: {}]   ;;  %s563_s1 = inlined_call_operand.vmem [shape: bf16[24,72], index: 1, kind: input, shape index: {}]   ;;  %s564_s2 = inlined_call_operand.vmem [shape: f32[1,72], index: 2, kind: input, shape index: {}]   ;;  %s565_s3 = inlined_call_operand.vmem [shape: bf16[128,72], index: 3, kind: output, shape index: {}]  }
   0x1 LB: > { %s417_s13 = sadd.s32 4294967295, %s499_s12   ;;  %p421_p0 = scmp.ge.s32.totalorder %s499_s12, 1  ;;  %s499_s12 = sphi %s521_s12, %s13_s12  }
   0x2   : > { %p138_p1 = scmp.lt.s32.totalorder %s499_s12, 3 }
   0x4   : > { %p139_p2 = pnand %p421_p0, %p138_p1 }
   0x5   : > { %v487_v0 = vld [vmem:[%s563_s1] sm:$0xff] (!%p139_p2)   ;;  %v488_v1 = vld [vmem:[%s563_s1 + $0x8] ss:$0 sps:$4 sm:$0xff] (!%p139_p2)   ;;  %vm235_vm0 = vcmask (!%p139_p2), 1043456   ;;  %s422_s18 = sshll.u32 (!%p139_p2), %s417_s13, 3  ;;  %vm222_vm1 = vcmask (!%p139_p2), 195584  }
   0x6   : > { %142 = sbr.rel (%p139_p2) target bundleno = 242 (0xf2), region = 32  ;;  %461 = vmatprep.subr.bf16.mxu0 (!%p139_p2), %v487_v0  ;;  %473 = vmatprep.subr.bf16.mxu1 (!%p139_p2), %v487_v0  ;;  %p163_p3 = scmp.lt.s32.totalorder (!%p139_p2), %s422_s18, 15  ;;  %v237_v2 = vsel (!%p139_p2), %vm235_vm0, %v488_v1, 0  ;;  %v426_v7 = vld [vmem:[%s564_s2] ss:$0 sm:$0xff] (!%p139_p2)  ;;  %vm352_vm2 = vcmask (!%p139_p2), 584704  }
   0x7   : > { %462 = vmatpush3.bf16.msra.mxu0 (!%p139_p2), %v487_v0  ;;  %475 = vmatpush3.bf16.msra.mxu1 (!%p139_p2), %v487_v0 }
   0x8   : > { %477 = vmatprep.subr.msk.bf16.mxu0 (!%p139_p2), %vm235_vm0, %v488_v1  ;;  %478 = vmatprep.subr.msk.bf16.mxu1 (!%p139_p2), %vm235_vm0, %v488_v1 }
   0xb   : > { %464 = vmatpush3.bf16.msra.mxu0 (!%p139_p2), %v237_v2  ;;  %476 = vmatpush3.bf16.msra.mxu1 (!%p139_p2), %v237_v2 }
   0xd   : > { %s567_s18 = smov (!%p163_p3, %s422_s18), 15 }
   0xe   : > { %s423_s19 = sshll.u32 %s567_s18, 2 }
   0xf   : > { %s166_s22 = scalar_lea.vmem %s562_s0, %s423_s19  ;;  %s172_s27 = scalar_lea.vmem %s565_s3, %s423_s19 }
  0x10   : > { %v489_v3 = vld [vmem:[%s166_s22] sm:$0xff]   ;;  %v490_v4 = vld [vmem:[%s166_s22 + $0x10] sm:$0xff]   ;;  %v491_v5 = vld [vmem:[%s166_s22 + $0x8] sm:$0xff]  }
  0x11   : > { %465 = vmatprep.mubr.msk.bf16.mxu0 %vm222_vm1, %v489_v3  ;;  %469 = vmatprep.mubr.msk.bf16.mxu1 %vm222_vm1, %v490_v4  ;;  %v492_v6 = vld [vmem:[%s166_s22 + $0x18] sm:$0xff]  }
  0x12   : > { %466 = vmatmul.mubr.msk.bf16.vlgmr.msra.gmra.mrb[0].mxu0 %vm222_vm1, %v491_v5  ;;  %470 = vmatmul.mubr.msk.bf16.vlgmr.msra.gmra.mrb[0].mxu1 %vm222_vm1, %v492_v6 }
  0xe5   : > { %v467_v8 = vpop.f32.mrb[0].mxu0  ;;  %v471_v10 = vpop.f32.mrb[0].mxu1 }
  0xe6   : > { %v282_v9 = vadd.f32 %v467_v8, %v426_v7  ;;  %v273_v11 = vpop.f32.mrb[1].mxu0  ;;  %v298_v12 = vadd.f32 %v471_v10, %v426_v7  ;;  %v289_v14 = vpop.f32.mrb[1].mxu1 }
  0xe7   : > { %v274_v13 = vadd.f32 %v426_v7, %v273_v11  ;;  %v468_v15 = vpop.f32.mrb[2].mxu0  ;;  %v290_v17 = vadd.f32 %v426_v7, %v289_v14  ;;  %v472_v19 = vpop.f32.mrb[2].mxu1 }
  0xe8   : > { %v306_v16 = vmax.f32 %v282_v9, 0.0  ;;  %v285_v18 = vadd.f32 %v468_v15, %v426_v7  ;;  %v276_v20 = vpop.f32.mrb[3].mxu0  ;;  %v310_v21 = vmax.f32 %v298_v12, 0.0  ;;  %v301_v23 = vadd.f32 %v472_v19, %v426_v7  ;;  %v292_v25 = vpop.f32.mrb[3].mxu1 }
  0xe9   : > { %v304_v22 = vmax.f32 %v274_v13, 0.0  ;;  %v277_v24 = vadd.f32 %v426_v7, %v276_v20  ;;  %v308_v27 = vmax.f32 %v290_v17, 0.0  ;;  %v293_v29 = vadd.f32 %v426_v7, %v292_v25 }
  0xea   : > { %v314_v26 = vmin.f32 %v306_v16, 6.0  ;;  %v307_v28 = vmax.f32 %v285_v18, 0.0  ;;  %v318_v30 = vmin.f32 %v310_v21, 6.0  ;;  %v311_v32 = vmax.f32 %v301_v23, 0.0 }
  0xeb   : > { %v312_v31 = vmin.f32 %v304_v22, 6.0  ;;  %v305_v33 = vmax.f32 %v277_v24, 0.0  ;;  %v316_v35 = vmin.f32 %v308_v27, 6.0  ;;  %v309_v37 = vmax.f32 %v293_v29, 0.0 }
  0xec   : > { %v449_v34 = vpack.c.bf16 %v314_v26, %v314_v26  ;;  %v315_v36 = vmin.f32 %v307_v28, 6.0  ;;  %v453_v38 = vpack.c.bf16 %v318_v30, %v318_v30  ;;  %v319_v40 = vmin.f32 %v311_v32, 6.0 }
  0xed   : > { %v447_v39 = vpack.c.bf16 %v312_v31, %v312_v31  ;;  %v313_v41 = vmin.f32 %v305_v33, 6.0  ;;  %v451_v42 = vpack.c.bf16 %v316_v35, %v316_v35  ;;  %v317_v44 = vmin.f32 %v309_v37, 6.0 }
  0xee   : > { %355 = vst.msk [vmem:[%s172_s27 + $0x8] sm:$0xf] %vm352_vm2, %v449_v34  ;;  %v450_v43 = vpack.c.bf16 %v315_v36, %v315_v36  ;;  %359 = vst.msk [vmem:[%s172_s27 + $0x18] sm:$0xf] %vm352_vm2, %v453_v38  ;;  %v454_v45 = vpack.c.bf16 %v319_v40, %v319_v40 }
  0xef   : > { %353 = vst.msk [vmem:[%s172_s27] sm:$0xf] %vm352_vm2, %v447_v39  ;;  %v448_v46 = vpack.c.bf16 %v313_v41, %v313_v41  ;;  %357 = vst.msk [vmem:[%s172_s27 + $0x10] sm:$0xf] %vm352_vm2, %v451_v42  ;;  %v452_v47 = vpack.c.bf16 %v317_v44, %v317_v44 }
  0xf0   : > { %356 = vst.msk [vmem:[%s172_s27 + $0xc] sm:$0xf] %vm352_vm2, %v450_v43  ;;  %360 = vst.msk [vmem:[%s172_s27 + $0x1c] sm:$0xf] %vm352_vm2, %v454_v45 }
  0xf1   : > { %354 = vst.msk [vmem:[%s172_s27 + $0x4] sm:$0xf] %vm352_vm2, %v448_v46  ;;  %358 = vst.msk [vmem:[%s172_s27 + $0x14] sm:$0xf] %vm352_vm2, %v452_v47 }
  0xf2 PF: > { %s13_s12 = sadd.s32 1, %s499_s12  }
  0xf3   : > { %p10_p4 = scmp.ge.s32.totalorder %s13_s12, 4  }
  0xf5   :  { %12 = sbr.rel (!%p10_p4) target bundleno = 1 (0x1), region = 62 }

// kernel: _lambda_.28
= control target key start
LH: loop header
LB: loop body
LE: loop exit
PB: predicated region body
PF: predicated region fallthrough
CT: control target
= control target key end

     0   :  { %s695_s12 = smov 0   ;;  %s907_s0 = inlined_call_operand.vmem [shape: bf16[2,8,8,72], index: 0, kind: input, shape index: {}]   ;;  %s908_s1 = inlined_call_operand.vmem [shape: f32[9,1,72], index: 1, kind: input, shape index: {}]   ;;  %s909_s2 = inlined_call_operand.vmem [shape: f32[1,1,72], index: 2, kind: input, shape index: {}]   ;;  %s910_s3 = inlined_call_operand.vmem [shape: bf16[2,8,8,72], index: 3, kind: output, shape index: {}]  }
   0x1 LB: > { %s607_s13 = sadd.s32 4294967295, %s672_s12   ;;  %p611_p0 = scmp.ge.s32.totalorder %s672_s12, 1  ;;  %s672_s12 = sphi %s695_s12, %s13_s12  }
   0x2   : > { %p137_p1 = scmp.lt.s32.totalorder %s672_s12, 3 }
   0x4   : > { %p138_p2 = pnand %p611_p0, %p137_p1 }
   0x5   : > { %vm171_vm0 = vcmask (!%p138_p2), 588800   ;;  %vm173_vm1 = vcmask (!%p138_p2), 582656   ;;  %vm178_vm2 = vcmask (!%p138_p2), 581632   ;;  %p705_p3 = scmp.lt.s32.totalorder (!%p138_p2), %s607_s13, 1  ;;  %v674_v0 = vmov (!%p138_p2), 0.0  }
   0x6   : > { %141 = sbr.rel (%p138_p2) target bundleno = 83 (0x53), region = 32  ;;  %172 = vst.msk [vmem:[#allocation2] sm:$0xff] (!%p138_p2), %vm171_vm0, %v674_v0  ;;  %176 = vst.msk [vmem:[#allocation2 + $0x90] sm:$0xff] (!%p138_p2), %vm171_vm0, %v674_v0  ;;  %v746_v1 = vld [vmem:[%s908_s1 + $0x1] ss:$0 sm:$0xff] (!%p138_p2)  ;;  %vm543_vm3 = vcmask (!%p138_p2), 584704  }
   0x7   : > { %174 = vst.msk [vmem:[#allocation2 + $0x8] sm:$0x3] (!%p138_p2), %vm173_vm1, %v674_v0  ;;  %177 = vst.msk [vmem:[#allocation2 + $0x98] sm:$0x3] (!%p138_p2), %vm173_vm1, %v674_v0  ;;  %v751_v10 = vld [vmem:[%s908_s1] ss:$0 sm:$0xff] (!%p138_p2) }
   0x8   : > { %180 = vst.msk [vmem:[#allocation2 + $0x10] sm:$0x1] (!%p138_p2), %vm178_vm2, %v674_v0  ;;  %181 = vst.msk [vmem:[#allocation2 + $0x20] sm:$0x1] (!%p138_p2), %vm178_vm2, %v674_v0  ;;  %v756_v16 = vld [vmem:[%s908_s1 + $0x2] ss:$0 sm:$0xff] (!%p138_p2) }
   0x9   : > { %182 = vst.msk [vmem:[#allocation2 + $0x30] sm:$0x1] (!%p138_p2), %vm178_vm2, %v674_v0  ;;  %183 = vst.msk [vmem:[#allocation2 + $0x40] sm:$0x1] (!%p138_p2), %vm178_vm2, %v674_v0  ;;  %v772_v23 = vld [vmem:[%s908_s1 + $0x3] ss:$0 sm:$0xff] (!%p138_p2) }
   0xa   : > { %184 = vst.msk [vmem:[#allocation2 + $0x50] sm:$0x1] (!%p138_p2), %vm178_vm2, %v674_v0  ;;  %185 = vst.msk [vmem:[#allocation2 + $0x60] sm:$0x1] (!%p138_p2), %vm178_vm2, %v674_v0  ;;  %v777_v24 = vld [vmem:[%s908_s1 + $0x4] ss:$0 sm:$0xff] (!%p138_p2) }
   0xb   : > { %186 = vst.msk [vmem:[#allocation2 + $0x70] sm:$0x1] (!%p138_p2), %vm178_vm2, %v674_v0  ;;  %187 = vst.msk [vmem:[#allocation2 + $0x80] sm:$0x1] (!%p138_p2), %vm178_vm2, %v674_v0  ;;  %v782_v25 = vld [vmem:[%s908_s1 + $0x5] ss:$0 sm:$0xff] (!%p138_p2) }
   0xc   : > { %190 = vst.msk [vmem:[#allocation2 + $0x19] sm:$0x1] (!%p138_p2), %vm178_vm2, %v674_v0  ;;  %191 = vst.msk [vmem:[#allocation2 + $0x29] sm:$0x1] (!%p138_p2), %vm178_vm2, %v674_v0  ;;  %v787_v27 = vld [vmem:[%s908_s1 + $0x6] ss:$0 sm:$0xff] (!%p138_p2) }
   0xd   : > { %192 = vst.msk [vmem:[#allocation2 + $0x39] sm:$0x1] %vm178_vm2, %v674_v0  ;;  %193 = vst.msk [vmem:[#allocation2 + $0x49] sm:$0x1] %vm178_vm2, %v674_v0  ;;  %s913_s13 = smov (!%p705_p3, %s607_s13), 1 }
   0xe   : > { %194 = vst.msk [vmem:[#allocation2 + $0x59] sm:$0x1] %vm178_vm2, %v674_v0  ;;  %195 = vst.msk [vmem:[#allocation2 + $0x69] sm:$0x1] %vm178_vm2, %v674_v0  ;;  %s636_s15 = sshll.u32 %s913_s13, 5  ;;  %v247_v15 = vld [vmem:[#allocation2 + $0x1] sm:$0xff] }
   0xf   : > { %196 = vst.msk [vmem:[#allocation2 + $0x79] sm:$0x1] %vm178_vm2, %v674_v0  ;;  %197 = vst.msk [vmem:[#allocation2 + $0x89] sm:$0x1] %vm178_vm2, %v674_v0  ;;  %s165_s18 = scalar_lea.vmem %s907_s0, %s636_s15  ;;  %v263_v18 = vmul.f32 %v746_v1, %v247_v15  ;;  %v792_v28 = vld [vmem:[%s908_s1 + $0x7] ss:$0 sm:$0xff]  ;;  %s849_s17 = scalar_lea.vmem %s910_s3, %s636_s15 }
  0x10   : > { %179 = vst.msk [vmem:[#allocation2] sm:$0x1] %vm178_vm2, %v674_v0  ;;  %188 = vst.msk [vmem:[#allocation2 + $0x90] sm:$0x1] %vm178_vm2, %v674_v0  ;;  %v639_v2 = vld [vmem:[%s165_s18] sm:$0xff]   ;;  %v654_v3 = vld [vmem:[%s165_s18 + $0x8] sm:$0xff]  }
  0x11   : > { %189 = vst.msk [vmem:[#allocation2 + $0x9] sm:$0x1] %vm178_vm2, %v674_v0  ;;  %198 = vst.msk [vmem:[#allocation2 + $0x99] sm:$0x1] %vm178_vm2, %v674_v0  ;;  %v655_v4 = vld [vmem:[%s165_s18 + $0x10] sm:$0xff]   ;;  %v640_v5 = vunpack.c.l.bf16 %v639_v2  ;;  %v641_v6 = vunpack.c.h.bf16 %v639_v2  ;;  %v644_v7 = vunpack.c.l.bf16 %v654_v3  ;;  %v645_v8 = vunpack.c.h.bf16 %v654_v3  ;;  %v656_v9 = vld [vmem:[%s165_s18 + $0x18] sm:$0xff]  }
  0x12   : > { %v648_v11 = vunpack.c.l.bf16 %v655_v4  ;;  %v649_v12 = vunpack.c.h.bf16 %v655_v4  ;;  %v652_v13 = vunpack.c.l.bf16 %v656_v9  ;;  %v653_v14 = vunpack.c.h.bf16 %v656_v9  ;;  %v797_v29 = vld [vmem:[%s908_s1 + $0x8] ss:$0 sm:$0xff] }
  0x13   : > { %216 = vst.msk [vmem:[#allocation2 + $0x11] sm:$0xff] %vm171_vm0, %v640_v5  ;;  %217 = vst.msk [vmem:[#allocation2 + $0x21] sm:$0xff] %vm171_vm0, %v641_v6 }
  0x14   : > { %218 = vst.msk [vmem:[#allocation2 + $0x31] sm:$0xff] %vm171_vm0, %v644_v7  ;;  %219 = vst.msk [vmem:[#allocation2 + $0x41] sm:$0xff] %vm171_vm0, %v645_v8 }
  0x15   : > { %220 = vst.msk [vmem:[#allocation2 + $0x51] sm:$0xff] %vm171_vm0, %v648_v11  ;;  %221 = vst.msk [vmem:[#allocation2 + $0x61] sm:$0xff] %vm171_vm0, %v649_v12 }
  0x16   : > { %222 = vst.msk [vmem:[#allocation2 + $0x71] sm:$0xff] %vm171_vm0, %v652_v13  ;;  %223 = vst.msk [vmem:[#allocation2 + $0x81] sm:$0xff] %vm171_vm0, %v653_v14 }
  0x17   : > { %v224_v17 = vld [vmem:[#allocation2] sm:$0xff] }
  0x18   : > { %v279_v19 = vld [vmem:[#allocation2 + $0x2] sm:$0xff]  ;;  %v239_v20 = vmul.f32 %v751_v10, %v224_v17 }
  0x19   : > { %v295_v21 = vmul.f32 %v756_v16, %v279_v19 }
  0x1a   : > { %v271_v22 = vadd.f32 %v263_v18, %v239_v20  ;;  %v311_v30 = vld [vmem:[#allocation2 + $0x10] sm:$0xff]  ;;  %v408_v34 = vld [vmem:[#allocation2 + $0x20] sm:$0xff] }
  0x1b   : > { %v343_v31 = vld [vmem:[#allocation2 + $0x11] sm:$0xff]  ;;  %v327_v33 = vmul.f32 %v772_v23, %v311_v30  ;;  %v440_v35 = vld [vmem:[#allocation2 + $0x21] sm:$0xff]  ;;  %v240_v37 = vmul.f32 %v751_v10, %v311_v30  ;;  %v424_v42 = vmul.f32 %v787_v27, %v408_v34  ;;  %v328_v50 = vmul.f32 %v772_v23, %v408_v34  ;;  %v828_v20 = vld [vmem:[%s909_s2] ss:$0 sm:$0xff] }
  0x1c   : > { %v303_v26 = vadd.f32 %v295_v21, %v271_v22  ;;  %v375_v32 = vld [vmem:[#allocation2 + $0x12] sm:$0xff]  ;;  %v472_v36 = vld [vmem:[#allocation2 + $0x22] sm:$0xff]  ;;  %v264_v38 = vmul.f32 %v746_v1, %v343_v31  ;;  %v359_v40 = vmul.f32 %v777_v24, %v343_v31  ;;  %v456_v44 = vmul.f32 %v792_v28, %v440_v35 }
  0x1d   : > { %v391_v41 = vmul.f32 %v782_v25, %v375_v32  ;;  %v409_v43 = vld [vmem:[#allocation2 + $0x30] sm:$0xff]  ;;  %v488_v45 = vmul.f32 %v797_v29, %v472_v36  ;;  %v296_v47 = vmul.f32 %v756_v16, %v375_v32  ;;  %v241_v52 = vmul.f32 %v751_v10, %v408_v34  ;;  %v410_v62 = vld [vmem:[#allocation2 + $0x40] sm:$0xff] }
  0x1e   : > { %v335_v39 = vadd.f32 %v327_v33, %v303_v26  ;;  %v272_v46 = vadd.f32 %v264_v38, %v240_v37  ;;  %v441_v48 = vld [vmem:[#allocation2 + $0x31] sm:$0xff]  ;;  %v265_v53 = vmul.f32 %v746_v1, %v440_v35  ;;  %v360_v55 = vmul.f32 %v777_v24, %v440_v35  ;;  %v442_v63 = vld [vmem:[#allocation2 + $0x41] sm:$0xff] }
  0x1f   : > { %v473_v51 = vld [vmem:[#allocation2 + $0x32] sm:$0xff]  ;;  %v392_v56 = vmul.f32 %v782_v25, %v472_v36  ;;  %v425_v57 = vmul.f32 %v787_v27, %v409_v43  ;;  %v457_v59 = vmul.f32 %v792_v28, %v441_v48  ;;  %v297_v61 = vmul.f32 %v756_v16, %v472_v36  ;;  %v474_v8 = vld [vmem:[#allocation2 + $0x42] sm:$0xff] }
  0x20   : > { %v367_v49 = vadd.f32 %v359_v40, %v335_v39  ;;  %v304_v54 = vadd.f32 %v296_v47, %v272_v46  ;;  %v273_v60 = vadd.f32 %v265_v53, %v241_v52  ;;  %v489_v2 = vmul.f32 %v797_v29, %v473_v51  ;;  %v411_v34 = vld [vmem:[#allocation2 + $0x50] sm:$0xff] }
  0x21   : > { %v329_v3 = vmul.f32 %v772_v23, %v409_v43  ;;  %v242_v4 = vmul.f32 %v751_v10, %v409_v43  ;;  %v361_v7 = vmul.f32 %v777_v24, %v441_v48  ;;  %v266_v9 = vmul.f32 %v746_v1, %v441_v48  ;;  %v443_v35 = vld [vmem:[#allocation2 + $0x51] sm:$0xff] }
  0x22   : > { %v399_v58 = vadd.f32 %v391_v41, %v367_v49  ;;  %v336_v0 = vadd.f32 %v328_v50, %v304_v54  ;;  %v305_v6 = vadd.f32 %v297_v61, %v273_v60  ;;  %v393_v12 = vmul.f32 %v782_v25, %v473_v51  ;;  %v475_v52 = vld [vmem:[#allocation2 + $0x52] sm:$0xff] }
  0x23   : > { %v426_v13 = vmul.f32 %v787_v27, %v410_v62  ;;  %v458_v14 = vmul.f32 %v792_v28, %v442_v63  ;;  %v274_v18 = vadd.f32 %v266_v9, %v242_v4  ;;  %v298_v19 = vmul.f32 %v756_v16, %v473_v51 }
  0x24   : > { %v432_v5 = vadd.f32 %v424_v42, %v399_v58  ;;  %v368_v11 = vadd.f32 %v360_v55, %v336_v0  ;;  %v337_v17 = vadd.f32 %v329_v3, %v305_v6  ;;  %v490_v22 = vmul.f32 %v797_v29, %v474_v8 }
  0x25   : > { %v330_v26 = vmul.f32 %v772_v23, %v410_v62  ;;  %v243_v30 = vmul.f32 %v751_v10, %v410_v62  ;;  %v306_v33 = vadd.f32 %v298_v19, %v274_v18  ;;  %v267_v36 = vmul.f32 %v746_v1, %v442_v63  ;;  %v412_v62 = vld [vmem:[#allocation2 + $0x60] sm:$0xff] }
  0x26   : > { %v464_v15 = vadd.f32 %v456_v44, %v432_v5  ;;  %v400_v21 = vadd.f32 %v392_v56, %v368_v11  ;;  %v369_v32 = vadd.f32 %v361_v7, %v337_v17  ;;  %v362_v38 = vmul.f32 %v777_v24, %v442_v63  ;;  %v476_v19 = vld [vmem:[#allocation2 + $0x62] sm:$0xff] }
  0x27   : > { %v394_v39 = vmul.f32 %v782_v25, %v474_v8  ;;  %v299_v40 = vmul.f32 %v756_v16, %v474_v8  ;;  %v338_v43 = vadd.f32 %v330_v26, %v306_v33  ;;  %v275_v44 = vadd.f32 %v267_v36, %v243_v30  ;;  %v444_v8 = vld [vmem:[#allocation2 + $0x61] sm:$0xff] }
  0x28   : > { %v496_v31 = vadd.f32 %v488_v45, %v464_v15  ;;  %v433_v37 = vadd.f32 %v425_v57, %v400_v21  ;;  %v401_v42 = vadd.f32 %v393_v12, %v369_v32  ;;  %v427_v45 = vmul.f32 %v787_v27, %v411_v34 }
  0x29   : > { %v459_v47 = vmul.f32 %v792_v28, %v443_v35  ;;  %v331_v48 = vmul.f32 %v772_v23, %v411_v34  ;;  %v370_v51 = vadd.f32 %v362_v38, %v338_v43  ;;  %v307_v53 = vadd.f32 %v299_v40, %v275_v44 }
  0x2a   : > { %v511_v41 = vadd.f32 %v828_v20, %v496_v31  ;;  %v465_v46 = vadd.f32 %v457_v59, %v433_v37  ;;  %v434_v50 = vadd.f32 %v426_v13, %v401_v42  ;;  %v363_v55 = vmul.f32 %v777_v24, %v443_v35 }
  0x2b   : > { %v244_v56 = vmul.f32 %v751_v10, %v411_v34  ;;  %v268_v57 = vmul.f32 %v746_v1, %v443_v35  ;;  %v402_v60 = vadd.f32 %v394_v39, %v370_v51  ;;  %v339_v61 = vadd.f32 %v331_v48, %v307_v53  ;;  %v413_v34 = vld [vmem:[#allocation2 + $0x70] sm:$0xff] }
  0x2c   : > { %v519_v49 = vmax.f32 %v511_v41, 0.0  ;;  %v497_v54 = vadd.f32 %v489_v2, %v465_v46  ;;  %v466_v59 = vadd.f32 %v458_v14, %v434_v50  ;;  %v395_v0 = vmul.f32 %v782_v25, %v475_v52  ;;  %v445_v39 = vld [vmem:[#allocation2 + $0x71] sm:$0xff] }
  0x2d   : > { %v276_v2 = vadd.f32 %v268_v57, %v244_v56  ;;  %v300_v3 = vmul.f32 %v756_v16, %v475_v52  ;;  %v435_v6 = vadd.f32 %v427_v45, %v402_v60  ;;  %v371_v7 = vadd.f32 %v363_v55, %v339_v61  ;;  %v477_v46 = vld [vmem:[#allocation2 + $0x72] sm:$0xff] }
  0x2e   : > { %v527_v58 = vmin.f32 %v519_v49, 6.0  ;;  %v512_v63 = vadd.f32 %v828_v20, %v497_v54  ;;  %v498_v5 = vadd.f32 %v490_v22, %v466_v59  ;;  %v491_v11 = vmul.f32 %v797_v29, %v475_v52 }
  0x2f   : > { %v308_v12 = vadd.f32 %v300_v3, %v276_v2  ;;  %v332_v13 = vmul.f32 %v772_v23, %v412_v62  ;;  %v467_v15 = vadd.f32 %v459_v47, %v435_v6  ;;  %v403_v17 = vadd.f32 %v395_v0, %v371_v7 }
  0x30   : > { %v535_v4 = vpack.c.bf16 %v527_v58, %v527_v58  ;;  %v520_v9 = vmax.f32 %v512_v63, 0.0  ;;  %v513_v14 = vadd.f32 %v828_v20, %v498_v5  ;;  %v428_v18 = vmul.f32 %v787_v27, %v412_v62  ;;  %v414_v58 = vld [vmem:[#allocation2 + $0x80] sm:$0xff] }
  0x31   : > { %v460_v22 = vmul.f32 %v792_v28, %v444_v8  ;;  %v340_v26 = vadd.f32 %v332_v13, %v308_v12  ;;  %v364_v30 = vmul.f32 %v777_v24, %v444_v8  ;;  %v499_v32 = vadd.f32 %v491_v11, %v467_v15  ;;  %v446_v12 = vld [vmem:[#allocation2 + $0x81] sm:$0xff] }
  0x32   : > { %544 = vst.msk [vmem:[%s849_s17] sm:$0xf] %vm543_vm3, %v535_v4  ;;  %v528_v21 = vmin.f32 %v520_v9, 6.0  ;;  %v521_v31 = vmax.f32 %v513_v14, 0.0  ;;  %v436_v33 = vadd.f32 %v428_v18, %v403_v17  ;;  %v245_v35 = vmul.f32 %v751_v10, %v412_v62  ;;  %v478_v15 = vld [vmem:[#allocation2 + $0x82] sm:$0xff]  ;;  %v415_v17 = vld [vmem:[#allocation2 + $0x90] sm:$0xff] }
  0x33   : > { %v372_v37 = vadd.f32 %v364_v30, %v340_v26  ;;  %v396_v38 = vmul.f32 %v782_v25, %v476_v19  ;;  %v269_v40 = vmul.f32 %v746_v1, %v444_v8  ;;  %v514_v42 = vadd.f32 %v828_v20, %v499_v32 }
  0x34   : > { %v536_v36 = vpack.c.bf16 %v528_v21, %v528_v21  ;;  %v529_v41 = vmin.f32 %v521_v31, 6.0  ;;  %v468_v43 = vadd.f32 %v460_v22, %v436_v33  ;;  %v492_v44 = vmul.f32 %v797_v29, %v476_v19 }
  0x35   : > { %v404_v45 = vadd.f32 %v396_v38, %v372_v37  ;;  %v429_v47 = vmul.f32 %v787_v27, %v413_v34  ;;  %v277_v48 = vadd.f32 %v269_v40, %v245_v35  ;;  %v301_v49 = vmul.f32 %v756_v16, %v476_v19 }
  0x36   : > { %545 = vst.msk [vmem:[%s849_s17 + $0x4] sm:$0xf] %vm543_vm3, %v536_v36  ;;  %v537_v50 = vpack.c.bf16 %v529_v41, %v529_v41  ;;  %v522_v51 = vmax.f32 %v514_v42, 0.0  ;;  %v500_v52 = vadd.f32 %v492_v44, %v468_v43  ;;  %v461_v53 = vmul.f32 %v792_v28, %v445_v39  ;;  %v447_v36 = vld [vmem:[#allocation2 + $0x91] sm:$0xff] }
  0x37   : > { %v437_v54 = vadd.f32 %v429_v47, %v404_v45  ;;  %v493_v55 = vmul.f32 %v797_v29, %v477_v46  ;;  %v309_v56 = vadd.f32 %v301_v49, %v277_v48  ;;  %v333_v57 = vmul.f32 %v772_v23, %v413_v34 }
  0x38   : > { %546 = vst.msk [vmem:[%s849_s17 + $0x8] sm:$0xf] %vm543_vm3, %v537_v50  ;;  %v530_v59 = vmin.f32 %v522_v51, 6.0  ;;  %v515_v60 = vadd.f32 %v828_v20, %v500_v52  ;;  %v246_v61 = vmul.f32 %v751_v10, %v413_v34  ;;  %v270_v62 = vmul.f32 %v746_v1, %v445_v39 }
  0x39   : > { %v469_v63 = vadd.f32 %v461_v53, %v437_v54  ;;  %v341_v0 = vadd.f32 %v333_v57, %v309_v56  ;;  %v365_v2 = vmul.f32 %v777_v24, %v445_v39  ;;  %v302_v3 = vmul.f32 %v756_v16, %v477_v46  ;;  %v479_v39 = vld [vmem:[#allocation2 + $0x92] sm:$0xff] }
  0x3a   : > { %v538_v4 = vpack.c.bf16 %v530_v59, %v530_v59  ;;  %v523_v5 = vmax.f32 %v515_v60, 0.0  ;;  %v278_v6 = vadd.f32 %v270_v62, %v246_v61  ;;  %v334_v7 = vmul.f32 %v772_v23, %v414_v58 }
  0x3b   : > { %v501_v8 = vadd.f32 %v493_v55, %v469_v63  ;;  %v373_v9 = vadd.f32 %v365_v2, %v341_v0  ;;  %v397_v11 = vmul.f32 %v782_v25, %v477_v46  ;;  %v430_v16 = vmul.f32 %v787_v27, %v414_v58 }
  0x3c   : > { %547 = vst.msk [vmem:[%s849_s17 + $0xc] sm:$0xf] %vm543_vm3, %v538_v4  ;;  %v531_v1 = vmin.f32 %v523_v5, 6.0  ;;  %v310_v10 = vadd.f32 %v302_v3, %v278_v6  ;;  %v366_v23 = vmul.f32 %v777_v24, %v446_v12  ;;  %v462_v26 = vmul.f32 %v792_v28, %v446_v12 }
  0x3d   : > { %v516_v13 = vadd.f32 %v828_v20, %v501_v8  ;;  %v405_v14 = vadd.f32 %v397_v11, %v373_v9  ;;  %v398_v31 = vmul.f32 %v782_v25, %v478_v15  ;;  %v431_v32 = vmul.f32 %v787_v27, %v415_v17 }
  0x3e   : > { %v539_v18 = vpack.c.bf16 %v531_v1, %v531_v1  ;;  %v342_v19 = vadd.f32 %v334_v7, %v310_v10  ;;  %v494_v35 = vmul.f32 %v797_v29, %v478_v15  ;;  %v463_v41 = vmul.f32 %v792_v28, %v447_v36 }
  0x3f   : > { %v524_v21 = vmax.f32 %v516_v13, 0.0  ;;  %v438_v22 = vadd.f32 %v430_v16, %v405_v14  ;;  %v495_v27 = vmul.f32 %v797_v29, %v479_v39 }
  0x40   : > { %548 = vst.msk [vmem:[%s849_s17 + $0x10] sm:$0xf] %vm543_vm3, %v539_v18  ;;  %v374_v30 = vadd.f32 %v366_v23, %v342_v19 }
  0x41   : > { %v532_v33 = vmin.f32 %v524_v21, 6.0  ;;  %v470_v34 = vadd.f32 %v462_v26, %v438_v22 }
  0x42   : > { %v406_v37 = vadd.f32 %v398_v31, %v374_v30 }
  0x43   : > { %v540_v24 = vpack.c.bf16 %v532_v33, %v532_v33  ;;  %v502_v38 = vadd.f32 %v494_v35, %v470_v34 }
  0x44   : > { %v439_v40 = vadd.f32 %v431_v32, %v406_v37 }
  0x45   : > { %549 = vst.msk [vmem:[%s849_s17 + $0x14] sm:$0xf] %vm543_vm3, %v540_v24  ;;  %v517_v25 = vadd.f32 %v828_v20, %v502_v38 }
  0x46   : > { %v471_v42 = vadd.f32 %v463_v41, %v439_v40 }
  0x47   : > { %v525_v43 = vmax.f32 %v517_v25, 0.0 }
  0x48   : > { %v503_v44 = vadd.f32 %v495_v27, %v471_v42 }
  0x49   : > { %v533_v46 = vmin.f32 %v525_v43, 6.0 }
  0x4a   : > { %v518_v45 = vadd.f32 %v828_v20, %v503_v44 }
  0x4b   : > { %v541_v47 = vpack.c.bf16 %v533_v46, %v533_v46 }
  0x4c   : > { %v526_v48 = vmax.f32 %v518_v45, 0.0 }
  0x4d   : > { %550 = vst.msk [vmem:[%s849_s17 + $0x18] sm:$0xf] %vm543_vm3, %v541_v47 }
  0x4e   : > { %v534_v49 = vmin.f32 %v526_v48, 6.0 }
  0x50   : > { %v542_v50 = vpack.c.bf16 %v534_v49, %v534_v49 }
  0x52   : > { %551 = vst.msk [vmem:[%s849_s17 + $0x1c] sm:$0xf] %vm543_vm3, %v542_v50 }
  0x53 PF: > { %s13_s12 = sadd.s32 1, %s672_s12  }
  0x54   : > { %p10_p4 = scmp.ge.s32.totalorder %s13_s12, 4  }
  0x56   :  { %12 = sbr.rel (!%p10_p4) target bundleno = 1 (0x1), region = 73 }

// kernel: _lambda_.29
= control target key start
LH: loop header
LB: loop body
LE: loop exit
PB: predicated region body
PF: predicated region fallthrough
CT: control target
= control target key end

     0   :  { %s550_s12 = smov 0   ;;  %s604_s0 = inlined_call_operand.vmem [shape: bf16[128,72], index: 0, kind: input, shape index: {}]   ;;  %s605_s1 = inlined_call_operand.vmem [shape: bf16[72,24], index: 1, kind: input, shape index: {}]   ;;  %s606_s2 = inlined_call_operand.vmem [shape: f32[1,24], index: 2, kind: input, shape index: {}]   ;;  %s607_s3 = inlined_call_operand.vmem [shape: bf16[128,24], index: 3, kind: output, shape index: {}]  }
   0x1 LB: > { %s425_s13 = sadd.s32 4294967295, %s528_s12   ;;  %p429_p0 = scmp.ge.s32.totalorder %s528_s12, 1  ;;  %s528_s12 = sphi %s550_s12, %s13_s12  }
   0x2   : > { %p138_p1 = scmp.lt.s32.totalorder %s528_s12, 3 }
   0x4   : > { %p139_p2 = pnand %p429_p0, %p138_p1 }
   0x5   : > { %v513_v0 = vld [vmem:[%s605_s1] sm:$0xff] (!%p139_p2)   ;;  %v514_v1 = vld [vmem:[%s605_s1 + $0x8] sm:$0xff] (!%p139_p2)   ;;  %s430_s18 = sshll.u32 (!%p139_p2), %s425_s13, 3  ;;  %v515_v2 = vld [vmem:[%s605_s1 + $0x10] sm:$0xff] (!%p139_p2)   ;;  %vm246_vm0 = vcmask (!%p139_p2), 588800   ;;  %vm259_vm1 = vcmask (!%p139_p2), 1043456  }
   0x6   : > { %142 = sbr.rel (%p139_p2) target bundleno = 246 (0xf6), region = 32  ;;  %475 = vmatprep.subr.bf16.mxu0 (!%p139_p2), %v513_v0  ;;  %493 = vmatprep.subr.bf16.mxu1 (!%p139_p2), %v513_v0  ;;  %p163_p3 = scmp.lt.s32.totalorder (!%p139_p2), %s430_s18, 15  ;;  %v516_v3 = vld [vmem:[%s605_s1 + $0x18] sm:$0xff] (!%p139_p2)   ;;  %v517_v6 = vld [vmem:[%s605_s1 + $0x20] ss:$0 sps:$4 sm:$0xff] (!%p139_p2)   ;;  %vm360_vm2 = vcmask (!%p139_p2), 191488  }
   0x7   : > { %476 = vmatpush3.bf16.msra.mxu0 (!%p139_p2), %v513_v0  ;;  %498 = vmatpush3.bf16.msra.mxu1 (!%p139_p2), %v513_v0  ;;  %v261_v7 = vsel (!%p139_p2), %vm259_vm1, %v517_v6, 0  ;;  %v434_v10 = vld [vmem:[%s606_s2] ss:$0 sm:$0xff] (!%p139_p2) }
   0x8   : > { %477 = vmatprep.subr.bf16.mxu0 (!%p139_p2), %v514_v1  ;;  %494 = vmatprep.subr.bf16.mxu1 (!%p139_p2), %v514_v1 }
   0xb   : > { %478 = vmatpush3.bf16.msra.mxu0 (!%p139_p2), %v514_v1  ;;  %499 = vmatpush3.bf16.msra.mxu1 (!%p139_p2), %v514_v1 }
   0xc   : > { %479 = vmatprep.subr.bf16.mxu0 (!%p139_p2), %v515_v2  ;;  %495 = vmatprep.subr.bf16.mxu1 (!%p139_p2), %v515_v2 }
   0xd   : > { %s609_s18 = smov (!%p163_p3, %s430_s18), 15 }
   0xe   : > { %s431_s21 = sshll.u32 %s609_s18, 2 }
   0xf   : > { %s166_s26 = scalar_lea.vmem %s604_s0, %s431_s21  ;;  %480 = vmatpush3.bf16.msra.mxu0 %v515_v2  ;;  %500 = vmatpush3.bf16.msra.mxu1 %v515_v2  ;;  %s172_s6 = scalar_lea.vmem %s607_s3, %s431_s21 }
  0x10   : > { %v518_v4 = vld [vmem:[%s166_s26] sm:$0xff]   ;;  %v519_v5 = vld [vmem:[%s166_s26 + $0x10] sm:$0xff]   ;;  %481 = vmatprep.subr.bf16.mxu0 %v516_v3  ;;  %496 = vmatprep.subr.bf16.mxu1 %v516_v3  ;;  %v520_v8 = vld [vmem:[%s166_s26 + $0x8] sm:$0xff]  }
  0x11   : > { %485 = vmatprep.mubr.msk.bf16.mxu0 %vm246_vm0, %v518_v4  ;;  %489 = vmatprep.mubr.msk.bf16.mxu1 %vm246_vm0, %v519_v5  ;;  %v521_v9 = vld [vmem:[%s166_s26 + $0x18] sm:$0xff]  }
  0x13   : > { %482 = vmatpush3.bf16.msra.mxu0 %v516_v3  ;;  %501 = vmatpush3.bf16.msra.mxu1 %v516_v3 }
  0x14   : > { %503 = vmatprep.subr.msk.bf16.mxu0 %vm259_vm1, %v517_v6  ;;  %504 = vmatprep.subr.msk.bf16.mxu1 %vm259_vm1, %v517_v6 }
  0x17   : > { %484 = vmatpush3.bf16.msra.mxu0 %v261_v7  ;;  %502 = vmatpush3.bf16.msra.mxu1 %v261_v7 }
  0x1a   : > { %486 = vmatmul.mubr.msk.bf16.vlgmr.msra.gmra.mrb[0].mxu0 %vm246_vm0, %v520_v8  ;;  %490 = vmatmul.mubr.msk.bf16.vlgmr.msra.gmra.mrb[0].mxu1 %vm246_vm0, %v521_v9 }
  0xed   : > { %v487_v11 = vpop.f32.mrb[0].mxu0  ;;  %v491_v12 = vpop.f32.mrb[0].mxu1 }
  0xee   : > { %v306_v13 = vadd.f32 %v487_v11, %v434_v10  ;;  %v322_v14 = vadd.f32 %v491_v12, %v434_v10  ;;  %v297_v15 = vpop.f32.mrb[1].mxu0  ;;  %v313_v16 = vpop.f32.mrb[1].mxu1 }
  0xef   : > { %v298_v17 = vadd.f32 %v434_v10, %v297_v15  ;;  %v314_v18 = vadd.f32 %v434_v10, %v313_v16  ;;  %v488_v19 = vpop.f32.mrb[2].mxu0  ;;  %v492_v20 = vpop.f32.mrb[2].mxu1 }
  0xf0   : > { %v460_v21 = vpack.c.bf16 %v306_v13, %v306_v13  ;;  %v464_v22 = vpack.c.bf16 %v322_v14, %v322_v14  ;;  %v309_v23 = vadd.f32 %v488_v19, %v434_v10  ;;  %v325_v24 = vadd.f32 %v492_v20, %v434_v10  ;;  %v300_v25 = vpop.f32.mrb[3].mxu0  ;;  %v316_v26 = vpop.f32.mrb[3].mxu1 }
  0xf1   : > { %v458_v27 = vpack.c.bf16 %v298_v17, %v298_v17  ;;  %v462_v28 = vpack.c.bf16 %v314_v18, %v314_v18  ;;  %v301_v29 = vadd.f32 %v434_v10, %v300_v25  ;;  %v317_v30 = vadd.f32 %v434_v10, %v316_v26 }
  0xf2   : > { %363 = vst.msk [vmem:[%s172_s6 + $0x8] sm:$0xf] %vm360_vm2, %v460_v21  ;;  %367 = vst.msk [vmem:[%s172_s6 + $0x18] sm:$0xf] %vm360_vm2, %v464_v22  ;;  %v461_v31 = vpack.c.bf16 %v309_v23, %v309_v23  ;;  %v465_v32 = vpack.c.bf16 %v325_v24, %v325_v24 }
  0xf3   : > { %361 = vst.msk [vmem:[%s172_s6] sm:$0xf] %vm360_vm2, %v458_v27  ;;  %365 = vst.msk [vmem:[%s172_s6 + $0x10] sm:$0xf] %vm360_vm2, %v462_v28  ;;  %v459_v33 = vpack.c.bf16 %v301_v29, %v301_v29  ;;  %v463_v34 = vpack.c.bf16 %v317_v30, %v317_v30 }
  0xf4   : > { %364 = vst.msk [vmem:[%s172_s6 + $0xc] sm:$0xf] %vm360_vm2, %v461_v31  ;;  %368 = vst.msk [vmem:[%s172_s6 + $0x1c] sm:$0xf] %vm360_vm2, %v465_v32 }
  0xf5   : > { %362 = vst.msk [vmem:[%s172_s6 + $0x4] sm:$0xf] %vm360_vm2, %v459_v33  ;;  %366 = vst.msk [vmem:[%s172_s6 + $0x14] sm:$0xf] %vm360_vm2, %v463_v34 }
  0xf6 PF: > { %s13_s12 = sadd.s32 1, %s528_s12  }
  0xf7   : > { %p10_p4 = scmp.ge.s32.totalorder %s13_s12, 4  }
  0xf9   :  { %12 = sbr.rel (!%p10_p4) target bundleno = 1 (0x1), region = 62 }

// kernel: _lambda_.32
= control target key start
LH: loop header
LB: loop body
LE: loop exit
PB: predicated region body
PF: predicated region fallthrough
CT: control target
= control target key end

     0   :  { %s661_s15 = smov 0   ;;  %s716_s0 = inlined_call_operand.vmem [shape: bf16[128,72], index: 0, kind: input, shape index: {}]   ;;  %s717_s1 = inlined_call_operand.vmem [shape: bf16[72,24], index: 1, kind: input, shape index: {}]   ;;  %s718_s2 = inlined_call_operand.vmem [shape: f32[1,24], index: 2, kind: input, shape index: {}]   ;;  %s719_s3 = inlined_call_operand.vmem [shape: bf16[128,24], index: 3, kind: input, shape index: {}]   ;;  %s720_s4 = inlined_call_operand.vmem [shape: bf16[128,24], index: 4, kind: output, shape index: {}]  }
   0x1 LB: > { %s510_s16 = sadd.s32 4294967295, %s634_s15   ;;  %p514_p0 = scmp.ge.s32.totalorder %s634_s15, 1  ;;  %s634_s15 = sphi %s661_s15, %s14_s15  }
   0x2   : > { %p174_p1 = scmp.lt.s32.totalorder %s634_s15, 3 }
   0x4   : > { %p175_p2 = pnand %p514_p0, %p174_p1 }
   0x5   : > { %v619_v0 = vld [vmem:[%s717_s1] sm:$0xff] (!%p175_p2)   ;;  %v620_v1 = vld [vmem:[%s717_s1 + $0x8] sm:$0xff] (!%p175_p2)   ;;  %s515_s21 = sshll.u32 (!%p175_p2), %s510_s16, 3  ;;  %v621_v2 = vld [vmem:[%s717_s1 + $0x10] sm:$0xff] (!%p175_p2)   ;;  %vm295_vm0 = vcmask (!%p175_p2), 588800   ;;  %vm308_vm1 = vcmask (!%p175_p2), 1043456  }
   0x6   : > { %178 = sbr.rel (%p175_p2) target bundleno = 248 (0xf8), region = 36  ;;  %581 = vmatprep.subr.bf16.mxu0 (!%p175_p2), %v619_v0  ;;  %599 = vmatprep.subr.bf16.mxu1 (!%p175_p2), %v619_v0  ;;  %p206_p3 = scmp.lt.s32.totalorder (!%p175_p2), %s515_s21, 15  ;;  %v622_v3 = vld [vmem:[%s717_s1 + $0x18] sm:$0xff] (!%p175_p2)   ;;  %v623_v6 = vld [vmem:[%s717_s1 + $0x20] ss:$0 sps:$4 sm:$0xff] (!%p175_p2)   ;;  %vm433_vm2 = vcmask (!%p175_p2), 191488  }
   0x7   : > { %582 = vmatpush3.bf16.msra.mxu0 (!%p175_p2), %v619_v0  ;;  %604 = vmatpush3.bf16.msra.mxu1 (!%p175_p2), %v619_v0  ;;  %v310_v7 = vsel (!%p175_p2), %vm308_vm1, %v623_v6, 0  ;;  %v521_v14 = vld [vmem:[%s718_s2] ss:$0 sm:$0xff] (!%p175_p2) }
   0x8   : > { %583 = vmatprep.subr.bf16.mxu0 (!%p175_p2), %v620_v1  ;;  %600 = vmatprep.subr.bf16.mxu1 (!%p175_p2), %v620_v1 }
   0xb   : > { %584 = vmatpush3.bf16.msra.mxu0 (!%p175_p2), %v620_v1  ;;  %605 = vmatpush3.bf16.msra.mxu1 (!%p175_p2), %v620_v1 }
   0xc   : > { %585 = vmatprep.subr.bf16.mxu0 (!%p175_p2), %v621_v2  ;;  %601 = vmatprep.subr.bf16.mxu1 (!%p175_p2), %v621_v2 }
   0xd   : > { %s722_s21 = smov (!%p206_p3, %s515_s21), 15 }
   0xe   : > { %s678_s24 = sshll.u32 %s722_s21, 2 }
   0xf   : > { %s209_s29 = scalar_lea.vmem %s716_s0, %s678_s24  ;;  %586 = vmatpush3.bf16.msra.mxu0 %v621_v2  ;;  %606 = vmatpush3.bf16.msra.mxu1 %v621_v2  ;;  %s215_s8 = scalar_lea.vmem %s719_s3, %s678_s24 }
  0x10   : > { %v624_v4 = vld [vmem:[%s209_s29] sm:$0xff]   ;;  %v625_v5 = vld [vmem:[%s209_s29 + $0x10] sm:$0xff]   ;;  %587 = vmatprep.subr.bf16.mxu0 %v622_v3  ;;  %602 = vmatprep.subr.bf16.mxu1 %v622_v3  ;;  %v626_v8 = vld [vmem:[%s209_s29 + $0x8] sm:$0xff]   ;;  %s221_s13 = scalar_lea.vmem %s720_s4, %s678_s24 }
  0x11   : > { %591 = vmatprep.mubr.msk.bf16.mxu0 %vm295_vm0, %v624_v4  ;;  %595 = vmatprep.mubr.msk.bf16.mxu1 %vm295_vm0, %v625_v5  ;;  %v627_v9 = vld [vmem:[%s209_s29 + $0x18] sm:$0xff]   ;;  %v569_v10 = vld [vmem:[%s215_s8 + $0x8] sm:$0xff]   ;;  %v554_v12 = vld [vmem:[%s215_s8] sm:$0xff]  }
  0x12   : > { %v571_v11 = vld [vmem:[%s215_s8 + $0x18] sm:$0xff]   ;;  %v570_v13 = vld [vmem:[%s215_s8 + $0x10] sm:$0xff]   ;;  %v559_v15 = vunpack.c.l.bf16 %v569_v10  ;;  %v555_v19 = vunpack.c.l.bf16 %v554_v12  ;;  %v560_v21 = vunpack.c.h.bf16 %v569_v10  ;;  %v556_v27 = vunpack.c.h.bf16 %v554_v12 }
  0x13   : > { %588 = vmatpush3.bf16.msra.mxu0 %v622_v3  ;;  %607 = vmatpush3.bf16.msra.mxu1 %v622_v3  ;;  %v567_v16 = vunpack.c.l.bf16 %v571_v11  ;;  %v563_v20 = vunpack.c.l.bf16 %v570_v13  ;;  %v568_v26 = vunpack.c.h.bf16 %v571_v11  ;;  %v564_v32 = vunpack.c.h.bf16 %v570_v13 }
  0x14   : > { %609 = vmatprep.subr.msk.bf16.mxu0 %vm308_vm1, %v623_v6  ;;  %610 = vmatprep.subr.msk.bf16.mxu1 %vm308_vm1, %v623_v6 }
  0x17   : > { %590 = vmatpush3.bf16.msra.mxu0 %v310_v7  ;;  %608 = vmatpush3.bf16.msra.mxu1 %v310_v7 }
  0x1a   : > { %592 = vmatmul.mubr.msk.bf16.vlgmr.msra.gmra.mrb[0].mxu0 %vm295_vm0, %v626_v8  ;;  %596 = vmatmul.mubr.msk.bf16.vlgmr.msra.gmra.mrb[0].mxu1 %vm295_vm0, %v627_v9 }
  0xed   : > { %v593_v17 = vpop.f32.mrb[0].mxu0  ;;  %v597_v18 = vpop.f32.mrb[0].mxu1 }
  0xee   : > { %v355_v22 = vadd.f32 %v593_v17, %v521_v14  ;;  %v371_v23 = vadd.f32 %v597_v18, %v521_v14  ;;  %v346_v24 = vpop.f32.mrb[1].mxu0  ;;  %v362_v25 = vpop.f32.mrb[1].mxu1 }
  0xef   : > { %v347_v28 = vadd.f32 %v521_v14, %v346_v24  ;;  %v363_v29 = vadd.f32 %v521_v14, %v362_v25  ;;  %v594_v30 = vpop.f32.mrb[2].mxu0  ;;  %v598_v31 = vpop.f32.mrb[2].mxu1 }
  0xf0   : > { %v395_v33 = vadd.f32 %v559_v15, %v355_v22  ;;  %v399_v34 = vadd.f32 %v567_v16, %v371_v23  ;;  %v358_v35 = vadd.f32 %v594_v30, %v521_v14  ;;  %v374_v36 = vadd.f32 %v598_v31, %v521_v14  ;;  %v349_v37 = vpop.f32.mrb[3].mxu0  ;;  %v365_v38 = vpop.f32.mrb[3].mxu1 }
  0xf1   : > { %v393_v39 = vadd.f32 %v555_v19, %v347_v28  ;;  %v397_v40 = vadd.f32 %v563_v20, %v363_v29  ;;  %v350_v41 = vadd.f32 %v521_v14, %v349_v37  ;;  %v366_v42 = vadd.f32 %v521_v14, %v365_v38 }
  0xf2   : > { %v547_v43 = vpack.c.bf16 %v395_v33, %v395_v33  ;;  %v551_v44 = vpack.c.bf16 %v399_v34, %v399_v34  ;;  %v396_v45 = vadd.f32 %v560_v21, %v358_v35  ;;  %v400_v46 = vadd.f32 %v568_v26, %v374_v36 }
  0xf3   : > { %v545_v47 = vpack.c.bf16 %v393_v39, %v393_v39  ;;  %v549_v48 = vpack.c.bf16 %v397_v40, %v397_v40  ;;  %v394_v49 = vadd.f32 %v556_v27, %v350_v41  ;;  %v398_v50 = vadd.f32 %v564_v32, %v366_v42 }
  0xf4   : > { %436 = vst.msk [vmem:[%s221_s13 + $0x8] sm:$0xf] %vm433_vm2, %v547_v43  ;;  %440 = vst.msk [vmem:[%s221_s13 + $0x18] sm:$0xf] %vm433_vm2, %v551_v44  ;;  %v548_v51 = vpack.c.bf16 %v396_v45, %v396_v45  ;;  %v552_v52 = vpack.c.bf16 %v400_v46, %v400_v46 }
  0xf5   : > { %434 = vst.msk [vmem:[%s221_s13] sm:$0xf] %vm433_vm2, %v545_v47  ;;  %438 = vst.msk [vmem:[%s221_s13 + $0x10] sm:$0xf] %vm433_vm2, %v549_v48  ;;  %v546_v53 = vpack.c.bf16 %v394_v49, %v394_v49  ;;  %v550_v54 = vpack.c.bf16 %v398_v50, %v398_v50 }
  0xf6   : > { %437 = vst.msk [vmem:[%s221_s13 + $0xc] sm:$0xf] %vm433_vm2, %v548_v51  ;;  %441 = vst.msk [vmem:[%s221_s13 + $0x1c] sm:$0xf] %vm433_vm2, %v552_v52 }
  0xf7   : > { %435 = vst.msk [vmem:[%s221_s13 + $0x4] sm:$0xf] %vm433_vm2, %v546_v53  ;;  %439 = vst.msk [vmem:[%s221_s13 + $0x14] sm:$0xf] %vm433_vm2, %v550_v54 }
  0xf8 PF: > { %s14_s15 = sadd.s32 1, %s634_s15  }
  0xf9   : > { %p11_p4 = scmp.ge.s32.totalorder %s14_s15, 4  }
  0xfb   :  { %13 = sbr.rel (!%p11_p4) target bundleno = 1 (0x1), region = 69 }

// kernel: _lambda_.33
= control target key start
LH: loop header
LB: loop body
LE: loop exit
PB: predicated region body
PF: predicated region fallthrough
CT: control target
= control target key end

     0   :  { %s395_s12 = smov 0   ;;  %s421_s0 = inlined_call_operand.vmem [shape: bf16[32,24], index: 0, kind: input, shape index: {}]   ;;  %s422_s1 = inlined_call_operand.vmem [shape: bf16[24,40], index: 1, kind: input, shape index: {}]   ;;  %s423_s2 = inlined_call_operand.vmem [shape: f32[1,40], index: 2, kind: input, shape index: {}]   ;;  %s424_s3 = inlined_call_operand.vmem [shape: bf16[32,40], index: 3, kind: output, shape index: {}]  }
   0x1 LB: > { %s321_s13 = sadd.s32 4294967295, %s371_s12   ;;  %p325_p0 = scmp.ge.s32.totalorder %s371_s12, 1  ;;  %s371_s12 = sphi %s395_s12, %s13_s12  }
   0x2   : > { %p138_p1 = scmp.lt.s32.totalorder %s371_s12, 3 }
   0x4   : > { %p139_p2 = pnand %p325_p0, %p138_p1 }
   0x5   : > { %v362_v0 = vld [vmem:[%s422_s1] sm:$0xff] (!%p139_p2)   ;;  %v373_v1 = vmov (!%p139_p2), 0.0   ;;  %v363_v2 = vld [vmem:[%s422_s1 + $0x8] ss:$0 sps:$4 sm:$0xff] (!%p139_p2)   ;;  %vm205_vm0 = vcmask (!%p139_p2), 1043456   ;;  %vm374_vm1 = vmmov (!%p139_p2), 0  }
   0x6   : > { %142 = sbr.rel (%p139_p2) target bundleno = 240 (0xf0), region = 32  ;;  %344 = vmatprep.subr.bf16.mxu0 (!%p139_p2), %v373_v1  ;;  %348 = vmatprep.mubr.msk.bf16.mxu0 (!%p139_p2), %vm374_vm1, %v373_v1  ;;  %s326_s18 = sshll.u32 (!%p139_p2), %s321_s13, 1  ;;  %v207_v3 = vsel (!%p139_p2), %vm205_vm0, %v363_v2, 0  ;;  %vm201_vm2 = vcmask (!%p139_p2), 195584   ;;  %v330_v5 = vld [vmem:[%s423_s2] ss:$0 sm:$0xff] (!%p139_p2) }
   0x7   : > { %345 = vmatpush3.bf16.msra.mxu0 (!%p139_p2), %v362_v0  ;;  %p163_p3 = scmp.lt.s32.totalorder (!%p139_p2), %s326_s18, 3  ;;  %vm262_vm3 = vcmask (!%p139_p2), 322560  }
   0x8   : > { %346 = vmatprep.subr.bf16.mxu0 (!%p139_p2), %v373_v1 }
   0xb   : > { %347 = vmatpush3.bf16.msra.mxu0 (!%p139_p2), %v207_v3 }
   0xd   : > { %s426_s18 = smov (!%p163_p3, %s326_s18), 3 }
   0xe   : > { %s327_s19 = sshll.u32 %s426_s18, 2 }
   0xf   : > { %s166_s22 = scalar_lea.vmem %s421_s0, %s327_s19  ;;  %s172_s27 = scalar_lea.vmem %s424_s3, %s327_s19 }
  0x10   : > { %v364_v4 = vld [vmem:[%s166_s22] sm:$0xff]  }
  0x11   : > { %349 = vmatmul.mubr.msk.bf16.vlgmr.msra.gmra.mrb[0].mxu0 %vm201_vm2, %v364_v4 }
  0xe4   : > { %v243_v6 = vpop.f32.mrb[0].mxu0 }
  0xe5   : > { %v244_v7 = vadd.f32 %v330_v5, %v243_v6  ;;  %v350_v8 = vpop.f32.mrb[1].mxu0 }
  0xe6   : > { %v246_v9 = vpop.f32.mrb[2].mxu0 }
  0xe7   : > { %v250_v10 = vmax.f32 %v244_v7, 0.0  ;;  %v247_v11 = vadd.f32 %v330_v5, %v246_v9  ;;  %v351_v12 = vpop.f32.mrb[3].mxu0 }
  0xe9   : > { %v252_v13 = vmin.f32 %v250_v10, 6.0  ;;  %v251_v14 = vmax.f32 %v247_v11, 0.0 }
  0xeb   : > { %v339_v15 = vpack.c.bf16 %v252_v13, %v252_v13  ;;  %v253_v16 = vmin.f32 %v251_v14, 6.0 }
  0xed   : > { %263 = vst.msk [vmem:[%s172_s27] sm:$0xf] %vm262_vm3, %v339_v15  ;;  %v340_v17 = vpack.c.bf16 %v253_v16, %v253_v16 }
  0xef   : > { %264 = vst.msk [vmem:[%s172_s27 + $0x4] sm:$0xf] %vm262_vm3, %v340_v17 }
  0xf0 PF: > { %s13_s12 = sadd.s32 1, %s371_s12  }
  0xf1   : > { %p10_p4 = scmp.ge.s32.totalorder %s13_s12, 4  }
  0xf3   :  { %12 = sbr.rel (!%p10_p4) target bundleno = 1 (0x1), region = 62 }

// kernel: _lambda_.34
= control target key start
LH: loop header
LB: loop body
LE: loop exit
PB: predicated region body
PF: predicated region fallthrough
CT: control target
= control target key end

     0   :  { %s408_s12 = smov 0   ;;  %s437_s0 = inlined_call_operand.vmem [shape: bf16[32,40], index: 0, kind: input, shape index: {}]   ;;  %s438_s1 = inlined_call_operand.vmem [shape: bf16[40,120], index: 1, kind: input, shape index: {}]   ;;  %s439_s2 = inlined_call_operand.vmem [shape: f32[1,120], index: 2, kind: input, shape index: {}]   ;;  %s440_s3 = inlined_call_operand.vmem [shape: bf16[32,120], index: 3, kind: output, shape index: {}]  }
   0x1 LB: > { %s329_s13 = sadd.s32 4294967295, %s384_s12   ;;  %p333_p0 = scmp.ge.s32.totalorder %s384_s12, 1  ;;  %s384_s12 = sphi %s408_s12, %s13_s12  }
   0x2   : > { %p138_p1 = scmp.lt.s32.totalorder %s384_s12, 3 }
   0x4   : > { %p139_p2 = pnand %p333_p0, %p138_p1 }
   0x5   : > { %v374_v0 = vld [vmem:[%s438_s1] sm:$0xff] (!%p139_p2)   ;;  %v386_v1 = vmov (!%p139_p2), 0.0   ;;  %v375_v2 = vld [vmem:[%s438_s1 + $0x8] sm:$0xff] (!%p139_p2)   ;;  %s334_s18 = sshll.u32 (!%p139_p2), %s329_s13, 1  ;;  %v376_v3 = vld [vmem:[%s438_s1 + $0x10] ss:$0 sps:$4 sm:$0xff] (!%p139_p2)  }
   0x6   : > { %142 = sbr.rel (%p139_p2) target bundleno = 241 (0xf1), region = 32  ;;  %354 = vmatprep.subr.bf16.mxu0 (!%p139_p2), %v386_v1  ;;  %vm387_vm0 = vmmov (!%p139_p2), 0   ;;  %p163_p3 = scmp.lt.s32.totalorder (!%p139_p2), %s334_s18, 3  ;;  %vm213_vm1 = vcmask (!%p139_p2), 1043456   ;;  %vm209_vm2 = vcmask (!%p139_p2), 326656   ;;  %vm270_vm3 = vcmask (!%p139_p2), 977920  }
   0x7   : > { %355 = vmatpush3.bf16.msra.mxu0 (!%p139_p2), %v374_v0  ;;  %360 = vmatprep.mubr.msk.bf16.mxu0 (!%p139_p2), %vm387_vm0, %v386_v1  ;;  %v215_v4 = vsel (!%p139_p2), %vm213_vm1, %v376_v3, 0  ;;  %v338_v6 = vld [vmem:[%s439_s2] ss:$0 sm:$0xff] (!%p139_p2) }
   0x8   : > { %356 = vmatprep.subr.bf16.mxu0 (!%p139_p2), %v386_v1 }
   0xb   : > { %357 = vmatpush3.bf16.msra.mxu0 (!%p139_p2), %v375_v2 }
   0xc   : > { %358 = vmatprep.subr.bf16.mxu0 (!%p139_p2), %v386_v1 }
   0xd   : > { %s442_s18 = smov (!%p163_p3, %s334_s18), 3 }
   0xe   : > { %s335_s21 = sshll.u32 %s442_s18, 2 }
   0xf   : > { %s166_s24 = scalar_lea.vmem %s437_s0, %s335_s21  ;;  %359 = vmatpush3.bf16.msra.mxu0 %v215_v4  ;;  %s172_s29 = scalar_lea.vmem %s440_s3, %s335_s21 }
  0x10   : > { %v377_v5 = vld [vmem:[%s166_s24] sm:$0xff]  }
  0x12   : > { %361 = vmatmul.mubr.msk.bf16.vlgmr.msra.gmra.mrb[0].mxu0 %vm209_vm2, %v377_v5 }
  0xe5   : > { %v251_v7 = vpop.f32.mrb[0].mxu0 }
  0xe6   : > { %v252_v8 = vadd.f32 %v338_v6, %v251_v7  ;;  %v362_v9 = vpop.f32.mrb[1].mxu0 }
  0xe7   : > { %v254_v10 = vpop.f32.mrb[2].mxu0 }
  0xe8   : > { %v258_v11 = vmax.f32 %v252_v8, 0.0  ;;  %v255_v12 = vadd.f32 %v338_v6, %v254_v10  ;;  %v363_v13 = vpop.f32.mrb[3].mxu0 }
  0xea   : > { %v260_v14 = vmin.f32 %v258_v11, 6.0  ;;  %v259_v15 = vmax.f32 %v255_v12, 0.0 }
  0xec   : > { %v348_v16 = vpack.c.bf16 %v260_v14, %v260_v14  ;;  %v261_v17 = vmin.f32 %v259_v15, 6.0 }
  0xee   : > { %271 = vst.msk [vmem:[%s172_s29] sm:$0xf] %vm270_vm3, %v348_v16  ;;  %v349_v18 = vpack.c.bf16 %v261_v17, %v261_v17 }
  0xf0   : > { %272 = vst.msk [vmem:[%s172_s29 + $0x4] sm:$0xf] %vm270_vm3, %v349_v18 }
  0xf1 PF: > { %s13_s12 = sadd.s32 1, %s384_s12  }
  0xf2   : > { %p10_p4 = scmp.ge.s32.totalorder %s13_s12, 4  }
  0xf4   :  { %12 = sbr.rel (!%p10_p4) target bundleno = 1 (0x1), region = 62 }

// kernel: _lambda_.36
= control target key start
LH: loop header
LB: loop body
LE: loop exit
PB: predicated region body
PF: predicated region fallthrough
CT: control target
= control target key end

     0   :  { %s469_s12 = smov 0   ;;  %s516_s0 = inlined_call_operand.vmem [shape: bf16[32,120], index: 0, kind: input, shape index: {}]   ;;  %s517_s1 = inlined_call_operand.vmem [shape: bf16[120,40], index: 1, kind: input, shape index: {}]   ;;  %s518_s2 = inlined_call_operand.vmem [shape: f32[1,40], index: 2, kind: input, shape index: {}]   ;;  %s519_s3 = inlined_call_operand.vmem [shape: bf16[32,40], index: 3, kind: output, shape index: {}]  }
   0x1 LB: > { %s365_s13 = sadd.s32 4294967295, %s445_s12   ;;  %p369_p0 = scmp.ge.s32.totalorder %s445_s12, 1  ;;  %s445_s12 = sphi %s469_s12, %s13_s12  }
   0x2   : > { %p138_p1 = scmp.lt.s32.totalorder %s445_s12, 3 }
   0x4   : > { %p139_p2 = pnand %p369_p0, %p138_p1 }
   0x5   : > { %v430_v0 = vld [vmem:[%s517_s1] sm:$0xff] (!%p139_p2)   ;;  %v447_v1 = vmov (!%p139_p2), 0.0   ;;  %v431_v2 = vld [vmem:[%s517_s1 + $0x8] sm:$0xff] (!%p139_p2)   ;;  %vm448_vm0 = vmmov (!%p139_p2), 0   ;;  %s370_s18 = sshll.u32 (!%p139_p2), %s365_s13, 1  ;;  %v432_v3 = vld [vmem:[%s517_s1 + $0x10] sm:$0xff] (!%p139_p2)  }
   0x6   : > { %142 = sbr.rel (%p139_p2) target bundleno = 257 (0x101), region = 32  ;;  %400 = vmatprep.subr.bf16.mxu0 (!%p139_p2), %v447_v1  ;;  %416 = vmatprep.mubr.msk.bf16.mxu0 (!%p139_p2), %vm448_vm0, %v447_v1  ;;  %p163_p3 = scmp.lt.s32.totalorder (!%p139_p2), %s370_s18, 3  ;;  %v433_v4 = vld [vmem:[%s517_s1 + $0x18] sm:$0xff] (!%p139_p2)   ;;  %v434_v5 = vld [vmem:[%s517_s1 + $0x20] sm:$0xff] (!%p139_p2)   ;;  %v435_v6 = vld [vmem:[%s517_s1 + $0x28] sm:$0xff] (!%p139_p2)   ;;  %vm253_vm1 = vcmask (!%p139_p2), 1043456  }
   0x7   : > { %401 = vmatpush3.bf16.msra.mxu0 (!%p139_p2), %v430_v0  ;;  %v436_v7 = vld [vmem:[%s517_s1 + $0x30] sm:$0xff] (!%p139_p2)   ;;  %v437_v8 = vld [vmem:[%s517_s1 + $0x38] ss:$0 sps:$4 sm:$0xff] (!%p139_p2)   ;;  %vm249_vm2 = vcmask (!%p139_p2), 982016   ;;  %v374_v11 = vld [vmem:[%s518_s2] ss:$0 sm:$0xff] (!%p139_p2) }
   0x8   : > { %402 = vmatprep.subr.bf16.mxu0 (!%p139_p2), %v447_v1  ;;  %v255_v9 = vsel (!%p139_p2), %vm253_vm1, %v437_v8, 0  ;;  %vm306_vm3 = vcmask (!%p139_p2), 322560  }
   0xb   : > { %403 = vmatpush3.bf16.msra.mxu0 (!%p139_p2), %v431_v2 }
   0xc   : > { %404 = vmatprep.subr.bf16.mxu0 (!%p139_p2), %v447_v1 }
   0xd   : > { %s521_s18 = smov (!%p163_p3, %s370_s18), 3 }
   0xe   : > { %s371_s21 = sshll.u32 %s521_s18, 2 }
   0xf   : > { %s166_s24 = scalar_lea.vmem %s516_s0, %s371_s21  ;;  %405 = vmatpush3.bf16.msra.mxu0 %v432_v3  ;;  %s172_s13 = scalar_lea.vmem %s519_s3, %s371_s21 }
  0x10   : > { %406 = vmatprep.subr.bf16.mxu0 %v447_v1  ;;  %v438_v10 = vld [vmem:[%s166_s24] sm:$0xff]  }
  0x13   : > { %407 = vmatpush3.bf16.msra.mxu0 %v433_v4 }
  0x14   : > { %408 = vmatprep.subr.bf16.mxu0 %v447_v1 }
  0x17   : > { %409 = vmatpush3.bf16.msra.mxu0 %v434_v5 }
  0x18   : > { %410 = vmatprep.subr.bf16.mxu0 %v447_v1 }
  0x1b   : > { %411 = vmatpush3.bf16.msra.mxu0 %v435_v6 }
  0x1c   : > { %412 = vmatprep.subr.bf16.mxu0 %v447_v1 }
  0x1f   : > { %413 = vmatpush3.bf16.msra.mxu0 %v436_v7 }
  0x20   : > { %414 = vmatprep.subr.bf16.mxu0 %v447_v1 }
  0x23   : > { %415 = vmatpush3.bf16.msra.mxu0 %v255_v9 }
  0x26   : > { %417 = vmatmul.mubr.msk.bf16.vlgmr.msra.gmra.mrb[0].mxu0 %vm249_vm2, %v438_v10 }
  0xf9   : > { %v291_v12 = vpop.f32.mrb[0].mxu0 }
  0xfa   : > { %v292_v13 = vadd.f32 %v374_v11, %v291_v12  ;;  %v418_v14 = vpop.f32.mrb[1].mxu0 }
  0xfb   : > { %v294_v15 = vpop.f32.mrb[2].mxu0 }
  0xfc   : > { %v389_v16 = vpack.c.bf16 %v292_v13, %v292_v13  ;;  %v295_v17 = vadd.f32 %v374_v11, %v294_v15  ;;  %v419_v18 = vpop.f32.mrb[3].mxu0 }
  0xfe   : > { %307 = vst.msk [vmem:[%s172_s13] sm:$0xf] %vm306_vm3, %v389_v16  ;;  %v390_v19 = vpack.c.bf16 %v295_v17, %v295_v17 }
 0x100   : > { %308 = vst.msk [vmem:[%s172_s13 + $0x4] sm:$0xf] %vm306_vm3, %v390_v19 }
 0x101 PF: > { %s13_s12 = sadd.s32 1, %s445_s12  }
 0x102   : > { %p10_p4 = scmp.ge.s32.totalorder %s13_s12, 4  }
 0x104   :  { %12 = sbr.rel (!%p10_p4) target bundleno = 1 (0x1), region = 62 }

// kernel: _lambda_.35
= control target key start
LH: loop header
LB: loop body
LE: loop exit
PB: predicated region body
PF: predicated region fallthrough
CT: control target
= control target key end

     0   :  { %s530_s12 = smov 0   ;;  %s658_s0 = inlined_call_operand.vmem [shape: bf16[2,4,4,120], index: 0, kind: input, shape index: {}]   ;;  %s659_s1 = inlined_call_operand.vmem [shape: f32[9,1,120], index: 1, kind: input, shape index: {}]   ;;  %s660_s2 = inlined_call_operand.vmem [shape: f32[1,1,120], index: 2, kind: input, shape index: {}]   ;;  %s661_s3 = inlined_call_operand.vmem [shape: bf16[2,4,4,120], index: 3, kind: output, shape index: {}]  }
   0x1 LB: > { %s461_s13 = sadd.s32 4294967295, %s507_s12   ;;  %p465_p0 = scmp.ge.s32.totalorder %s507_s12, 1  ;;  %s507_s12 = sphi %s530_s12, %s13_s12  }
   0x2   : > { %p137_p1 = scmp.lt.s32.totalorder %s507_s12, 3 }
   0x4   : > { %p138_p2 = pnand %p465_p0, %p137_p1 }
   0x5   : > { %vm171_vm0 = vcmask (!%p138_p2), 979968   ;;  %vm175_vm1 = vcmask (!%p138_p2), 974848   ;;  %p538_p3 = scmp.lt.s32.totalorder (!%p138_p2), %s461_s13, 1  ;;  %v509_v0 = vmov (!%p138_p2), 0.0   ;;  %vm197_vm2 = vcmask (!%p138_p2), 977920  }
   0x6   : > { %141 = sbr.rel (%p138_p2) target bundleno = 59 (0x3b), region = 32  ;;  %172 = vst.msk [vmem:[#allocation2] sm:$0x3f] (!%p138_p2), %vm171_vm0, %v509_v0  ;;  %174 = vst.msk [vmem:[#allocation2 + $0x28] sm:$0x3f] (!%p138_p2), %vm171_vm0, %v509_v0  ;;  %vm401_vm3 = vcmask (!%p138_p2), 975872  }
   0x7   : > { %177 = vst.msk [vmem:[#allocation2 + $0x8] sm:$0x1] (!%p138_p2), %vm175_vm1, %v509_v0  ;;  %178 = vst.msk [vmem:[#allocation2 + $0x10] sm:$0x1] (!%p138_p2), %vm175_vm1, %v509_v0  ;;  %v567_v1 = vld [vmem:[%s659_s1 + $0x1] ss:$0 sm:$0xff] (!%p138_p2) }
   0x8   : > { %179 = vst.msk [vmem:[#allocation2 + $0x18] sm:$0x1] (!%p138_p2), %vm175_vm1, %v509_v0  ;;  %180 = vst.msk [vmem:[#allocation2 + $0x20] sm:$0x1] (!%p138_p2), %vm175_vm1, %v509_v0  ;;  %v470_v9 = vld [vmem:[%s659_s1] ss:$0 sm:$0xff] (!%p138_p2) }
   0x9   : > { %183 = vst.msk [vmem:[#allocation2 + $0xd] sm:$0x1] (!%p138_p2), %vm175_vm1, %v509_v0  ;;  %184 = vst.msk [vmem:[#allocation2 + $0x15] sm:$0x1] (!%p138_p2), %vm175_vm1, %v509_v0  ;;  %v575_v12 = vld [vmem:[%s659_s1 + $0x2] ss:$0 sm:$0xff] (!%p138_p2) }
   0xa   : > { %185 = vst.msk [vmem:[#allocation2 + $0x1d] sm:$0x1] (!%p138_p2), %vm175_vm1, %v509_v0  ;;  %186 = vst.msk [vmem:[#allocation2 + $0x25] sm:$0x1] (!%p138_p2), %vm175_vm1, %v509_v0  ;;  %v586_v19 = vld [vmem:[%s659_s1 + $0x3] ss:$0 sm:$0xff] (!%p138_p2) }
   0xb   : > { %176 = vst.msk [vmem:[#allocation2] sm:$0x1] (!%p138_p2), %vm175_vm1, %v509_v0  ;;  %181 = vst.msk [vmem:[#allocation2 + $0x28] sm:$0x1] (!%p138_p2), %vm175_vm1, %v509_v0  ;;  %v591_v23 = vld [vmem:[%s659_s1 + $0x4] ss:$0 sm:$0xff] (!%p138_p2) }
   0xc   : > { %182 = vst.msk [vmem:[#allocation2 + $0x5] sm:$0x1] (!%p138_p2), %vm175_vm1, %v509_v0  ;;  %187 = vst.msk [vmem:[#allocation2 + $0x2d] sm:$0x1] (!%p138_p2), %vm175_vm1, %v509_v0  ;;  %v597_v26 = vld [vmem:[%s659_s1 + $0x5] ss:$0 sm:$0xff] (!%p138_p2) }
   0xd   : > { %s664_s13 = smov (!%p538_p3, %s461_s13), 1  ;;  %v217_v11 = vld [vmem:[#allocation2 + $0x1] sm:$0xf]  ;;  %v603_v32 = vld [vmem:[%s659_s1 + $0x6] ss:$0 sm:$0xff] }
   0xe   : > { %s490_s15 = sshll.u32 %s664_s13, 3  ;;  %v229_v14 = vmul.f32 %v567_v1, %v217_v11  ;;  %v608_v33 = vld [vmem:[%s659_s1 + $0x7] ss:$0 sm:$0xff]  ;;  %v616_v46 = vld [vmem:[%s659_s1 + $0x8] ss:$0 sm:$0xff] }
   0xf   : > { %s165_s18 = scalar_lea.vmem %s658_s0, %s490_s15  ;;  %s170_s17 = scalar_lea.vmem %s661_s3, %s490_s15 }
  0x10   : > { %v188_v2 = vld [vmem:[%s165_s18] sm:$0x3]  ;;  %v189_v3 = vld [vmem:[%s165_s18 + $0x2] sm:$0x3]  ;;  %v190_v4 = vld [vmem:[%s165_s18 + $0x4] sm:$0x3] }
  0x11   : > { %v192_v5 = vunpack.c.l.bf16 %v188_v2  ;;  %v193_v6 = vunpack.c.l.bf16 %v189_v3  ;;  %v194_v7 = vunpack.c.l.bf16 %v190_v4  ;;  %v191_v8 = vld [vmem:[%s165_s18 + $0x6] sm:$0x3] }
  0x12   : > { %v195_v10 = vunpack.c.l.bf16 %v191_v8  ;;  %v202_v13 = vld [vmem:[#allocation2] sm:$0xf] }
  0x13   : > { %198 = vst.msk [vmem:[#allocation2 + $0x9] sm:$0xf] %vm197_vm2, %v192_v5  ;;  %199 = vst.msk [vmem:[#allocation2 + $0x11] sm:$0xf] %vm197_vm2, %v193_v6  ;;  %v237_v15 = vld [vmem:[#allocation2 + $0x2] sm:$0xf]  ;;  %v213_v16 = vmul.f32 %v470_v9, %v202_v13 }
  0x14   : > { %200 = vst.msk [vmem:[#allocation2 + $0x19] sm:$0xf] %vm197_vm2, %v194_v7  ;;  %201 = vst.msk [vmem:[#allocation2 + $0x21] sm:$0xf] %vm197_vm2, %v195_v10  ;;  %v249_v17 = vmul.f32 %v575_v12, %v237_v15 }
  0x15   : > { %v233_v18 = vadd.f32 %v229_v14, %v213_v16 }
  0x17   : > { %v253_v20 = vadd.f32 %v249_v17, %v233_v18 }
  0x1a   : > { %v257_v21 = vld [vmem:[#allocation2 + $0x8] sm:$0xf]  ;;  %v318_v36 = vld [vmem:[#allocation2 + $0x10] sm:$0xf] }
  0x1b   : > { %v277_v22 = vld [vmem:[#allocation2 + $0x9] sm:$0xf]  ;;  %v269_v24 = vmul.f32 %v586_v19, %v257_v21  ;;  %v338_v37 = vld [vmem:[#allocation2 + $0x11] sm:$0xf]  ;;  %v330_v51 = vmul.f32 %v603_v32, %v318_v36  ;;  %v259_v56 = vld [vmem:[#allocation2 + $0x18] sm:$0xf] }
  0x1c   : > { %v297_v25 = vld [vmem:[#allocation2 + $0xa] sm:$0xf]  ;;  %v289_v31 = vmul.f32 %v591_v23, %v277_v22  ;;  %v258_v38 = vld [vmem:[#allocation2 + $0x10] sm:$0xf]  ;;  %v350_v57 = vmul.f32 %v608_v33, %v338_v37  ;;  %v279_v60 = vld [vmem:[#allocation2 + $0x19] sm:$0xf]  ;;  %v271_v10 = vmul.f32 %v586_v19, %v259_v56 }
  0x1d   : > { %v203_v27 = vld [vmem:[#allocation2 + $0x8] sm:$0xf]  ;;  %v273_v30 = vadd.f32 %v269_v24, %v253_v20  ;;  %v309_v40 = vmul.f32 %v597_v26, %v297_v25  ;;  %v204_v43 = vld [vmem:[#allocation2 + $0x10] sm:$0xf]  ;;  %v270_v54 = vmul.f32 %v586_v19, %v258_v38  ;;  %v205_v61 = vld [vmem:[#allocation2 + $0x18] sm:$0xf]  ;;  %v291_v16 = vmul.f32 %v591_v23, %v279_v60 }
  0x1e   : > { %v218_v28 = vld [vmem:[#allocation2 + $0x9] sm:$0xf]  ;;  %v214_v34 = vmul.f32 %v470_v9, %v203_v27  ;;  %v219_v44 = vld [vmem:[#allocation2 + $0x11] sm:$0xf]  ;;  %v215_v48 = vmul.f32 %v470_v9, %v204_v43  ;;  %v220_v62 = vld [vmem:[#allocation2 + $0x19] sm:$0xf]  ;;  %v216_v3 = vmul.f32 %v470_v9, %v205_v61 }
  0x1f   : > { %v238_v29 = vld [vmem:[#allocation2 + $0xa] sm:$0xf]  ;;  %v230_v35 = vmul.f32 %v567_v1, %v218_v28  ;;  %v293_v39 = vadd.f32 %v289_v31, %v273_v30  ;;  %v239_v45 = vld [vmem:[#allocation2 + $0x12] sm:$0xf]  ;;  %v231_v49 = vmul.f32 %v567_v1, %v219_v44  ;;  %v240_v4 = vld [vmem:[#allocation2 + $0x1a] sm:$0xf]  ;;  %v232_v11 = vmul.f32 %v567_v1, %v220_v62 }
  0x20   : > { %v250_v42 = vmul.f32 %v575_v12, %v238_v29  ;;  %v278_v47 = vld [vmem:[#allocation2 + $0x11] sm:$0xf]  ;;  %v251_v59 = vmul.f32 %v575_v12, %v239_v45  ;;  %v260_v5 = vld [vmem:[#allocation2 + $0x20] sm:$0xf]  ;;  %v319_v7 = vld [vmem:[#allocation2 + $0x18] sm:$0xf]  ;;  %v252_v22 = vmul.f32 %v575_v12, %v240_v4 }
  0x21   : > { %v234_v41 = vadd.f32 %v230_v35, %v214_v34  ;;  %v313_v50 = vadd.f32 %v309_v40, %v293_v39  ;;  %v358_v52 = vld [vmem:[#allocation2 + $0x12] sm:$0xf]  ;;  %v235_v58 = vadd.f32 %v231_v49, %v215_v48  ;;  %v290_v2 = vmul.f32 %v591_v23, %v278_v47  ;;  %v299_v17 = vld [vmem:[#allocation2 + $0x1a] sm:$0xf]  ;;  %v487_v9 = vld [vmem:[%s660_s2] ss:$0 sm:$0xff] }
  0x22   : > { %v298_v55 = vld [vmem:[#allocation2 + $0x12] sm:$0xf]  ;;  %v370_v6 = vmul.f32 %v616_v46, %v358_v52  ;;  %v339_v18 = vld [vmem:[#allocation2 + $0x19] sm:$0xf]  ;;  %v236_v21 = vadd.f32 %v232_v11, %v216_v3  ;;  %v272_v24 = vmul.f32 %v586_v19, %v260_v5  ;;  %v331_v27 = vmul.f32 %v603_v32, %v319_v7  ;;  %v320_v28 = vld [vmem:[#allocation2 + $0x20] sm:$0xf] }
  0x23   : > { %v254_v53 = vadd.f32 %v250_v42, %v234_v41  ;;  %v334_v63 = vadd.f32 %v330_v51, %v313_v50  ;;  %v255_v8 = vadd.f32 %v251_v59, %v235_v58  ;;  %v310_v15 = vmul.f32 %v597_v26, %v298_v55  ;;  %v280_v29 = vld [vmem:[#allocation2 + $0x21] sm:$0xf]  ;;  %v359_v30 = vld [vmem:[#allocation2 + $0x1a] sm:$0xf]  ;;  %v321_v36 = vld [vmem:[#allocation2 + $0x28] sm:$0xf] }
  0x24   : > { %v311_v34 = vmul.f32 %v597_v26, %v299_v17  ;;  %v256_v35 = vadd.f32 %v252_v22, %v236_v21  ;;  %v351_v39 = vmul.f32 %v608_v33, %v339_v18  ;;  %v340_v40 = vld [vmem:[#allocation2 + $0x21] sm:$0xf]  ;;  %v332_v19 = vmul.f32 %v603_v32, %v320_v28  ;;  %v341_v56 = vld [vmem:[#allocation2 + $0x29] sm:$0xf] }
  0x25   : > { %v274_v0 = vadd.f32 %v270_v54, %v254_v53  ;;  %v354_v13 = vadd.f32 %v350_v57, %v334_v63  ;;  %v275_v20 = vadd.f32 %v271_v10, %v255_v8  ;;  %v300_v12 = vld [vmem:[#allocation2 + $0x22] sm:$0xf]  ;;  %v292_v43 = vmul.f32 %v591_v23, %v280_v29  ;;  %v361_v60 = vld [vmem:[#allocation2 + $0x2a] sm:$0xf] }
  0x26   : > { %v276_v42 = vadd.f32 %v272_v24, %v256_v35  ;;  %v371_v47 = vmul.f32 %v616_v46, %v359_v30  ;;  %v360_v48 = vld [vmem:[#allocation2 + $0x22] sm:$0xf]  ;;  %v333_v49 = vmul.f32 %v603_v32, %v321_v36  ;;  %v352_v51 = vmul.f32 %v608_v33, %v340_v40 }
  0x27   : > { %v294_v14 = vadd.f32 %v290_v2, %v274_v0  ;;  %v374_v25 = vadd.f32 %v370_v6, %v354_v13  ;;  %v295_v31 = vadd.f32 %v291_v16, %v275_v20  ;;  %v312_v53 = vmul.f32 %v597_v26, %v300_v12 }
  0x28   : > { %v296_v52 = vadd.f32 %v292_v43, %v276_v42  ;;  %v372_v57 = vmul.f32 %v616_v46, %v360_v48  ;;  %v353_v26 = vmul.f32 %v608_v33, %v341_v56  ;;  %v373_v3 = vmul.f32 %v616_v46, %v361_v60 }
  0x29   : > { %v314_v1 = vadd.f32 %v310_v15, %v294_v14  ;;  %v385_v37 = vadd.f32 %v487_v9, %v374_v25  ;;  %v315_v41 = vadd.f32 %v311_v34, %v295_v31 }
  0x2a   : > { %v316_v58 = vadd.f32 %v312_v53, %v296_v52 }
  0x2b   : > { %v335_v38 = vadd.f32 %v331_v27, %v314_v1  ;;  %v389_v44 = vmax.f32 %v385_v37, 0.0  ;;  %v336_v50 = vadd.f32 %v332_v19, %v315_v41 }
  0x2c   : > { %v337_v62 = vadd.f32 %v333_v49, %v316_v58 }
  0x2d   : > { %v355_v45 = vadd.f32 %v351_v39, %v335_v38  ;;  %v393_v54 = vmin.f32 %v389_v44, 6.0  ;;  %v356_v23 = vadd.f32 %v352_v51, %v336_v50 }
  0x2e   : > { %v357_v2 = vadd.f32 %v353_v26, %v337_v62 }
  0x2f   : > { %v375_v55 = vadd.f32 %v371_v47, %v355_v45  ;;  %v397_v32 = vpack.c.bf16 %v393_v54, %v393_v54  ;;  %v376_v61 = vadd.f32 %v372_v57, %v356_v23 }
  0x30   : > { %v377_v6 = vadd.f32 %v373_v3, %v357_v2 }
  0x31   : > { %v386_v59 = vadd.f32 %v487_v9, %v375_v55  ;;  %402 = vst.msk [vmem:[%s170_s17] sm:$0x3] %vm401_vm3, %v397_v32  ;;  %v387_v0 = vadd.f32 %v487_v9, %v376_v61 }
  0x32   : > { %v388_v10 = vadd.f32 %v487_v9, %v377_v6 }
  0x33   : > { %v390_v63 = vmax.f32 %v386_v59, 0.0  ;;  %v391_v5 = vmax.f32 %v387_v0, 0.0 }
  0x34   : > { %v392_v13 = vmax.f32 %v388_v10, 0.0 }
  0x35   : > { %v394_v4 = vmin.f32 %v390_v63, 6.0  ;;  %v395_v8 = vmin.f32 %v391_v5, 6.0 }
  0x36   : > { %v396_v33 = vmin.f32 %v392_v13, 6.0 }
  0x37   : > { %v398_v7 = vpack.c.bf16 %v394_v4, %v394_v4  ;;  %v399_v11 = vpack.c.bf16 %v395_v8, %v395_v8 }
  0x38   : > { %v400_v14 = vpack.c.bf16 %v396_v33, %v396_v33 }
  0x39   : > { %403 = vst.msk [vmem:[%s170_s17 + $0x2] sm:$0x3] %vm401_vm3, %v398_v7  ;;  %404 = vst.msk [vmem:[%s170_s17 + $0x4] sm:$0x3] %vm401_vm3, %v399_v11 }
  0x3a   : > { %405 = vst.msk [vmem:[%s170_s17 + $0x6] sm:$0x3] %vm401_vm3, %v400_v14 }
  0x3b PF: > { %s13_s12 = sadd.s32 1, %s507_s12  }
  0x3c   : > { %p10_p4 = scmp.ge.s32.totalorder %s13_s12, 4  }
  0x3e   :  { %12 = sbr.rel (!%p10_p4) target bundleno = 1 (0x1), region = 73 }

// kernel: _lambda_.40
= control target key start
LH: loop header
LB: loop body
LE: loop exit
PB: predicated region body
PF: predicated region fallthrough
CT: control target
= control target key end

     0   :  { %s408_s12 = smov 0   ;;  %s437_s0 = inlined_call_operand.vmem [shape: bf16[32,40], index: 0, kind: input, shape index: {}]   ;;  %s438_s1 = inlined_call_operand.vmem [shape: bf16[40,80], index: 1, kind: input, shape index: {}]   ;;  %s439_s2 = inlined_call_operand.vmem [shape: f32[1,80], index: 2, kind: input, shape index: {}]   ;;  %s440_s3 = inlined_call_operand.vmem [shape: bf16[32,80], index: 3, kind: output, shape index: {}]  }
   0x1 LB: > { %s329_s13 = sadd.s32 4294967295, %s384_s12   ;;  %p333_p0 = scmp.ge.s32.totalorder %s384_s12, 1  ;;  %s384_s12 = sphi %s408_s12, %s13_s12  }
   0x2   : > { %p138_p1 = scmp.lt.s32.totalorder %s384_s12, 3 }
   0x4   : > { %p139_p2 = pnand %p333_p0, %p138_p1 }
   0x5   : > { %v374_v0 = vld [vmem:[%s438_s1] sm:$0xff] (!%p139_p2)   ;;  %v386_v1 = vmov (!%p139_p2), 0.0   ;;  %v375_v2 = vld [vmem:[%s438_s1 + $0x8] sm:$0xff] (!%p139_p2)   ;;  %s334_s18 = sshll.u32 (!%p139_p2), %s329_s13, 1  ;;  %v376_v3 = vld [vmem:[%s438_s1 + $0x10] ss:$0 sps:$4 sm:$0xff] (!%p139_p2)  }
   0x6   : > { %142 = sbr.rel (%p139_p2) target bundleno = 241 (0xf1), region = 32  ;;  %354 = vmatprep.subr.bf16.mxu0 (!%p139_p2), %v386_v1  ;;  %vm387_vm0 = vmmov (!%p139_p2), 0   ;;  %p163_p3 = scmp.lt.s32.totalorder (!%p139_p2), %s334_s18, 3  ;;  %vm213_vm1 = vcmask (!%p139_p2), 1043456   ;;  %vm209_vm2 = vcmask (!%p139_p2), 326656   ;;  %vm270_vm3 = vcmask (!%p139_p2), 650240  }
   0x7   : > { %355 = vmatpush3.bf16.msra.mxu0 (!%p139_p2), %v374_v0  ;;  %360 = vmatprep.mubr.msk.bf16.mxu0 (!%p139_p2), %vm387_vm0, %v386_v1  ;;  %v215_v4 = vsel (!%p139_p2), %vm213_vm1, %v376_v3, 0  ;;  %v338_v6 = vld [vmem:[%s439_s2] ss:$0 sm:$0xff] (!%p139_p2) }
   0x8   : > { %356 = vmatprep.subr.bf16.mxu0 (!%p139_p2), %v386_v1 }
   0xb   : > { %357 = vmatpush3.bf16.msra.mxu0 (!%p139_p2), %v375_v2 }
   0xc   : > { %358 = vmatprep.subr.bf16.mxu0 (!%p139_p2), %v386_v1 }
   0xd   : > { %s442_s18 = smov (!%p163_p3, %s334_s18), 3 }
   0xe   : > { %s335_s21 = sshll.u32 %s442_s18, 2 }
   0xf   : > { %s166_s24 = scalar_lea.vmem %s437_s0, %s335_s21  ;;  %359 = vmatpush3.bf16.msra.mxu0 %v215_v4  ;;  %s172_s29 = scalar_lea.vmem %s440_s3, %s335_s21 }
  0x10   : > { %v377_v5 = vld [vmem:[%s166_s24] sm:$0xff]  }
  0x12   : > { %361 = vmatmul.mubr.msk.bf16.vlgmr.msra.gmra.mrb[0].mxu0 %vm209_vm2, %v377_v5 }
  0xe5   : > { %v251_v7 = vpop.f32.mrb[0].mxu0 }
  0xe6   : > { %v252_v8 = vadd.f32 %v338_v6, %v251_v7  ;;  %v362_v9 = vpop.f32.mrb[1].mxu0 }
  0xe7   : > { %v254_v10 = vpop.f32.mrb[2].mxu0 }
  0xe8   : > { %v258_v11 = vmax.f32 %v252_v8, 0.0  ;;  %v255_v12 = vadd.f32 %v338_v6, %v254_v10  ;;  %v363_v13 = vpop.f32.mrb[3].mxu0 }
  0xea   : > { %v260_v14 = vmin.f32 %v258_v11, 6.0  ;;  %v259_v15 = vmax.f32 %v255_v12, 0.0 }
  0xec   : > { %v348_v16 = vpack.c.bf16 %v260_v14, %v260_v14  ;;  %v261_v17 = vmin.f32 %v259_v15, 6.0 }
  0xee   : > { %271 = vst.msk [vmem:[%s172_s29] sm:$0xf] %vm270_vm3, %v348_v16  ;;  %v349_v18 = vpack.c.bf16 %v261_v17, %v261_v17 }
  0xf0   : > { %272 = vst.msk [vmem:[%s172_s29 + $0x4] sm:$0xf] %vm270_vm3, %v349_v18 }
  0xf1 PF: > { %s13_s12 = sadd.s32 1, %s384_s12  }
  0xf2   : > { %p10_p4 = scmp.ge.s32.totalorder %s13_s12, 4  }
  0xf4   :  { %12 = sbr.rel (!%p10_p4) target bundleno = 1 (0x1), region = 62 }

// kernel: _lambda_.39
= control target key start
LH: loop header
LB: loop body
LE: loop exit
PB: predicated region body
PF: predicated region fallthrough
CT: control target
= control target key end

     0   :  { %s547_s15 = smov 0   ;;  %s599_s0 = inlined_call_operand.vmem [shape: bf16[32,120], index: 0, kind: input, shape index: {}]   ;;  %s600_s1 = inlined_call_operand.vmem [shape: bf16[120,40], index: 1, kind: input, shape index: {}]   ;;  %s601_s2 = inlined_call_operand.vmem [shape: f32[1,40], index: 2, kind: input, shape index: {}]   ;;  %s602_s3 = inlined_call_operand.vmem [shape: bf16[32,40], index: 3, kind: input, shape index: {}]   ;;  %s603_s4 = inlined_call_operand.vmem [shape: bf16[32,40], index: 4, kind: output, shape index: {}]  }
   0x1 LB: > { %s432_s16 = sadd.s32 4294967295, %s518_s15   ;;  %p436_p0 = scmp.ge.s32.totalorder %s518_s15, 1  ;;  %s518_s15 = sphi %s547_s15, %s14_s15  }
   0x2   : > { %p174_p1 = scmp.lt.s32.totalorder %s518_s15, 3 }
   0x4   : > { %p175_p2 = pnand %p436_p0, %p174_p1 }
   0x5   : > { %v503_v0 = vld [vmem:[%s600_s1] sm:$0xff] (!%p175_p2)   ;;  %v520_v1 = vmov (!%p175_p2), 0.0   ;;  %v504_v2 = vld [vmem:[%s600_s1 + $0x8] sm:$0xff] (!%p175_p2)   ;;  %vm521_vm0 = vmmov (!%p175_p2), 0   ;;  %s437_s21 = sshll.u32 (!%p175_p2), %s432_s16, 1  ;;  %v505_v3 = vld [vmem:[%s600_s1 + $0x10] sm:$0xff] (!%p175_p2)  }
   0x6   : > { %178 = sbr.rel (%p175_p2) target bundleno = 259 (0x103), region = 36  ;;  %473 = vmatprep.subr.bf16.mxu0 (!%p175_p2), %v520_v1  ;;  %489 = vmatprep.mubr.msk.bf16.mxu0 (!%p175_p2), %vm521_vm0, %v520_v1  ;;  %p206_p3 = scmp.lt.s32.totalorder (!%p175_p2), %s437_s21, 3  ;;  %v506_v4 = vld [vmem:[%s600_s1 + $0x18] sm:$0xff] (!%p175_p2)   ;;  %v507_v5 = vld [vmem:[%s600_s1 + $0x20] sm:$0xff] (!%p175_p2)   ;;  %v508_v6 = vld [vmem:[%s600_s1 + $0x28] sm:$0xff] (!%p175_p2)   ;;  %vm302_vm1 = vcmask (!%p175_p2), 1043456  }
   0x7   : > { %474 = vmatpush3.bf16.msra.mxu0 (!%p175_p2), %v503_v0  ;;  %v509_v7 = vld [vmem:[%s600_s1 + $0x30] sm:$0xff] (!%p175_p2)   ;;  %v510_v8 = vld [vmem:[%s600_s1 + $0x38] ss:$0 sps:$4 sm:$0xff] (!%p175_p2)   ;;  %vm298_vm2 = vcmask (!%p175_p2), 982016   ;;  %v443_v12 = vld [vmem:[%s601_s2] ss:$0 sm:$0xff] (!%p175_p2) }
   0x8   : > { %475 = vmatprep.subr.bf16.mxu0 (!%p175_p2), %v520_v1  ;;  %v304_v9 = vsel (!%p175_p2), %vm302_vm1, %v510_v8, 0  ;;  %vm361_vm3 = vcmask (!%p175_p2), 322560  }
   0xb   : > { %476 = vmatpush3.bf16.msra.mxu0 (!%p175_p2), %v504_v2 }
   0xc   : > { %477 = vmatprep.subr.bf16.mxu0 (!%p175_p2), %v520_v1 }
   0xd   : > { %s605_s21 = smov (!%p206_p3, %s437_s21), 3 }
   0xe   : > { %s564_s24 = sshll.u32 %s605_s21, 2 }
   0xf   : > { %s209_s27 = scalar_lea.vmem %s599_s0, %s564_s24  ;;  %478 = vmatpush3.bf16.msra.mxu0 %v505_v3  ;;  %s215_s14 = scalar_lea.vmem %s602_s3, %s564_s24 }
  0x10   : > { %479 = vmatprep.subr.bf16.mxu0 %v520_v1  ;;  %v511_v10 = vld [vmem:[%s209_s27] sm:$0xff]   ;;  %s221_s20 = scalar_lea.vmem %s603_s4, %s564_s24 }
  0x11   : > { %v461_v11 = vld [vmem:[%s215_s14] sm:$0xff]  }
  0x12   : > { %v462_v13 = vunpack.c.l.bf16 %v461_v11  ;;  %v463_v17 = vunpack.c.h.bf16 %v461_v11 }
  0x13   : > { %480 = vmatpush3.bf16.msra.mxu0 %v506_v4 }
  0x14   : > { %481 = vmatprep.subr.bf16.mxu0 %v520_v1 }
  0x17   : > { %482 = vmatpush3.bf16.msra.mxu0 %v507_v5 }
  0x18   : > { %483 = vmatprep.subr.bf16.mxu0 %v520_v1 }
  0x1b   : > { %484 = vmatpush3.bf16.msra.mxu0 %v508_v6 }
  0x1c   : > { %485 = vmatprep.subr.bf16.mxu0 %v520_v1 }
  0x1f   : > { %486 = vmatpush3.bf16.msra.mxu0 %v509_v7 }
  0x20   : > { %487 = vmatprep.subr.bf16.mxu0 %v520_v1 }
  0x23   : > { %488 = vmatpush3.bf16.msra.mxu0 %v304_v9 }
  0x26   : > { %490 = vmatmul.mubr.msk.bf16.vlgmr.msra.gmra.mrb[0].mxu0 %vm298_vm2, %v511_v10 }
  0xf9   : > { %v340_v14 = vpop.f32.mrb[0].mxu0 }
  0xfa   : > { %v341_v15 = vadd.f32 %v443_v12, %v340_v14  ;;  %v491_v16 = vpop.f32.mrb[1].mxu0 }
  0xfb   : > { %v343_v18 = vpop.f32.mrb[2].mxu0 }
  0xfc   : > { %v351_v19 = vadd.f32 %v462_v13, %v341_v15  ;;  %v344_v20 = vadd.f32 %v443_v12, %v343_v18  ;;  %v492_v21 = vpop.f32.mrb[3].mxu0 }
  0xfe   : > { %v458_v22 = vpack.c.bf16 %v351_v19, %v351_v19  ;;  %v352_v23 = vadd.f32 %v463_v17, %v344_v20 }
 0x100   : > { %362 = vst.msk [vmem:[%s221_s20] sm:$0xf] %vm361_vm3, %v458_v22  ;;  %v459_v24 = vpack.c.bf16 %v352_v23, %v352_v23 }
 0x102   : > { %363 = vst.msk [vmem:[%s221_s20 + $0x4] sm:$0xf] %vm361_vm3, %v459_v24 }
 0x103 PF: > { %s14_s15 = sadd.s32 1, %s518_s15  }
 0x104   : > { %p11_p4 = scmp.ge.s32.totalorder %s14_s15, 4  }
 0x106   :  { %13 = sbr.rel (!%p11_p4) target bundleno = 1 (0x1), region = 69 }

// kernel: _lambda_.41
= control target key start
LH: loop header
LB: loop body
LE: loop exit
PB: predicated region body
PF: predicated region fallthrough
CT: control target
= control target key end

     0   :  { %s469_s12 = smov 0   ;;  %s523_s0 = inlined_call_operand.vmem [shape: bf16[32,80], index: 0, kind: input, shape index: {}]   ;;  %s524_s1 = inlined_call_operand.vmem [shape: bf16[80,240], index: 1, kind: input, shape index: {}]   ;;  %s525_s2 = inlined_call_operand.vmem [shape: f32[1,240], index: 2, kind: input, shape index: {}]   ;;  %s526_s3 = inlined_call_operand.vmem [shape: bf16[32,240], index: 3, kind: output, shape index: {}]  }
   0x1 LB: > { %s386_s13 = sadd.s32 4294967295, %s446_s12   ;;  %p390_p0 = scmp.ge.s32.totalorder %s446_s12, 1  ;;  %s446_s12 = sphi %s469_s12, %s13_s12  }
   0x2   : > { %p138_p1 = scmp.lt.s32.totalorder %s446_s12, 3 }
   0x4   : > { %p139_p2 = pnand %p390_p0, %p138_p1 }
   0x5   : > { %v424_v0 = vld [vmem:[%s524_s1 + $0x4] ss:$8 sps:$4 sm:$0xff] (!%p139_p2)   ;;  %s391_s16 = sshll.u32 (!%p139_p2), %s386_s13, 1  ;;  %v426_v1 = vld [vmem:[%s524_s1] ss:$8 sps:$4 sm:$0xff] (!%p139_p2)   ;;  %v448_v2 = vmov (!%p139_p2), 0   ;;  %v191_v12 = vlaneseq (!%p139_p2) }
   0x6   : > { %142 = sbr.rel (%p139_p2) target bundleno = 250 (0xfa), region = 32  ;;  %292 = vmatprep.mubr.bf16.mxu0 (!%p139_p2), %v448_v2  ;;  %p164_p3 = scmp.lt.s32.totalorder (!%p139_p2), %s391_s16, 3  ;;  %260 = vmatprep.subr.bf16.mxu0 (!%p139_p2), %v424_v0  ;;  %v427_v3 = vld [vmem:[%s524_s1 + $0x14] ss:$8 sps:$4 sm:$0xff] (!%p139_p2)   ;;  %v429_v4 = vld [vmem:[%s524_s1 + $0x10] ss:$8 sps:$4 sm:$0xff] (!%p139_p2)  }
   0x7   : > { %261 = vmatpush1.bf16.msra.mxu0 (!%p139_p2), %v426_v1  ;;  %v430_v5 = vld [vmem:[%s524_s1 + $0x24] ss:$8 sps:$4 sm:$0xff] (!%p139_p2)   ;;  %v432_v6 = vld [vmem:[%s524_s1 + $0x20] ss:$8 sps:$4 sm:$0xff] (!%p139_p2)   ;;  %v433_v7 = vld [vmem:[%s524_s1 + $0x34] ss:$8 sps:$4 sm:$0xff] (!%p139_p2)  }
   0x8   : > { %262 = vmatprep.subr.bf16.mxu0 (!%p139_p2), %v427_v3  ;;  %v435_v8 = vld [vmem:[%s524_s1 + $0x30] ss:$8 sps:$4 sm:$0xff] (!%p139_p2)   ;;  %v436_v9 = vld [vmem:[%s524_s1 + $0x44] ss:$8 sps:$4 sm:$0xff] (!%p139_p2)   ;;  %v438_v10 = vld [vmem:[%s524_s1 + $0x40] ss:$8 sps:$4 sm:$0xff] (!%p139_p2)  }
   0x9   : > { %vm256_vm0 = vcmask (!%p139_p2), 654336   ;;  %v192_v13 = vshrl.u32 (!%p139_p2), %v191_v12, 7  ;;  %v189_v15 = vld [vmem:[%s525_s2] sm:$0x3] (!%p139_p2)  ;;  %vm323_vm1 = vcmask (!%p139_p2), 1043456   ;;  %vm324_vm2 = vcmask (!%p139_p2), 916484  }
   0xa   : > { %vm325_vm3 = vmor (!%p139_p2), %vm324_vm2, %vm323_vm1 }
   0xb   : > { %263 = vmatpush1.bf16.msra.mxu0 (!%p139_p2), %v429_v4  ;;  %v193_v14 = vsub.s32 (!%p139_p2), 0, %v192_v13  ;;  %v197_v16 = vsub.s32 (!%p139_p2), 1, %v192_v13 }
   0xc   : > { %264 = vmatprep.subr.bf16.mxu0 (!%p139_p2), %v430_v5 }
   0xd   : > { %s528_s16 = smov (!%p164_p3, %s391_s16), 3  ;;  %v194_v17 = vrot.slane %v189_v15, %v193_v14  ;;  %v198_v18 = vrot.slane %v189_v15, %v197_v16 }
   0xe   : > { %s392_s25 = sshll.u32 %s528_s16, 2  ;;  %s412_s15 = sshll.u32 %s528_s16, 3 }
   0xf   : > { %s167_s28 = scalar_lea.vmem %s523_s0, %s392_s25  ;;  %265 = vmatpush1.bf16.msra.mxu0 %v432_v6  ;;  %s174_s19 = scalar_lea.vmem %s526_s3, %s412_s15 }
  0x10   : > { %266 = vmatprep.subr.bf16.mxu0 %v433_v7  ;;  %v439_v11 = vld [vmem:[%s167_s28] sm:$0xff]  }
  0x13   : > { %267 = vmatpush1.bf16.msra.mxu0 %v435_v8 }
  0x14   : > { %268 = vmatprep.subr.bf16.mxu0 %v436_v9 }
  0x17   : > { %269 = vmatpush1.bf16.msra.mxu0 %v438_v10 }
  0x1a   : > { %407 = vmatmul.mubr.msk.bf16.vlgmr.msra.gmra.mrb[0].mxu0 %vm256_vm0, %v439_v11 }
  0xed   : > { %v294_v19 = vpop.f32.mrb[0].mxu0 }
  0xee   : > { %v295_v20 = vadd.f32 %v294_v19, %v194_v17  ;;  %v296_v21 = vpop.f32.mrb[1].mxu0 }
  0xef   : > { %v297_v22 = vadd.f32 %v296_v21, %v198_v18  ;;  %v298_v23 = vpop.f32.mrb[2].mxu0 }
  0xf0   : > { %v303_v24 = vmax.f32 %v295_v20, 0.0  ;;  %v299_v25 = vadd.f32 %v298_v23, %v194_v17  ;;  %v300_v26 = vpop.f32.mrb[3].mxu0 }
  0xf1   : > { %v304_v27 = vmax.f32 %v297_v22, 0.0  ;;  %v301_v28 = vadd.f32 %v300_v26, %v198_v18 }
  0xf2   : > { %v307_v29 = vmin.f32 %v303_v24, 6.0  ;;  %v305_v30 = vmax.f32 %v299_v25, 0.0 }
  0xf3   : > { %v308_v31 = vmin.f32 %v304_v27, 6.0  ;;  %v306_v32 = vmax.f32 %v301_v28, 0.0 }
  0xf4   : > { %v309_v33 = vmin.f32 %v305_v30, 6.0 }
  0xf5   : > { %v413_v34 = vpack.c.bf16 %v308_v31, %v307_v29  ;;  %v310_v35 = vmin.f32 %v306_v32, 6.0 }
  0xf7   : > { %326 = vst.msk [vmem:[%s174_s19] sm:$0xff] %vm325_vm3, %v413_v34  ;;  %v414_v36 = vpack.c.bf16 %v310_v35, %v309_v33 }
  0xf9   : > { %327 = vst.msk [vmem:[%s174_s19 + $0x8] sm:$0xff] %vm325_vm3, %v414_v36 }
  0xfa PF: > { %s13_s12 = sadd.s32 1, %s446_s12  }
  0xfb   : > { %p10_p4 = scmp.ge.s32.totalorder %s13_s12, 4  }
  0xfd   :  { %12 = sbr.rel (!%p10_p4) target bundleno = 1 (0x1), region = 62 }

// kernel: _lambda_.43
= control target key start
LH: loop header
LB: loop body
LE: loop exit
PB: predicated region body
PF: predicated region fallthrough
CT: control target
= control target key end

     0   :  { %s520_s12 = smov 0   ;;  %s593_s0 = inlined_call_operand.vmem [shape: bf16[32,240], index: 0, kind: input, shape index: {}]   ;;  %s594_s1 = inlined_call_operand.vmem [shape: bf16[240,80], index: 1, kind: input, shape index: {}]   ;;  %s595_s2 = inlined_call_operand.vmem [shape: f32[1,80], index: 2, kind: input, shape index: {}]   ;;  %s596_s3 = inlined_call_operand.vmem [shape: bf16[32,80], index: 3, kind: output, shape index: {}]  }
   0x1 LB: > { %s428_s13 = sadd.s32 4294967295, %s497_s12   ;;  %p432_p0 = scmp.ge.s32.totalorder %s497_s12, 1  ;;  %s497_s12 = sphi %s520_s12, %s13_s12  }
   0x2   : > { %p139_p1 = scmp.lt.s32.totalorder %s497_s12, 3 }
   0x4   : > { %p140_p2 = pnand %p432_p0, %p139_p1 }
   0x5   : > { %v473_v0 = vld [vmem:[%s594_s1] sm:$0xff] (!%p140_p2)   ;;  %v499_v1 = vmov (!%p140_p2), 0   ;;  %s433_s16 = sshll.u32 (!%p140_p2), %s428_s13, 1  ;;  %v474_v2 = vld [vmem:[%s594_s1 + $0x8] sm:$0xff] (!%p140_p2)   ;;  %v475_v3 = vld [vmem:[%s594_s1 + $0x10] sm:$0xff] (!%p140_p2)   ;;  %vm316_vm0 = vcmask (!%p140_p2), 916480  }
   0x6   : > { %143 = sbr.rel (%p140_p2) target bundleno = 285 (0x11d), region = 32  ;;  %320 = vmatprep.subr.bf16.mxu0 (!%p140_p2), %v499_v1  ;;  %p165_p3 = scmp.lt.s32.totalorder (!%p140_p2), %s433_s16, 3  ;;  %v476_v4 = vld [vmem:[%s594_s1 + $0x18] sm:$0xff] (!%p140_p2)   ;;  %v477_v5 = vld [vmem:[%s594_s1 + $0x20] sm:$0xff] (!%p140_p2)   ;;  %v478_v7 = vld [vmem:[%s594_s1 + $0x28] sm:$0xff] (!%p140_p2)   ;;  %vm369_vm1 = vcmask (!%p140_p2), 650240  }
   0x7   : > { %321 = vmatpush1.bf16.msra.mxu0 (!%p140_p2), %v473_v0  ;;  %v479_v8 = vld [vmem:[%s594_s1 + $0x30] sm:$0xff] (!%p140_p2)   ;;  %v480_v9 = vld [vmem:[%s594_s1 + $0x38] sm:$0xff] (!%p140_p2)   ;;  %v481_v10 = vld [vmem:[%s594_s1 + $0x40] sm:$0xff] (!%p140_p2)  }
   0x8   : > { %322 = vmatprep.subr.bf16.mxu0 (!%p140_p2), %v499_v1  ;;  %v482_v11 = vld [vmem:[%s594_s1 + $0x48] sm:$0xff] (!%p140_p2)   ;;  %v483_v12 = vld [vmem:[%s594_s1 + $0x50] sm:$0xff] (!%p140_p2)   ;;  %v484_v13 = vld [vmem:[%s594_s1 + $0x58] sm:$0xff] (!%p140_p2)  }
   0x9   : > { %v485_v14 = vld [vmem:[%s594_s1 + $0x60] sm:$0xff] (!%p140_p2)   ;;  %v486_v15 = vld [vmem:[%s594_s1 + $0x68] sm:$0xff] (!%p140_p2)   ;;  %v487_v16 = vld [vmem:[%s594_s1 + $0x70] sm:$0xff] (!%p140_p2)  }
   0xa   : > { %v438_v18 = vld [vmem:[%s595_s2] ss:$0 sm:$0xff] (!%p140_p2) }
   0xb   : > { %323 = vmatpush1.bf16.msra.mxu0 (!%p140_p2), %v474_v2 }
   0xc   : > { %324 = vmatprep.subr.bf16.mxu0 (!%p140_p2), %v499_v1 }
   0xd   : > { %s598_s16 = smov (!%p165_p3, %s433_s16), 3 }
   0xe   : > { %s461_s23 = sshll.u32 %s598_s16, 3  ;;  %s437_s27 = sshll.u32 %s598_s16, 2 }
   0xf   : > { %325 = vmatpush1.bf16.msra.mxu0 %v475_v3  ;;  %s546_s26 = scalar_lea.vmem %s593_s0, %s461_s23  ;;  %s175_s30 = scalar_lea.vmem %s596_s3, %s437_s27 }
  0x10   : > { %326 = vmatprep.subr.bf16.mxu0 %v499_v1  ;;  %v490_v6 = vld [vmem:[%s546_s26 + $0x4] ss:$8 sps:$4 sm:$0xff]   ;;  %v488_v17 = vld [vmem:[%s546_s26] ss:$8 sps:$4 sm:$0xff]  }
  0x11   : > { %456 = vmatprep.mubr.msk.bf16.mxu0 %vm316_vm0, %v490_v6 }
  0x13   : > { %327 = vmatpush1.bf16.msra.mxu0 %v476_v4 }
  0x14   : > { %328 = vmatprep.subr.bf16.mxu0 %v499_v1 }
  0x17   : > { %329 = vmatpush1.bf16.msra.mxu0 %v477_v5 }
  0x18   : > { %330 = vmatprep.subr.bf16.mxu0 %v499_v1 }
  0x1b   : > { %331 = vmatpush1.bf16.msra.mxu0 %v478_v7 }
  0x1c   : > { %332 = vmatprep.subr.bf16.mxu0 %v499_v1 }
  0x1f   : > { %333 = vmatpush1.bf16.msra.mxu0 %v479_v8 }
  0x20   : > { %334 = vmatprep.subr.bf16.mxu0 %v499_v1 }
  0x23   : > { %335 = vmatpush1.bf16.msra.mxu0 %v480_v9 }
  0x24   : > { %336 = vmatprep.subr.bf16.mxu0 %v499_v1 }
  0x27   : > { %337 = vmatpush1.bf16.msra.mxu0 %v481_v10 }
  0x28   : > { %338 = vmatprep.subr.bf16.mxu0 %v499_v1 }
  0x2b   : > { %339 = vmatpush1.bf16.msra.mxu0 %v482_v11 }
  0x2c   : > { %340 = vmatprep.subr.bf16.mxu0 %v499_v1 }
  0x2f   : > { %341 = vmatpush1.bf16.msra.mxu0 %v483_v12 }
  0x30   : > { %342 = vmatprep.subr.bf16.mxu0 %v499_v1 }
  0x33   : > { %343 = vmatpush1.bf16.msra.mxu0 %v484_v13 }
  0x34   : > { %344 = vmatprep.subr.bf16.mxu0 %v499_v1 }
  0x37   : > { %345 = vmatpush1.bf16.msra.mxu0 %v485_v14 }
  0x38   : > { %346 = vmatprep.subr.bf16.mxu0 %v499_v1 }
  0x3b   : > { %347 = vmatpush1.bf16.msra.mxu0 %v486_v15 }
  0x3c   : > { %348 = vmatprep.subr.bf16.mxu0 %v499_v1 }
  0x3f   : > { %349 = vmatpush1.bf16.msra.mxu0 %v487_v16 }
  0x42   : > { %353 = vmatmul.mubr.bf16.vlgmr.msra.gmra.mrb[0].mxu0 %v488_v17 }
 0x115   : > { %v354_v19 = vpop.f32.mrb[0].mxu0 }
 0x116   : > { %v355_v20 = vadd.f32 %v438_v18, %v354_v19  ;;  %v356_v21 = vpop.f32.mrb[1].mxu0 }
 0x117   : > { %v357_v22 = vpop.f32.mrb[2].mxu0 }
 0x118   : > { %v462_v23 = vpack.c.bf16 %v355_v20, %v355_v20  ;;  %v358_v24 = vadd.f32 %v438_v18, %v357_v22  ;;  %v359_v25 = vpop.f32.mrb[3].mxu0 }
 0x11a   : > { %370 = vst.msk [vmem:[%s175_s30] sm:$0xf] %vm369_vm1, %v462_v23  ;;  %v463_v26 = vpack.c.bf16 %v358_v24, %v358_v24 }
 0x11c   : > { %371 = vst.msk [vmem:[%s175_s30 + $0x4] sm:$0xf] %vm369_vm1, %v463_v26 }
 0x11d PF: > { %s13_s12 = sadd.s32 1, %s497_s12  }
 0x11e   : > { %p10_p4 = scmp.ge.s32.totalorder %s13_s12, 4  }
 0x120   :  { %12 = sbr.rel (!%p10_p4) target bundleno = 1 (0x1), region = 62 }

// kernel: _lambda_.42
= control target key start
LH: loop header
LB: loop body
LE: loop exit
PB: predicated region body
PF: predicated region fallthrough
CT: control target
= control target key end

     0   :  { %s951_s12 = smov 0   ;;  %s1184_s0 = inlined_call_operand.vmem [shape: bf16[2,4,4,240], index: 0, kind: input, shape index: {}]   ;;  %s1185_s1 = inlined_call_operand.vmem [shape: f32[9,1,240], index: 1, kind: input, shape index: {}]   ;;  %s1186_s2 = inlined_call_operand.vmem [shape: f32[1,1,240], index: 2, kind: input, shape index: {}]   ;;  %s1187_s3 = inlined_call_operand.vmem [shape: bf16[2,4,4,240], index: 3, kind: output, shape index: {}]  }
   0x1 LB: > { %s877_s13 = sadd.s32 4294967295, %s927_s12   ;;  %p881_p0 = scmp.ge.s32.totalorder %s927_s12, 1  ;;  %s927_s12 = sphi %s951_s12, %s13_s12  }
   0x2   : > { %p137_p1 = scmp.lt.s32.totalorder %s927_s12, 3 }
   0x4   : > { %p138_p2 = pnand %p881_p0, %p137_p1 }
   0x5   : > { %vm172_vm0 = vcmask (!%p138_p2), 914432   ;;  %v177_v0 = vlaneseq (!%p138_p2)  ;;  %p161_p3 = scmp.lt.s32.totalorder (!%p138_p2), %s877_s13, 1  ;;  %v929_v1 = vmov (!%p138_p2), 0.0   ;;  %v266_v3 = vld [vmem:[%s1185_s1] sm:$0x3] (!%p138_p2)  ;;  %vm250_vm2 = vcmask (!%p138_p2), 913409  }
   0x6   : > { %141 = sbr.rel (%p138_p2) target bundleno = 96 (0x60), region = 32  ;;  %171 = vst [vmem:[#allocation2] sm:$0x3f] (!%p138_p2), %v929_v1  ;;  %175 = vst [vmem:[#allocation2 + $0x50] sm:$0x3f] (!%p138_p2), %v929_v1  ;;  %vm815_vm3 = vcmask (!%p138_p2), 1041408  }
   0x7   : > { %173 = vst.msk [vmem:[#allocation2 + $0x8] sm:$0x3f] (!%p138_p2), %vm172_vm0, %v929_v1  ;;  %176 = vst.msk [vmem:[#allocation2 + $0x58] sm:$0x3f] (!%p138_p2), %vm172_vm0, %v929_v1  ;;  %vm179_vm1 = vcmp.lt.s32.totalorder (!%p138_p2), %v177_v0, 240  ;;  %v961_v2 = vshrl.u32 (!%p138_p2), %v177_v0, 7 }
   0x8   : > { %181 = vst.msk [vmem:[#allocation2] ss:$8 sm:$0x3] (!%p138_p2), %vm179_vm1, %v929_v1  ;;  %184 = vst.msk [vmem:[#allocation2 + $0x10] ss:$8 sm:$0x3] (!%p138_p2), %vm179_vm1, %v929_v1 }
   0x9   : > { %187 = vst.msk [vmem:[#allocation2 + $0x20] ss:$8 sm:$0x3] (!%p138_p2), %vm179_vm1, %v929_v1  ;;  %190 = vst.msk [vmem:[#allocation2 + $0x30] ss:$8 sm:$0x3] (!%p138_p2), %vm179_vm1, %v929_v1 }
   0xa   : > { %193 = vst.msk [vmem:[#allocation2 + $0x40] ss:$8 sm:$0x3] (!%p138_p2), %vm179_vm1, %v929_v1  ;;  %196 = vst.msk [vmem:[#allocation2 + $0x50] ss:$8 sm:$0x3] (!%p138_p2), %vm179_vm1, %v929_v1 }
   0xb   : > { %199 = vst.msk [vmem:[#allocation2 + $0x5] ss:$8 sm:$0x3] (!%p138_p2), %vm179_vm1, %v929_v1  ;;  %202 = vst.msk [vmem:[#allocation2 + $0x15] ss:$8 sm:$0x3] (!%p138_p2), %vm179_vm1, %v929_v1 }
   0xc   : > { %205 = vst.msk [vmem:[#allocation2 + $0x25] ss:$8 sm:$0x3] (!%p138_p2), %vm179_vm1, %v929_v1  ;;  %208 = vst.msk [vmem:[#allocation2 + $0x35] ss:$8 sm:$0x3] (!%p138_p2), %vm179_vm1, %v929_v1 }
   0xd   : > { %s1191_s13 = smov (!%p161_p3, %s877_s13), 1  ;;  %211 = vst.msk [vmem:[#allocation2 + $0x45] ss:$8 sm:$0x3] %vm179_vm1, %v929_v1  ;;  %v886_v4 = vld [vmem:[%s1185_s1 + $0x2] sm:$0x3] }
   0xe   : > { %214 = vst.msk [vmem:[#allocation2 + $0x55] ss:$8 sm:$0x3] %vm179_vm1, %v929_v1  ;;  %s900_s18 = sshll.u32 %s1191_s13, 4  ;;  %v971_v5 = vsub.s32 0, %v961_v2  ;;  %v974_v6 = vsub.s32 1, %v961_v2 }
   0xf   : > { %s165_s21 = scalar_lea.vmem %s1184_s0, %s900_s18  ;;  %v887_v7 = vld [vmem:[%s1185_s1 + $0x4] sm:$0x3]  ;;  %v888_v21 = vld [vmem:[%s1185_s1 + $0x6] sm:$0x3]  ;;  %v287_v26 = vld [vmem:[#allocation2 + $0x8] sm:$0x1e]  ;;  %s1122_s15 = scalar_lea.vmem %s1187_s3, %s900_s18 }
  0x10   : > { %v903_v8 = vld [vmem:[%s165_s21] sm:$0xff]   ;;  %v910_v9 = vld [vmem:[%s165_s21 + $0x8] sm:$0xff]   ;;  %v985_v10 = vrot.slane %v266_v3, %v971_v5  ;;  %v988_v11 = vrot.slane %v266_v3, %v974_v6  ;;  %v991_v12 = vrot.slane %v886_v4, %v971_v5  ;;  %v994_v18 = vrot.slane %v886_v4, %v974_v6  ;;  %v893_v55 = vld [vmem:[%s1185_s1 + $0x10] sm:$0x3] }
  0x11   : > { %v904_v13 = vunpack.c.l.bf16 %v903_v8  ;;  %v905_v14 = vunpack.c.h.bf16 %v903_v8  ;;  %v908_v15 = vunpack.c.l.bf16 %v910_v9  ;;  %v909_v16 = vunpack.c.h.bf16 %v910_v9  ;;  %v286_v17 = vld [vmem:[#allocation2] sm:$0x1e]  ;;  %v889_v27 = vld [vmem:[%s1185_s1 + $0x8] sm:$0x3]  ;;  %v890_v44 = vld [vmem:[%s1185_s1 + $0xa] sm:$0x3] }
  0x12   : > { %v997_v19 = vrot.slane %v887_v7, %v971_v5  ;;  %v1000_v20 = vrot.slane %v887_v7, %v974_v6  ;;  %v258_v32 = vld [vmem:[#allocation2] sm:$0xf]  ;;  %v259_v33 = vld [vmem:[#allocation2 + $0x8] sm:$0xf]  ;;  %v307_v37 = vmul.f32 %v991_v12, %v286_v17  ;;  %v308_v43 = vmul.f32 %v994_v18, %v287_v26  ;;  %v891_v49 = vld [vmem:[%s1185_s1 + $0xc] sm:$0x3] }
  0x13   : > { %v232_v22 = vrot.slane %v904_v13, 7  ;;  %v234_v23 = vrot.slane %v905_v14, 7  ;;  %v236_v24 = vrot.slane %v908_v15, 7  ;;  %v228_v25 = vcombine.high %v904_v13, %v904_v13  ;;  %v347_v38 = vld [vmem:[#allocation2] sm:$0x3c] }
  0x14   : > { %v229_v28 = vcombine.high %v905_v14, %v905_v14  ;;  %v230_v29 = vcombine.high %v908_v15, %v908_v15  ;;  %v238_v30 = vrot.slane %v909_v16, 7  ;;  %v231_v31 = vcombine.high %v909_v16, %v909_v16  ;;  %v348_v39 = vld [vmem:[#allocation2 + $0x8] sm:$0x3c]  ;;  %v892_v50 = vld [vmem:[%s1185_s1 + $0xe] sm:$0x3] }
  0x15   : > { %249 = vst [vmem:[#allocation2 + $0x10] sm:$0x1e] %v232_v22  ;;  %252 = vst [vmem:[#allocation2 + $0x20] sm:$0x1e] %v234_v23  ;;  %v233_v34 = vrot.slane %v228_v25, 7  ;;  %v278_v35 = vmul.f32 %v985_v10, %v258_v32  ;;  %v279_v36 = vmul.f32 %v988_v11, %v259_v33  ;;  %v323_v45 = vrot.slane %v307_v37, 1 }
  0x16   : > { %254 = vst [vmem:[#allocation2 + $0x30] sm:$0x1e] %v236_v24  ;;  %v235_v40 = vrot.slane %v229_v28, 7  ;;  %v237_v41 = vrot.slane %v230_v29, 7  ;;  %256 = vst [vmem:[#allocation2 + $0x40] sm:$0x1e] %v238_v30  ;;  %v368_v46 = vmul.f32 %v997_v19, %v347_v38  ;;  %v369_v47 = vmul.f32 %v1000_v20, %v348_v39 }
  0x17   : > { %v239_v42 = vrot.slane %v231_v31, 7  ;;  %251 = vst.msk [vmem:[#allocation2 + $0x18] sm:$0x1e] %vm250_vm2, %v233_v34  ;;  %v1019_v48 = vrot.slane %v888_v21, %v971_v5  ;;  %v324_v51 = vrot.slane %v308_v43, 1  ;;  %v1031_v52 = vrot.slane %v888_v21, %v974_v6  ;;  %v727_v60 = vld [vmem:[%s1186_s2] sm:$0x3] }
  0x18   : > { %253 = vst.msk [vmem:[#allocation2 + $0x28] sm:$0x1e] %vm250_vm2, %v235_v40  ;;  %255 = vst.msk [vmem:[#allocation2 + $0x38] sm:$0x1e] %vm250_vm2, %v237_v41  ;;  %v1034_v53 = vrot.slane %v889_v27, %v971_v5  ;;  %v1037_v54 = vrot.slane %v889_v27, %v974_v6  ;;  %v339_v56 = vadd.f32 %v323_v45, %v278_v35  ;;  %v384_v57 = vrot.slane %v368_v46, 2 }
  0x19   : > { %257 = vst.msk [vmem:[#allocation2 + $0x48] sm:$0x1e] %vm250_vm2, %v239_v42  ;;  %v385_v58 = vrot.slane %v369_v47, 2  ;;  %v1043_v59 = vrot.slane %v890_v44, %v971_v5  ;;  %v340_v61 = vadd.f32 %v324_v51, %v279_v36  ;;  %v1049_v62 = vrot.slane %v890_v44, %v974_v6 }
  0x1a   : > { %v1052_v63 = vrot.slane %v891_v49, %v971_v5  ;;  %v1055_v0 = vrot.slane %v892_v50, %v971_v5  ;;  %v400_v1 = vadd.f32 %v384_v57, %v339_v56  ;;  %v1058_v3 = vrot.slane %v891_v49, %v974_v6 }
  0x1b   : > { %v1061_v4 = vrot.slane %v892_v50, %v974_v6  ;;  %v1064_v7 = vrot.slane %v893_v55, %v971_v5  ;;  %v401_v8 = vadd.f32 %v385_v58, %v340_v61  ;;  %v1067_v15 = vrot.slane %v893_v55, %v974_v6 }
  0x1c   : > { %v408_v9 = vld [vmem:[#allocation2 + $0x10] sm:$0xf]  ;;  %v1070_v16 = vrot.slane %v727_v60, %v971_v5  ;;  %v930_v17 = vmov 1983009808   ;;  %v568_v25 = vld [vmem:[#allocation2 + $0x20] sm:$0xf]  ;;  %v1076_v28 = vrot.slane %v727_v60, %v974_v6 }
  0x1d   : > { %v445_v13 = vld [vmem:[#allocation2 + $0x10] sm:$0x1e]  ;;  %v781_v21 = vunpack.c.l.s4 %v930_v17  ;;  %v429_v22 = vmul.f32 %v1019_v48, %v408_v9  ;;  %v605_v26 = vld [vmem:[#allocation2 + $0x20] sm:$0x1e]  ;;  %v589_v5 = vmul.f32 %v1052_v63, %v568_v25  ;;  %vm816_vm4 = vcmask 912386  }
  0x1e   : > { %v506_v14 = vld [vmem:[#allocation2 + $0x10] sm:$0x3c]  ;;  %v466_v23 = vmul.f32 %v1034_v53, %v445_v13  ;;  %v666_v27 = vld [vmem:[#allocation2 + $0x20] sm:$0x3c]  ;;  %v409_v29 = vld [vmem:[#allocation2 + $0x18] sm:$0xf]  ;;  %v626_v32 = vmul.f32 %v1055_v0, %v605_v26 }
  0x1f   : > { %v527_v24 = vmul.f32 %v1043_v59, %v506_v14  ;;  %v446_v30 = vld [vmem:[#allocation2 + $0x18] sm:$0x1e]  ;;  %v687_v33 = vmul.f32 %v1064_v7, %v666_v27  ;;  %v782_v34 = vunpack.c.0.s8 %v781_v21  ;;  %v430_v35 = vmul.f32 %v1031_v52, %v409_v29  ;;  %v569_v39 = vld [vmem:[#allocation2 + $0x28] sm:$0xf]  ;;  %v260_v45 = vld [vmem:[#allocation2 + $0x10] sm:$0xf] }
  0x20   : > { %v507_v31 = vld [vmem:[#allocation2 + $0x18] sm:$0x3c]  ;;  %v437_v36 = vadd.f32 %v429_v22, %v400_v1  ;;  %v467_v37 = vmul.f32 %v1037_v54, %v446_v30  ;;  %v482_v38 = vrot.slane %v466_v23, 1  ;;  %v606_v40 = vld [vmem:[#allocation2 + $0x28] sm:$0x1e]  ;;  %v590_v42 = vmul.f32 %v1058_v3, %v569_v39  ;;  %vm1126_vm5 = vmor %vm816_vm4, %vm815_vm3 }
  0x21   : > { %v528_v6 = vmul.f32 %v1049_v62, %v507_v31  ;;  %v543_v41 = vrot.slane %v527_v24, 2  ;;  %v627_v43 = vmul.f32 %v1061_v4, %v606_v40  ;;  %v667_v44 = vld [vmem:[#allocation2 + $0x28] sm:$0x3c]  ;;  %v438_v46 = vadd.f32 %v430_v35, %v401_v8  ;;  %v261_v51 = vld [vmem:[#allocation2 + $0x18] sm:$0xf] }
  0x22   : > { %v483_v47 = vrot.slane %v467_v37, 1  ;;  %v498_v49 = vadd.f32 %v482_v38, %v437_v36  ;;  %v642_v50 = vrot.slane %v626_v32, 1  ;;  %v288_v55 = vld [vmem:[#allocation2 + $0x10] sm:$0x1e]  ;;  %v688_v58 = vmul.f32 %v1067_v15, %v667_v44  ;;  %v289_v61 = vld [vmem:[#allocation2 + $0x18] sm:$0x1e] }
  0x23   : > { %v544_v56 = vrot.slane %v528_v6, 2  ;;  %v643_v57 = vrot.slane %v627_v43, 1  ;;  %v703_v60 = vrot.slane %v687_v33, 2  ;;  %v1088_v13 = vsub.s32 %v782_v34, %v961_v2  ;;  %v349_v17 = vld [vmem:[#allocation2 + $0x10] sm:$0x3c] }
  0x24   : > { %v499_v1 = vadd.f32 %v483_v47, %v438_v46  ;;  %v559_v9 = vadd.f32 %v543_v41, %v498_v49  ;;  %v280_v14 = vmul.f32 %v985_v10, %v260_v45  ;;  %v350_v8 = vld [vmem:[#allocation2 + $0x18] sm:$0x3c]  ;;  %v410_v21 = vld [vmem:[#allocation2 + $0x20] sm:$0xf]  ;;  %v704_v22 = vrot.slane %v688_v58, 2 }
  0x25   : > { %v281_v23 = vmul.f32 %v988_v11, %v261_v51  ;;  %v309_v24 = vmul.f32 %v991_v12, %v288_v55  ;;  %v310_v25 = vmul.f32 %v994_v18, %v289_v61  ;;  %v411_v26 = vld [vmem:[#allocation2 + $0x28] sm:$0xf]  ;;  %v370_v30 = vmul.f32 %v997_v19, %v349_v17  ;;  %v447_v31 = vld [vmem:[#allocation2 + $0x20] sm:$0x1e]  ;;  %v570_v55 = vld [vmem:[#allocation2 + $0x30] sm:$0xf] }
  0x26   : > { %v560_v27 = vadd.f32 %v544_v56, %v499_v1  ;;  %v597_v29 = vadd.f32 %v589_v5, %v559_v9  ;;  %v371_v2 = vmul.f32 %v1000_v20, %v350_v8  ;;  %v448_v32 = vld [vmem:[#allocation2 + $0x28] sm:$0x1e]  ;;  %v431_v35 = vmul.f32 %v1019_v48, %v410_v21  ;;  %v508_v37 = vld [vmem:[#allocation2 + $0x20] sm:$0x3c]  ;;  %v571_v56 = vld [vmem:[#allocation2 + $0x38] sm:$0xf] }
  0x27   : > { %v325_v33 = vrot.slane %v309_v24, 1  ;;  %v326_v34 = vrot.slane %v310_v25, 1  ;;  %v432_v36 = vmul.f32 %v1031_v52, %v411_v26  ;;  %v509_v38 = vld [vmem:[#allocation2 + $0x28] sm:$0x3c]  ;;  %v386_v6 = vrot.slane %v370_v30, 2 }
  0x28   : > { %v598_v39 = vadd.f32 %v590_v42, %v560_v27  ;;  %v658_v40 = vadd.f32 %v642_v50, %v597_v29  ;;  %v387_v41 = vrot.slane %v371_v2, 2  ;;  %v468_v44 = vmul.f32 %v1034_v53, %v447_v31  ;;  %v607_v1 = vld [vmem:[#allocation2 + $0x30] sm:$0x1e]  ;;  %v608_v9 = vld [vmem:[#allocation2 + $0x38] sm:$0x1e] }
  0x29   : > { %v341_v43 = vadd.f32 %v325_v33, %v280_v14  ;;  %v342_v5 = vadd.f32 %v326_v34, %v281_v23  ;;  %v469_v45 = vmul.f32 %v1037_v54, %v448_v32  ;;  %v529_v49 = vmul.f32 %v1043_v59, %v508_v37  ;;  %v669_v21 = vld [vmem:[#allocation2 + $0x38] sm:$0x3c]  ;;  %v291_v37 = vld [vmem:[#allocation2 + $0x28] sm:$0x1e] }
  0x2a   : > { %v659_v46 = vadd.f32 %v643_v57, %v598_v39  ;;  %v719_v47 = vadd.f32 %v703_v60, %v658_v40  ;;  %v530_v51 = vmul.f32 %v1049_v62, %v509_v38  ;;  %v484_v58 = vrot.slane %v468_v44, 1  ;;  %v668_v60 = vld [vmem:[#allocation2 + $0x30] sm:$0x3c] }
  0x2b   : > { %v402_v42 = vadd.f32 %v386_v6, %v341_v43  ;;  %v403_v50 = vadd.f32 %v387_v41, %v342_v5  ;;  %v485_v61 = vrot.slane %v469_v45, 1  ;;  %v545_v8 = vrot.slane %v529_v49, 2  ;;  %v351_v41 = vld [vmem:[#allocation2 + $0x20] sm:$0x3c] }
  0x2c   : > { %v720_v14 = vadd.f32 %v704_v22, %v659_v46  ;;  %v739_v17 = vadd.f32 %v1070_v16, %v719_v47  ;;  %v546_v57 = vrot.slane %v530_v51, 2  ;;  %v591_v25 = vmul.f32 %v1052_v63, %v570_v55  ;;  %v262_v22 = vld [vmem:[#allocation2 + $0x20] sm:$0xf]  ;;  %v352_v46 = vld [vmem:[#allocation2 + $0x28] sm:$0x3c] }
  0x2d   : > { %v439_v23 = vadd.f32 %v431_v35, %v402_v42  ;;  %v440_v24 = vadd.f32 %v432_v36, %v403_v50  ;;  %v592_v26 = vmul.f32 %v1058_v3, %v571_v56  ;;  %v628_v30 = vmul.f32 %v1055_v0, %v607_v1  ;;  %v263_v35 = vld [vmem:[#allocation2 + $0x28] sm:$0xf]  ;;  %v290_v36 = vld [vmem:[#allocation2 + $0x20] sm:$0x1e]  ;;  %v412_v47 = vld [vmem:[#allocation2 + $0x30] sm:$0xf] }
  0x2e   : > { %v740_v27 = vadd.f32 %v1076_v28, %v720_v14  ;;  %v747_v29 = vmax.f32 %v739_v17, 0.0  ;;  %v629_v2 = vmul.f32 %v1061_v4, %v608_v9  ;;  %v689_v33 = vmul.f32 %v1064_v7, %v668_v60  ;;  %v413_v1 = vld [vmem:[#allocation2 + $0x38] sm:$0xf] }
  0x2f   : > { %v500_v31 = vadd.f32 %v484_v58, %v439_v23  ;;  %v501_v32 = vadd.f32 %v485_v61, %v440_v24  ;;  %v690_v34 = vmul.f32 %v1067_v15, %v669_v21  ;;  %v644_v40 = vrot.slane %v628_v30, 1  ;;  %v450_v60 = vld [vmem:[#allocation2 + $0x38] sm:$0x1e] }
  0x30   : > { %v748_v38 = vmax.f32 %v740_v27, 0.0  ;;  %v755_v39 = vmin.f32 %v747_v29, 6.0  ;;  %v645_v6 = vrot.slane %v629_v2, 1  ;;  %v705_v44 = vrot.slane %v689_v33, 2  ;;  %v510_v27 = vld [vmem:[#allocation2 + $0x30] sm:$0x3c] }
  0x31   : > { %v561_v43 = vadd.f32 %v545_v8, %v500_v31  ;;  %v562_v5 = vadd.f32 %v546_v57, %v501_v32  ;;  %v706_v45 = vrot.slane %v690_v34, 2  ;;  %v282_v51 = vmul.f32 %v985_v10, %v262_v22  ;;  %v449_v57 = vld [vmem:[#allocation2 + $0x30] sm:$0x1e]  ;;  %v511_v29 = vld [vmem:[#allocation2 + $0x38] sm:$0x3c] }
  0x32   : > { %v756_v49 = vmin.f32 %v748_v38, 6.0  ;;  %v283_v55 = vmul.f32 %v988_v11, %v263_v35  ;;  %v311_v56 = vmul.f32 %v991_v12, %v290_v36  ;;  %v312_v58 = vmul.f32 %v994_v18, %v291_v37 }
  0x33   : > { %v599_v42 = vadd.f32 %v591_v25, %v561_v43  ;;  %v600_v50 = vadd.f32 %v592_v26, %v562_v5  ;;  %v372_v61 = vmul.f32 %v997_v19, %v351_v41  ;;  %v373_v17 = vmul.f32 %v1000_v20, %v352_v46  ;;  %v610_v46 = vld [vmem:[#allocation2 + $0x48] sm:$0x1e] }
  0x34   : > { %v894_v9 = vpack.c.bf16 %v756_v49, %v755_v39  ;;  %v327_v14 = vrot.slane %v311_v56, 1  ;;  %v433_v8 = vmul.f32 %v1019_v48, %v412_v47  ;;  %v328_v25 = vrot.slane %v312_v58, 1  ;;  %v670_v56 = vld [vmem:[#allocation2 + $0x40] sm:$0x3c] }
  0x35   : > { %v660_v23 = vadd.f32 %v644_v40, %v599_v42  ;;  %v661_v24 = vadd.f32 %v645_v6, %v600_v50  ;;  %v388_v26 = vrot.slane %v372_v61, 2  ;;  %v389_v22 = vrot.slane %v373_v17, 2  ;;  %v572_v40 = vld [vmem:[#allocation2 + $0x40] sm:$0xf]  ;;  %v573_v6 = vld [vmem:[#allocation2 + $0x48] sm:$0xf] }
  0x36   : > { %v786_v30 = vrot.slane %v894_v9, %v1088_v13  ;;  %v343_v2 = vadd.f32 %v327_v14, %v282_v51  ;;  %v434_v31 = vmul.f32 %v1031_v52, %v413_v1  ;;  %v344_v34 = vadd.f32 %v328_v25, %v283_v55  ;;  %v671_v1 = vld [vmem:[#allocation2 + $0x48] sm:$0x3c] }
  0x37   : > { %v721_v32 = vadd.f32 %v705_v44, %v660_v23  ;;  %v722_v33 = vadd.f32 %v706_v45, %v661_v24  ;;  %v470_v35 = vmul.f32 %v1034_v53, %v449_v57  ;;  %v471_v37 = vmul.f32 %v1037_v54, %v450_v60  ;;  %v609_v45 = vld [vmem:[#allocation2 + $0x40] sm:$0x1e]  ;;  %v264_v60 = vld [vmem:[#allocation2 + $0x30] sm:$0xf] }
  0x38   : > { %818 = vst.msk [vmem:[%s1122_s15] sm:$0xf] %vm1126_vm5, %v786_v30  ;;  %v404_v36 = vadd.f32 %v388_v26, %v343_v2  ;;  %v531_v38 = vmul.f32 %v1043_v59, %v510_v27  ;;  %v532_v39 = vmul.f32 %v1049_v62, %v511_v29  ;;  %v405_v5 = vadd.f32 %v389_v22, %v344_v34  ;;  %v265_v26 = vld [vmem:[#allocation2 + $0x38] sm:$0xf]  ;;  %v292_v27 = vld [vmem:[#allocation2 + $0x30] sm:$0x1e] }
  0x39   : > { %v741_v41 = vadd.f32 %v1070_v16, %v721_v32  ;;  %v742_v43 = vadd.f32 %v1076_v28, %v722_v33  ;;  %v486_v44 = vrot.slane %v470_v35, 1  ;;  %v487_v49 = vrot.slane %v471_v37, 1  ;;  %v353_v32 = vld [vmem:[#allocation2 + $0x30] sm:$0x3c]  ;;  %v354_v37 = vld [vmem:[#allocation2 + $0x38] sm:$0x3c] }
  0x3a   : > { %v441_v47 = vadd.f32 %v433_v8, %v404_v36  ;;  %v547_v51 = vrot.slane %v531_v38, 2  ;;  %v548_v55 = vrot.slane %v532_v39, 2  ;;  %v442_v58 = vadd.f32 %v434_v31, %v405_v5  ;;  %v293_v31 = vld [vmem:[#allocation2 + $0x38] sm:$0x1e]  ;;  %v414_v38 = vld [vmem:[#allocation2 + $0x40] sm:$0xf] }
  0x3b   : > { %v749_v42 = vmax.f32 %v741_v41, 0.0  ;;  %v750_v50 = vmax.f32 %v742_v43, 0.0  ;;  %v593_v61 = vmul.f32 %v1052_v63, %v572_v40  ;;  %v594_v14 = vmul.f32 %v1058_v3, %v573_v6  ;;  %v415_v43 = vld [vmem:[#allocation2 + $0x48] sm:$0xf] }
  0x3c   : > { %v502_v9 = vadd.f32 %v486_v44, %v441_v47  ;;  %v630_v17 = vmul.f32 %v1055_v0, %v609_v45  ;;  %v631_v57 = vmul.f32 %v1061_v4, %v610_v46  ;;  %v503_v24 = vadd.f32 %v487_v49, %v442_v58  ;;  %v451_v47 = vld [vmem:[#allocation2 + $0x40] sm:$0x1e] }
  0x3d   : > { %v757_v23 = vmin.f32 %v749_v42, 6.0  ;;  %v758_v8 = vmin.f32 %v750_v50, 6.0  ;;  %v691_v25 = vmul.f32 %v1064_v7, %v670_v56  ;;  %v692_v22 = vmul.f32 %v1067_v15, %v671_v1  ;;  %v452_v56 = vld [vmem:[#allocation2 + $0x48] sm:$0x1e]  ;;  %v512_v42 = vld [vmem:[#allocation2 + $0x40] sm:$0x3c] }
  0x3e   : > { %v563_v29 = vadd.f32 %v547_v51, %v502_v9  ;;  %v646_v30 = vrot.slane %v630_v17, 1  ;;  %v647_v2 = vrot.slane %v631_v57, 1  ;;  %v564_v34 = vadd.f32 %v548_v55, %v503_v24  ;;  %v513_v9 = vld [vmem:[#allocation2 + $0x48] sm:$0x3c]  ;;  %v611_v57 = vld [vmem:[#allocation2 + $0x50] sm:$0x1e] }
  0x3f   : > { %v895_v33 = vpack.c.bf16 %v758_v8, %v757_v23  ;;  %v707_v35 = vrot.slane %v691_v25, 2  ;;  %v284_v36 = vmul.f32 %v985_v10, %v264_v60  ;;  %v708_v40 = vrot.slane %v692_v22, 2  ;;  %v574_v24 = vld [vmem:[#allocation2 + $0x50] sm:$0xf]  ;;  %v612_v25 = vld [vmem:[#allocation2 + $0x58] sm:$0x1e] }
  0x40   : > { %v601_v39 = vadd.f32 %v593_v61, %v563_v29  ;;  %v285_v6 = vmul.f32 %v988_v11, %v265_v26  ;;  %v313_v41 = vmul.f32 %v991_v12, %v292_v27  ;;  %v602_v44 = vadd.f32 %v594_v14, %v564_v34  ;;  %v575_v29 = vld [vmem:[#allocation2 + $0x58] sm:$0xf] }
  0x41   : > { %v794_v5 = vrot.slane %v895_v33, %v1088_v13  ;;  %v314_v45 = vmul.f32 %v994_v18, %v293_v31  ;;  %v374_v46 = vmul.f32 %v997_v19, %v353_v32  ;;  %v375_v51 = vmul.f32 %v1000_v20, %v354_v37  ;;  %v673_v37 = vld [vmem:[#allocation2 + $0x58] sm:$0x3c] }
  0x42   : > { %v662_v49 = vadd.f32 %v646_v30, %v601_v39  ;;  %v329_v10 = vrot.slane %v313_v41, 1  ;;  %v435_v55 = vmul.f32 %v1019_v48, %v414_v38  ;;  %v663_v11 = vadd.f32 %v647_v2, %v602_v44  ;;  %v672_v30 = vld [vmem:[#allocation2 + $0x50] sm:$0x3c] }
  0x43   : > { %819 = vst.msk [vmem:[%s1122_s15 + $0x4] sm:$0xf] %vm1126_vm5, %v794_v5  ;;  %v330_v12 = vrot.slane %v314_v45, 1  ;;  %v390_v50 = vrot.slane %v374_v46, 2  ;;  %v436_v58 = vmul.f32 %v1031_v52, %v415_v43  ;;  %v391_v19 = vrot.slane %v375_v51, 2 }
  0x44   : > { %v723_v18 = vadd.f32 %v707_v35, %v662_v49  ;;  %v345_v61 = vadd.f32 %v329_v10, %v284_v36  ;;  %v472_v1 = vmul.f32 %v1034_v53, %v451_v47  ;;  %v724_v14 = vadd.f32 %v708_v40, %v663_v11 }
  0x45   : > { %v346_v20 = vadd.f32 %v330_v12, %v285_v6  ;;  %v473_v48 = vmul.f32 %v1037_v54, %v452_v56  ;;  %v533_v17 = vmul.f32 %v1043_v59, %v512_v42  ;;  %v534_v53 = vmul.f32 %v1049_v62, %v513_v9 }
  0x46   : > { %v743_v60 = vadd.f32 %v1070_v16, %v723_v18  ;;  %v406_v23 = vadd.f32 %v390_v50, %v345_v61  ;;  %v488_v8 = vrot.slane %v472_v1, 1  ;;  %v744_v52 = vadd.f32 %v1076_v28, %v724_v14 }
  0x47   : > { %v407_v26 = vadd.f32 %v391_v19, %v346_v20  ;;  %v489_v27 = vrot.slane %v473_v48, 1  ;;  %v549_v54 = vrot.slane %v533_v17, 2  ;;  %v632_v59 = vmul.f32 %v1055_v0, %v611_v57 }
  0x48   : > { %v751_v2 = vmax.f32 %v743_v60, 0.0  ;;  %v443_v22 = vadd.f32 %v435_v55, %v406_v23  ;;  %v752_v31 = vmax.f32 %v744_v52, 0.0  ;;  %v633_v33 = vmul.f32 %v1061_v4, %v612_v25 }
  0x49   : > { %v444_v32 = vadd.f32 %v436_v58, %v407_v26  ;;  %v595_v35 = vmul.f32 %v1052_v63, %v574_v24  ;;  %v596_v36 = vmul.f32 %v1058_v3, %v575_v29  ;;  %v693_v38 = vmul.f32 %v1064_v7, %v672_v30 }
  0x4a   : > { %v504_v34 = vadd.f32 %v488_v8, %v443_v22  ;;  %v759_v62 = vmin.f32 %v751_v2, 6.0  ;;  %v760_v39 = vmin.f32 %v752_v31, 6.0  ;;  %v550_v6 = vrot.slane %v534_v53, 2 }
  0x4b   : > { %v505_v40 = vadd.f32 %v489_v27, %v444_v32  ;;  %v648_v43 = vrot.slane %v632_v59, 1  ;;  %v649_v44 = vrot.slane %v633_v33, 1  ;;  %v694_v4 = vmul.f32 %v1067_v15, %v673_v37 }
  0x4c   : > { %v565_v41 = vadd.f32 %v549_v54, %v504_v34  ;;  %v896_v0 = vpack.c.bf16 %v760_v39, %v759_v62  ;;  %v709_v46 = vrot.slane %v693_v38, 2 }
  0x4d   : > { %v566_v5 = vadd.f32 %v550_v6, %v505_v40  ;;  %v710_v49 = vrot.slane %v694_v4, 2 }
  0x4e   : > { %v603_v45 = vadd.f32 %v595_v35, %v565_v41  ;;  %v802_v63 = vrot.slane %v896_v0, %v1088_v13 }
  0x4f   : > { %v604_v3 = vadd.f32 %v596_v36, %v566_v5 }
  0x50   : > { %v664_v47 = vadd.f32 %v648_v43, %v603_v45  ;;  %820 = vst.msk [vmem:[%s1122_s15 + $0x8] sm:$0xf] %vm1126_vm5, %v802_v63 }
  0x51   : > { %v665_v7 = vadd.f32 %v649_v44, %v604_v3 }
  0x52   : > { %v725_v10 = vadd.f32 %v709_v46, %v664_v47 }
  0x53   : > { %v726_v51 = vadd.f32 %v710_v49, %v665_v7 }
  0x54   : > { %v745_v55 = vadd.f32 %v1070_v16, %v725_v10 }
  0x55   : > { %v746_v56 = vadd.f32 %v1076_v28, %v726_v51 }
  0x56   : > { %v753_v42 = vmax.f32 %v745_v55, 0.0 }
  0x57   : > { %v754_v15 = vmax.f32 %v746_v56, 0.0 }
  0x58   : > { %v761_v11 = vmin.f32 %v753_v42, 6.0 }
  0x59   : > { %v762_v12 = vmin.f32 %v754_v15, 6.0 }
  0x5b   : > { %v897_v50 = vpack.c.bf16 %v762_v12, %v761_v11 }
  0x5d   : > { %v810_v58 = vrot.slane %v897_v50, %v1088_v13 }
  0x5f   : > { %821 = vst.msk [vmem:[%s1122_s15 + $0xc] sm:$0xf] %vm1126_vm5, %v810_v58 }
  0x60 PF: > { %s13_s12 = sadd.s32 1, %s927_s12  }
  0x61   : > { %p10_p4 = scmp.ge.s32.totalorder %s13_s12, 4  }
  0x63   :  { %12 = sbr.rel (!%p10_p4) target bundleno = 1 (0x1), region = 84 }

// kernel: _lambda_.44
= control target key start
LH: loop header
LB: loop body
LE: loop exit
PB: predicated region body
PF: predicated region fallthrough
CT: control target
= control target key end

     0   :  { %s1278_s12 = smov 0   ;;  %s1280_s13 = smov 0   ;;  %s1546_s0 = inlined_call_operand.vmem [shape: bf16[2,16,80], index: 0, kind: input, shape index: {}]   ;;  %s1547_s1 = inlined_call_operand.vmem [shape: bf16[80,1280], index: 1, kind: input, shape index: {}]   ;;  %s1548_s2 = inlined_call_operand.vmem [shape: f32[1,1280], index: 2, kind: input, shape index: {}]   ;;  %s1549_s3 = inlined_call_operand.vmem [shape: f32[2,1,1280], index: 3, kind: output, shape index: {}]  }
   0x1   :  { %s1282_s14 = smov 0  }
   0x2 LB: > { %s25_s15 = sadd.s32 1, %s1249_s13  ;;  %p1065_p0 = scmp.ge.s32.totalorder %s1253_s14, 1  ;;  %s1253_s14 = sphi %s1282_s14, %s13_s14   ;;  %s1249_s13 = sphi %s1280_s13, %s1553_s13   ;;  %s1245_s12 = sphi %s1278_s12, %s1552_s12  }
   0x3   : > { %p27_p1 = scmp.ge.s32.totalorder %s25_s15, 2  ;;  %p156_p2 = scmp.lt.s32.totalorder %s1253_s14, 3 }
   0x5   : > { %s1555_s15 = smov (%p27_p1, %s25_s15), 0  ;;  %p157_p3 = pnand %p1065_p0, %p156_p2 }
   0x6   : > { %v1155_v0 = vld [vmem:[%s1547_s1 + $0x4] ss:$40 sps:$4 sm:$0xff] (!%p157_p3)   ;;  %p184_p4 = scmp.lt.s32.totalorder (!%p157_p3), %s1245_s12, 1  ;;  %v1255_v2 = vmov (!%p157_p3), 0   ;;  %v1159_v3 = vld [vmem:[%s1547_s1] ss:$40 sps:$4 sm:$0xff] (!%p157_p3)   ;;  %v203_v6 = vlaneseq (!%p157_p3) }
   0x7   : > { %160 = sbr.rel (%p157_p3) target bundleno = 314 (0x13a), region = 32  ;;  %v1157_v1 = vld [vmem:[%s1547_s1 + $0xc] ss:$40 sps:$4 sm:$0xff] (!%p157_p3)   ;;  %605 = vmatprep.mubr.bf16.mxu0 (!%p157_p3), %v1255_v2  ;;  %648 = vmatprep.mubr.bf16.mxu1 (!%p157_p3), %v1255_v2  ;;  %v1160_v4 = vld [vmem:[%s1547_s1 + $0x8] ss:$40 sps:$4 sm:$0xff] (!%p157_p3)   ;;  %v1256_v16 = vmov (!%p157_p3), 0.0  }
   0x8   : > { %573 = vmatprep.subr.bf16.mxu0 (!%p157_p3), %v1155_v0  ;;  %616 = vmatprep.subr.bf16.mxu1 (!%p157_p3), %v1157_v1  ;;  %v1161_v5 = vld [vmem:[%s1547_s1 + $0x54] ss:$40 sps:$4 sm:$0xff] (!%p157_p3)   ;;  %v1165_v8 = vld [vmem:[%s1547_s1 + $0x50] ss:$40 sps:$4 sm:$0xff] (!%p157_p3)   ;;  %vm1326_vm0 = vcmp.lt.s32.totalorder (!%p157_p3), %v203_v6, 256  ;;  %vm569_vm1 = vcmask (!%p157_p3), 654336  }
   0x9   : > { %574 = vmatpush1.bf16.msra.mxu0 (!%p157_p3), %v1159_v3  ;;  %617 = vmatpush1.bf16.msra.mxu1 (!%p157_p3), %v1160_v4  ;;  %v1163_v7 = vld [vmem:[%s1547_s1 + $0x5c] ss:$40 sps:$4 sm:$0xff] (!%p157_p3)   ;;  %v1166_v9 = vld [vmem:[%s1547_s1 + $0x58] ss:$40 sps:$4 sm:$0xff] (!%p157_p3)   ;;  %v1169_v12 = vld [vmem:[%s1547_s1 + $0xac] ss:$40 sps:$4 sm:$0xff] (!%p157_p3)  }
   0xa   : > { %575 = vmatprep.subr.bf16.mxu0 (!%p157_p3), %v1161_v5  ;;  %618 = vmatprep.subr.bf16.mxu1 (!%p157_p3), %v1163_v7  ;;  %v1167_v11 = vld [vmem:[%s1547_s1 + $0xa4] ss:$40 sps:$4 sm:$0xff] (!%p157_p3)   ;;  %v1171_v13 = vld [vmem:[%s1547_s1 + $0xa0] ss:$40 sps:$4 sm:$0xff] (!%p157_p3)   ;;  %v1173_v15 = vld [vmem:[%s1547_s1 + $0xf4] ss:$40 sps:$4 sm:$0xff] (!%p157_p3)  }
   0xb   : > { %v1172_v14 = vld [vmem:[%s1547_s1 + $0xa8] ss:$40 sps:$4 sm:$0xff] (!%p157_p3)   ;;  %v1175_v17 = vld [vmem:[%s1547_s1 + $0xfc] ss:$40 sps:$4 sm:$0xff] (!%p157_p3)   ;;  %v1178_v19 = vld [vmem:[%s1547_s1 + $0xf8] ss:$40 sps:$4 sm:$0xff] (!%p157_p3)  }
   0xc   : > { %v1177_v18 = vld [vmem:[%s1547_s1 + $0xf0] ss:$40 sps:$4 sm:$0xff] (!%p157_p3)   ;;  %v1179_v20 = vld [vmem:[%s1547_s1 + $0x144] ss:$40 sps:$4 sm:$0xff] (!%p157_p3)   ;;  %v1183_v22 = vld [vmem:[%s1547_s1 + $0x140] ss:$40 sps:$4 sm:$0xff] (!%p157_p3)  }
   0xd   : > { %576 = vmatpush1.bf16.msra.mxu0 (!%p157_p3), %v1165_v8  ;;  %619 = vmatpush1.bf16.msra.mxu1 (!%p157_p3), %v1166_v9  ;;  %v1181_v21 = vld [vmem:[%s1547_s1 + $0x14c] ss:$40 sps:$4 sm:$0xff] (!%p157_p3)   ;;  %v1184_v23 = vld [vmem:[%s1547_s1 + $0x148] ss:$40 sps:$4 sm:$0xff] (!%p157_p3)   ;;  %v1191_v25 = vld [vmem:[%s1547_s1 + $0x1c] ss:$40 sps:$4 sm:$0xff] (!%p157_p3)  }
   0xe   : > { %s1557_s12 = smov (!%p184_p4, %s1245_s12), 1  ;;  %577 = vmatprep.subr.bf16.mxu0 %v1167_v11  ;;  %620 = vmatprep.subr.bf16.mxu1 %v1169_v12  ;;  %v1188_v24 = vld [vmem:[%s1547_s1 + $0x14] ss:$40 sps:$4 sm:$0xff]   ;;  %v1186_v27 = vld [vmem:[%s1547_s1 + $0x10] ss:$40 sps:$4 sm:$0xff]   ;;  %v1484_v55 = vshrl.u32 %v203_v6, 7 }
   0xf   : > { %s1127_s5 = smul.u32 10, %s1557_s12  ;;  %s1126_s25 = sshll.u32 %s1557_s12, 3  ;;  %v1189_v28 = vld [vmem:[%s1547_s1 + $0x18] ss:$40 sps:$4 sm:$0xff]   ;;  %v1194_v29 = vld [vmem:[%s1547_s1 + $0x64] ss:$40 sps:$4 sm:$0xff]  }
  0x10   : > { %s191_s7 = scalar_lea.vmem %s1546_s0, %s1126_s25  ;;  %v1197_v30 = vld [vmem:[%s1547_s1 + $0x6c] ss:$40 sps:$4 sm:$0xff]   ;;  %v1192_v31 = vld [vmem:[%s1547_s1 + $0x60] ss:$40 sps:$4 sm:$0xff]   ;;  %v1203_v34 = vld [vmem:[%s1547_s1 + $0xbc] ss:$40 sps:$4 sm:$0xff]  }
  0x11   : > { %s1345_s20 = scalar_lea.vmem %s1549_s3, %s1127_s5  ;;  %578 = vmatpush1.bf16.msra.mxu0 %v1171_v13  ;;  %621 = vmatpush1.bf16.msra.mxu1 %v1172_v14  ;;  %v1384_v26 = vld [vmem:[%s191_s7] sm:$0xff]   ;;  %v1195_v32 = vld [vmem:[%s1547_s1 + $0x68] ss:$40 sps:$4 sm:$0xff]   ;;  %v1200_v33 = vld [vmem:[%s1547_s1 + $0xb4] ss:$40 sps:$4 sm:$0xff]   ;;  %v266_v56 = vsub.s32 0, %v1484_v55 }
  0x12   : > { %207 = vst.msk [vmem:[%s1345_s20 + $0x8] sm:$0x3] %vm1326_vm0, %v1256_v16  ;;  %579 = vmatprep.subr.bf16.mxu0 %v1173_v15  ;;  %622 = vmatprep.subr.bf16.mxu1 %v1175_v17  ;;  %v1198_v35 = vld [vmem:[%s1547_s1 + $0xb0] ss:$40 sps:$4 sm:$0xff]   ;;  %v1206_v37 = vld [vmem:[%s1547_s1 + $0x104] ss:$40 sps:$4 sm:$0xff]  }
  0x13   : > { %v1201_v36 = vld [vmem:[%s1547_s1 + $0xb8] ss:$40 sps:$4 sm:$0xff]   ;;  %v1209_v38 = vld [vmem:[%s1547_s1 + $0x10c] ss:$40 sps:$4 sm:$0xff]   ;;  %v1207_v40 = vld [vmem:[%s1547_s1 + $0x108] ss:$40 sps:$4 sm:$0xff]  }
  0x14   : > { %v1204_v39 = vld [vmem:[%s1547_s1 + $0x100] ss:$40 sps:$4 sm:$0xff]   ;;  %v1212_v41 = vld [vmem:[%s1547_s1 + $0x154] ss:$40 sps:$4 sm:$0xff]   ;;  %v1210_v43 = vld [vmem:[%s1547_s1 + $0x150] ss:$40 sps:$4 sm:$0xff]  }
  0x15   : > { %580 = vmatpush1.bf16.msra.mxu0 %v1177_v18  ;;  %623 = vmatpush1.bf16.msra.mxu1 %v1178_v19  ;;  %v1215_v42 = vld [vmem:[%s1547_s1 + $0x15c] ss:$40 sps:$4 sm:$0xff]   ;;  %v1213_v44 = vld [vmem:[%s1547_s1 + $0x158] ss:$40 sps:$4 sm:$0xff]   ;;  %v274_v57 = vsub.s32 2, %v1484_v55  ;;  %v270_v59 = vsub.s32 1, %v1484_v55 }
  0x16   : > { %581 = vmatprep.subr.bf16.mxu0 %v1179_v20  ;;  %624 = vmatprep.subr.bf16.mxu1 %v1181_v21  ;;  %v1218_v45 = vld [vmem:[%s1547_s1 + $0x24] ss:$40 sps:$4 sm:$0xff]   ;;  %v1216_v46 = vld [vmem:[%s1547_s1 + $0x20] ss:$40 sps:$4 sm:$0xff]   ;;  %v1221_v47 = vld [vmem:[%s1547_s1 + $0x74] ss:$40 sps:$4 sm:$0xff]  }
  0x17   : > { %v1219_v48 = vld [vmem:[%s1547_s1 + $0x70] ss:$40 sps:$4 sm:$0xff]   ;;  %v1224_v49 = vld [vmem:[%s1547_s1 + $0xc4] ss:$40 sps:$4 sm:$0xff]   ;;  %v1222_v50 = vld [vmem:[%s1547_s1 + $0xc0] ss:$40 sps:$4 sm:$0xff]  }
  0x18   : > { %v1227_v51 = vld [vmem:[%s1547_s1 + $0x114] ss:$40 sps:$4 sm:$0xff]   ;;  %v1225_v52 = vld [vmem:[%s1547_s1 + $0x110] ss:$40 sps:$4 sm:$0xff]   ;;  %v1230_v53 = vld [vmem:[%s1547_s1 + $0x164] ss:$40 sps:$4 sm:$0xff]  }
  0x19   : > { %582 = vmatpush1.bf16.msra.mxu0 %v1183_v22  ;;  %625 = vmatpush1.bf16.msra.mxu1 %v1184_v23  ;;  %v1228_v54 = vld [vmem:[%s1547_s1 + $0x160] ss:$40 sps:$4 sm:$0xff]   ;;  %v278_v60 = vsub.s32 3, %v1484_v55 }
  0x1a   : > { %659 = vmatprep.subr.bf16.mxu0 %v1188_v24  ;;  %702 = vmatprep.subr.bf16.mxu1 %v1191_v25  ;;  %v1491_v58 = vld [vmem:[%s1548_s2] sm:$0xff] }
  0x1b   : > { %v267_v61 = vrot.slane %v1491_v58, %v266_v56  ;;  %v275_v62 = vrot.slane %v1491_v58, %v274_v57  ;;  %v271_v63 = vrot.slane %v1491_v58, %v270_v59  ;;  %v279_v0 = vrot.slane %v1491_v58, %v278_v60 }
  0x1c   : > { %1119 = vmatmul.mubr.msk.bf16.vlgmr.msra.gmra.mrb[0].mxu0 %vm569_vm1, %v1384_v26  ;;  %1120 = vmatmul.mubr.msk.bf16.vlgmr.msra.gmra.mrb[0].mxu1 %vm569_vm1, %v1384_v26 }
  0x1d   : > { %660 = vmatpush1.bf16.msra.mxu0 %v1186_v27  ;;  %703 = vmatpush1.bf16.msra.mxu1 %v1189_v28 }
  0x1e   : > { %661 = vmatprep.subr.bf16.mxu0 %v1194_v29  ;;  %704 = vmatprep.subr.bf16.mxu1 %v1197_v30 }
  0x1f   : > { %691 = vmatprep.mubr.bf16.mxu0 %v1255_v2  ;;  %734 = vmatprep.mubr.bf16.mxu1 %v1255_v2 }
  0x21   : > { %662 = vmatpush1.bf16.msra.mxu0 %v1192_v31  ;;  %705 = vmatpush1.bf16.msra.mxu1 %v1195_v32 }
  0x22   : > { %663 = vmatprep.subr.bf16.mxu0 %v1200_v33  ;;  %706 = vmatprep.subr.bf16.mxu1 %v1203_v34 }
  0x25   : > { %664 = vmatpush1.bf16.msra.mxu0 %v1198_v35  ;;  %707 = vmatpush1.bf16.msra.mxu1 %v1201_v36 }
  0x26   : > { %665 = vmatprep.subr.bf16.mxu0 %v1206_v37  ;;  %708 = vmatprep.subr.bf16.mxu1 %v1209_v38 }
  0x29   : > { %666 = vmatpush1.bf16.msra.mxu0 %v1204_v39  ;;  %709 = vmatpush1.bf16.msra.mxu1 %v1207_v40 }
  0x2a   : > { %667 = vmatprep.subr.bf16.mxu0 %v1212_v41  ;;  %710 = vmatprep.subr.bf16.mxu1 %v1215_v42  ;;  %v282_v42 = vsub.s32 4, %v1484_v55 }
  0x2d   : > { %668 = vmatpush1.bf16.msra.mxu0 %v1210_v43  ;;  %711 = vmatpush1.bf16.msra.mxu1 %v1213_v44 }
  0x2e   : > { %745 = vmatprep.subr.bf16.mxu0 %v1218_v45  ;;  %v290_v45 = vsub.s32 6, %v1484_v55 }
  0x30   : > { %1121 = vmatmul.mubr.msk.bf16.vlgmr.msra.gmra.mrb[4].mxu0 %vm569_vm1, %v1384_v26  ;;  %1122 = vmatmul.mubr.msk.bf16.vlgmr.msra.gmra.mrb[4].mxu1 %vm569_vm1, %v1384_v26 }
  0x31   : > { %746 = vmatpush1.bf16.msra.mxu0 %v1216_v46  ;;  %777 = vmatprep.mubr.bf16.mxu0 %v1255_v2 }
  0x32   : > { %747 = vmatprep.subr.bf16.mxu0 %v1221_v47 }
  0x35   : > { %748 = vmatpush1.bf16.msra.mxu0 %v1219_v48  ;;  %v286_v48 = vsub.s32 5, %v1484_v55 }
  0x36   : > { %749 = vmatprep.subr.bf16.mxu0 %v1224_v49  ;;  %v294_v49 = vsub.s32 7, %v1484_v55 }
  0x39   : > { %750 = vmatpush1.bf16.msra.mxu0 %v1222_v50 }
  0x3a   : > { %751 = vmatprep.subr.bf16.mxu0 %v1227_v51 }
  0x3d   : > { %752 = vmatpush1.bf16.msra.mxu0 %v1225_v52 }
  0x3e   : > { %753 = vmatprep.subr.bf16.mxu0 %v1230_v53  ;;  %v1257_v53 = vmov 1966171168  }
  0x41   : > { %754 = vmatpush1.bf16.msra.mxu0 %v1228_v54  ;;  %v925_v54 = vunpack.c.l.s4 %v1257_v53 }
  0x44   : > { %1123 = vmatmul.mubr.msk.bf16.vlgmr.msra.gmra.mrb[8].mxu0 %vm569_vm1, %v1384_v26 }
  0xef   : > { %v607_v1 = vpop.f32.mrb[0].mxu0  ;;  %v650_v2 = vpop.f32.mrb[0].mxu1 }
  0xf0   : > { %v608_v3 = vadd.f32 %v607_v1, %v267_v61  ;;  %v651_v4 = vadd.f32 %v650_v2, %v275_v62  ;;  %v609_v5 = vpop.f32.mrb[1].mxu0  ;;  %v652_v6 = vpop.f32.mrb[1].mxu1  ;;  %v287_v2 = vrot.slane %v1491_v58, %v286_v48 }
  0xf1   : > { %v610_v7 = vadd.f32 %v609_v5, %v271_v63  ;;  %v653_v8 = vadd.f32 %v652_v6, %v279_v0  ;;  %v611_v9 = vpop.f32.mrb[2].mxu0  ;;  %v654_v11 = vpop.f32.mrb[2].mxu1 }
  0xf2   : > { %v788_v12 = vmax.f32 %v608_v3, 0.0  ;;  %v790_v13 = vmax.f32 %v651_v4, 0.0  ;;  %v612_v14 = vadd.f32 %v611_v9, %v267_v61  ;;  %v655_v15 = vadd.f32 %v654_v11, %v275_v62  ;;  %v613_v16 = vpop.f32.mrb[3].mxu0  ;;  %v656_v17 = vpop.f32.mrb[3].mxu1 }
  0xf3   : > { %v789_v18 = vmax.f32 %v610_v7, 0.0  ;;  %v791_v19 = vmax.f32 %v653_v8, 0.0  ;;  %v614_v20 = vadd.f32 %v613_v16, %v271_v63  ;;  %v657_v21 = vadd.f32 %v656_v17, %v279_v0 }
  0xf4   : > { %v808_v22 = vmin.f32 %v788_v12, 6.0  ;;  %v810_v23 = vmin.f32 %v790_v13, 6.0  ;;  %v798_v24 = vmax.f32 %v612_v14, 0.0  ;;  %v800_v25 = vmax.f32 %v655_v15, 0.0 }
  0xf5   : > { %v811_v26 = vmin.f32 %v791_v19, 6.0  ;;  %v799_v27 = vmax.f32 %v614_v20, 0.0  ;;  %v801_v28 = vmax.f32 %v657_v21, 0.0  ;;  %v809_v31 = vmin.f32 %v789_v18, 6.0 }
  0xf6   : > { %v818_v29 = vmin.f32 %v798_v24, 6.0  ;;  %v820_v30 = vmin.f32 %v800_v25, 6.0  ;;  %v283_v62 = vrot.slane %v1491_v58, %v282_v42  ;;  %v291_v63 = vrot.slane %v1491_v58, %v290_v45 }
  0xf7   : > { %v819_v32 = vmin.f32 %v799_v27, 6.0  ;;  %v821_v33 = vmin.f32 %v801_v28, 6.0  ;;  %v295_v3 = vrot.slane %v1491_v58, %v294_v49  ;;  %v926_v7 = vunpack.c.0.s8 %v925_v54 }
  0xf8   : > { %v828_v34 = vadd.f32 %v818_v29, %v808_v22  ;;  %v842_v35 = vadd.f32 %v820_v30, %v810_v23 }
  0xf9   : > { %v835_v36 = vadd.f32 %v819_v32, %v809_v31  ;;  %v849_v37 = vadd.f32 %v821_v33, %v811_v26  ;;  %v1512_v30 = vsub.s32 %v926_v7, %v1484_v55 }
  0xfa   : > { %v829_v38 = vrot.slane %v828_v34, 4  ;;  %v843_v39 = vrot.slane %v842_v35, 4 }
  0xfb   : > { %v836_v40 = vrot.slane %v835_v36, 4  ;;  %v850_v41 = vrot.slane %v849_v37, 4 }
  0xfc   : > { %v830_v43 = vadd.f32 %v829_v38, %v828_v34  ;;  %v844_v44 = vadd.f32 %v843_v39, %v842_v35 }
  0xfd   : > { %v837_v46 = vadd.f32 %v836_v40, %v835_v36  ;;  %v851_v47 = vadd.f32 %v850_v41, %v849_v37 }
  0xfe   : > { %v831_v50 = vrot.slane %v830_v43, 2  ;;  %v845_v51 = vrot.slane %v844_v44, 2 }
  0xff   : > { %v838_v52 = vrot.slane %v837_v46, 2  ;;  %v852_v57 = vrot.slane %v851_v47, 2 }
 0x100   : > { %v832_v60 = vadd.f32 %v831_v50, %v830_v43  ;;  %v846_v61 = vadd.f32 %v845_v51, %v844_v44 }
 0x101   : > { %v839_v0 = vadd.f32 %v838_v52, %v837_v46  ;;  %v853_v1 = vadd.f32 %v852_v57, %v851_v47 }
 0x102   : > { %v833_v4 = vrot.slane %v832_v60, 1  ;;  %v847_v5 = vrot.slane %v846_v61, 1 }
 0x103   : > { %v840_v6 = vrot.slane %v839_v0, 1  ;;  %v854_v8 = vrot.slane %v853_v1, 1  ;;  %v693_v9 = vpop.f32.mrb[4].mxu0  ;;  %v736_v11 = vpop.f32.mrb[4].mxu1 }
 0x104   : > { %v834_v12 = vadd.f32 %v833_v4, %v832_v60  ;;  %v848_v13 = vadd.f32 %v847_v5, %v846_v61  ;;  %v694_v14 = vadd.f32 %v693_v9, %v283_v62  ;;  %v737_v15 = vadd.f32 %v736_v11, %v291_v63  ;;  %v695_v16 = vpop.f32.mrb[5].mxu0  ;;  %v738_v17 = vpop.f32.mrb[5].mxu1 }
 0x105   : > { %v841_v18 = vadd.f32 %v840_v6, %v839_v0  ;;  %v855_v19 = vadd.f32 %v854_v8, %v853_v1  ;;  %v696_v20 = vadd.f32 %v695_v16, %v287_v2  ;;  %v739_v21 = vadd.f32 %v738_v17, %v295_v3  ;;  %v697_v22 = vpop.f32.mrb[6].mxu0  ;;  %v740_v23 = vpop.f32.mrb[6].mxu1  ;;  %v261_v6 = vld [vmem:[%s1548_s2 + $0x8] sm:$0x3] }
 0x106   : > { %v898_v58 = vmul.f32 0.0625, %v834_v12  ;;  %v900_v24 = vmul.f32 0.0625, %v848_v13  ;;  %v792_v25 = vmax.f32 %v694_v14, 0.0  ;;  %v794_v26 = vmax.f32 %v737_v15, 0.0  ;;  %v699_v27 = vpop.f32.mrb[7].mxu0  ;;  %v742_v28 = vpop.f32.mrb[7].mxu1 }
 0x107   : > { %v899_v29 = vmul.f32 0.0625, %v841_v18  ;;  %v901_v31 = vmul.f32 0.0625, %v855_v19  ;;  %v795_v32 = vmax.f32 %v739_v21, 0.0  ;;  %v793_v33 = vmax.f32 %v696_v20, 0.0 }
 0x108   : > { %v698_v34 = vadd.f32 %v697_v22, %v283_v62  ;;  %v741_v35 = vadd.f32 %v740_v23, %v291_v63  ;;  %v812_v38 = vmin.f32 %v792_v25, 6.0  ;;  %v814_v39 = vmin.f32 %v794_v26, 6.0 }
 0x109   : > { %v920_v36 = vcombine.low %v898_v58, %v899_v29  ;;  %v921_v37 = vcombine.low %v900_v24, %v901_v31  ;;  %v700_v42 = vadd.f32 %v699_v27, %v287_v2  ;;  %v743_v43 = vadd.f32 %v742_v28, %v295_v3 }
 0x10a   : > { %v802_v40 = vmax.f32 %v698_v34, 0.0  ;;  %v804_v41 = vmax.f32 %v741_v35, 0.0  ;;  %v815_v46 = vmin.f32 %v795_v32, 6.0  ;;  %v813_v52 = vmin.f32 %v793_v33, 6.0 }
 0x10b   : > { %v930_v44 = vrot.slane %v920_v36, %v1512_v30  ;;  %v937_v45 = vrot.slane %v921_v37, %v1512_v30  ;;  %v803_v49 = vmax.f32 %v700_v42, 0.0  ;;  %v805_v50 = vmax.f32 %v743_v43, 0.0 }
 0x10c   : > { %v822_v47 = vmin.f32 %v802_v40, 6.0  ;;  %v824_v48 = vmin.f32 %v804_v41, 6.0  ;;  %v299_v12 = vrot.slane %v261_v6, %v266_v56  ;;  %v303_v13 = vrot.slane %v261_v6, %v270_v59 }
 0x10d   : > { %v952_v51 = vcombine.low %v930_v44, %v937_v45  ;;  %v823_v57 = vmin.f32 %v803_v49, 6.0  ;;  %v825_v60 = vmin.f32 %v805_v50, 6.0 }
 0x10e   : > { %v856_v53 = vadd.f32 %v822_v47, %v812_v38  ;;  %v870_v54 = vadd.f32 %v824_v48, %v814_v39 }
 0x10f   : > { %v1517_v61 = vrot.slane %v952_v51, %v1512_v30  ;;  %v863_v0 = vadd.f32 %v823_v57, %v813_v52  ;;  %v877_v1 = vadd.f32 %v825_v60, %v815_v46 }
 0x110   : > { %v857_v62 = vrot.slane %v856_v53, 4  ;;  %v871_v63 = vrot.slane %v870_v54, 4 }
 0x111   : > { %v864_v4 = vrot.slane %v863_v0, 4  ;;  %v878_v5 = vrot.slane %v877_v1, 4 }
 0x112   : > { %v858_v2 = vadd.f32 %v857_v62, %v856_v53  ;;  %v872_v3 = vadd.f32 %v871_v63, %v870_v54 }
 0x113   : > { %v865_v9 = vadd.f32 %v864_v4, %v863_v0  ;;  %v879_v11 = vadd.f32 %v878_v5, %v877_v1 }
 0x114   : > { %v859_v7 = vrot.slane %v858_v2, 2  ;;  %v873_v8 = vrot.slane %v872_v3, 2 }
 0x115   : > { %v866_v16 = vrot.slane %v865_v9, 2  ;;  %v880_v17 = vrot.slane %v879_v11, 2 }
 0x116   : > { %v860_v14 = vadd.f32 %v859_v7, %v858_v2  ;;  %v874_v15 = vadd.f32 %v873_v8, %v872_v3 }
 0x117   : > { %v779_v18 = vpop.f32.mrb[8].mxu0  ;;  %v867_v21 = vadd.f32 %v866_v16, %v865_v9  ;;  %v881_v22 = vadd.f32 %v880_v17, %v879_v11 }
 0x118   : > { %v861_v19 = vrot.slane %v860_v14, 1  ;;  %v875_v20 = vrot.slane %v874_v15, 1  ;;  %v781_v23 = vpop.f32.mrb[9].mxu0  ;;  %v780_v58 = vadd.f32 %v779_v18, %v299_v12 }
 0x119   : > { %v782_v24 = vadd.f32 %v781_v23, %v303_v13  ;;  %v783_v25 = vpop.f32.mrb[10].mxu0  ;;  %v868_v28 = vrot.slane %v867_v21, 1  ;;  %v882_v56 = vrot.slane %v881_v22, 1 }
 0x11a   : > { %v862_v26 = vadd.f32 %v861_v19, %v860_v14  ;;  %v876_v27 = vadd.f32 %v875_v20, %v874_v15  ;;  %v785_v29 = vpop.f32.mrb[11].mxu0  ;;  %v796_v55 = vmax.f32 %v780_v58, 0.0  ;;  %v784_v31 = vadd.f32 %v783_v25, %v299_v12  ;;  %v909_v12 = vld [vmem:[%s1345_s20 + $0x8] sm:$0x3] }
 0x11b   : > { %v797_v59 = vmax.f32 %v782_v24, 0.0  ;;  %v786_v32 = vadd.f32 %v785_v29, %v303_v13  ;;  %v869_v35 = vadd.f32 %v868_v28, %v867_v21  ;;  %v883_v36 = vadd.f32 %v882_v56, %v881_v22 }
 0x11c   : > { %v902_v33 = vmul.f32 0.0625, %v862_v26  ;;  %v904_v34 = vmul.f32 0.0625, %v876_v27  ;;  %v806_v37 = vmax.f32 %v784_v31, 0.0  ;;  %v816_v41 = vmin.f32 %v796_v55, 6.0 }
 0x11d   : > { %v807_v38 = vmax.f32 %v786_v32, 0.0  ;;  %v903_v39 = vmul.f32 0.0625, %v869_v35  ;;  %v905_v40 = vmul.f32 0.0625, %v883_v36  ;;  %v817_v42 = vmin.f32 %v797_v59, 6.0 }
 0x11e   : > { %v826_v43 = vmin.f32 %v806_v37, 6.0 }
 0x11f   : > { %v827_v44 = vmin.f32 %v807_v38, 6.0  ;;  %v922_v45 = vcombine.low %v902_v33, %v903_v39  ;;  %v923_v46 = vcombine.low %v904_v34, %v905_v40 }
 0x120   : > { %v884_v47 = vadd.f32 %v826_v43, %v816_v41 }
 0x121   : > { %v891_v48 = vadd.f32 %v827_v44, %v817_v42  ;;  %v944_v49 = vrot.slane %v922_v45, %v1512_v30  ;;  %v951_v50 = vrot.slane %v923_v46, %v1512_v30 }
 0x122   : > { %v885_v51 = vrot.slane %v884_v47, 4 }
 0x123   : > { %v892_v52 = vrot.slane %v891_v48, 4  ;;  %v953_v53 = vcombine.low %v944_v49, %v951_v50 }
 0x124   : > { %v886_v54 = vadd.f32 %v885_v51, %v884_v47 }
 0x125   : > { %v893_v57 = vadd.f32 %v892_v52, %v891_v48  ;;  %v967_v60 = vrot.slane %v953_v53, %v1512_v30 }
 0x126   : > { %v887_v62 = vrot.slane %v886_v54, 2 }
 0x127   : > { %v894_v63 = vrot.slane %v893_v57, 2  ;;  %v968_v0 = vcombine.low %v1517_v61, %v967_v60 }
 0x128   : > { %v888_v1 = vadd.f32 %v887_v62, %v886_v54 }
 0x129   : > { %v895_v2 = vadd.f32 %v894_v63, %v893_v57  ;;  %988 = vst [vmem:[%s1345_s20] sm:$0xff] %v968_v0 }
 0x12a   : > { %v889_v3 = vrot.slane %v888_v1, 1 }
 0x12b   : > { %v896_v4 = vrot.slane %v895_v2, 1 }
 0x12c   : > { %v890_v5 = vadd.f32 %v889_v3, %v888_v1 }
 0x12d   : > { %v897_v6 = vadd.f32 %v896_v4, %v895_v2 }
 0x12e   : > { %v906_v7 = vmul.f32 0.0625, %v890_v5 }
 0x12f   : > { %v907_v8 = vmul.f32 0.0625, %v897_v6 }
 0x131   : > { %v969_v9 = vcombine.low %v906_v7, %v907_v8 }
 0x133   : > { %v976_v11 = vrot.slane %v969_v9, %v1512_v30 }
 0x135   : > { %v983_v13 = vrot.slane %v976_v11, %v1512_v30 }
 0x137   : > { %v987_v14 = vadd.f32 %v983_v13, %v909_v12 }
 0x139   : > { %993 = vst.msk [vmem:[%s1345_s20 + $0x8] sm:$0x3] %vm1326_vm0, %v987_v14 }
 0x13a PF: > { %s13_s14 = sadd.s32 1, %s1253_s14   ;;  %s1552_s12 = smov %s1249_s13 }
 0x13b   : > { %p10_p5 = scmp.ge.s32.totalorder %s13_s14, 4   ;;  %s1553_s13 = smov %s1555_s15 }
 0x13d   :  { %12 = sbr.rel (!%p10_p5) target bundleno = 2 (0x2), region = 66 }

// kernel: _lambda_.45
= control target key start
LH: loop header
LB: loop body
LE: loop exit
PB: predicated region body
PF: predicated region fallthrough
CT: control target
= control target key end

     0   :  { %v659_v32 = vlaneseq  ;;  %v5610_v33 = vmov 1966171168   ;;  %s7700_s0 = inlined_call_operand.vmem [shape: bf16[2,1280], index: 0, kind: input, shape index: {}]   ;;  %s7701_s1 = inlined_call_operand.vmem [shape: bf16[1280,1000], index: 1, kind: input, shape index: {}]   ;;  %s7702_s2 = inlined_call_operand.vmem [shape: f32[1,1000], index: 2, kind: input, shape index: {}]   ;;  %s7703_s3 = inlined_call_operand.hbm [shape: f32[2,1000], index: 3, kind: output, shape index: {}]  }
   0x1   :  { %v17_v0 = vld [vmem:[%s7701_s1] sm:$0xff]  ;;  %v18_v2 = vld [vmem:[%s7701_s1 + $0x8] sm:$0xff]  ;;  %v703_v34 = vunpack.c.l.s4 %v5610_v33 }
   0x2   :  { %v21_v1 = vld [vmem:[%s7701_s1 + $0x20] sm:$0xff]  ;;  %v22_v4 = vld [vmem:[%s7701_s1 + $0x28] sm:$0xff]  ;;  %v5699_v43 = vshrl.u32 %v659_v32, 7 }
   0x3   :  { %v4871_v3 = vcombine.high %v17_v0, %v21_v1  ;;  %v4870_v5 = vcombine.low %v17_v0, %v21_v1  ;;  %v25_v6 = vld [vmem:[%s7701_s1 + $0x40] sm:$0xff]  ;;  %v4873_v8 = vcombine.high %v18_v2, %v22_v4  ;;  %v4872_v9 = vcombine.low %v18_v2, %v22_v4  ;;  %v26_v11 = vld [vmem:[%s7701_s1 + $0x48] sm:$0xff] }
   0x4   :  { %v29_v7 = vld [vmem:[%s7701_s1 + $0x60] sm:$0xff]  ;;  %v30_v12 = vld [vmem:[%s7701_s1 + $0x68] sm:$0xff]  ;;  %v704_v44 = vunpack.c.0.s8 %v703_v34 }
   0x5   :  { %v4879_v10 = vcombine.high %v25_v6, %v29_v7  ;;  %v33_v13 = vld [vmem:[%s7701_s1 + $0x80] sm:$0xff]  ;;  %3982 = vmatprep.subr.bf16.mxu0 %v4871_v3  ;;  %v4881_v14 = vcombine.high %v26_v11, %v30_v12  ;;  %v34_v16 = vld [vmem:[%s7701_s1 + $0x88] sm:$0xff]  ;;  %4187 = vmatprep.subr.bf16.mxu1 %v4873_v8  ;;  %v4878_v18 = vcombine.low %v25_v6, %v29_v7 }
   0x6   :  { %v37_v15 = vld [vmem:[%s7701_s1 + $0xa0] sm:$0xff]  ;;  %v38_v17 = vld [vmem:[%s7701_s1 + $0xa8] sm:$0xff]  ;;  %3983 = vmatpush1.bf16.msra.mxu0 %v4870_v5  ;;  %4188 = vmatpush1.bf16.msra.mxu1 %v4872_v9  ;;  %v4880_v19 = vcombine.low %v26_v11, %v30_v12  ;;  %v5714_v53 = vsub.s32 %v704_v44, %v5699_v43 }
   0x7   :  { %3984 = vmatprep.subr.bf16.mxu0 %v4879_v10  ;;  %v4887_v20 = vcombine.high %v33_v13, %v37_v15  ;;  %4189 = vmatprep.subr.bf16.mxu1 %v4881_v14  ;;  %v4889_v21 = vcombine.high %v34_v16, %v38_v17  ;;  %v41_v22 = vld [vmem:[%s7701_s1 + $0xc0] sm:$0xff]  ;;  %v42_v24 = vld [vmem:[%s7701_s1 + $0xc8] sm:$0xff]  ;;  %v4886_v26 = vcombine.low %v33_v13, %v37_v15 }
   0x8   :  { %v45_v23 = vld [vmem:[%s7701_s1 + $0xe0] sm:$0xff]  ;;  %v46_v25 = vld [vmem:[%s7701_s1 + $0xe8] sm:$0xff]  ;;  %v4888_v27 = vcombine.low %v34_v16, %v38_v17 }
   0x9   :  { %v4895_v28 = vcombine.high %v41_v22, %v45_v23  ;;  %v4897_v29 = vcombine.high %v42_v24, %v46_v25  ;;  %v49_v30 = vld [vmem:[%s7701_s1 + $0x100] sm:$0xff]  ;;  %v50_v35 = vld [vmem:[%s7701_s1 + $0x108] sm:$0xff]  ;;  %v4894_v37 = vcombine.low %v41_v22, %v45_v23  ;;  %v4896_v38 = vcombine.low %v42_v24, %v46_v25 }
   0xa   :  { %3985 = vmatpush1.bf16.msra.mxu0 %v4878_v18  ;;  %4190 = vmatpush1.bf16.msra.mxu1 %v4880_v19  ;;  %v53_v31 = vld [vmem:[%s7701_s1 + $0x120] sm:$0xff]  ;;  %v54_v36 = vld [vmem:[%s7701_s1 + $0x128] sm:$0xff] }
   0xb   :  { %3986 = vmatprep.subr.bf16.mxu0 %v4887_v20  ;;  %4191 = vmatprep.subr.bf16.mxu1 %v4889_v21  ;;  %v4903_v39 = vcombine.high %v49_v30, %v53_v31  ;;  %v4905_v40 = vcombine.high %v50_v35, %v54_v36  ;;  %v57_v41 = vld [vmem:[%s7701_s1 + $0x140] sm:$0xff]  ;;  %v58_v45 = vld [vmem:[%s7701_s1 + $0x148] sm:$0xff]  ;;  %v4902_v47 = vcombine.low %v49_v30, %v53_v31 }
   0xc   :  { %v61_v42 = vld [vmem:[%s7701_s1 + $0x160] sm:$0xff]  ;;  %v62_v46 = vld [vmem:[%s7701_s1 + $0x168] sm:$0xff]  ;;  %v4904_v48 = vcombine.low %v50_v35, %v54_v36 }
   0xd   :  { %v4911_v49 = vcombine.high %v57_v41, %v61_v42  ;;  %v4913_v50 = vcombine.high %v58_v45, %v62_v46  ;;  %v65_v51 = vld [vmem:[%s7701_s1 + $0x180] sm:$0xff]  ;;  %v66_v54 = vld [vmem:[%s7701_s1 + $0x188] sm:$0xff]  ;;  %v4910_v56 = vcombine.low %v57_v41, %v61_v42  ;;  %v4912_v57 = vcombine.low %v58_v45, %v62_v46 }
   0xe   :  { %3987 = vmatpush1.bf16.msra.mxu0 %v4886_v26  ;;  %4192 = vmatpush1.bf16.msra.mxu1 %v4888_v27  ;;  %v69_v52 = vld [vmem:[%s7701_s1 + $0x1a0] sm:$0xff]  ;;  %v70_v55 = vld [vmem:[%s7701_s1 + $0x1a8] sm:$0xff] }
   0xf   :  { %3988 = vmatprep.subr.bf16.mxu0 %v4895_v28  ;;  %4193 = vmatprep.subr.bf16.mxu1 %v4897_v29  ;;  %v4919_v58 = vcombine.high %v65_v51, %v69_v52  ;;  %v5725_v59 = vld [vmem:[%s7700_s0] sm:$0xff]  ;;  %v4921_v60 = vcombine.high %v66_v54, %v70_v55  ;;  %v74_v0 = vld [vmem:[%s7701_s1 + $0x1c8] sm:$0xff]  ;;  %v4918_v2 = vcombine.low %v65_v51, %v69_v52 }
  0x10   :  { %v73_v61 = vld [vmem:[%s7701_s1 + $0x1c0] sm:$0xff]  ;;  %v5735_v63 = vrot.slane %v5725_v59, %v5714_v53  ;;  %v78_v1 = vld [vmem:[%s7701_s1 + $0x1e8] sm:$0xff]  ;;  %v4920_v4 = vcombine.low %v66_v54, %v70_v55 }
  0x11   :  { %v77_v62 = vld [vmem:[%s7701_s1 + $0x1e0] sm:$0xff]  ;;  %v4929_v6 = vcombine.high %v74_v0, %v78_v1  ;;  %v82_v10 = vld [vmem:[%s7701_s1 + $0x208] sm:$0xff]  ;;  %v4928_v13 = vcombine.low %v74_v0, %v78_v1 }
  0x12   :  { %3989 = vmatpush1.bf16.msra.mxu0 %v4894_v37  ;;  %4194 = vmatpush1.bf16.msra.mxu1 %v4896_v38  ;;  %v716_v3 = vcombine.high %v5735_v63, %v5735_v63  ;;  %v4927_v5 = vcombine.high %v73_v61, %v77_v62  ;;  %v81_v7 = vld [vmem:[%s7701_s1 + $0x200] sm:$0xff]  ;;  %v86_v11 = vld [vmem:[%s7701_s1 + $0x228] sm:$0xff]  ;;  %v4926_v12 = vcombine.low %v73_v61, %v77_v62 }
  0x13   :  { %3990 = vmatprep.subr.bf16.mxu0 %v4903_v39  ;;  %4195 = vmatprep.subr.bf16.mxu1 %v4905_v40  ;;  %v85_v8 = vld [vmem:[%s7701_s1 + $0x220] sm:$0xff]  ;;  %v4937_v15 = vcombine.high %v82_v10, %v86_v11  ;;  %v90_v18 = vld [vmem:[%s7701_s1 + $0x248] sm:$0xff]  ;;  %v4936_v21 = vcombine.low %v82_v10, %v86_v11 }
  0x14   :  { %v5752_v9 = vrot.slane %v716_v3, %v5714_v53  ;;  %v4935_v14 = vcombine.high %v81_v7, %v85_v8  ;;  %v89_v16 = vld [vmem:[%s7701_s1 + $0x240] sm:$0xff]  ;;  %v94_v19 = vld [vmem:[%s7701_s1 + $0x268] sm:$0xff]  ;;  %v4934_v20 = vcombine.low %v81_v7, %v85_v8 }
  0x15   :  { %v93_v17 = vld [vmem:[%s7701_s1 + $0x260] sm:$0xff]  ;;  %v4945_v23 = vcombine.high %v90_v18, %v94_v19  ;;  %v98_v26 = vld [vmem:[%s7701_s1 + $0x288] sm:$0xff]  ;;  %v4944_v29 = vcombine.low %v90_v18, %v94_v19 }
  0x16   :  { %3991 = vmatpush1.bf16.msra.mxu0 %v4902_v47  ;;  %4196 = vmatpush1.bf16.msra.mxu1 %v4904_v48  ;;  %v4943_v22 = vcombine.high %v89_v16, %v93_v17  ;;  %v97_v24 = vld [vmem:[%s7701_s1 + $0x280] sm:$0xff]  ;;  %v102_v27 = vld [vmem:[%s7701_s1 + $0x2a8] sm:$0xff]  ;;  %v4942_v28 = vcombine.low %v89_v16, %v93_v17 }
  0x17   :  { %3992 = vmatprep.subr.bf16.mxu0 %v4911_v49  ;;  %4197 = vmatprep.subr.bf16.mxu1 %v4913_v50  ;;  %v101_v25 = vld [vmem:[%s7701_s1 + $0x2a0] sm:$0xff]  ;;  %v4953_v31 = vcombine.high %v98_v26, %v102_v27  ;;  %v106_v34 = vld [vmem:[%s7701_s1 + $0x2c8] sm:$0xff]  ;;  %v4952_v37 = vcombine.low %v98_v26, %v102_v27 }
  0x18   :  { %4014 = vmatprep.mubr.bf16.mxu0 %v5752_v9  ;;  %4219 = vmatprep.mubr.bf16.mxu1 %v5752_v9  ;;  %v4951_v30 = vcombine.high %v97_v24, %v101_v25  ;;  %v105_v32 = vld [vmem:[%s7701_s1 + $0x2c0] sm:$0xff]  ;;  %v110_v35 = vld [vmem:[%s7701_s1 + $0x2e8] sm:$0xff]  ;;  %v4950_v36 = vcombine.low %v97_v24, %v101_v25 }
  0x19   :  { %v109_v33 = vld [vmem:[%s7701_s1 + $0x2e0] sm:$0xff]  ;;  %v4961_v39 = vcombine.high %v106_v34, %v110_v35  ;;  %v114_v42 = vld [vmem:[%s7701_s1 + $0x308] sm:$0xff]  ;;  %v4960_v46 = vcombine.low %v106_v34, %v110_v35 }
  0x1a   :  { %3993 = vmatpush1.bf16.msra.mxu0 %v4910_v56  ;;  %4198 = vmatpush1.bf16.msra.mxu1 %v4912_v57  ;;  %v4959_v38 = vcombine.high %v105_v32, %v109_v33  ;;  %v113_v40 = vld [vmem:[%s7701_s1 + $0x300] sm:$0xff]  ;;  %v118_v44 = vld [vmem:[%s7701_s1 + $0x328] sm:$0xff]  ;;  %v4958_v45 = vcombine.low %v105_v32, %v109_v33 }
  0x1b   :  { %3994 = vmatprep.subr.bf16.mxu0 %v4919_v58  ;;  %4199 = vmatprep.subr.bf16.mxu1 %v4921_v60  ;;  %v117_v41 = vld [vmem:[%s7701_s1 + $0x320] sm:$0xff]  ;;  %v4969_v48 = vcombine.high %v114_v42, %v118_v44  ;;  %v122_v51 = vld [vmem:[%s7701_s1 + $0x348] sm:$0xff]  ;;  %v4968_v55 = vcombine.low %v114_v42, %v118_v44 }
  0x1c   :  { %v4967_v47 = vcombine.high %v113_v40, %v117_v41  ;;  %v121_v49 = vld [vmem:[%s7701_s1 + $0x340] sm:$0xff]  ;;  %v126_v52 = vld [vmem:[%s7701_s1 + $0x368] sm:$0xff]  ;;  %v4966_v54 = vcombine.low %v113_v40, %v117_v41 }
  0x1d   :  { %v125_v50 = vld [vmem:[%s7701_s1 + $0x360] sm:$0xff]  ;;  %v4977_v57 = vcombine.high %v122_v51, %v126_v52  ;;  %v130_v61 = vld [vmem:[%s7701_s1 + $0x388] sm:$0xff]  ;;  %v4976_v1 = vcombine.low %v122_v51, %v126_v52 }
  0x1e   :  { %3995 = vmatpush1.bf16.msra.mxu0 %v4918_v2  ;;  %4200 = vmatpush1.bf16.msra.mxu1 %v4920_v4  ;;  %v4975_v56 = vcombine.high %v121_v49, %v125_v50  ;;  %v129_v58 = vld [vmem:[%s7701_s1 + $0x380] sm:$0xff]  ;;  %v134_v62 = vld [vmem:[%s7701_s1 + $0x3a8] sm:$0xff]  ;;  %v4974_v0 = vcombine.low %v121_v49, %v125_v50 }
  0x1f   :  { %3996 = vmatprep.subr.bf16.mxu0 %v4927_v5  ;;  %4201 = vmatprep.subr.bf16.mxu1 %v4929_v6  ;;  %v133_v60 = vld [vmem:[%s7701_s1 + $0x3a0] sm:$0xff]  ;;  %v4985_v3 = vcombine.high %v130_v61, %v134_v62  ;;  %v138_v6 = vld [vmem:[%s7701_s1 + $0x3c8] sm:$0xff]  ;;  %v4984_v10 = vcombine.low %v130_v61, %v134_v62 }
  0x20   :  { %v4983_v2 = vcombine.high %v129_v58, %v133_v60  ;;  %v137_v4 = vld [vmem:[%s7701_s1 + $0x3c0] sm:$0xff]  ;;  %v142_v7 = vld [vmem:[%s7701_s1 + $0x3e8] sm:$0xff]  ;;  %v4982_v8 = vcombine.low %v129_v58, %v133_v60 }
  0x21   :  { %v141_v5 = vld [vmem:[%s7701_s1 + $0x3e0] sm:$0xff]  ;;  %v150_v16 = vld [vmem:[%s7701_s1 + $0x428] sm:$0xff]  ;;  %v4992_v18 = vcombine.low %v138_v6, %v142_v7 }
  0x22   :  { %3997 = vmatpush1.bf16.msra.mxu0 %v4926_v12  ;;  %4202 = vmatpush1.bf16.msra.mxu1 %v4928_v13  ;;  %v4991_v11 = vcombine.high %v137_v4, %v141_v5  ;;  %v4993_v12 = vcombine.high %v138_v6, %v142_v7  ;;  %v145_v13 = vld [vmem:[%s7701_s1 + $0x400] sm:$0xff]  ;;  %v4990_v17 = vcombine.low %v137_v4, %v141_v5  ;;  %v154_v24 = vld [vmem:[%s7701_s1 + $0x448] sm:$0xff] }
  0x23   :  { %3998 = vmatprep.subr.bf16.mxu0 %v4935_v14  ;;  %4203 = vmatprep.subr.bf16.mxu1 %v4937_v15  ;;  %v149_v14 = vld [vmem:[%s7701_s1 + $0x420] sm:$0xff]  ;;  %v146_v15 = vld [vmem:[%s7701_s1 + $0x408] sm:$0xff] }
  0x24   :  { %v4999_v19 = vcombine.high %v145_v13, %v149_v14  ;;  %v158_v25 = vld [vmem:[%s7701_s1 + $0x468] sm:$0xff]  ;;  %v4998_v26 = vcombine.low %v145_v13, %v149_v14 }
  0x26   :  { %3999 = vmatpush1.bf16.msra.mxu0 %v4934_v20  ;;  %4204 = vmatpush1.bf16.msra.mxu1 %v4936_v21  ;;  %v5001_v20 = vcombine.high %v146_v15, %v150_v16  ;;  %v153_v21 = vld [vmem:[%s7701_s1 + $0x440] sm:$0xff] }
  0x27   :  { %4000 = vmatprep.subr.bf16.mxu0 %v4943_v22  ;;  %4205 = vmatprep.subr.bf16.mxu1 %v4945_v23  ;;  %v157_v22 = vld [vmem:[%s7701_s1 + $0x460] sm:$0xff]  ;;  %v5866_v23 = vrot.slane %v5735_v63, %v5714_v53 }
  0x2a   :  { %4001 = vmatpush1.bf16.msra.mxu0 %v4942_v28  ;;  %4206 = vmatpush1.bf16.msra.mxu1 %v4944_v29 }
  0x2b   :  { %4002 = vmatprep.subr.bf16.mxu0 %v4951_v30  ;;  %4207 = vmatprep.subr.bf16.mxu1 %v4953_v31 }
  0x2e   :  { %4003 = vmatpush1.bf16.msra.mxu0 %v4950_v36  ;;  %4208 = vmatpush1.bf16.msra.mxu1 %v4952_v37 }
  0x2f   :  { %4004 = vmatprep.subr.bf16.mxu0 %v4959_v38  ;;  %4209 = vmatprep.subr.bf16.mxu1 %v4961_v39 }
  0x32   :  { %4005 = vmatpush1.bf16.msra.mxu0 %v4958_v45  ;;  %4210 = vmatpush1.bf16.msra.mxu1 %v4960_v46 }
  0x33   :  { %4006 = vmatprep.subr.bf16.mxu0 %v4967_v47  ;;  %4211 = vmatprep.subr.bf16.mxu1 %v4969_v48 }
  0x36   :  { %4007 = vmatpush1.bf16.msra.mxu0 %v4966_v54  ;;  %4212 = vmatpush1.bf16.msra.mxu1 %v4968_v55 }
  0x37   :  { %4008 = vmatprep.subr.bf16.mxu0 %v4975_v56  ;;  %4213 = vmatprep.subr.bf16.mxu1 %v4977_v57 }
  0x3a   :  { %4009 = vmatpush1.bf16.msra.mxu0 %v4974_v0  ;;  %4214 = vmatpush1.bf16.msra.mxu1 %v4976_v1 }
  0x3b   :  { %4010 = vmatprep.subr.bf16.mxu0 %v4983_v2  ;;  %4215 = vmatprep.subr.bf16.mxu1 %v4985_v3 }
  0x3e   :  { %4011 = vmatpush1.bf16.msra.mxu0 %v4982_v8  ;;  %4216 = vmatpush1.bf16.msra.mxu1 %v4984_v10 }
  0x3f   :  { %4012 = vmatprep.subr.bf16.mxu0 %v4991_v11  ;;  %4217 = vmatprep.subr.bf16.mxu1 %v4993_v12 }
  0x42   :  { %4013 = vmatpush1.bf16.msra.mxu0 %v4990_v17 }
  0x43   :  { %8 = vsyncpa [#allocation3], 0  ;;  %4218 = vmatpush1.bf16.msra.mxu1 %v4992_v18  ;;  %4023 = vmatprep.subr.bf16.mxu0 %v4999_v19  ;;  %v5000_v27 = vcombine.low %v146_v15, %v150_v16  ;;  %v5007_v28 = vcombine.high %v153_v21, %v157_v22  ;;  %v5009_v29 = vcombine.high %v154_v24, %v158_v25  ;;  %v161_v63 = vld [vmem:[%s7701_s1 + $0x480] sm:$0xff]  ;;  %v162_v32 = vld [vmem:[%s7701_s1 + $0x488] sm:$0xff]  ;;  %vm4847_vm0 = vcmask 1041408  }
  0x44   :  { %4228 = vmatprep.subr.bf16.mxu1 %v5001_v20  ;;  %v165_v30 = vld [vmem:[%s7701_s1 + $0x4a0] sm:$0xff]  ;;  %v5882_v31 = vcombine.high %v5752_v9, %v5752_v9  ;;  %v166_v33 = vld [vmem:[%s7701_s1 + $0x4a8] sm:$0xff]  ;;  %v5006_v34 = vcombine.low %v153_v21, %v157_v22  ;;  %v5008_v35 = vcombine.low %v154_v24, %v158_v25  ;;  %vm4848_vm1 = vcmask 1043458  }
  0x45   :  { %4015 = vmatmul.mubr.bf16.vlgmr.msra.gmra.mrb[0].mxu0 %v5866_v23  ;;  %v5015_v36 = vcombine.high %v161_v63, %v165_v30  ;;  %v5017_v37 = vcombine.high %v162_v32, %v166_v33  ;;  %v169_v38 = vld [vmem:[%s7701_s1 + $0x4c0] sm:$0xff]  ;;  %v170_v40 = vld [vmem:[%s7701_s1 + $0x4c8] sm:$0xff]  ;;  %v5014_v42 = vcombine.low %v161_v63, %v165_v30  ;;  %v5016_v44 = vcombine.low %v162_v32, %v166_v33  ;;  %vm4849_vm2 = vmor %vm4848_vm1, %vm4847_vm0 }
  0x46   :  { %4024 = vmatpush1.bf16.msra.mxu0 %v4998_v26  ;;  %4220 = vmatmul.mubr.bf16.vlgmr.msra.gmra.mrb[0].mxu1 %v5866_v23  ;;  %v173_v39 = vld [vmem:[%s7701_s1 + $0x4e0] sm:$0xff]  ;;  %v174_v41 = vld [vmem:[%s7701_s1 + $0x4e8] sm:$0xff]  ;;  %vm4850_vm3 = vcmask 1045508   ;;  %vm4852_vm5 = vcmask 850950  }
  0x47   :  { %4229 = vmatpush1.bf16.msra.mxu1 %v5000_v27  ;;  %4025 = vmatprep.subr.bf16.mxu0 %v5007_v28  ;;  %v5023_v45 = vcombine.high %v169_v38, %v173_v39  ;;  %v5025_v46 = vcombine.high %v170_v40, %v174_v41  ;;  %v177_v47 = vld [vmem:[%s7701_s1 + $0x500] sm:$0xff]  ;;  %v178_v49 = vld [vmem:[%s7701_s1 + $0x508] sm:$0xff]  ;;  %v5022_v51 = vcombine.low %v169_v38, %v173_v39  ;;  %vm4851_vm4 = vmor %vm4850_vm3, %vm4849_vm2 }
  0x48   :  { %4230 = vmatprep.subr.bf16.mxu1 %v5009_v29  ;;  %4055 = vmatprep.mubr.bf16.mxu0 %v5882_v31  ;;  %v181_v48 = vld [vmem:[%s7701_s1 + $0x520] sm:$0xff]  ;;  %v182_v50 = vld [vmem:[%s7701_s1 + $0x528] sm:$0xff]  ;;  %v5024_v52 = vcombine.low %v170_v40, %v174_v41  ;;  %vm4853_vm6 = vmor %vm4852_vm5, %vm4851_vm4 }
  0x49   :  { %4260 = vmatprep.mubr.bf16.mxu1 %v5882_v31  ;;  %v5031_v54 = vcombine.high %v177_v47, %v181_v48  ;;  %v5033_v55 = vcombine.high %v178_v49, %v182_v50  ;;  %v185_v56 = vld [vmem:[%s7701_s1 + $0x540] sm:$0xff]  ;;  %v186_v58 = vld [vmem:[%s7701_s1 + $0x548] sm:$0xff]  ;;  %v5030_v61 = vcombine.low %v177_v47, %v181_v48  ;;  %v5032_v62 = vcombine.low %v178_v49, %v182_v50 }
  0x4a   :  { %4026 = vmatpush1.bf16.msra.mxu0 %v5006_v34  ;;  %v189_v57 = vld [vmem:[%s7701_s1 + $0x560] sm:$0xff]  ;;  %v190_v60 = vld [vmem:[%s7701_s1 + $0x568] sm:$0xff] }
  0x4b   :  { %4231 = vmatpush1.bf16.msra.mxu1 %v5008_v35  ;;  %4027 = vmatprep.subr.bf16.mxu0 %v5015_v36  ;;  %v5039_v0 = vcombine.high %v185_v56, %v189_v57  ;;  %v5041_v1 = vcombine.high %v186_v58, %v190_v60  ;;  %v193_v2 = vld [vmem:[%s7701_s1 + $0x580] sm:$0xff]  ;;  %v194_v4 = vld [vmem:[%s7701_s1 + $0x588] sm:$0xff]  ;;  %v5038_v6 = vcombine.low %v185_v56, %v189_v57 }
  0x4c   :  { %4232 = vmatprep.subr.bf16.mxu1 %v5017_v37  ;;  %v197_v3 = vld [vmem:[%s7701_s1 + $0x5a0] sm:$0xff]  ;;  %v198_v5 = vld [vmem:[%s7701_s1 + $0x5a8] sm:$0xff]  ;;  %v5040_v7 = vcombine.low %v186_v58, %v190_v60 }
  0x4d   :  { %v5047_v8 = vcombine.high %v193_v2, %v197_v3  ;;  %v5049_v10 = vcombine.high %v194_v4, %v198_v5  ;;  %v201_v11 = vld [vmem:[%s7701_s1 + $0x5c0] sm:$0xff]  ;;  %v202_v13 = vld [vmem:[%s7701_s1 + $0x5c8] sm:$0xff]  ;;  %v5046_v15 = vcombine.low %v193_v2, %v197_v3  ;;  %v5048_v16 = vcombine.low %v194_v4, %v198_v5 }
  0x4e   :  { %4028 = vmatpush1.bf16.msra.mxu0 %v5014_v42  ;;  %v205_v12 = vld [vmem:[%s7701_s1 + $0x5e0] sm:$0xff]  ;;  %v206_v14 = vld [vmem:[%s7701_s1 + $0x5e8] sm:$0xff] }
  0x4f   :  { %4233 = vmatpush1.bf16.msra.mxu1 %v5016_v44  ;;  %4029 = vmatprep.subr.bf16.mxu0 %v5023_v45  ;;  %v5055_v17 = vcombine.high %v201_v11, %v205_v12  ;;  %v5057_v18 = vcombine.high %v202_v13, %v206_v14  ;;  %v209_v19 = vld [vmem:[%s7701_s1 + $0x600] sm:$0xff]  ;;  %v210_v21 = vld [vmem:[%s7701_s1 + $0x608] sm:$0xff]  ;;  %v5054_v24 = vcombine.low %v201_v11, %v205_v12 }
  0x50   :  { %4234 = vmatprep.subr.bf16.mxu1 %v5025_v46  ;;  %v213_v20 = vld [vmem:[%s7701_s1 + $0x620] sm:$0xff]  ;;  %v214_v22 = vld [vmem:[%s7701_s1 + $0x628] sm:$0xff]  ;;  %v5056_v25 = vcombine.low %v202_v13, %v206_v14 }
  0x51   :  { %v5063_v26 = vcombine.high %v209_v19, %v213_v20  ;;  %v5065_v27 = vcombine.high %v210_v21, %v214_v22  ;;  %v217_v28 = vld [vmem:[%s7701_s1 + $0x640] sm:$0xff]  ;;  %v218_v63 = vld [vmem:[%s7701_s1 + $0x648] sm:$0xff]  ;;  %v5062_v32 = vcombine.low %v209_v19, %v213_v20  ;;  %v5064_v33 = vcombine.low %v210_v21, %v214_v22 }
  0x52   :  { %4030 = vmatpush1.bf16.msra.mxu0 %v5022_v51  ;;  %v221_v29 = vld [vmem:[%s7701_s1 + $0x660] sm:$0xff]  ;;  %v222_v30 = vld [vmem:[%s7701_s1 + $0x668] sm:$0xff]  ;;  %v701_v19 = vcombine.high %v5725_v59, %v5725_v59 }
  0x53   :  { %4235 = vmatpush1.bf16.msra.mxu1 %v5024_v52  ;;  %4031 = vmatprep.subr.bf16.mxu0 %v5031_v54  ;;  %v5071_v34 = vcombine.high %v217_v28, %v221_v29  ;;  %v5073_v35 = vcombine.high %v218_v63, %v222_v30  ;;  %v225_v36 = vld [vmem:[%s7701_s1 + $0x680] sm:$0xff]  ;;  %v226_v38 = vld [vmem:[%s7701_s1 + $0x688] sm:$0xff]  ;;  %v5070_v40 = vcombine.low %v217_v28, %v221_v29 }
  0x54   :  { %4236 = vmatprep.subr.bf16.mxu1 %v5033_v55  ;;  %v229_v37 = vld [vmem:[%s7701_s1 + $0x6a0] sm:$0xff]  ;;  %v230_v39 = vld [vmem:[%s7701_s1 + $0x6a8] sm:$0xff]  ;;  %v5072_v41 = vcombine.low %v218_v63, %v222_v30  ;;  %v6059_v28 = vrot.slane %v701_v19, %v5714_v53 }
  0x55   :  { %v5079_v42 = vcombine.high %v225_v36, %v229_v37  ;;  %v5081_v44 = vcombine.high %v226_v38, %v230_v39  ;;  %v233_v45 = vld [vmem:[%s7701_s1 + $0x6c0] sm:$0xff]  ;;  %v234_v47 = vld [vmem:[%s7701_s1 + $0x6c8] sm:$0xff]  ;;  %v5078_v49 = vcombine.low %v225_v36, %v229_v37  ;;  %v5080_v50 = vcombine.low %v226_v38, %v230_v39 }
  0x56   :  { %4032 = vmatpush1.bf16.msra.mxu0 %v5030_v61  ;;  %v237_v46 = vld [vmem:[%s7701_s1 + $0x6e0] sm:$0xff]  ;;  %v238_v48 = vld [vmem:[%s7701_s1 + $0x6e8] sm:$0xff]  ;;  %v717_v37 = vcombine.high %v6059_v28, %v6059_v28  ;;  %v6077_v38 = vcombine.high %v5866_v23, %v5866_v23 }
  0x57   :  { %4237 = vmatpush1.bf16.msra.mxu1 %v5032_v62  ;;  %4033 = vmatprep.subr.bf16.mxu0 %v5039_v0  ;;  %v5087_v51 = vcombine.high %v233_v45, %v237_v46  ;;  %v5089_v52 = vcombine.high %v234_v47, %v238_v48  ;;  %v241_v54 = vld [vmem:[%s7701_s1 + $0x700] sm:$0xff]  ;;  %v242_v56 = vld [vmem:[%s7701_s1 + $0x708] sm:$0xff]  ;;  %v5086_v58 = vcombine.low %v233_v45, %v237_v46 }
  0x58   :  { %4238 = vmatprep.subr.bf16.mxu1 %v5041_v1  ;;  %v245_v55 = vld [vmem:[%s7701_s1 + $0x720] sm:$0xff]  ;;  %v246_v57 = vld [vmem:[%s7701_s1 + $0x728] sm:$0xff]  ;;  %v5088_v60 = vcombine.low %v234_v47, %v238_v48  ;;  %v6092_v48 = vrot.slane %v717_v37, %v5714_v53 }
  0x59   :  { %v5095_v61 = vcombine.high %v241_v54, %v245_v55  ;;  %v5097_v62 = vcombine.high %v242_v56, %v246_v57  ;;  %v249_v0 = vld [vmem:[%s7701_s1 + $0x740] sm:$0xff]  ;;  %v250_v2 = vld [vmem:[%s7701_s1 + $0x748] sm:$0xff]  ;;  %v5094_v4 = vcombine.low %v241_v54, %v245_v55  ;;  %v5096_v5 = vcombine.low %v242_v56, %v246_v57 }
  0x5a   :  { %4034 = vmatpush1.bf16.msra.mxu0 %v5038_v6  ;;  %v253_v1 = vld [vmem:[%s7701_s1 + $0x760] sm:$0xff]  ;;  %v254_v3 = vld [vmem:[%s7701_s1 + $0x768] sm:$0xff] }
  0x5b   :  { %4239 = vmatpush1.bf16.msra.mxu1 %v5040_v7  ;;  %4035 = vmatprep.subr.bf16.mxu0 %v5047_v8  ;;  %v5103_v6 = vcombine.high %v249_v0, %v253_v1  ;;  %v5105_v7 = vcombine.high %v250_v2, %v254_v3  ;;  %v257_v8 = vld [vmem:[%s7701_s1 + $0x780] sm:$0xff]  ;;  %v258_v11 = vld [vmem:[%s7701_s1 + $0x788] sm:$0xff]  ;;  %v5102_v13 = vcombine.low %v249_v0, %v253_v1 }
  0x5c   :  { %4240 = vmatprep.subr.bf16.mxu1 %v5049_v10  ;;  %v261_v10 = vld [vmem:[%s7701_s1 + $0x7a0] sm:$0xff]  ;;  %v262_v12 = vld [vmem:[%s7701_s1 + $0x7a8] sm:$0xff]  ;;  %v5104_v14 = vcombine.low %v250_v2, %v254_v3 }
  0x5d   :  { %v266_v20 = vld [vmem:[%s7701_s1 + $0x7c8] sm:$0xff]  ;;  %v5110_v22 = vcombine.low %v257_v8, %v261_v10  ;;  %v273_v59 = vld [vmem:[%s7701_s1 + $0x800] sm:$0xff] }
  0x5e   :  { %4036 = vmatpush1.bf16.msra.mxu0 %v5046_v15  ;;  %v5111_v15 = vcombine.high %v257_v8, %v261_v10  ;;  %v270_v21 = vld [vmem:[%s7701_s1 + $0x7e8] sm:$0xff]  ;;  %v285_v36 = vld [vmem:[%s7701_s1 + $0x860] sm:$0xff] }
  0x5f   :  { %4241 = vmatpush1.bf16.msra.mxu1 %v5048_v16  ;;  %4037 = vmatprep.subr.bf16.mxu0 %v5055_v17  ;;  %v5113_v16 = vcombine.high %v258_v11, %v262_v12  ;;  %v265_v17 = vld [vmem:[%s7701_s1 + $0x7c0] sm:$0xff]  ;;  %v274_v29 = vld [vmem:[%s7701_s1 + $0x808] sm:$0xff] }
  0x60   :  { %4242 = vmatprep.subr.bf16.mxu1 %v5057_v18  ;;  %v269_v18 = vld [vmem:[%s7701_s1 + $0x7e0] sm:$0xff]  ;;  %v278_v63 = vld [vmem:[%s7701_s1 + $0x828] sm:$0xff] }
  0x61   :  { %v5118_v30 = vcombine.low %v265_v17, %v269_v18  ;;  %v282_v39 = vld [vmem:[%s7701_s1 + $0x848] sm:$0xff]  ;;  %v289_v46 = vld [vmem:[%s7701_s1 + $0x880] sm:$0xff] }
  0x62   :  { %4038 = vmatpush1.bf16.msra.mxu0 %v5054_v24  ;;  %v5112_v24 = vcombine.low %v258_v11, %v262_v12  ;;  %v293_v47 = vld [vmem:[%s7701_s1 + $0x8a0] sm:$0xff] }
  0x63   :  { %4243 = vmatpush1.bf16.msra.mxu1 %v5056_v25  ;;  %4039 = vmatprep.subr.bf16.mxu0 %v5063_v26  ;;  %v5119_v25 = vcombine.high %v265_v17, %v269_v18  ;;  %v5121_v26 = vcombine.high %v266_v20, %v270_v21  ;;  %v5143_v54 = vcombine.high %v289_v46, %v293_v47  ;;  %v297_v56 = vld [vmem:[%s7701_s1 + $0x8c0] sm:$0xff] }
  0x64   :  { %4244 = vmatprep.subr.bf16.mxu1 %v5065_v27  ;;  %v277_v27 = vld [vmem:[%s7701_s1 + $0x820] sm:$0xff] }
  0x65   :  { %v301_v57 = vld [vmem:[%s7701_s1 + $0x8e0] sm:$0xff] }
  0x66   :  { %4040 = vmatpush1.bf16.msra.mxu0 %v5062_v32  ;;  %v5120_v32 = vcombine.low %v266_v20, %v270_v21  ;;  %v5151_v0 = vcombine.high %v297_v56, %v301_v57  ;;  %v305_v2 = vld [vmem:[%s7701_s1 + $0x900] sm:$0xff]  ;;  %v322_v21 = vld [vmem:[%s7701_s1 + $0x988] sm:$0xff] }
  0x67   :  { %4245 = vmatpush1.bf16.msra.mxu1 %v5064_v33  ;;  %4041 = vmatprep.subr.bf16.mxu0 %v5071_v34  ;;  %v5127_v33 = vcombine.high %v273_v59, %v277_v27  ;;  %v5129_v34 = vcombine.high %v274_v29, %v278_v63  ;;  %v309_v3 = vld [vmem:[%s7701_s1 + $0x920] sm:$0xff] }
  0x68   :  { %4246 = vmatprep.subr.bf16.mxu1 %v5073_v35  ;;  %v281_v35 = vld [vmem:[%s7701_s1 + $0x840] sm:$0xff]  ;;  %v5159_v8 = vcombine.high %v305_v2, %v309_v3 }
  0x69   :  { %v313_v11 = vld [vmem:[%s7701_s1 + $0x940] sm:$0xff] }
  0x6a   :  { %4042 = vmatpush1.bf16.msra.mxu0 %v5070_v40  ;;  %v286_v40 = vld [vmem:[%s7701_s1 + $0x868] sm:$0xff]  ;;  %v317_v12 = vld [vmem:[%s7701_s1 + $0x960] sm:$0xff] }
  0x6b   :  { %4247 = vmatpush1.bf16.msra.mxu1 %v5072_v41  ;;  %4043 = vmatprep.subr.bf16.mxu0 %v5079_v42  ;;  %v5126_v41 = vcombine.low %v273_v59, %v277_v27  ;;  %v5128_v42 = vcombine.low %v274_v29, %v278_v63  ;;  %v5137_v45 = vcombine.high %v282_v39, %v286_v40  ;;  %v321_v19 = vld [vmem:[%s7701_s1 + $0x980] sm:$0xff]  ;;  %v330_v63 = vld [vmem:[%s7701_s1 + $0x9c8] sm:$0xff] }
  0x6c   :  { %4248 = vmatprep.subr.bf16.mxu1 %v5081_v44  ;;  %v5135_v44 = vcombine.high %v281_v35, %v285_v36  ;;  %v5167_v17 = vcombine.high %v313_v11, %v317_v12  ;;  %v325_v20 = vld [vmem:[%s7701_s1 + $0x9a0] sm:$0xff] }
  0x6d   :  { %v329_v27 = vld [vmem:[%s7701_s1 + $0x9c0] sm:$0xff] }
  0x6e   :  { %4044 = vmatpush1.bf16.msra.mxu0 %v5078_v49  ;;  %v290_v49 = vld [vmem:[%s7701_s1 + $0x888] sm:$0xff]  ;;  %v333_v29 = vld [vmem:[%s7701_s1 + $0x9e0] sm:$0xff] }
  0x6f   :  { %4249 = vmatpush1.bf16.msra.mxu1 %v5080_v50  ;;  %4045 = vmatprep.subr.bf16.mxu0 %v5087_v51  ;;  %v294_v50 = vld [vmem:[%s7701_s1 + $0x8a8] sm:$0xff]  ;;  %v5134_v51 = vcombine.low %v281_v35, %v285_v36  ;;  %v337_v36 = vld [vmem:[%s7701_s1 + $0xa00] sm:$0xff] }
  0x70   :  { %4250 = vmatprep.subr.bf16.mxu1 %v5089_v52  ;;  %v5136_v52 = vcombine.low %v282_v39, %v286_v40  ;;  %v5145_v55 = vcombine.high %v290_v49, %v294_v50  ;;  %v341_v37 = vld [vmem:[%s7701_s1 + $0xa20] sm:$0xff]  ;;  %v338_v39 = vld [vmem:[%s7701_s1 + $0xa08] sm:$0xff] }
  0x71   :  { %v342_v40 = vld [vmem:[%s7701_s1 + $0xa28] sm:$0xff] }
  0x72   :  { %4046 = vmatpush1.bf16.msra.mxu0 %v5086_v58  ;;  %v298_v58 = vld [vmem:[%s7701_s1 + $0x8c8] sm:$0xff] }
  0x73   :  { %4251 = vmatpush1.bf16.msra.mxu1 %v5088_v60  ;;  %4047 = vmatprep.subr.bf16.mxu0 %v5095_v61  ;;  %v302_v60 = vld [vmem:[%s7701_s1 + $0x8e8] sm:$0xff]  ;;  %v5142_v61 = vcombine.low %v289_v46, %v293_v47  ;;  %v345_v46 = vld [vmem:[%s7701_s1 + $0xa40] sm:$0xff] }
  0x74   :  { %4252 = vmatprep.subr.bf16.mxu1 %v5097_v62  ;;  %v5144_v62 = vcombine.low %v290_v49, %v294_v50  ;;  %v5153_v1 = vcombine.high %v298_v58, %v302_v60  ;;  %v349_v47 = vld [vmem:[%s7701_s1 + $0xa60] sm:$0xff]  ;;  %v346_v49 = vld [vmem:[%s7701_s1 + $0xa48] sm:$0xff] }
  0x75   :  { %v350_v50 = vld [vmem:[%s7701_s1 + $0xa68] sm:$0xff] }
  0x76   :  { %4048 = vmatpush1.bf16.msra.mxu0 %v5094_v4  ;;  %v306_v4 = vld [vmem:[%s7701_s1 + $0x908] sm:$0xff] }
  0x77   :  { %4253 = vmatpush1.bf16.msra.mxu1 %v5096_v5  ;;  %4049 = vmatprep.subr.bf16.mxu0 %v5103_v6  ;;  %v310_v5 = vld [vmem:[%s7701_s1 + $0x928] sm:$0xff]  ;;  %v5150_v6 = vcombine.low %v297_v56, %v301_v57  ;;  %v353_v56 = vld [vmem:[%s7701_s1 + $0xa80] sm:$0xff] }
  0x78   :  { %4254 = vmatprep.subr.bf16.mxu1 %v5105_v7  ;;  %v5152_v7 = vcombine.low %v298_v58, %v302_v60  ;;  %v5161_v10 = vcombine.high %v306_v4, %v310_v5  ;;  %v357_v57 = vld [vmem:[%s7701_s1 + $0xaa0] sm:$0xff]  ;;  %v354_v58 = vld [vmem:[%s7701_s1 + $0xa88] sm:$0xff] }
  0x79   :  { %v358_v60 = vld [vmem:[%s7701_s1 + $0xaa8] sm:$0xff] }
  0x7a   :  { %4050 = vmatpush1.bf16.msra.mxu0 %v5102_v13  ;;  %v314_v13 = vld [vmem:[%s7701_s1 + $0x948] sm:$0xff] }
  0x7b   :  { %4255 = vmatpush1.bf16.msra.mxu1 %v5104_v14  ;;  %4051 = vmatprep.subr.bf16.mxu0 %v5111_v15  ;;  %v318_v14 = vld [vmem:[%s7701_s1 + $0x968] sm:$0xff]  ;;  %v5158_v15 = vcombine.low %v305_v2, %v309_v3  ;;  %v361_v2 = vld [vmem:[%s7701_s1 + $0xac0] sm:$0xff] }
  0x7c   :  { %4256 = vmatprep.subr.bf16.mxu1 %v5113_v16  ;;  %v5160_v16 = vcombine.low %v306_v4, %v310_v5  ;;  %v5169_v18 = vcombine.high %v314_v13, %v318_v14  ;;  %v365_v3 = vld [vmem:[%s7701_s1 + $0xae0] sm:$0xff]  ;;  %v362_v4 = vld [vmem:[%s7701_s1 + $0xac8] sm:$0xff] }
  0x7d   :  { %v366_v5 = vld [vmem:[%s7701_s1 + $0xae8] sm:$0xff] }
  0x7e   :  { %4052 = vmatpush1.bf16.msra.mxu0 %v5110_v22  ;;  %v326_v22 = vld [vmem:[%s7701_s1 + $0x9a8] sm:$0xff] }
  0x7f   :  { %4257 = vmatpush1.bf16.msra.mxu1 %v5112_v24  ;;  %4053 = vmatprep.subr.bf16.mxu0 %v5119_v25  ;;  %v5166_v24 = vcombine.low %v313_v11, %v317_v12  ;;  %v5168_v25 = vcombine.low %v314_v13, %v318_v14  ;;  %v5177_v59 = vcombine.high %v322_v21, %v326_v22  ;;  %v369_v11 = vld [vmem:[%s7701_s1 + $0xb00] sm:$0xff]  ;;  %v370_v13 = vld [vmem:[%s7701_s1 + $0xb08] sm:$0xff] }
  0x80   :  { %4258 = vmatprep.subr.bf16.mxu1 %v5121_v26  ;;  %v5175_v26 = vcombine.high %v321_v19, %v325_v20  ;;  %v373_v12 = vld [vmem:[%s7701_s1 + $0xb20] sm:$0xff]  ;;  %v374_v14 = vld [vmem:[%s7701_s1 + $0xb28] sm:$0xff] }
  0x82   :  { %4054 = vmatpush1.bf16.msra.mxu0 %v5118_v30  ;;  %v334_v30 = vld [vmem:[%s7701_s1 + $0x9e8] sm:$0xff] }
  0x83   :  { %4259 = vmatpush1.bf16.msra.mxu1 %v5120_v32  ;;  %4064 = vmatprep.subr.bf16.mxu0 %v5127_v33  ;;  %v5174_v32 = vcombine.low %v321_v19, %v325_v20  ;;  %v5176_v33 = vcombine.low %v322_v21, %v326_v22  ;;  %v5185_v35 = vcombine.high %v330_v63, %v334_v30  ;;  %v377_v19 = vld [vmem:[%s7701_s1 + $0xb40] sm:$0xff]  ;;  %v378_v21 = vld [vmem:[%s7701_s1 + $0xb48] sm:$0xff] }
  0x84   :  { %4269 = vmatprep.subr.bf16.mxu1 %v5129_v34  ;;  %v5183_v34 = vcombine.high %v329_v27, %v333_v29  ;;  %v381_v20 = vld [vmem:[%s7701_s1 + $0xb60] sm:$0xff]  ;;  %v382_v22 = vld [vmem:[%s7701_s1 + $0xb68] sm:$0xff] }
  0x85   :  { %4056 = vmatmul.mubr.bf16.vlgmr.msra.gmra.mrb[0].mxu0 %v6077_v38 }
  0x86   :  { %4065 = vmatpush1.bf16.msra.mxu0 %v5126_v41  ;;  %4261 = vmatmul.mubr.bf16.vlgmr.msra.gmra.mrb[0].mxu1 %v6077_v38  ;;  %v5182_v41 = vcombine.low %v329_v27, %v333_v29  ;;  %v385_v27 = vld [vmem:[%s7701_s1 + $0xb80] sm:$0xff] }
  0x87   :  { %4270 = vmatpush1.bf16.msra.mxu1 %v5128_v42  ;;  %4066 = vmatprep.subr.bf16.mxu0 %v5135_v44  ;;  %v5184_v42 = vcombine.low %v330_v63, %v334_v30  ;;  %v5191_v44 = vcombine.high %v337_v36, %v341_v37  ;;  %v389_v29 = vld [vmem:[%s7701_s1 + $0xba0] sm:$0xff]  ;;  %v386_v63 = vld [vmem:[%s7701_s1 + $0xb88] sm:$0xff] }
  0x88   :  { %4271 = vmatprep.subr.bf16.mxu1 %v5137_v45  ;;  %4096 = vmatprep.mubr.bf16.mxu0 %v6092_v48  ;;  %v5193_v45 = vcombine.high %v338_v39, %v342_v40  ;;  %v390_v30 = vld [vmem:[%s7701_s1 + $0xba8] sm:$0xff] }
  0x89   :  { %4301 = vmatprep.mubr.bf16.mxu1 %v6092_v48 }
  0x8a   :  { %4067 = vmatpush1.bf16.msra.mxu0 %v5134_v51  ;;  %v5190_v51 = vcombine.low %v337_v36, %v341_v37  ;;  %v393_v36 = vld [vmem:[%s7701_s1 + $0xbc0] sm:$0xff] }
  0x8b   :  { %4272 = vmatpush1.bf16.msra.mxu1 %v5136_v52  ;;  %4068 = vmatprep.subr.bf16.mxu0 %v5143_v54  ;;  %v5192_v52 = vcombine.low %v338_v39, %v342_v40  ;;  %v5199_v54 = vcombine.high %v345_v46, %v349_v47  ;;  %v397_v37 = vld [vmem:[%s7701_s1 + $0xbe0] sm:$0xff]  ;;  %v394_v39 = vld [vmem:[%s7701_s1 + $0xbc8] sm:$0xff] }
  0x8c   :  { %4273 = vmatprep.subr.bf16.mxu1 %v5145_v55  ;;  %v5201_v55 = vcombine.high %v346_v49, %v350_v50  ;;  %v398_v40 = vld [vmem:[%s7701_s1 + $0xbe8] sm:$0xff] }
  0x8e   :  { %4069 = vmatpush1.bf16.msra.mxu0 %v5142_v61  ;;  %v5198_v61 = vcombine.low %v345_v46, %v349_v47  ;;  %v401_v46 = vld [vmem:[%s7701_s1 + $0xc00] sm:$0xff] }
  0x8f   :  { %4274 = vmatpush1.bf16.msra.mxu1 %v5144_v62  ;;  %4070 = vmatprep.subr.bf16.mxu0 %v5151_v0  ;;  %v5200_v62 = vcombine.low %v346_v49, %v350_v50  ;;  %v5207_v0 = vcombine.high %v353_v56, %v357_v57  ;;  %v405_v47 = vld [vmem:[%s7701_s1 + $0xc20] sm:$0xff]  ;;  %v402_v49 = vld [vmem:[%s7701_s1 + $0xc08] sm:$0xff] }
  0x90   :  { %4275 = vmatprep.subr.bf16.mxu1 %v5153_v1  ;;  %v5209_v1 = vcombine.high %v354_v58, %v358_v60  ;;  %v406_v50 = vld [vmem:[%s7701_s1 + $0xc28] sm:$0xff] }
  0x92   :  { %4071 = vmatpush1.bf16.msra.mxu0 %v5150_v6  ;;  %v5206_v6 = vcombine.low %v353_v56, %v357_v57  ;;  %v409_v56 = vld [vmem:[%s7701_s1 + $0xc40] sm:$0xff] }
  0x93   :  { %4276 = vmatpush1.bf16.msra.mxu1 %v5152_v7  ;;  %4072 = vmatprep.subr.bf16.mxu0 %v5159_v8  ;;  %v5208_v7 = vcombine.low %v354_v58, %v358_v60  ;;  %v5215_v8 = vcombine.high %v361_v2, %v365_v3  ;;  %v413_v57 = vld [vmem:[%s7701_s1 + $0xc60] sm:$0xff]  ;;  %v6280_v58 = vrot.slane %v6059_v28, %v5714_v53  ;;  %v410_v60 = vld [vmem:[%s7701_s1 + $0xc48] sm:$0xff] }
  0x94   :  { %4277 = vmatprep.subr.bf16.mxu1 %v5161_v10  ;;  %v5217_v10 = vcombine.high %v362_v4, %v366_v5  ;;  %v417_v28 = vld [vmem:[%s7701_s1 + $0xc80] sm:$0xff] }
  0x96   :  { %4073 = vmatpush1.bf16.msra.mxu0 %v5158_v15  ;;  %v5214_v15 = vcombine.low %v361_v2, %v365_v3  ;;  %v421_v3 = vld [vmem:[%s7701_s1 + $0xca0] sm:$0xff] }
  0x97   :  { %4278 = vmatpush1.bf16.msra.mxu1 %v5160_v16  ;;  %4074 = vmatprep.subr.bf16.mxu0 %v5167_v17  ;;  %v5216_v16 = vcombine.low %v362_v4, %v366_v5  ;;  %v5223_v17 = vcombine.high %v369_v11, %v373_v12  ;;  %v6296_v4 = vcombine.high %v6092_v48, %v6092_v48  ;;  %v418_v5 = vld [vmem:[%s7701_s1 + $0xc88] sm:$0xff] }
  0x98   :  { %4279 = vmatprep.subr.bf16.mxu1 %v5169_v18  ;;  %v5225_v18 = vcombine.high %v370_v13, %v374_v14 }
  0x9a   :  { %4075 = vmatpush1.bf16.msra.mxu0 %v5166_v24  ;;  %v5222_v24 = vcombine.low %v369_v11, %v373_v12  ;;  %v425_v12 = vld [vmem:[%s7701_s1 + $0xcc0] sm:$0xff] }
  0x9b   :  { %4280 = vmatpush1.bf16.msra.mxu1 %v5168_v25  ;;  %4076 = vmatprep.subr.bf16.mxu0 %v5175_v26  ;;  %v5224_v25 = vcombine.low %v370_v13, %v374_v14  ;;  %v5231_v26 = vcombine.high %v377_v19, %v381_v20  ;;  %v429_v13 = vld [vmem:[%s7701_s1 + $0xce0] sm:$0xff]  ;;  %v426_v14 = vld [vmem:[%s7701_s1 + $0xcc8] sm:$0xff] }
  0x9c   :  { %4281 = vmatprep.subr.bf16.mxu1 %v5177_v59  ;;  %v5233_v59 = vcombine.high %v378_v21, %v382_v22 }
  0x9e   :  { %4077 = vmatpush1.bf16.msra.mxu0 %v5174_v32  ;;  %v5230_v32 = vcombine.low %v377_v19, %v381_v20  ;;  %v433_v20 = vld [vmem:[%s7701_s1 + $0xd00] sm:$0xff] }
  0x9f   :  { %4282 = vmatpush1.bf16.msra.mxu1 %v5176_v33  ;;  %4078 = vmatprep.subr.bf16.mxu0 %v5183_v34  ;;  %v5232_v33 = vcombine.low %v378_v21, %v382_v22  ;;  %v5239_v34 = vcombine.high %v385_v27, %v389_v29  ;;  %v437_v21 = vld [vmem:[%s7701_s1 + $0xd20] sm:$0xff]  ;;  %v434_v22 = vld [vmem:[%s7701_s1 + $0xd08] sm:$0xff] }
  0xa0   :  { %4283 = vmatprep.subr.bf16.mxu1 %v5185_v35  ;;  %v5241_v35 = vcombine.high %v386_v63, %v390_v30 }
  0xa2   :  { %4079 = vmatpush1.bf16.msra.mxu0 %v5182_v41  ;;  %v5238_v41 = vcombine.low %v385_v27, %v389_v29  ;;  %v441_v29 = vld [vmem:[%s7701_s1 + $0xd40] sm:$0xff] }
  0xa3   :  { %4284 = vmatpush1.bf16.msra.mxu1 %v5184_v42  ;;  %4080 = vmatprep.subr.bf16.mxu0 %v5191_v44  ;;  %v5240_v42 = vcombine.low %v386_v63, %v390_v30  ;;  %v5247_v44 = vcombine.high %v393_v36, %v397_v37  ;;  %v445_v63 = vld [vmem:[%s7701_s1 + $0xd60] sm:$0xff]  ;;  %v442_v30 = vld [vmem:[%s7701_s1 + $0xd48] sm:$0xff] }
  0xa4   :  { %4285 = vmatprep.subr.bf16.mxu1 %v5193_v45  ;;  %v5249_v45 = vcombine.high %v394_v39, %v398_v40 }
  0xa6   :  { %4081 = vmatpush1.bf16.msra.mxu0 %v5190_v51  ;;  %v5246_v51 = vcombine.low %v393_v36, %v397_v37  ;;  %v449_v37 = vld [vmem:[%s7701_s1 + $0xd80] sm:$0xff] }
  0xa7   :  { %4286 = vmatpush1.bf16.msra.mxu1 %v5192_v52  ;;  %4082 = vmatprep.subr.bf16.mxu0 %v5199_v54  ;;  %v5248_v52 = vcombine.low %v394_v39, %v398_v40  ;;  %v5255_v54 = vcombine.high %v401_v46, %v405_v47  ;;  %v453_v39 = vld [vmem:[%s7701_s1 + $0xda0] sm:$0xff]  ;;  %v450_v40 = vld [vmem:[%s7701_s1 + $0xd88] sm:$0xff] }
  0xa8   :  { %4287 = vmatprep.subr.bf16.mxu1 %v5201_v55  ;;  %v5257_v55 = vcombine.high %v402_v49, %v406_v50 }
  0xaa   :  { %4083 = vmatpush1.bf16.msra.mxu0 %v5198_v61  ;;  %v414_v61 = vld [vmem:[%s7701_s1 + $0xc68] sm:$0xff] }
  0xab   :  { %4288 = vmatpush1.bf16.msra.mxu1 %v5200_v62  ;;  %4084 = vmatprep.subr.bf16.mxu0 %v5207_v0  ;;  %v5254_v62 = vcombine.low %v401_v46, %v405_v47  ;;  %v5256_v0 = vcombine.low %v402_v49, %v406_v50  ;;  %v5265_v2 = vcombine.high %v410_v60, %v414_v61  ;;  %v457_v47 = vld [vmem:[%s7701_s1 + $0xdc0] sm:$0xff]  ;;  %v458_v50 = vld [vmem:[%s7701_s1 + $0xdc8] sm:$0xff] }
  0xac   :  { %4289 = vmatprep.subr.bf16.mxu1 %v5209_v1  ;;  %v5263_v1 = vcombine.high %v409_v56, %v413_v57  ;;  %v461_v49 = vld [vmem:[%s7701_s1 + $0xde0] sm:$0xff] }
  0xae   :  { %4085 = vmatpush1.bf16.msra.mxu0 %v5206_v6  ;;  %v422_v6 = vld [vmem:[%s7701_s1 + $0xca8] sm:$0xff] }
  0xaf   :  { %4290 = vmatpush1.bf16.msra.mxu1 %v5208_v7  ;;  %4086 = vmatprep.subr.bf16.mxu0 %v5215_v8  ;;  %v5262_v7 = vcombine.low %v409_v56, %v413_v57  ;;  %v5264_v8 = vcombine.low %v410_v60, %v414_v61  ;;  %v5273_v11 = vcombine.high %v418_v5, %v422_v6  ;;  %v465_v57 = vld [vmem:[%s7701_s1 + $0xe00] sm:$0xff]  ;;  %v466_v61 = vld [vmem:[%s7701_s1 + $0xe08] sm:$0xff] }
  0xb0   :  { %4291 = vmatprep.subr.bf16.mxu1 %v5217_v10  ;;  %v5271_v10 = vcombine.high %v417_v28, %v421_v3  ;;  %v469_v60 = vld [vmem:[%s7701_s1 + $0xe20] sm:$0xff] }
  0xb2   :  { %4087 = vmatpush1.bf16.msra.mxu0 %v5214_v15  ;;  %v430_v15 = vld [vmem:[%s7701_s1 + $0xce8] sm:$0xff] }
  0xb3   :  { %4292 = vmatpush1.bf16.msra.mxu1 %v5216_v16  ;;  %4088 = vmatprep.subr.bf16.mxu0 %v5223_v17  ;;  %v5270_v16 = vcombine.low %v417_v28, %v421_v3  ;;  %v5272_v17 = vcombine.low %v418_v5, %v422_v6  ;;  %v5281_v19 = vcombine.high %v426_v14, %v430_v15  ;;  %v473_v3 = vld [vmem:[%s7701_s1 + $0xe40] sm:$0xff]  ;;  %v474_v6 = vld [vmem:[%s7701_s1 + $0xe48] sm:$0xff] }
  0xb4   :  { %4293 = vmatprep.subr.bf16.mxu1 %v5225_v18  ;;  %v5279_v18 = vcombine.high %v425_v12, %v429_v13  ;;  %v477_v5 = vld [vmem:[%s7701_s1 + $0xe60] sm:$0xff] }
  0xb6   :  { %4089 = vmatpush1.bf16.msra.mxu0 %v5222_v24  ;;  %v438_v24 = vld [vmem:[%s7701_s1 + $0xd28] sm:$0xff] }
  0xb7   :  { %4294 = vmatpush1.bf16.msra.mxu1 %v5224_v25  ;;  %4090 = vmatprep.subr.bf16.mxu0 %v5231_v26  ;;  %v5278_v25 = vcombine.low %v425_v12, %v429_v13  ;;  %v5280_v26 = vcombine.low %v426_v14, %v430_v15  ;;  %v5289_v27 = vcombine.high %v434_v22, %v438_v24  ;;  %v481_v13 = vld [vmem:[%s7701_s1 + $0xe80] sm:$0xff]  ;;  %v482_v15 = vld [vmem:[%s7701_s1 + $0xe88] sm:$0xff] }
  0xb8   :  { %4295 = vmatprep.subr.bf16.mxu1 %v5233_v59  ;;  %v5287_v59 = vcombine.high %v433_v20, %v437_v21  ;;  %v485_v14 = vld [vmem:[%s7701_s1 + $0xea0] sm:$0xff] }
  0xba   :  { %4091 = vmatpush1.bf16.msra.mxu0 %v5230_v32  ;;  %v446_v32 = vld [vmem:[%s7701_s1 + $0xd68] sm:$0xff] }
  0xbb   :  { %4296 = vmatpush1.bf16.msra.mxu1 %v5232_v33  ;;  %4092 = vmatprep.subr.bf16.mxu0 %v5239_v34  ;;  %v5286_v33 = vcombine.low %v433_v20, %v437_v21  ;;  %v5288_v34 = vcombine.low %v434_v22, %v438_v24  ;;  %v5297_v36 = vcombine.high %v442_v30, %v446_v32  ;;  %v489_v21 = vld [vmem:[%s7701_s1 + $0xec0] sm:$0xff]  ;;  %v490_v24 = vld [vmem:[%s7701_s1 + $0xec8] sm:$0xff] }
  0xbc   :  { %4297 = vmatprep.subr.bf16.mxu1 %v5241_v35  ;;  %v5295_v35 = vcombine.high %v441_v29, %v445_v63  ;;  %v493_v22 = vld [vmem:[%s7701_s1 + $0xee0] sm:$0xff] }
  0xbe   :  { %4093 = vmatpush1.bf16.msra.mxu0 %v5238_v41  ;;  %v454_v41 = vld [vmem:[%s7701_s1 + $0xda8] sm:$0xff] }
  0xbf   :  { %4298 = vmatpush1.bf16.msra.mxu1 %v5240_v42  ;;  %4094 = vmatprep.subr.bf16.mxu0 %v5247_v44  ;;  %v5294_v42 = vcombine.low %v441_v29, %v445_v63  ;;  %v5296_v44 = vcombine.low %v442_v30, %v446_v32  ;;  %v5305_v46 = vcombine.high %v450_v40, %v454_v41  ;;  %v497_v63 = vld [vmem:[%s7701_s1 + $0xf00] sm:$0xff]  ;;  %v498_v32 = vld [vmem:[%s7701_s1 + $0xf08] sm:$0xff] }
  0xc0   :  { %4299 = vmatprep.subr.bf16.mxu1 %v5249_v45  ;;  %v5303_v45 = vcombine.high %v449_v37, %v453_v39  ;;  %v501_v30 = vld [vmem:[%s7701_s1 + $0xf20] sm:$0xff] }
  0xc2   :  { %4095 = vmatpush1.bf16.msra.mxu0 %v5246_v51  ;;  %v462_v51 = vld [vmem:[%s7701_s1 + $0xde8] sm:$0xff] }
  0xc3   :  { %4300 = vmatpush1.bf16.msra.mxu1 %v5248_v52  ;;  %4105 = vmatprep.subr.bf16.mxu0 %v5255_v54  ;;  %v5302_v52 = vcombine.low %v449_v37, %v453_v39  ;;  %v5304_v54 = vcombine.low %v450_v40, %v454_v41  ;;  %v5313_v56 = vcombine.high %v458_v50, %v462_v51  ;;  %v505_v39 = vld [vmem:[%s7701_s1 + $0xf40] sm:$0xff]  ;;  %v506_v41 = vld [vmem:[%s7701_s1 + $0xf48] sm:$0xff] }
  0xc4   :  { %4310 = vmatprep.subr.bf16.mxu1 %v5257_v55  ;;  %v5311_v55 = vcombine.high %v457_v47, %v461_v49  ;;  %v509_v40 = vld [vmem:[%s7701_s1 + $0xf60] sm:$0xff] }
  0xc5   :  { %4097 = vmatmul.mubr.bf16.vlgmr.msra.gmra.mrb[0].mxu0 %v6280_v58 }
  0xc6   :  { %4106 = vmatpush1.bf16.msra.mxu0 %v5254_v62  ;;  %4302 = vmatmul.mubr.bf16.vlgmr.msra.gmra.mrb[0].mxu1 %v6280_v58  ;;  %v470_v62 = vld [vmem:[%s7701_s1 + $0xe28] sm:$0xff] }
  0xc7   :  { %4311 = vmatpush1.bf16.msra.mxu1 %v5256_v0  ;;  %4107 = vmatprep.subr.bf16.mxu0 %v5263_v1  ;;  %v5310_v0 = vcombine.low %v457_v47, %v461_v49  ;;  %v5312_v1 = vcombine.low %v458_v50, %v462_v51  ;;  %v5321_v28 = vcombine.high %v466_v61, %v470_v62  ;;  %v513_v49 = vld [vmem:[%s7701_s1 + $0xf80] sm:$0xff]  ;;  %v514_v51 = vld [vmem:[%s7701_s1 + $0xf88] sm:$0xff] }
  0xc8   :  { %4312 = vmatprep.subr.bf16.mxu1 %v5265_v2  ;;  %4137 = vmatprep.mubr.bf16.mxu0 %v6296_v4  ;;  %v5319_v2 = vcombine.high %v465_v57, %v469_v60  ;;  %v517_v50 = vld [vmem:[%s7701_s1 + $0xfa0] sm:$0xff] }
  0xc9   :  { %4342 = vmatprep.mubr.bf16.mxu1 %v6296_v4 }
  0xca   :  { %4108 = vmatpush1.bf16.msra.mxu0 %v5262_v7  ;;  %v478_v7 = vld [vmem:[%s7701_s1 + $0xe68] sm:$0xff] }
  0xcb   :  { %4313 = vmatpush1.bf16.msra.mxu1 %v5264_v8  ;;  %4109 = vmatprep.subr.bf16.mxu0 %v5271_v10  ;;  %v5318_v8 = vcombine.low %v465_v57, %v469_v60  ;;  %v5320_v10 = vcombine.low %v466_v61, %v470_v62  ;;  %v5329_v12 = vcombine.high %v474_v6, %v478_v7  ;;  %v521_v60 = vld [vmem:[%s7701_s1 + $0xfc0] sm:$0xff]  ;;  %v522_v62 = vld [vmem:[%s7701_s1 + $0xfc8] sm:$0xff] }
  0xcc   :  { %4314 = vmatprep.subr.bf16.mxu1 %v5273_v11  ;;  %v5327_v11 = vcombine.high %v473_v3, %v477_v5  ;;  %v525_v61 = vld [vmem:[%s7701_s1 + $0xfe0] sm:$0xff] }
  0xce   :  { %4110 = vmatpush1.bf16.msra.mxu0 %v5270_v16  ;;  %v486_v16 = vld [vmem:[%s7701_s1 + $0xea8] sm:$0xff] }
  0xcf   :  { %4315 = vmatpush1.bf16.msra.mxu1 %v5272_v17  ;;  %4111 = vmatprep.subr.bf16.mxu0 %v5279_v18  ;;  %v5326_v17 = vcombine.low %v473_v3, %v477_v5  ;;  %v5328_v18 = vcombine.low %v474_v6, %v478_v7  ;;  %v5337_v20 = vcombine.high %v482_v15, %v486_v16  ;;  %v529_v5 = vld [vmem:[%s7701_s1 + $0x1000] sm:$0xff]  ;;  %v530_v7 = vld [vmem:[%s7701_s1 + $0x1008] sm:$0xff] }
  0xd0   :  { %4316 = vmatprep.subr.bf16.mxu1 %v5281_v19  ;;  %v5335_v19 = vcombine.high %v481_v13, %v485_v14  ;;  %v533_v6 = vld [vmem:[%s7701_s1 + $0x1020] sm:$0xff] }
  0xd2   :  { %4112 = vmatpush1.bf16.msra.mxu0 %v5278_v25  ;;  %v494_v25 = vld [vmem:[%s7701_s1 + $0xee8] sm:$0xff] }
  0xd3   :  { %4317 = vmatpush1.bf16.msra.mxu1 %v5280_v26  ;;  %4113 = vmatprep.subr.bf16.mxu0 %v5287_v59  ;;  %v5334_v26 = vcombine.low %v481_v13, %v485_v14  ;;  %v5336_v59 = vcombine.low %v482_v15, %v486_v16  ;;  %v5345_v29 = vcombine.high %v490_v24, %v494_v25  ;;  %v537_v15 = vld [vmem:[%s7701_s1 + $0x1040] sm:$0xff] }
  0xd4   :  { %4318 = vmatprep.subr.bf16.mxu1 %v5289_v27  ;;  %v5343_v27 = vcombine.high %v489_v21, %v493_v22  ;;  %v5383_v13 = vcombine.high %v529_v5, %v533_v6  ;;  %v541_v16 = vld [vmem:[%s7701_s1 + $0x1060] sm:$0xff] }
  0xd6   :  { %4114 = vmatpush1.bf16.msra.mxu0 %v5286_v33  ;;  %v502_v33 = vld [vmem:[%s7701_s1 + $0xf28] sm:$0xff] }
  0xd7   :  { %4319 = vmatpush1.bf16.msra.mxu1 %v5288_v34  ;;  %4115 = vmatprep.subr.bf16.mxu0 %v5295_v35  ;;  %v5342_v34 = vcombine.low %v489_v21, %v493_v22  ;;  %v5344_v35 = vcombine.low %v490_v24, %v494_v25  ;;  %v5353_v37 = vcombine.high %v498_v32, %v502_v33 }
  0xd8   :  { %4320 = vmatprep.subr.bf16.mxu1 %v5297_v36  ;;  %v5351_v36 = vcombine.high %v497_v63, %v501_v30  ;;  %v5382_v21 = vcombine.low %v529_v5, %v533_v6  ;;  %v5391_v24 = vcombine.high %v537_v15, %v541_v16  ;;  %v582_v5 = vld [vmem:[%s7701_s1 + $0x11a8] sm:$0xff] }
  0xda   :  { %4116 = vmatpush1.bf16.msra.mxu0 %v5294_v42  ;;  %v510_v42 = vld [vmem:[%s7701_s1 + $0xf68] sm:$0xff] }
  0xdb   :  { %4321 = vmatpush1.bf16.msra.mxu1 %v5296_v44  ;;  %4117 = vmatprep.subr.bf16.mxu0 %v5303_v45  ;;  %v5350_v44 = vcombine.low %v497_v63, %v501_v30  ;;  %v5352_v45 = vcombine.low %v498_v32, %v502_v33  ;;  %v5361_v47 = vcombine.high %v506_v41, %v510_v42  ;;  %v550_v63 = vld [vmem:[%s7701_s1 + $0x10a8] sm:$0xff] }
  0xdc   :  { %4322 = vmatprep.subr.bf16.mxu1 %v5305_v46  ;;  %v5359_v46 = vcombine.high %v505_v39, %v509_v40  ;;  %v5390_v30 = vcombine.low %v537_v15, %v541_v16  ;;  %v590_v15 = vld [vmem:[%s7701_s1 + $0x11e8] sm:$0xff] }
  0xde   :  { %4118 = vmatpush1.bf16.msra.mxu0 %v5302_v52  ;;  %v518_v52 = vld [vmem:[%s7701_s1 + $0xfa8] sm:$0xff] }
  0xdf   :  { %4323 = vmatpush1.bf16.msra.mxu1 %v5304_v54  ;;  %4119 = vmatprep.subr.bf16.mxu0 %v5311_v55  ;;  %v5358_v54 = vcombine.low %v505_v39, %v509_v40  ;;  %v5360_v55 = vcombine.low %v506_v41, %v510_v42  ;;  %v5369_v57 = vcombine.high %v514_v51, %v518_v52  ;;  %v558_v39 = vld [vmem:[%s7701_s1 + $0x10e8] sm:$0xff] }
  0xe0   :  { %4324 = vmatprep.subr.bf16.mxu1 %v5313_v56  ;;  %v5367_v56 = vcombine.high %v513_v49, %v517_v50 }
  0xe2   :  { %4120 = vmatpush1.bf16.msra.mxu0 %v5310_v0  ;;  %v526_v0 = vld [vmem:[%s7701_s1 + $0xfe8] sm:$0xff] }
  0xe3   :  { %4325 = vmatpush1.bf16.msra.mxu1 %v5312_v1  ;;  %4121 = vmatprep.subr.bf16.mxu0 %v5319_v2  ;;  %v5366_v1 = vcombine.low %v513_v49, %v517_v50  ;;  %v5368_v2 = vcombine.low %v514_v51, %v518_v52  ;;  %v5377_v3 = vcombine.high %v522_v62, %v526_v0  ;;  %v566_v49 = vld [vmem:[%s7701_s1 + $0x1128] sm:$0xff] }
  0xe4   :  { %4326 = vmatprep.subr.bf16.mxu1 %v5321_v28  ;;  %v5375_v28 = vcombine.high %v521_v60, %v525_v61 }
  0xe6   :  { %4122 = vmatpush1.bf16.msra.mxu0 %v5318_v8  ;;  %v534_v8 = vld [vmem:[%s7701_s1 + $0x1028] sm:$0xff] }
  0xe7   :  { %4327 = vmatpush1.bf16.msra.mxu1 %v5320_v10  ;;  %4123 = vmatprep.subr.bf16.mxu0 %v5327_v11  ;;  %v6479_v10 = vld.sshfl [vmem:[%s7700_s0 + $0x8] sm:$0x11 pattern:$0x75316420]  ;;  %v5374_v11 = vcombine.low %v521_v60, %v525_v61  ;;  %v5385_v14 = vcombine.high %v530_v7, %v534_v8  ;;  %v5384_v22 = vcombine.low %v530_v7, %v534_v8 }
  0xe8   :  { %4328 = vmatprep.subr.bf16.mxu1 %v5329_v12  ;;  %v5376_v12 = vcombine.low %v522_v62, %v526_v0  ;;  %v574_v60 = vld [vmem:[%s7701_s1 + $0x1168] sm:$0xff] }
  0xea   :  { %4124 = vmatpush1.bf16.msra.mxu0 %v5326_v17  ;;  %v757_v17 = vcombine.high %v6479_v10, %v6479_v10 }
  0xeb   :  { %4329 = vmatpush1.bf16.msra.mxu1 %v5328_v18  ;;  %4125 = vmatprep.subr.bf16.mxu0 %v5335_v19  ;;  %v6491_v18 = vcombine.high %v6280_v58, %v6280_v58  ;;  %v538_v19 = vld [vmem:[%s7701_s1 + $0x1048] sm:$0xff] }
  0xec   :  { %4330 = vmatprep.subr.bf16.mxu1 %v5337_v20  ;;  %v542_v20 = vld [vmem:[%s7701_s1 + $0x1068] sm:$0xff] }
  0xed   :  { %v5393_v25 = vcombine.high %v538_v19, %v542_v20  ;;  %v5392_v32 = vcombine.low %v538_v19, %v542_v20 }
  0xee   :  { %4126 = vmatpush1.bf16.msra.mxu0 %v5334_v26  ;;  %v545_v26 = vld [vmem:[%s7701_s1 + $0x1080] sm:$0xff] }
  0xef   :  { %4331 = vmatpush1.bf16.msra.mxu1 %v5336_v59  ;;  %4127 = vmatprep.subr.bf16.mxu0 %v5343_v27  ;;  %v549_v59 = vld [vmem:[%s7701_s1 + $0x10a0] sm:$0xff]  ;;  %v6506_v27 = vrot.slane %v757_v17, %v5714_v53 }
  0xf0   :  { %4332 = vmatprep.subr.bf16.mxu1 %v5345_v29  ;;  %v546_v29 = vld [vmem:[%s7701_s1 + $0x1088] sm:$0xff]  ;;  %v5399_v33 = vcombine.high %v545_v26, %v549_v59  ;;  %v5398_v40 = vcombine.low %v545_v26, %v549_v59 }
  0xf1   :  { %v5400_v41 = vcombine.low %v546_v29, %v550_v63 }
  0xf2   :  { %4128 = vmatpush1.bf16.msra.mxu0 %v5342_v34  ;;  %v5401_v34 = vcombine.high %v546_v29, %v550_v63 }
  0xf3   :  { %4333 = vmatpush1.bf16.msra.mxu1 %v5344_v35  ;;  %4129 = vmatprep.subr.bf16.mxu0 %v5351_v36  ;;  %v553_v35 = vld [vmem:[%s7701_s1 + $0x10c0] sm:$0xff] }
  0xf4   :  { %4334 = vmatprep.subr.bf16.mxu1 %v5353_v37  ;;  %v557_v36 = vld [vmem:[%s7701_s1 + $0x10e0] sm:$0xff]  ;;  %v554_v37 = vld [vmem:[%s7701_s1 + $0x10c8] sm:$0xff] }
  0xf5   :  { %v5407_v42 = vcombine.high %v553_v35, %v557_v36  ;;  %v5406_v50 = vcombine.low %v553_v35, %v557_v36  ;;  %v5408_v51 = vcombine.low %v554_v37, %v558_v39 }
  0xf6   :  { %4130 = vmatpush1.bf16.msra.mxu0 %v5350_v44  ;;  %v5409_v44 = vcombine.high %v554_v37, %v558_v39 }
  0xf7   :  { %4335 = vmatpush1.bf16.msra.mxu1 %v5352_v45  ;;  %4131 = vmatprep.subr.bf16.mxu0 %v5359_v46  ;;  %v561_v45 = vld [vmem:[%s7701_s1 + $0x1100] sm:$0xff] }
  0xf8   :  { %4336 = vmatprep.subr.bf16.mxu1 %v5361_v47  ;;  %v565_v46 = vld [vmem:[%s7701_s1 + $0x1120] sm:$0xff]  ;;  %v562_v47 = vld [vmem:[%s7701_s1 + $0x1108] sm:$0xff] }
  0xf9   :  { %v5415_v52 = vcombine.high %v561_v45, %v565_v46  ;;  %v5414_v61 = vcombine.low %v561_v45, %v565_v46  ;;  %v5416_v62 = vcombine.low %v562_v47, %v566_v49 }
  0xfa   :  { %4132 = vmatpush1.bf16.msra.mxu0 %v5358_v54  ;;  %v5417_v54 = vcombine.high %v562_v47, %v566_v49 }
  0xfb   :  { %4337 = vmatpush1.bf16.msra.mxu1 %v5360_v55  ;;  %4133 = vmatprep.subr.bf16.mxu0 %v5367_v56  ;;  %v569_v55 = vld [vmem:[%s7701_s1 + $0x1140] sm:$0xff] }
  0xfc   :  { %4338 = vmatprep.subr.bf16.mxu1 %v5369_v57  ;;  %v573_v56 = vld [vmem:[%s7701_s1 + $0x1160] sm:$0xff]  ;;  %v570_v57 = vld [vmem:[%s7701_s1 + $0x1148] sm:$0xff] }
  0xfd   :  { %v5423_v0 = vcombine.high %v569_v55, %v573_v56  ;;  %v5422_v6 = vcombine.low %v569_v55, %v573_v56  ;;  %v5424_v7 = vcombine.low %v570_v57, %v574_v60 }
  0xfe   :  { %4134 = vmatpush1.bf16.msra.mxu0 %v5366_v1  ;;  %v5425_v1 = vcombine.high %v570_v57, %v574_v60 }
  0xff   :  { %4339 = vmatpush1.bf16.msra.mxu1 %v5368_v2  ;;  %4135 = vmatprep.subr.bf16.mxu0 %v5375_v28  ;;  %v577_v2 = vld [vmem:[%s7701_s1 + $0x1180] sm:$0xff] }
 0x100   :  { %4340 = vmatprep.subr.bf16.mxu1 %v5377_v3  ;;  %v581_v28 = vld [vmem:[%s7701_s1 + $0x11a0] sm:$0xff]  ;;  %v578_v3 = vld [vmem:[%s7701_s1 + $0x1188] sm:$0xff] }
 0x101   :  { %v5431_v8 = vcombine.high %v577_v2, %v581_v28  ;;  %v5430_v16 = vcombine.low %v577_v2, %v581_v28  ;;  %v5432_v17 = vcombine.low %v578_v3, %v582_v5 }
 0x102   :  { %4136 = vmatpush1.bf16.msra.mxu0 %v5374_v11  ;;  %v5433_v11 = vcombine.high %v578_v3, %v582_v5 }
 0x103   :  { %4341 = vmatpush1.bf16.msra.mxu1 %v5376_v12  ;;  %4146 = vmatprep.subr.bf16.mxu0 %v5383_v13  ;;  %v585_v12 = vld [vmem:[%s7701_s1 + $0x11c0] sm:$0xff] }
 0x104   :  { %4351 = vmatprep.subr.bf16.mxu1 %v5385_v14  ;;  %v589_v13 = vld [vmem:[%s7701_s1 + $0x11e0] sm:$0xff]  ;;  %v586_v14 = vld [vmem:[%s7701_s1 + $0x11c8] sm:$0xff] }
 0x105   :  { %4138 = vmatmul.mubr.bf16.vlgmr.msra.gmra.mrb[0].mxu0 %v6491_v18  ;;  %v5439_v19 = vcombine.high %v585_v12, %v589_v13  ;;  %v5441_v20 = vcombine.high %v586_v14, %v590_v15  ;;  %v5438_v26 = vcombine.low %v585_v12, %v589_v13  ;;  %v5440_v59 = vcombine.low %v586_v14, %v590_v15 }
 0x106   :  { %4147 = vmatpush1.bf16.msra.mxu0 %v5382_v21  ;;  %4343 = vmatmul.mubr.bf16.vlgmr.msra.gmra.mrb[0].mxu1 %v6491_v18  ;;  %v593_v21 = vld [vmem:[%s7701_s1 + $0x1200] sm:$0xff] }
 0x107   :  { %4352 = vmatpush1.bf16.msra.mxu1 %v5384_v22  ;;  %4148 = vmatprep.subr.bf16.mxu0 %v5391_v24  ;;  %v597_v22 = vld [vmem:[%s7701_s1 + $0x1220] sm:$0xff]  ;;  %v594_v24 = vld [vmem:[%s7701_s1 + $0x1208] sm:$0xff] }
 0x108   :  { %4353 = vmatprep.subr.bf16.mxu1 %v5393_v25  ;;  %4178 = vmatprep.mubr.bf16.mxu0 %v6506_v27  ;;  %v598_v25 = vld [vmem:[%s7701_s1 + $0x1228] sm:$0xff]  ;;  %v5447_v29 = vcombine.high %v593_v21, %v597_v22  ;;  %v5446_v35 = vcombine.low %v593_v21, %v597_v22 }
 0x109   :  { %4383 = vmatprep.mubr.bf16.mxu1 %v6506_v27  ;;  %v5449_v63 = vcombine.high %v594_v24, %v598_v25  ;;  %v5448_v36 = vcombine.low %v594_v24, %v598_v25 }
 0x10a   :  { %4149 = vmatpush1.bf16.msra.mxu0 %v5390_v30  ;;  %v601_v30 = vld [vmem:[%s7701_s1 + $0x1240] sm:$0xff] }
 0x10b   :  { %4354 = vmatpush1.bf16.msra.mxu1 %v5392_v32  ;;  %4150 = vmatprep.subr.bf16.mxu0 %v5399_v33  ;;  %v605_v32 = vld [vmem:[%s7701_s1 + $0x1260] sm:$0xff]  ;;  %v602_v33 = vld [vmem:[%s7701_s1 + $0x1248] sm:$0xff] }
 0x10c   :  { %4355 = vmatprep.subr.bf16.mxu1 %v5401_v34  ;;  %v606_v34 = vld [vmem:[%s7701_s1 + $0x1268] sm:$0xff]  ;;  %v5455_v37 = vcombine.high %v601_v30, %v605_v32  ;;  %v5454_v45 = vcombine.low %v601_v30, %v605_v32 }
 0x10d   :  { %v5457_v39 = vcombine.high %v602_v33, %v606_v34  ;;  %v5456_v46 = vcombine.low %v602_v33, %v606_v34 }
 0x10e   :  { %4151 = vmatpush1.bf16.msra.mxu0 %v5398_v40  ;;  %v609_v40 = vld [vmem:[%s7701_s1 + $0x1280] sm:$0xff] }
 0x10f   :  { %4356 = vmatpush1.bf16.msra.mxu1 %v5400_v41  ;;  %4152 = vmatprep.subr.bf16.mxu0 %v5407_v42  ;;  %v613_v41 = vld [vmem:[%s7701_s1 + $0x12a0] sm:$0xff]  ;;  %v610_v42 = vld [vmem:[%s7701_s1 + $0x1288] sm:$0xff] }
 0x110   :  { %4357 = vmatprep.subr.bf16.mxu1 %v5409_v44  ;;  %v614_v44 = vld [vmem:[%s7701_s1 + $0x12a8] sm:$0xff]  ;;  %v5463_v47 = vcombine.high %v609_v40, %v613_v41  ;;  %v5462_v55 = vcombine.low %v609_v40, %v613_v41 }
 0x111   :  { %v5465_v49 = vcombine.high %v610_v42, %v614_v44  ;;  %v5464_v56 = vcombine.low %v610_v42, %v614_v44 }
 0x112   :  { %4153 = vmatpush1.bf16.msra.mxu0 %v5406_v50  ;;  %v617_v50 = vld [vmem:[%s7701_s1 + $0x12c0] sm:$0xff] }
 0x113   :  { %4358 = vmatpush1.bf16.msra.mxu1 %v5408_v51  ;;  %4154 = vmatprep.subr.bf16.mxu0 %v5415_v52  ;;  %v621_v51 = vld [vmem:[%s7701_s1 + $0x12e0] sm:$0xff]  ;;  %v618_v52 = vld [vmem:[%s7701_s1 + $0x12c8] sm:$0xff] }
 0x114   :  { %4359 = vmatprep.subr.bf16.mxu1 %v5417_v54  ;;  %v622_v54 = vld [vmem:[%s7701_s1 + $0x12e8] sm:$0xff]  ;;  %v5471_v57 = vcombine.high %v617_v50, %v621_v51  ;;  %v5470_v2 = vcombine.low %v617_v50, %v621_v51  ;;  %v32_v50 = vld [vmem:[%s7701_s1 + $0x78] sm:$0xff] }
 0x115   :  { %v5473_v60 = vcombine.high %v618_v52, %v622_v54  ;;  %v5472_v28 = vcombine.low %v618_v52, %v622_v54 }
 0x116   :  { %4155 = vmatpush1.bf16.msra.mxu0 %v5414_v61  ;;  %v625_v61 = vld [vmem:[%s7701_s1 + $0x1300] sm:$0xff] }
 0x117   :  { %4360 = vmatpush1.bf16.msra.mxu1 %v5416_v62  ;;  %4156 = vmatprep.subr.bf16.mxu0 %v5423_v0  ;;  %v629_v62 = vld [vmem:[%s7701_s1 + $0x1320] sm:$0xff]  ;;  %v626_v0 = vld [vmem:[%s7701_s1 + $0x1308] sm:$0xff] }
 0x118   :  { %4361 = vmatprep.subr.bf16.mxu1 %v5425_v1  ;;  %v630_v1 = vld [vmem:[%s7701_s1 + $0x1328] sm:$0xff]  ;;  %v5479_v3 = vcombine.high %v625_v61, %v629_v62  ;;  %v5478_v12 = vcombine.low %v625_v61, %v629_v62 }
 0x119   :  { %v5481_v5 = vcombine.high %v626_v0, %v630_v1  ;;  %v5480_v13 = vcombine.low %v626_v0, %v630_v1  ;;  %v43_v1 = vld [vmem:[%s7701_s1 + $0xd0] sm:$0xff] }
 0x11a   :  { %4157 = vmatpush1.bf16.msra.mxu0 %v5422_v6  ;;  %v633_v6 = vld [vmem:[%s7701_s1 + $0x1340] sm:$0xff] }
 0x11b   :  { %4362 = vmatpush1.bf16.msra.mxu1 %v5424_v7  ;;  %4158 = vmatprep.subr.bf16.mxu0 %v5431_v8  ;;  %v637_v7 = vld [vmem:[%s7701_s1 + $0x1360] sm:$0xff]  ;;  %v634_v8 = vld [vmem:[%s7701_s1 + $0x1348] sm:$0xff] }
 0x11c   :  { %4363 = vmatprep.subr.bf16.mxu1 %v5433_v11  ;;  %v638_v11 = vld [vmem:[%s7701_s1 + $0x1368] sm:$0xff]  ;;  %v5487_v14 = vcombine.high %v633_v6, %v637_v7  ;;  %v5486_v21 = vcombine.low %v633_v6, %v637_v7 }
 0x11d   :  { %v5489_v15 = vcombine.high %v634_v8, %v638_v11  ;;  %v5488_v22 = vcombine.low %v634_v8, %v638_v11  ;;  %v51_v11 = vld [vmem:[%s7701_s1 + $0x110] sm:$0xff] }
 0x11e   :  { %4159 = vmatpush1.bf16.msra.mxu0 %v5430_v16  ;;  %v641_v16 = vld [vmem:[%s7701_s1 + $0x1380] sm:$0xff] }
 0x11f   :  { %4364 = vmatpush1.bf16.msra.mxu1 %v5432_v17  ;;  %4160 = vmatprep.subr.bf16.mxu0 %v5439_v19  ;;  %v645_v17 = vld [vmem:[%s7701_s1 + $0x13a0] sm:$0xff]  ;;  %v642_v19 = vld [vmem:[%s7701_s1 + $0x1388] sm:$0xff] }
 0x120   :  { %4365 = vmatprep.subr.bf16.mxu1 %v5441_v20  ;;  %v646_v20 = vld [vmem:[%s7701_s1 + $0x13a8] sm:$0xff]  ;;  %v5495_v24 = vcombine.high %v641_v16, %v645_v17  ;;  %v5494_v30 = vcombine.low %v641_v16, %v645_v17 }
 0x121   :  { %v5497_v25 = vcombine.high %v642_v19, %v646_v20  ;;  %v5496_v32 = vcombine.low %v642_v19, %v646_v20  ;;  %v59_v19 = vld [vmem:[%s7701_s1 + $0x150] sm:$0xff] }
 0x122   :  { %4161 = vmatpush1.bf16.msra.mxu0 %v5438_v26  ;;  %v649_v26 = vld [vmem:[%s7701_s1 + $0x13c0] sm:$0xff]  ;;  %v63_v20 = vld [vmem:[%s7701_s1 + $0x170] sm:$0xff] }
 0x123   :  { %4366 = vmatpush1.bf16.msra.mxu1 %v5440_v59  ;;  %4162 = vmatprep.subr.bf16.mxu0 %v5447_v29  ;;  %v653_v59 = vld [vmem:[%s7701_s1 + $0x13e0] sm:$0xff]  ;;  %v650_v29 = vld [vmem:[%s7701_s1 + $0x13c8] sm:$0xff] }
 0x124   :  { %4367 = vmatprep.subr.bf16.mxu1 %v5449_v63  ;;  %v654_v63 = vld [vmem:[%s7701_s1 + $0x13e8] sm:$0xff]  ;;  %v5503_v33 = vcombine.high %v649_v26, %v653_v59  ;;  %v5502_v40 = vcombine.low %v649_v26, %v653_v59  ;;  %v4915_v26 = vcombine.high %v59_v19, %v63_v20 }
 0x125   :  { %v5505_v34 = vcombine.high %v650_v29, %v654_v63  ;;  %v5504_v41 = vcombine.low %v650_v29, %v654_v63  ;;  %v67_v29 = vld [vmem:[%s7701_s1 + $0x190] sm:$0xff] }
 0x126   :  { %4163 = vmatpush1.bf16.msra.mxu0 %v5446_v35  ;;  %v19_v35 = vld [vmem:[%s7701_s1 + $0x10] sm:$0xff] }
 0x127   :  { %4368 = vmatpush1.bf16.msra.mxu1 %v5448_v36  ;;  %4164 = vmatprep.subr.bf16.mxu0 %v5455_v37  ;;  %v23_v36 = vld [vmem:[%s7701_s1 + $0x30] sm:$0xff]  ;;  %v20_v37 = vld [vmem:[%s7701_s1 + $0x18] sm:$0xff] }
 0x128   :  { %4369 = vmatprep.subr.bf16.mxu1 %v5457_v39  ;;  %v24_v39 = vld [vmem:[%s7701_s1 + $0x38] sm:$0xff]  ;;  %v4875_v42 = vcombine.high %v19_v35, %v23_v36  ;;  %v4874_v51 = vcombine.low %v19_v35, %v23_v36  ;;  %v71_v63 = vld [vmem:[%s7701_s1 + $0x1b0] sm:$0xff] }
 0x129   :  { %v4877_v44 = vcombine.high %v20_v37, %v24_v39  ;;  %v4876_v52 = vcombine.low %v20_v37, %v24_v39  ;;  %v4923_v35 = vcombine.high %v67_v29, %v71_v63  ;;  %v75_v37 = vld [vmem:[%s7701_s1 + $0x1d0] sm:$0xff] }
 0x12a   :  { %4165 = vmatpush1.bf16.msra.mxu0 %v5454_v45  ;;  %v27_v45 = vld [vmem:[%s7701_s1 + $0x50] sm:$0xff] }
 0x12b   :  { %4370 = vmatpush1.bf16.msra.mxu1 %v5456_v46  ;;  %4166 = vmatprep.subr.bf16.mxu0 %v5463_v47  ;;  %v31_v46 = vld [vmem:[%s7701_s1 + $0x70] sm:$0xff]  ;;  %v6694_v47 = vrot.slane %v6479_v10, %v5714_v53 }
 0x12c   :  { %4371 = vmatprep.subr.bf16.mxu1 %v5465_v49  ;;  %v28_v49 = vld [vmem:[%s7701_s1 + $0x58] sm:$0xff]  ;;  %v4883_v54 = vcombine.high %v27_v45, %v31_v46  ;;  %v35_v53 = vld [vmem:[%s7701_s1 + $0x90] sm:$0xff] }
 0x12d   :  { %v39_v10 = vld [vmem:[%s7701_s1 + $0xb0] sm:$0xff]  ;;  %v4884_v61 = vcombine.low %v28_v49, %v32_v50 }
 0x12e   :  { %4167 = vmatpush1.bf16.msra.mxu0 %v5462_v55  ;;  %v4885_v55 = vcombine.high %v28_v49, %v32_v50  ;;  %v4891_v62 = vcombine.high %v35_v53, %v39_v10  ;;  %v79_v39 = vld [vmem:[%s7701_s1 + $0x1f0] sm:$0xff] }
 0x12f   :  { %4372 = vmatpush1.bf16.msra.mxu1 %v5464_v56  ;;  %4168 = vmatprep.subr.bf16.mxu0 %v5471_v57  ;;  %v36_v56 = vld [vmem:[%s7701_s1 + $0x98] sm:$0xff]  ;;  %v83_v49 = vld [vmem:[%s7701_s1 + $0x210] sm:$0xff] }
 0x130   :  { %4373 = vmatprep.subr.bf16.mxu1 %v5473_v60  ;;  %v40_v57 = vld [vmem:[%s7701_s1 + $0xb8] sm:$0xff]  ;;  %v4882_v60 = vcombine.low %v27_v45, %v31_v46  ;;  %v4931_v45 = vcombine.high %v75_v37, %v79_v39  ;;  %v87_v50 = vld [vmem:[%s7701_s1 + $0x230] sm:$0xff] }
 0x131   :  { %v4893_v0 = vcombine.high %v36_v56, %v40_v57  ;;  %v4892_v6 = vcombine.low %v36_v56, %v40_v57  ;;  %v91_v56 = vld [vmem:[%s7701_s1 + $0x250] sm:$0xff] }
 0x132   :  { %4169 = vmatpush1.bf16.msra.mxu0 %v5470_v2  ;;  %v47_v2 = vld [vmem:[%s7701_s1 + $0xf0] sm:$0xff] }
 0x133   :  { %4374 = vmatpush1.bf16.msra.mxu1 %v5472_v28  ;;  %4170 = vmatprep.subr.bf16.mxu0 %v5479_v3  ;;  %v44_v28 = vld [vmem:[%s7701_s1 + $0xd8] sm:$0xff]  ;;  %v4899_v7 = vcombine.high %v43_v1, %v47_v2  ;;  %v95_v57 = vld [vmem:[%s7701_s1 + $0x270] sm:$0xff] }
 0x134   :  { %4375 = vmatprep.subr.bf16.mxu1 %v5481_v5  ;;  %v48_v3 = vld [vmem:[%s7701_s1 + $0xf8] sm:$0xff]  ;;  %v4890_v5 = vcombine.low %v35_v53, %v39_v10  ;;  %v4939_v53 = vcombine.high %v83_v49, %v87_v50 }
 0x135   :  { %v4901_v8 = vcombine.high %v44_v28, %v48_v3 }
 0x136   :  { %4171 = vmatpush1.bf16.msra.mxu0 %v5478_v12  ;;  %v55_v12 = vld [vmem:[%s7701_s1 + $0x130] sm:$0xff] }
 0x137   :  { %4376 = vmatpush1.bf16.msra.mxu1 %v5480_v13  ;;  %4172 = vmatprep.subr.bf16.mxu0 %v5487_v14  ;;  %v56_v13 = vld [vmem:[%s7701_s1 + $0x138] sm:$0xff]  ;;  %v4898_v14 = vcombine.low %v43_v1, %v47_v2  ;;  %v4907_v16 = vcombine.high %v51_v11, %v55_v12  ;;  %v4947_v1 = vcombine.high %v91_v56, %v95_v57 }
 0x138   :  { %4377 = vmatprep.subr.bf16.mxu1 %v5489_v15  ;;  %v4900_v15 = vcombine.low %v44_v28, %v48_v3  ;;  %v99_v28 = vld [vmem:[%s7701_s1 + $0x290] sm:$0xff] }
 0x139   :  { %v103_v3 = vld [vmem:[%s7701_s1 + $0x2b0] sm:$0xff] }
 0x13a   :  { %4173 = vmatpush1.bf16.msra.mxu0 %v5486_v21  ;;  %v60_v21 = vld [vmem:[%s7701_s1 + $0x158] sm:$0xff] }
 0x13b   :  { %4378 = vmatpush1.bf16.msra.mxu1 %v5488_v22  ;;  %4174 = vmatprep.subr.bf16.mxu0 %v5495_v24  ;;  %v64_v22 = vld [vmem:[%s7701_s1 + $0x178] sm:$0xff]  ;;  %v4906_v24 = vcombine.low %v51_v11, %v55_v12  ;;  %v4955_v11 = vcombine.high %v99_v28, %v103_v3 }
 0x13c   :  { %4379 = vmatprep.subr.bf16.mxu1 %v5497_v25  ;;  %v4917_v59 = vcombine.high %v60_v21, %v64_v22 }
 0x13e   :  { %4175 = vmatpush1.bf16.msra.mxu0 %v5494_v30  ;;  %v68_v30 = vld [vmem:[%s7701_s1 + $0x198] sm:$0xff] }
 0x13f   :  { %4380 = vmatpush1.bf16.msra.mxu1 %v5496_v32  ;;  %4176 = vmatprep.subr.bf16.mxu0 %v5503_v33  ;;  %v72_v32 = vld [vmem:[%s7701_s1 + $0x1b8] sm:$0xff]  ;;  %v4914_v33 = vcombine.low %v59_v19, %v63_v20 }
 0x140   :  { %4381 = vmatprep.subr.bf16.mxu1 %v5505_v34  ;;  %v4916_v34 = vcombine.low %v60_v21, %v64_v22  ;;  %v4925_v36 = vcombine.high %v68_v30, %v72_v32  ;;  %v115_v21 = vld [vmem:[%s7701_s1 + $0x310] sm:$0xff] }
 0x141   :  { %v119_v22 = vld [vmem:[%s7701_s1 + $0x330] sm:$0xff] }
 0x142   :  { %4177 = vmatpush1.bf16.msra.mxu0 %v5502_v40  ;;  %v76_v40 = vld [vmem:[%s7701_s1 + $0x1d8] sm:$0xff] }
 0x143   :  { %4382 = vmatpush1.bf16.msra.mxu1 %v5504_v41  ;;  %4392 = vmatprep.subr.bf16.mxu0 %v4875_v42  ;;  %v80_v41 = vld [vmem:[%s7701_s1 + $0x1f8] sm:$0xff]  ;;  %v4922_v42 = vcombine.low %v67_v29, %v71_v63  ;;  %v4971_v29 = vcombine.high %v115_v21, %v119_v22 }
 0x144   :  { %4597 = vmatprep.subr.bf16.mxu1 %v4877_v44  ;;  %v4924_v44 = vcombine.low %v68_v30, %v72_v32  ;;  %v4933_v46 = vcombine.high %v76_v40, %v80_v41  ;;  %v123_v30 = vld [vmem:[%s7701_s1 + $0x350] sm:$0xff] }
 0x145   :  { %4179 = vmatmul.mubr.bf16.vlgmr.msra.gmra.mrb[0].mxu0 %v6694_v47  ;;  %v127_v32 = vld [vmem:[%s7701_s1 + $0x370] sm:$0xff] }
 0x146   :  { %4384 = vmatmul.mubr.bf16.vlgmr.msra.gmra.mrb[0].mxu1 %v6694_v47  ;;  %4393 = vmatpush1.bf16.msra.mxu0 %v4874_v51  ;;  %v84_v51 = vld [vmem:[%s7701_s1 + $0x218] sm:$0xff] }
 0x147   :  { %4598 = vmatpush1.bf16.msra.mxu1 %v4876_v52  ;;  %4394 = vmatprep.subr.bf16.mxu0 %v4883_v54  ;;  %v88_v52 = vld [vmem:[%s7701_s1 + $0x238] sm:$0xff]  ;;  %v4930_v54 = vcombine.low %v75_v37, %v79_v39  ;;  %v4979_v37 = vcombine.high %v123_v30, %v127_v32 }
 0x148   :  { %4599 = vmatprep.subr.bf16.mxu1 %v4885_v55  ;;  %4424 = vmatprep.mubr.bf16.mxu0 %v5752_v9  ;;  %v4932_v55 = vcombine.low %v76_v40, %v80_v41  ;;  %v4941_v10 = vcombine.high %v84_v51, %v88_v52  ;;  %v131_v40 = vld [vmem:[%s7701_s1 + $0x390] sm:$0xff] }
 0x149   :  { %4629 = vmatprep.mubr.bf16.mxu1 %v5752_v9  ;;  %v52_v9 = vld [vmem:[%s7701_s1 + $0x118] sm:$0xff]  ;;  %v135_v41 = vld [vmem:[%s7701_s1 + $0x3b0] sm:$0xff] }
 0x14a   :  { %4395 = vmatpush1.bf16.msra.mxu0 %v4882_v60  ;;  %v4909_v17 = vcombine.high %v52_v9, %v56_v13  ;;  %v4908_v25 = vcombine.low %v52_v9, %v56_v13  ;;  %v92_v60 = vld [vmem:[%s7701_s1 + $0x258] sm:$0xff]  ;;  %v107_v9 = vld [vmem:[%s7701_s1 + $0x2d0] sm:$0xff] }
 0x14b   :  { %4600 = vmatpush1.bf16.msra.mxu1 %v4884_v61  ;;  %4396 = vmatprep.subr.bf16.mxu0 %v4891_v62  ;;  %v96_v61 = vld [vmem:[%s7701_s1 + $0x278] sm:$0xff]  ;;  %v4938_v62 = vcombine.low %v83_v49, %v87_v50  ;;  %v111_v13 = vld [vmem:[%s7701_s1 + $0x2f0] sm:$0xff]  ;;  %v4987_v49 = vcombine.high %v131_v40, %v135_v41 }
 0x14c   :  { %4601 = vmatprep.subr.bf16.mxu1 %v4893_v0  ;;  %v4940_v0 = vcombine.low %v84_v51, %v88_v52  ;;  %v4949_v2 = vcombine.high %v92_v60, %v96_v61  ;;  %v4963_v19 = vcombine.high %v107_v9, %v111_v13  ;;  %v139_v51 = vld [vmem:[%s7701_s1 + $0x3d0] sm:$0xff] }
 0x14d   :  { %v143_v52 = vld [vmem:[%s7701_s1 + $0x3f0] sm:$0xff] }
 0x14e   :  { %4397 = vmatpush1.bf16.msra.mxu0 %v4890_v5  ;;  %v100_v5 = vld [vmem:[%s7701_s1 + $0x298] sm:$0xff] }
 0x14f   :  { %4602 = vmatpush1.bf16.msra.mxu1 %v4892_v6  ;;  %4398 = vmatprep.subr.bf16.mxu0 %v4899_v7  ;;  %v104_v6 = vld [vmem:[%s7701_s1 + $0x2b8] sm:$0xff]  ;;  %v4946_v7 = vcombine.low %v91_v56, %v95_v57  ;;  %v4995_v56 = vcombine.high %v139_v51, %v143_v52 }
 0x150   :  { %4603 = vmatprep.subr.bf16.mxu1 %v4901_v8  ;;  %v4948_v8 = vcombine.low %v92_v60, %v96_v61  ;;  %v4957_v12 = vcombine.high %v100_v5, %v104_v6  ;;  %v147_v60 = vld [vmem:[%s7701_s1 + $0x410] sm:$0xff] }
 0x151   :  { %v151_v61 = vld [vmem:[%s7701_s1 + $0x430] sm:$0xff] }
 0x152   :  { %4399 = vmatpush1.bf16.msra.mxu0 %v4898_v14  ;;  %v108_v14 = vld [vmem:[%s7701_s1 + $0x2d8] sm:$0xff] }
 0x153   :  { %4604 = vmatpush1.bf16.msra.mxu1 %v4900_v15  ;;  %4400 = vmatprep.subr.bf16.mxu0 %v4907_v16  ;;  %v112_v15 = vld [vmem:[%s7701_s1 + $0x2f8] sm:$0xff]  ;;  %v4954_v16 = vcombine.low %v99_v28, %v103_v3  ;;  %v5003_v28 = vcombine.high %v147_v60, %v151_v61 }
 0x154   :  { %4605 = vmatprep.subr.bf16.mxu1 %v4909_v17  ;;  %v4956_v17 = vcombine.low %v100_v5, %v104_v6  ;;  %v4965_v20 = vcombine.high %v108_v14, %v112_v15  ;;  %v155_v5 = vld [vmem:[%s7701_s1 + $0x450] sm:$0xff] }
 0x155   :  { %v159_v6 = vld [vmem:[%s7701_s1 + $0x470] sm:$0xff] }
 0x156   :  { %4401 = vmatpush1.bf16.msra.mxu0 %v4906_v24  ;;  %v116_v24 = vld [vmem:[%s7701_s1 + $0x318] sm:$0xff] }
 0x157   :  { %4606 = vmatpush1.bf16.msra.mxu1 %v4908_v25  ;;  %4402 = vmatprep.subr.bf16.mxu0 %v4915_v26  ;;  %v120_v25 = vld [vmem:[%s7701_s1 + $0x338] sm:$0xff]  ;;  %v4962_v26 = vcombine.low %v107_v9, %v111_v13  ;;  %v5011_v9 = vcombine.high %v155_v5, %v159_v6 }
 0x158   :  { %4607 = vmatprep.subr.bf16.mxu1 %v4917_v59  ;;  %v4964_v59 = vcombine.low %v108_v14, %v112_v15  ;;  %v4973_v63 = vcombine.high %v116_v24, %v120_v25  ;;  %v163_v14 = vld [vmem:[%s7701_s1 + $0x490] sm:$0xff] }
 0x159   :  { %v167_v15 = vld [vmem:[%s7701_s1 + $0x4b0] sm:$0xff] }
 0x15a   :  { %4403 = vmatpush1.bf16.msra.mxu0 %v4914_v33  ;;  %v124_v33 = vld [vmem:[%s7701_s1 + $0x358] sm:$0xff] }
 0x15b   :  { %4608 = vmatpush1.bf16.msra.mxu1 %v4916_v34  ;;  %4404 = vmatprep.subr.bf16.mxu0 %v4923_v35  ;;  %v128_v34 = vld [vmem:[%s7701_s1 + $0x378] sm:$0xff]  ;;  %v4970_v35 = vcombine.low %v115_v21, %v119_v22  ;;  %v5019_v21 = vcombine.high %v163_v14, %v167_v15 }
 0x15c   :  { %4609 = vmatprep.subr.bf16.mxu1 %v4925_v36  ;;  %v4972_v36 = vcombine.low %v116_v24, %v120_v25  ;;  %v4981_v39 = vcombine.high %v124_v33, %v128_v34  ;;  %v171_v24 = vld [vmem:[%s7701_s1 + $0x4d0] sm:$0xff] }
 0x15d   :  { %v175_v25 = vld [vmem:[%s7701_s1 + $0x4f0] sm:$0xff] }
 0x15e   :  { %4405 = vmatpush1.bf16.msra.mxu0 %v4922_v42  ;;  %v132_v42 = vld [vmem:[%s7701_s1 + $0x398] sm:$0xff] }
 0x15f   :  { %4610 = vmatpush1.bf16.msra.mxu1 %v4924_v44  ;;  %4406 = vmatprep.subr.bf16.mxu0 %v4931_v45  ;;  %v136_v44 = vld [vmem:[%s7701_s1 + $0x3b8] sm:$0xff]  ;;  %v4978_v45 = vcombine.low %v123_v30, %v127_v32  ;;  %v179_v32 = vld [vmem:[%s7701_s1 + $0x510] sm:$0xff] }
 0x160   :  { %4611 = vmatprep.subr.bf16.mxu1 %v4933_v46  ;;  %v4980_v46 = vcombine.low %v124_v33, %v128_v34  ;;  %v4989_v50 = vcombine.high %v132_v42, %v136_v44  ;;  %v183_v33 = vld [vmem:[%s7701_s1 + $0x530] sm:$0xff]  ;;  %v184_v34 = vld [vmem:[%s7701_s1 + $0x538] sm:$0xff] }
 0x162   :  { %4407 = vmatpush1.bf16.msra.mxu0 %v4930_v54  ;;  %v140_v54 = vld [vmem:[%s7701_s1 + $0x3d8] sm:$0xff] }
 0x163   :  { %4612 = vmatpush1.bf16.msra.mxu1 %v4932_v55  ;;  %4408 = vmatprep.subr.bf16.mxu0 %v4939_v53  ;;  %v144_v55 = vld [vmem:[%s7701_s1 + $0x3f8] sm:$0xff]  ;;  %v4986_v53 = vcombine.low %v131_v40, %v135_v41  ;;  %v187_v40 = vld [vmem:[%s7701_s1 + $0x550] sm:$0xff] }
 0x164   :  { %4613 = vmatprep.subr.bf16.mxu1 %v4941_v10  ;;  %v4988_v10 = vcombine.low %v132_v42, %v136_v44  ;;  %v4997_v57 = vcombine.high %v140_v54, %v144_v55  ;;  %v191_v41 = vld [vmem:[%s7701_s1 + $0x570] sm:$0xff]  ;;  %v188_v42 = vld [vmem:[%s7701_s1 + $0x558] sm:$0xff] }
 0x165   :  { %v192_v44 = vld [vmem:[%s7701_s1 + $0x578] sm:$0xff] }
 0x166   :  { %4409 = vmatpush1.bf16.msra.mxu0 %v4938_v62  ;;  %v148_v62 = vld [vmem:[%s7701_s1 + $0x418] sm:$0xff] }
 0x167   :  { %4614 = vmatpush1.bf16.msra.mxu1 %v4940_v0  ;;  %4410 = vmatprep.subr.bf16.mxu0 %v4947_v1  ;;  %v152_v0 = vld [vmem:[%s7701_s1 + $0x438] sm:$0xff]  ;;  %v4994_v1 = vcombine.low %v139_v51, %v143_v52  ;;  %v195_v51 = vld [vmem:[%s7701_s1 + $0x590] sm:$0xff] }
 0x168   :  { %4615 = vmatprep.subr.bf16.mxu1 %v4949_v2  ;;  %v4996_v2 = vcombine.low %v140_v54, %v144_v55  ;;  %v5005_v3 = vcombine.high %v148_v62, %v152_v0  ;;  %v199_v52 = vld [vmem:[%s7701_s1 + $0x5b0] sm:$0xff]  ;;  %v196_v54 = vld [vmem:[%s7701_s1 + $0x598] sm:$0xff] }
 0x169   :  { %v200_v55 = vld [vmem:[%s7701_s1 + $0x5b8] sm:$0xff] }
 0x16a   :  { %4411 = vmatpush1.bf16.msra.mxu0 %v4946_v7  ;;  %v156_v7 = vld [vmem:[%s7701_s1 + $0x458] sm:$0xff] }
 0x16b   :  { %4616 = vmatpush1.bf16.msra.mxu1 %v4948_v8  ;;  %4412 = vmatprep.subr.bf16.mxu0 %v4955_v11  ;;  %v160_v8 = vld [vmem:[%s7701_s1 + $0x478] sm:$0xff]  ;;  %v5002_v11 = vcombine.low %v147_v60, %v151_v61  ;;  %v203_v60 = vld [vmem:[%s7701_s1 + $0x5d0] sm:$0xff] }
 0x16c   :  { %4617 = vmatprep.subr.bf16.mxu1 %v4957_v12  ;;  %v5004_v12 = vcombine.low %v148_v62, %v152_v0  ;;  %v5013_v13 = vcombine.high %v156_v7, %v160_v8  ;;  %v207_v61 = vld [vmem:[%s7701_s1 + $0x5f0] sm:$0xff]  ;;  %v204_v62 = vld [vmem:[%s7701_s1 + $0x5d8] sm:$0xff] }
 0x16d   :  { %v208_v0 = vld [vmem:[%s7701_s1 + $0x5f8] sm:$0xff] }
 0x16e   :  { %4413 = vmatpush1.bf16.msra.mxu0 %v4954_v16  ;;  %v164_v16 = vld [vmem:[%s7701_s1 + $0x498] sm:$0xff] }
 0x16f   :  { %4618 = vmatpush1.bf16.msra.mxu1 %v4956_v17  ;;  %4414 = vmatprep.subr.bf16.mxu0 %v4963_v19  ;;  %v168_v17 = vld [vmem:[%s7701_s1 + $0x4b8] sm:$0xff]  ;;  %v5010_v19 = vcombine.low %v155_v5, %v159_v6  ;;  %v211_v5 = vld [vmem:[%s7701_s1 + $0x610] sm:$0xff] }
 0x170   :  { %4619 = vmatprep.subr.bf16.mxu1 %v4965_v20  ;;  %v5012_v20 = vcombine.low %v156_v7, %v160_v8  ;;  %v5021_v22 = vcombine.high %v164_v16, %v168_v17  ;;  %v215_v6 = vld [vmem:[%s7701_s1 + $0x630] sm:$0xff]  ;;  %v212_v7 = vld [vmem:[%s7701_s1 + $0x618] sm:$0xff] }
 0x171   :  { %v216_v8 = vld [vmem:[%s7701_s1 + $0x638] sm:$0xff] }
 0x172   :  { %4415 = vmatpush1.bf16.msra.mxu0 %v4962_v26  ;;  %v176_v26 = vld [vmem:[%s7701_s1 + $0x4f8] sm:$0xff] }
 0x173   :  { %4620 = vmatpush1.bf16.msra.mxu1 %v4964_v59  ;;  %4416 = vmatprep.subr.bf16.mxu0 %v4971_v29  ;;  %v5018_v59 = vcombine.low %v163_v14, %v167_v15  ;;  %v5020_v29 = vcombine.low %v164_v16, %v168_v17  ;;  %v219_v14 = vld [vmem:[%s7701_s1 + $0x650] sm:$0xff]  ;;  %v220_v16 = vld [vmem:[%s7701_s1 + $0x658] sm:$0xff] }
 0x174   :  { %4621 = vmatprep.subr.bf16.mxu1 %v4973_v63  ;;  %v5027_v63 = vcombine.high %v171_v24, %v175_v25  ;;  %v223_v15 = vld [vmem:[%s7701_s1 + $0x670] sm:$0xff]  ;;  %v224_v17 = vld [vmem:[%s7701_s1 + $0x678] sm:$0xff] }
 0x176   :  { %4417 = vmatpush1.bf16.msra.mxu0 %v4970_v35  ;;  %v5026_v35 = vcombine.low %v171_v24, %v175_v25  ;;  %v227_v24 = vld [vmem:[%s7701_s1 + $0x690] sm:$0xff] }
 0x177   :  { %4622 = vmatpush1.bf16.msra.mxu1 %v4972_v36  ;;  %4418 = vmatprep.subr.bf16.mxu0 %v4979_v37  ;;  %v5035_v37 = vcombine.high %v179_v32, %v183_v33  ;;  %v231_v25 = vld [vmem:[%s7701_s1 + $0x6b0] sm:$0xff] }
 0x178   :  { %4623 = vmatprep.subr.bf16.mxu1 %v4981_v39 }
 0x17a   :  { %4419 = vmatpush1.bf16.msra.mxu0 %v4978_v45  ;;  %v5034_v45 = vcombine.low %v179_v32, %v183_v33  ;;  %v235_v32 = vld [vmem:[%s7701_s1 + $0x6d0] sm:$0xff] }
 0x17b   :  { %4624 = vmatpush1.bf16.msra.mxu1 %v4980_v46  ;;  %4420 = vmatprep.subr.bf16.mxu0 %v4987_v49  ;;  %v5043_v49 = vcombine.high %v187_v40, %v191_v41  ;;  %v239_v33 = vld [vmem:[%s7701_s1 + $0x6f0] sm:$0xff] }
 0x17c   :  { %4625 = vmatprep.subr.bf16.mxu1 %v4989_v50  ;;  %v5045_v50 = vcombine.high %v188_v42, %v192_v44 }
 0x17e   :  { %4421 = vmatpush1.bf16.msra.mxu0 %v4986_v53  ;;  %v5042_v53 = vcombine.low %v187_v40, %v191_v41  ;;  %v243_v40 = vld [vmem:[%s7701_s1 + $0x710] sm:$0xff] }
 0x17f   :  { %4626 = vmatpush1.bf16.msra.mxu1 %v4988_v10  ;;  %4422 = vmatprep.subr.bf16.mxu0 %v4995_v56  ;;  %v5044_v10 = vcombine.low %v188_v42, %v192_v44  ;;  %v5051_v56 = vcombine.high %v195_v51, %v199_v52  ;;  %v247_v41 = vld [vmem:[%s7701_s1 + $0x730] sm:$0xff]  ;;  %v244_v42 = vld [vmem:[%s7701_s1 + $0x718] sm:$0xff] }
 0x180   :  { %4627 = vmatprep.subr.bf16.mxu1 %v4997_v57  ;;  %v5053_v57 = vcombine.high %v196_v54, %v200_v55  ;;  %v248_v44 = vld [vmem:[%s7701_s1 + $0x738] sm:$0xff] }
 0x182   :  { %4423 = vmatpush1.bf16.msra.mxu0 %v4994_v1  ;;  %v5050_v1 = vcombine.low %v195_v51, %v199_v52  ;;  %v251_v51 = vld [vmem:[%s7701_s1 + $0x750] sm:$0xff] }
 0x183   :  { %4628 = vmatpush1.bf16.msra.mxu1 %v4996_v2  ;;  %4433 = vmatprep.subr.bf16.mxu0 %v5003_v28  ;;  %v5052_v2 = vcombine.low %v196_v54, %v200_v55  ;;  %v5059_v28 = vcombine.high %v203_v60, %v207_v61  ;;  %v255_v52 = vld [vmem:[%s7701_s1 + $0x770] sm:$0xff]  ;;  %v252_v54 = vld [vmem:[%s7701_s1 + $0x758] sm:$0xff] }
 0x184   :  { %4638 = vmatprep.subr.bf16.mxu1 %v5005_v3  ;;  %v5061_v3 = vcombine.high %v204_v62, %v208_v0  ;;  %v256_v55 = vld [vmem:[%s7701_s1 + $0x778] sm:$0xff] }
 0x185   :  { %4425 = vmatmul.mubr.bf16.vlgmr.msra.gmra.mrb[4].mxu0 %v5866_v23 }
 0x186   :  { %4434 = vmatpush1.bf16.msra.mxu0 %v5002_v11  ;;  %4630 = vmatmul.mubr.bf16.vlgmr.msra.gmra.mrb[4].mxu1 %v5866_v23  ;;  %v172_v23 = vld [vmem:[%s7701_s1 + $0x4d8] sm:$0xff]  ;;  %v5058_v11 = vcombine.low %v203_v60, %v207_v61  ;;  %v259_v60 = vld [vmem:[%s7701_s1 + $0x790] sm:$0xff] }
 0x187   :  { %4639 = vmatpush1.bf16.msra.mxu1 %v5004_v12  ;;  %4435 = vmatprep.subr.bf16.mxu0 %v5011_v9  ;;  %v5029_v30 = vcombine.high %v172_v23, %v176_v26  ;;  %v5028_v36 = vcombine.low %v172_v23, %v176_v26  ;;  %v5060_v12 = vcombine.low %v204_v62, %v208_v0  ;;  %v228_v23 = vld [vmem:[%s7701_s1 + $0x698] sm:$0xff]  ;;  %v263_v61 = vld [vmem:[%s7701_s1 + $0x7b0] sm:$0xff] }
 0x188   :  { %4640 = vmatprep.subr.bf16.mxu1 %v5013_v13  ;;  %4465 = vmatprep.mubr.bf16.mxu0 %v5882_v31  ;;  %v5067_v9 = vcombine.high %v211_v5, %v215_v6  ;;  %v5069_v13 = vcombine.high %v212_v7, %v216_v8  ;;  %v232_v26 = vld [vmem:[%s7701_s1 + $0x6b8] sm:$0xff] }
 0x189   :  { %4670 = vmatprep.mubr.bf16.mxu1 %v5882_v31  ;;  %v180_v31 = vld [vmem:[%s7701_s1 + $0x518] sm:$0xff] }
 0x18a   :  { %4436 = vmatpush1.bf16.msra.mxu0 %v5010_v19  ;;  %v5037_v39 = vcombine.high %v180_v31, %v184_v34  ;;  %v5036_v46 = vcombine.low %v180_v31, %v184_v34  ;;  %v5066_v19 = vcombine.low %v211_v5, %v215_v6  ;;  %v236_v31 = vld [vmem:[%s7701_s1 + $0x6d8] sm:$0xff]  ;;  %v267_v5 = vld [vmem:[%s7701_s1 + $0x7d0] sm:$0xff] }
 0x18b   :  { %4641 = vmatpush1.bf16.msra.mxu1 %v5012_v20  ;;  %4437 = vmatprep.subr.bf16.mxu0 %v5019_v21  ;;  %v5068_v20 = vcombine.low %v212_v7, %v216_v8  ;;  %v5075_v21 = vcombine.high %v219_v14, %v223_v15  ;;  %v240_v34 = vld [vmem:[%s7701_s1 + $0x6f8] sm:$0xff]  ;;  %v271_v6 = vld [vmem:[%s7701_s1 + $0x7f0] sm:$0xff] }
 0x18c   :  { %4642 = vmatprep.subr.bf16.mxu1 %v5021_v22  ;;  %v5077_v22 = vcombine.high %v220_v16, %v224_v17  ;;  %v260_v62 = vld [vmem:[%s7701_s1 + $0x798] sm:$0xff] }
 0x18d   :  { %v264_v0 = vld [vmem:[%s7701_s1 + $0x7b8] sm:$0xff] }
 0x18e   :  { %4438 = vmatpush1.bf16.msra.mxu0 %v5018_v59  ;;  %v5074_v59 = vcombine.low %v219_v14, %v223_v15  ;;  %v268_v7 = vld [vmem:[%s7701_s1 + $0x7d8] sm:$0xff]  ;;  %v275_v14 = vld [vmem:[%s7701_s1 + $0x810] sm:$0xff] }
 0x18f   :  { %4643 = vmatpush1.bf16.msra.mxu1 %v5020_v29  ;;  %4439 = vmatprep.subr.bf16.mxu0 %v5027_v63  ;;  %v5076_v29 = vcombine.low %v220_v16, %v224_v17  ;;  %v5083_v63 = vcombine.high %v227_v24, %v231_v25  ;;  %v272_v8 = vld [vmem:[%s7701_s1 + $0x7f8] sm:$0xff]  ;;  %v279_v15 = vld [vmem:[%s7701_s1 + $0x830] sm:$0xff] }
 0x190   :  { %4644 = vmatprep.subr.bf16.mxu1 %v5029_v30  ;;  %v5085_v30 = vcombine.high %v228_v23, %v232_v26  ;;  %v276_v16 = vld [vmem:[%s7701_s1 + $0x818] sm:$0xff] }
 0x191   :  { %v280_v17 = vld [vmem:[%s7701_s1 + $0x838] sm:$0xff] }
 0x192   :  { %4440 = vmatpush1.bf16.msra.mxu0 %v5026_v35  ;;  %v5082_v35 = vcombine.low %v227_v24, %v231_v25  ;;  %v283_v24 = vld [vmem:[%s7701_s1 + $0x850] sm:$0xff] }
 0x193   :  { %4645 = vmatpush1.bf16.msra.mxu1 %v5028_v36  ;;  %4441 = vmatprep.subr.bf16.mxu0 %v5035_v37  ;;  %v5084_v36 = vcombine.low %v228_v23, %v232_v26  ;;  %v5091_v37 = vcombine.high %v235_v32, %v239_v33  ;;  %v287_v25 = vld [vmem:[%s7701_s1 + $0x870] sm:$0xff]  ;;  %v284_v23 = vld [vmem:[%s7701_s1 + $0x858] sm:$0xff] }
 0x194   :  { %4646 = vmatprep.subr.bf16.mxu1 %v5037_v39  ;;  %v5093_v39 = vcombine.high %v236_v31, %v240_v34  ;;  %v288_v26 = vld [vmem:[%s7701_s1 + $0x878] sm:$0xff] }
 0x196   :  { %4442 = vmatpush1.bf16.msra.mxu0 %v5034_v45  ;;  %v5090_v45 = vcombine.low %v235_v32, %v239_v33  ;;  %v291_v32 = vld [vmem:[%s7701_s1 + $0x890] sm:$0xff] }
 0x197   :  { %4647 = vmatpush1.bf16.msra.mxu1 %v5036_v46  ;;  %4443 = vmatprep.subr.bf16.mxu0 %v5043_v49  ;;  %v5092_v46 = vcombine.low %v236_v31, %v240_v34  ;;  %v5099_v49 = vcombine.high %v243_v40, %v247_v41  ;;  %v295_v33 = vld [vmem:[%s7701_s1 + $0x8b0] sm:$0xff]  ;;  %v292_v31 = vld [vmem:[%s7701_s1 + $0x898] sm:$0xff] }
 0x198   :  { %4648 = vmatprep.subr.bf16.mxu1 %v5045_v50  ;;  %v5101_v50 = vcombine.high %v244_v42, %v248_v44  ;;  %v296_v34 = vld [vmem:[%s7701_s1 + $0x8b8] sm:$0xff] }
 0x19a   :  { %4444 = vmatpush1.bf16.msra.mxu0 %v5042_v53  ;;  %v5098_v53 = vcombine.low %v243_v40, %v247_v41  ;;  %v299_v40 = vld [vmem:[%s7701_s1 + $0x8d0] sm:$0xff] }
 0x19b   :  { %4649 = vmatpush1.bf16.msra.mxu1 %v5044_v10  ;;  %4445 = vmatprep.subr.bf16.mxu0 %v5051_v56  ;;  %v5100_v10 = vcombine.low %v244_v42, %v248_v44  ;;  %v5107_v56 = vcombine.high %v251_v51, %v255_v52  ;;  %v303_v41 = vld [vmem:[%s7701_s1 + $0x8f0] sm:$0xff]  ;;  %v304_v42 = vld [vmem:[%s7701_s1 + $0x8f8] sm:$0xff]  ;;  %v5146_v44 = vcombine.low %v291_v32, %v295_v33 }
 0x19c   :  { %4650 = vmatprep.subr.bf16.mxu1 %v5053_v57  ;;  %v5109_v57 = vcombine.high %v252_v54, %v256_v55 }
 0x19e   :  { %4446 = vmatpush1.bf16.msra.mxu0 %v5050_v1  ;;  %v5106_v1 = vcombine.low %v251_v51, %v255_v52  ;;  %v311_v51 = vld [vmem:[%s7701_s1 + $0x930] sm:$0xff]  ;;  %v312_v52 = vld [vmem:[%s7701_s1 + $0x938] sm:$0xff] }
 0x19f   :  { %4651 = vmatpush1.bf16.msra.mxu1 %v5052_v2  ;;  %4447 = vmatprep.subr.bf16.mxu0 %v5059_v28  ;;  %v5108_v2 = vcombine.low %v252_v54, %v256_v55  ;;  %v5115_v28 = vcombine.high %v259_v60, %v263_v61  ;;  %v5154_v54 = vcombine.low %v299_v40, %v303_v41 }
 0x1a0   :  { %4652 = vmatprep.subr.bf16.mxu1 %v5061_v3  ;;  %v5117_v3 = vcombine.high %v260_v62, %v264_v0 }
 0x1a2   :  { %4448 = vmatpush1.bf16.msra.mxu0 %v5058_v11  ;;  %v5114_v11 = vcombine.low %v259_v60, %v263_v61  ;;  %v316_v60 = vld [vmem:[%s7701_s1 + $0x958] sm:$0xff] }
 0x1a3   :  { %4653 = vmatpush1.bf16.msra.mxu1 %v5060_v12  ;;  %4449 = vmatprep.subr.bf16.mxu0 %v5067_v9  ;;  %v5116_v12 = vcombine.low %v260_v62, %v264_v0  ;;  %v5123_v9 = vcombine.high %v267_v5, %v271_v6  ;;  %v320_v61 = vld [vmem:[%s7701_s1 + $0x978] sm:$0xff] }
 0x1a4   :  { %4654 = vmatprep.subr.bf16.mxu1 %v5069_v13  ;;  %v5125_v13 = vcombine.high %v268_v7, %v272_v8 }
 0x1a6   :  { %4450 = vmatpush1.bf16.msra.mxu0 %v5066_v19  ;;  %v5122_v19 = vcombine.low %v267_v5, %v271_v6  ;;  %v324_v5 = vld [vmem:[%s7701_s1 + $0x998] sm:$0xff] }
 0x1a7   :  { %4655 = vmatpush1.bf16.msra.mxu1 %v5068_v20  ;;  %4451 = vmatprep.subr.bf16.mxu0 %v5075_v21  ;;  %v5124_v20 = vcombine.low %v268_v7, %v272_v8  ;;  %v5131_v21 = vcombine.high %v275_v14, %v279_v15  ;;  %v328_v6 = vld [vmem:[%s7701_s1 + $0x9b8] sm:$0xff]  ;;  %v5172_v8 = vcombine.low %v316_v60, %v320_v61 }
 0x1a8   :  { %4656 = vmatprep.subr.bf16.mxu1 %v5077_v22  ;;  %v5133_v22 = vcombine.high %v276_v16, %v280_v17 }
 0x1aa   :  { %4452 = vmatpush1.bf16.msra.mxu0 %v5074_v59  ;;  %v5130_v59 = vcombine.low %v275_v14, %v279_v15  ;;  %v332_v14 = vld [vmem:[%s7701_s1 + $0x9d8] sm:$0xff] }
 0x1ab   :  { %4657 = vmatpush1.bf16.msra.mxu1 %v5076_v29  ;;  %4453 = vmatprep.subr.bf16.mxu0 %v5083_v63  ;;  %v5132_v29 = vcombine.low %v276_v16, %v280_v17  ;;  %v5139_v63 = vcombine.high %v283_v24, %v287_v25  ;;  %v336_v15 = vld [vmem:[%s7701_s1 + $0x9f8] sm:$0xff]  ;;  %v5180_v17 = vcombine.low %v324_v5, %v328_v6 }
 0x1ac   :  { %4658 = vmatprep.subr.bf16.mxu1 %v5085_v30  ;;  %v5141_v30 = vcombine.high %v284_v23, %v288_v26 }
 0x1ae   :  { %4454 = vmatpush1.bf16.msra.mxu0 %v5082_v35  ;;  %v5138_v35 = vcombine.low %v283_v24, %v287_v25  ;;  %v340_v24 = vld [vmem:[%s7701_s1 + $0xa18] sm:$0xff] }
 0x1af   :  { %4659 = vmatpush1.bf16.msra.mxu1 %v5084_v36  ;;  %4455 = vmatprep.subr.bf16.mxu0 %v5091_v37  ;;  %v5140_v36 = vcombine.low %v284_v23, %v288_v26  ;;  %v5147_v37 = vcombine.high %v291_v32, %v295_v33  ;;  %v344_v25 = vld [vmem:[%s7701_s1 + $0xa38] sm:$0xff]  ;;  %v5188_v26 = vcombine.low %v332_v14, %v336_v15 }
 0x1b0   :  { %4660 = vmatprep.subr.bf16.mxu1 %v5093_v39  ;;  %v5149_v39 = vcombine.high %v292_v31, %v296_v34  ;;  %v348_v32 = vld [vmem:[%s7701_s1 + $0xa58] sm:$0xff] }
 0x1b1   :  { %v352_v33 = vld [vmem:[%s7701_s1 + $0xa78] sm:$0xff] }
 0x1b2   :  { %4456 = vmatpush1.bf16.msra.mxu0 %v5090_v45  ;;  %v5148_v45 = vcombine.low %v292_v31, %v296_v34  ;;  %v5196_v34 = vcombine.low %v340_v24, %v344_v25 }
 0x1b3   :  { %4661 = vmatpush1.bf16.msra.mxu1 %v5092_v46  ;;  %4457 = vmatprep.subr.bf16.mxu0 %v5099_v49  ;;  %v5155_v46 = vcombine.high %v299_v40, %v303_v41  ;;  %v356_v40 = vld [vmem:[%s7701_s1 + $0xa98] sm:$0xff] }
 0x1b4   :  { %4662 = vmatprep.subr.bf16.mxu1 %v5101_v50  ;;  %v307_v50 = vld [vmem:[%s7701_s1 + $0x910] sm:$0xff]  ;;  %v360_v41 = vld [vmem:[%s7701_s1 + $0xab8] sm:$0xff] }
 0x1b5   :  { %v5162_v62 = vcombine.low %v307_v50, %v311_v51 }
 0x1b6   :  { %4458 = vmatpush1.bf16.msra.mxu0 %v5098_v53  ;;  %v5163_v53 = vcombine.high %v307_v50, %v311_v51  ;;  %v364_v50 = vld [vmem:[%s7701_s1 + $0xad8] sm:$0xff] }
 0x1b7   :  { %4663 = vmatpush1.bf16.msra.mxu1 %v5100_v10  ;;  %4459 = vmatprep.subr.bf16.mxu0 %v5107_v56  ;;  %v315_v56 = vld [vmem:[%s7701_s1 + $0x950] sm:$0xff]  ;;  %v368_v51 = vld [vmem:[%s7701_s1 + $0xaf8] sm:$0xff] }
 0x1b8   :  { %4664 = vmatprep.subr.bf16.mxu1 %v5109_v57  ;;  %v319_v57 = vld [vmem:[%s7701_s1 + $0x970] sm:$0xff] }
 0x1b9   :  { %v5170_v7 = vcombine.low %v315_v56, %v319_v57 }
 0x1ba   :  { %4460 = vmatpush1.bf16.msra.mxu0 %v5106_v1  ;;  %v5171_v1 = vcombine.high %v315_v56, %v319_v57  ;;  %v372_v56 = vld [vmem:[%s7701_s1 + $0xb18] sm:$0xff] }
 0x1bb   :  { %4665 = vmatpush1.bf16.msra.mxu1 %v5108_v2  ;;  %4461 = vmatprep.subr.bf16.mxu0 %v5115_v28  ;;  %v5173_v2 = vcombine.high %v316_v60, %v320_v61  ;;  %v323_v28 = vld [vmem:[%s7701_s1 + $0x990] sm:$0xff]  ;;  %v376_v57 = vld [vmem:[%s7701_s1 + $0xb38] sm:$0xff]  ;;  %v5220_v61 = vcombine.low %v364_v50, %v368_v51 }
 0x1bc   :  { %4666 = vmatprep.subr.bf16.mxu1 %v5117_v3  ;;  %v327_v3 = vld [vmem:[%s7701_s1 + $0x9b0] sm:$0xff] }
 0x1bd   :  { %v5178_v16 = vcombine.low %v323_v28, %v327_v3 }
 0x1be   :  { %4462 = vmatpush1.bf16.msra.mxu0 %v5114_v11  ;;  %v5179_v11 = vcombine.high %v323_v28, %v327_v3  ;;  %v380_v28 = vld [vmem:[%s7701_s1 + $0xb58] sm:$0xff] }
 0x1bf   :  { %4667 = vmatpush1.bf16.msra.mxu1 %v5116_v12  ;;  %4463 = vmatprep.subr.bf16.mxu0 %v5123_v9  ;;  %v5181_v12 = vcombine.high %v324_v5, %v328_v6  ;;  %v331_v9 = vld [vmem:[%s7701_s1 + $0x9d0] sm:$0xff]  ;;  %v384_v3 = vld [vmem:[%s7701_s1 + $0xb78] sm:$0xff]  ;;  %v5228_v6 = vcombine.low %v372_v56, %v376_v57 }
 0x1c0   :  { %4668 = vmatprep.subr.bf16.mxu1 %v5125_v13  ;;  %v335_v13 = vld [vmem:[%s7701_s1 + $0x9f0] sm:$0xff] }
 0x1c1   :  { %v5186_v23 = vcombine.low %v331_v9, %v335_v13 }
 0x1c2   :  { %4464 = vmatpush1.bf16.msra.mxu0 %v5122_v19  ;;  %v5187_v19 = vcombine.high %v331_v9, %v335_v13  ;;  %v388_v9 = vld [vmem:[%s7701_s1 + $0xb98] sm:$0xff] }
 0x1c3   :  { %4669 = vmatpush1.bf16.msra.mxu1 %v5124_v20  ;;  %4474 = vmatprep.subr.bf16.mxu0 %v5131_v21  ;;  %v5189_v20 = vcombine.high %v332_v14, %v336_v15  ;;  %v339_v21 = vld [vmem:[%s7701_s1 + $0xa10] sm:$0xff]  ;;  %v392_v13 = vld [vmem:[%s7701_s1 + $0xbb8] sm:$0xff]  ;;  %v5236_v15 = vcombine.low %v380_v28, %v384_v3 }
 0x1c4   :  { %4679 = vmatprep.subr.bf16.mxu1 %v5133_v22  ;;  %v343_v22 = vld [vmem:[%s7701_s1 + $0xa30] sm:$0xff] }
 0x1c5   :  { %4466 = vmatmul.mubr.bf16.vlgmr.msra.gmra.mrb[4].mxu0 %v6077_v38  ;;  %v5194_v31 = vcombine.low %v339_v21, %v343_v22 }
 0x1c6   :  { %4475 = vmatpush1.bf16.msra.mxu0 %v5130_v59  ;;  %4671 = vmatmul.mubr.bf16.vlgmr.msra.gmra.mrb[4].mxu1 %v6077_v38  ;;  %v300_v38 = vld [vmem:[%s7701_s1 + $0x8d8] sm:$0xff]  ;;  %v5195_v59 = vcombine.high %v339_v21, %v343_v22 }
 0x1c7   :  { %4680 = vmatpush1.bf16.msra.mxu1 %v5132_v29  ;;  %4476 = vmatprep.subr.bf16.mxu0 %v5139_v63  ;;  %v5157_v49 = vcombine.high %v300_v38, %v304_v42  ;;  %v5156_v55 = vcombine.low %v300_v38, %v304_v42  ;;  %v5197_v29 = vcombine.high %v340_v24, %v344_v25  ;;  %v347_v63 = vld [vmem:[%s7701_s1 + $0xa50] sm:$0xff]  ;;  %v396_v21 = vld [vmem:[%s7701_s1 + $0xbd8] sm:$0xff] }
 0x1c8   :  { %4681 = vmatprep.subr.bf16.mxu1 %v5141_v30  ;;  %4506 = vmatprep.mubr.bf16.mxu0 %v6092_v48  ;;  %v351_v30 = vld [vmem:[%s7701_s1 + $0xa70] sm:$0xff]  ;;  %v5204_v42 = vcombine.low %v348_v32, %v352_v33  ;;  %v400_v22 = vld [vmem:[%s7701_s1 + $0xbf8] sm:$0xff]  ;;  %v5244_v25 = vcombine.low %v388_v9, %v392_v13 }
 0x1c9   :  { %4711 = vmatprep.mubr.bf16.mxu1 %v6092_v48  ;;  %v308_v48 = vld [vmem:[%s7701_s1 + $0x918] sm:$0xff]  ;;  %v5202_v38 = vcombine.low %v347_v63, %v351_v30 }
 0x1ca   :  { %4477 = vmatpush1.bf16.msra.mxu0 %v5138_v35  ;;  %v5165_v10 = vcombine.high %v308_v48, %v312_v52  ;;  %v5164_v0 = vcombine.low %v308_v48, %v312_v52  ;;  %v5203_v35 = vcombine.high %v347_v63, %v351_v30  ;;  %v5212_v52 = vcombine.low %v356_v40, %v360_v41  ;;  %v404_v63 = vld [vmem:[%s7701_s1 + $0xc18] sm:$0xff] }
 0x1cb   :  { %4682 = vmatpush1.bf16.msra.mxu1 %v5140_v36  ;;  %4478 = vmatprep.subr.bf16.mxu0 %v5147_v37  ;;  %v5205_v36 = vcombine.high %v348_v32, %v352_v33  ;;  %v355_v37 = vld [vmem:[%s7701_s1 + $0xa90] sm:$0xff]  ;;  %v408_v30 = vld [vmem:[%s7701_s1 + $0xc38] sm:$0xff]  ;;  %v5252_v33 = vcombine.low %v396_v21, %v400_v22 }
 0x1cc   :  { %4683 = vmatprep.subr.bf16.mxu1 %v5149_v39  ;;  %v359_v39 = vld [vmem:[%s7701_s1 + $0xab0] sm:$0xff] }
 0x1cd   :  { %v5210_v48 = vcombine.low %v355_v37, %v359_v39 }
 0x1ce   :  { %4479 = vmatpush1.bf16.msra.mxu0 %v5146_v44  ;;  %v5211_v44 = vcombine.high %v355_v37, %v359_v39  ;;  %v412_v37 = vld [vmem:[%s7701_s1 + $0xc58] sm:$0xff] }
 0x1cf   :  { %4684 = vmatpush1.bf16.msra.mxu1 %v5148_v45  ;;  %4480 = vmatprep.subr.bf16.mxu0 %v5155_v46  ;;  %v5213_v45 = vcombine.high %v356_v40, %v360_v41  ;;  %v363_v46 = vld [vmem:[%s7701_s1 + $0xad0] sm:$0xff]  ;;  %v416_v39 = vld [vmem:[%s7701_s1 + $0xc78] sm:$0xff]  ;;  %v5260_v41 = vcombine.low %v404_v63, %v408_v30 }
 0x1d0   :  { %4685 = vmatprep.subr.bf16.mxu1 %v5157_v49  ;;  %v367_v49 = vld [vmem:[%s7701_s1 + $0xaf0] sm:$0xff] }
 0x1d1   :  { %v5218_v60 = vcombine.low %v363_v46, %v367_v49 }
 0x1d2   :  { %4481 = vmatpush1.bf16.msra.mxu0 %v5154_v54  ;;  %v5219_v54 = vcombine.high %v363_v46, %v367_v49  ;;  %v420_v46 = vld [vmem:[%s7701_s1 + $0xc98] sm:$0xff] }
 0x1d3   :  { %4686 = vmatpush1.bf16.msra.mxu1 %v5156_v55  ;;  %4482 = vmatprep.subr.bf16.mxu0 %v5163_v53  ;;  %v5221_v55 = vcombine.high %v364_v50, %v368_v51  ;;  %v371_v53 = vld [vmem:[%s7701_s1 + $0xb10] sm:$0xff]  ;;  %v424_v49 = vld [vmem:[%s7701_s1 + $0xcb8] sm:$0xff]  ;;  %v5268_v51 = vcombine.low %v412_v37, %v416_v39 }
 0x1d4   :  { %4687 = vmatprep.subr.bf16.mxu1 %v5165_v10  ;;  %v375_v10 = vld [vmem:[%s7701_s1 + $0xb30] sm:$0xff] }
 0x1d5   :  { %v5226_v5 = vcombine.low %v371_v53, %v375_v10 }
 0x1d6   :  { %4483 = vmatpush1.bf16.msra.mxu0 %v5162_v62  ;;  %v5227_v62 = vcombine.high %v371_v53, %v375_v10  ;;  %v432_v53 = vld [vmem:[%s7701_s1 + $0xcf8] sm:$0xff] }
 0x1d7   :  { %4688 = vmatpush1.bf16.msra.mxu1 %v5164_v0  ;;  %4484 = vmatprep.subr.bf16.mxu0 %v5171_v1  ;;  %v5229_v0 = vcombine.high %v372_v56, %v376_v57  ;;  %v379_v1 = vld [vmem:[%s7701_s1 + $0xb50] sm:$0xff]  ;;  %v5276_v56 = vcombine.low %v420_v46, %v424_v49 }
 0x1d8   :  { %4689 = vmatprep.subr.bf16.mxu1 %v5173_v2  ;;  %v383_v2 = vld [vmem:[%s7701_s1 + $0xb70] sm:$0xff] }
 0x1d9   :  { %v5234_v14 = vcombine.low %v379_v1, %v383_v2 }
 0x1da   :  { %4485 = vmatpush1.bf16.msra.mxu0 %v5170_v7  ;;  %v5235_v7 = vcombine.high %v379_v1, %v383_v2 }
 0x1db   :  { %4690 = vmatpush1.bf16.msra.mxu1 %v5172_v8  ;;  %4486 = vmatprep.subr.bf16.mxu0 %v5179_v11  ;;  %v5237_v8 = vcombine.high %v380_v28, %v384_v3  ;;  %v387_v11 = vld [vmem:[%s7701_s1 + $0xb90] sm:$0xff] }
 0x1dc   :  { %4691 = vmatprep.subr.bf16.mxu1 %v5181_v12  ;;  %v391_v12 = vld [vmem:[%s7701_s1 + $0xbb0] sm:$0xff] }
 0x1dd   :  { %v5242_v24 = vcombine.low %v387_v11, %v391_v12 }
 0x1de   :  { %4487 = vmatpush1.bf16.msra.mxu0 %v5178_v16  ;;  %v5243_v16 = vcombine.high %v387_v11, %v391_v12  ;;  %v448_v11 = vld [vmem:[%s7701_s1 + $0xd78] sm:$0xff] }
 0x1df   :  { %4692 = vmatpush1.bf16.msra.mxu1 %v5180_v17  ;;  %4488 = vmatprep.subr.bf16.mxu0 %v5187_v19  ;;  %v5245_v17 = vcombine.high %v388_v9, %v392_v13  ;;  %v395_v19 = vld [vmem:[%s7701_s1 + $0xbd0] sm:$0xff]  ;;  %v7346_v9 = vld [vmem:[%s7702_s2] sm:$0xff]  ;;  %v669_v13 = vsub.s32 2, %v5699_v43 }
 0x1e0   :  { %4693 = vmatprep.subr.bf16.mxu1 %v5189_v20  ;;  %v399_v20 = vld [vmem:[%s7701_s1 + $0xbf0] sm:$0xff] }
 0x1e1   :  { %v5250_v32 = vcombine.low %v395_v19, %v399_v20 }
 0x1e2   :  { %4489 = vmatpush1.bf16.msra.mxu0 %v5186_v23  ;;  %v5251_v23 = vcombine.high %v395_v19, %v399_v20  ;;  %v673_v19 = vsub.s32 3, %v5699_v43 }
 0x1e3   :  { %4694 = vmatpush1.bf16.msra.mxu1 %v5188_v26  ;;  %4490 = vmatprep.subr.bf16.mxu0 %v5195_v59  ;;  %v5253_v26 = vcombine.high %v396_v21, %v400_v22  ;;  %v403_v59 = vld [vmem:[%s7701_s1 + $0xc10] sm:$0xff] }
 0x1e4   :  { %4695 = vmatprep.subr.bf16.mxu1 %v5197_v29  ;;  %v407_v29 = vld [vmem:[%s7701_s1 + $0xc30] sm:$0xff] }
 0x1e5   :  { %v5258_v40 = vcombine.low %v403_v59, %v407_v29  ;;  %v451_v22 = vld [vmem:[%s7701_s1 + $0xd90] sm:$0xff] }
 0x1e6   :  { %4491 = vmatpush1.bf16.msra.mxu0 %v5194_v31  ;;  %v5259_v31 = vcombine.high %v403_v59, %v407_v29  ;;  %v670_v59 = vrot.slane %v7346_v9, %v669_v13 }
 0x1e7   :  { %4696 = vmatpush1.bf16.msra.mxu1 %v5196_v34  ;;  %4492 = vmatprep.subr.bf16.mxu0 %v5203_v35  ;;  %v5261_v34 = vcombine.high %v404_v63, %v408_v30  ;;  %v411_v35 = vld [vmem:[%s7701_s1 + $0xc50] sm:$0xff] }
 0x1e8   :  { %4697 = vmatprep.subr.bf16.mxu1 %v5205_v36  ;;  %v415_v36 = vld [vmem:[%s7701_s1 + $0xc70] sm:$0xff] }
 0x1e9   :  { %v5266_v50 = vcombine.low %v411_v35, %v415_v36 }
 0x1ea   :  { %4493 = vmatpush1.bf16.msra.mxu0 %v5202_v38  ;;  %v5267_v38 = vcombine.high %v411_v35, %v415_v36  ;;  %v459_v36 = vld [vmem:[%s7701_s1 + $0xdd0] sm:$0xff] }
 0x1eb   :  { %4698 = vmatpush1.bf16.msra.mxu1 %v5204_v42  ;;  %4494 = vmatprep.subr.bf16.mxu0 %v5211_v44  ;;  %v5269_v42 = vcombine.high %v412_v37, %v416_v39  ;;  %v419_v44 = vld [vmem:[%s7701_s1 + $0xc90] sm:$0xff] }
 0x1ec   :  { %4699 = vmatprep.subr.bf16.mxu1 %v5213_v45  ;;  %v423_v45 = vld [vmem:[%s7701_s1 + $0xcb0] sm:$0xff] }
 0x1ed   :  { %v5274_v10 = vcombine.low %v419_v44, %v423_v45  ;;  %v463_v37 = vld [vmem:[%s7701_s1 + $0xdf0] sm:$0xff] }
 0x1ee   :  { %4495 = vmatpush1.bf16.msra.mxu0 %v5210_v48  ;;  %v5275_v48 = vcombine.high %v419_v44, %v423_v45 }
 0x1ef   :  { %4700 = vmatpush1.bf16.msra.mxu1 %v5212_v52  ;;  %4496 = vmatprep.subr.bf16.mxu0 %v5219_v54  ;;  %v5277_v52 = vcombine.high %v420_v46, %v424_v49  ;;  %v427_v54 = vld [vmem:[%s7701_s1 + $0xcd0] sm:$0xff] }
 0x1f0   :  { %4701 = vmatprep.subr.bf16.mxu1 %v5221_v55  ;;  %v431_v55 = vld [vmem:[%s7701_s1 + $0xcf0] sm:$0xff] }
 0x1f1   :  { %v5283_v57 = vcombine.high %v427_v54, %v431_v55  ;;  %v5282_v1 = vcombine.low %v427_v54, %v431_v55 }
 0x1f2   :  { %4497 = vmatpush1.bf16.msra.mxu0 %v5218_v60 }
 0x1f3   :  { %4702 = vmatpush1.bf16.msra.mxu1 %v5220_v61  ;;  %4498 = vmatprep.subr.bf16.mxu0 %v5227_v62  ;;  %v435_v61 = vld [vmem:[%s7701_s1 + $0xd10] sm:$0xff] }
 0x1f4   :  { %4703 = vmatprep.subr.bf16.mxu1 %v5229_v0  ;;  %v439_v62 = vld [vmem:[%s7701_s1 + $0xd30] sm:$0xff]  ;;  %v440_v0 = vld [vmem:[%s7701_s1 + $0xd38] sm:$0xff] }
 0x1f5   :  { %v5291_v28 = vcombine.high %v435_v61, %v439_v62  ;;  %v5290_v12 = vcombine.low %v435_v61, %v439_v62  ;;  %v468_v62 = vld [vmem:[%s7701_s1 + $0xe18] sm:$0xff] }
 0x1f6   :  { %4499 = vmatpush1.bf16.msra.mxu0 %v5226_v5  ;;  %v443_v5 = vld [vmem:[%s7701_s1 + $0xd50] sm:$0xff] }
 0x1f7   :  { %4704 = vmatpush1.bf16.msra.mxu1 %v5228_v6  ;;  %4500 = vmatprep.subr.bf16.mxu0 %v5235_v7  ;;  %v447_v6 = vld [vmem:[%s7701_s1 + $0xd70] sm:$0xff]  ;;  %v661_v7 = vsub.s32 0, %v5699_v43 }
 0x1f8   :  { %4705 = vmatprep.subr.bf16.mxu1 %v5237_v8  ;;  %v444_v8 = vld [vmem:[%s7701_s1 + $0xd58] sm:$0xff]  ;;  %v5299_v20 = vcombine.high %v443_v5, %v447_v6  ;;  %v5298_v30 = vcombine.low %v443_v5, %v447_v6  ;;  %v475_v6 = vld [vmem:[%s7701_s1 + $0xe50] sm:$0xff] }
 0x1f9   :  { %v5301_v21 = vcombine.high %v444_v8, %v448_v11 }
 0x1fa   :  { %4501 = vmatpush1.bf16.msra.mxu0 %v5234_v14  ;;  %v665_v14 = vsub.s32 1, %v5699_v43 }
 0x1fb   :  { %4706 = vmatpush1.bf16.msra.mxu1 %v5236_v15  ;;  %4502 = vmatprep.subr.bf16.mxu0 %v5243_v16  ;;  %v5611_v15 = vmov 1983009808  }
 0x1fc   :  { %4707 = vmatprep.subr.bf16.mxu1 %v5245_v17  ;;  %v4813_v16 = vunpack.c.l.s4 %v5611_v15  ;;  %v666_v29 = vrot.slane %v7346_v9, %v665_v14 }
 0x1fe   :  { %4503 = vmatpush1.bf16.msra.mxu0 %v5242_v24  ;;  %v455_v24 = vld [vmem:[%s7701_s1 + $0xdb0] sm:$0xff]  ;;  %v4814_v63 = vunpack.c.0.s8 %v4813_v16 }
 0x1ff   :  { %4708 = vmatpush1.bf16.msra.mxu1 %v5244_v25  ;;  %4504 = vmatprep.subr.bf16.mxu0 %v5251_v23  ;;  %v662_v25 = vrot.slane %v7346_v9, %v661_v7  ;;  %v452_v23 = vld [vmem:[%s7701_s1 + $0xd98] sm:$0xff]  ;;  %v479_v7 = vld [vmem:[%s7701_s1 + $0xe70] sm:$0xff] }
 0x200   :  { %4709 = vmatprep.subr.bf16.mxu1 %v5253_v26  ;;  %v456_v26 = vld [vmem:[%s7701_s1 + $0xdb8] sm:$0xff]  ;;  %v7380_v46 = vsub.s32 %v4814_v63, %v5699_v43  ;;  %v5331_v15 = vcombine.high %v475_v6, %v479_v7 }
 0x201   :  { %v5309_v35 = vcombine.high %v452_v23, %v456_v26  ;;  %v5308_v55 = vcombine.low %v452_v23, %v456_v26  ;;  %v491_v26 = vld [vmem:[%s7701_s1 + $0xed0] sm:$0xff]  ;;  %v496_v63 = vld [vmem:[%s7701_s1 + $0xef8] sm:$0xff] }
 0x202   :  { %4505 = vmatpush1.bf16.msra.mxu0 %v5250_v32  ;;  %v674_v32 = vrot.slane %v7346_v9, %v673_v19  ;;  %v487_v19 = vld [vmem:[%s7701_s1 + $0xeb0] sm:$0xff] }
 0x203   :  { %4710 = vmatpush1.bf16.msra.mxu1 %v5252_v33  ;;  %4515 = vmatprep.subr.bf16.mxu0 %v5259_v31  ;;  %v5300_v33 = vcombine.low %v444_v8, %v448_v11  ;;  %v5307_v31 = vcombine.high %v451_v22, %v455_v24  ;;  %v476_v8 = vld [vmem:[%s7701_s1 + $0xe58] sm:$0xff] }
 0x204   :  { %4720 = vmatprep.subr.bf16.mxu1 %v5261_v34  ;;  %v480_v11 = vld [vmem:[%s7701_s1 + $0xe78] sm:$0xff] }
 0x205   :  { %4507 = vmatmul.mubr.bf16.vlgmr.msra.gmra.mrb[4].mxu0 %v6280_v58  ;;  %v5333_v16 = vcombine.high %v476_v8, %v480_v11 }
 0x206   :  { %4516 = vmatpush1.bf16.msra.mxu0 %v5258_v40  ;;  %4712 = vmatmul.mubr.bf16.vlgmr.msra.gmra.mrb[4].mxu1 %v6280_v58  ;;  %v428_v58 = vld [vmem:[%s7701_s1 + $0xcd8] sm:$0xff] }
 0x207   :  { %4721 = vmatpush1.bf16.msra.mxu1 %v5260_v41  ;;  %4517 = vmatprep.subr.bf16.mxu0 %v5267_v38  ;;  %v5285_v60 = vcombine.high %v428_v58, %v432_v53  ;;  %v5284_v2 = vcombine.low %v428_v58, %v432_v53  ;;  %v460_v38 = vld [vmem:[%s7701_s1 + $0xdd8] sm:$0xff]  ;;  %v5315_v58 = vcombine.high %v459_v36, %v463_v37 }
 0x208   :  { %4722 = vmatprep.subr.bf16.mxu1 %v5269_v42  ;;  %4547 = vmatprep.mubr.bf16.mxu0 %v6296_v4  ;;  %v464_v42 = vld [vmem:[%s7701_s1 + $0xdf8] sm:$0xff] }
 0x209   :  { %4752 = vmatprep.mubr.bf16.mxu1 %v6296_v4  ;;  %v436_v4 = vld [vmem:[%s7701_s1 + $0xd18] sm:$0xff] }
 0x20a   :  { %4518 = vmatpush1.bf16.msra.mxu0 %v5266_v50  ;;  %v5293_v3 = vcombine.high %v436_v4, %v440_v0  ;;  %v5292_v17 = vcombine.low %v436_v4, %v440_v0  ;;  %v472_v4 = vld [vmem:[%s7701_s1 + $0xe38] sm:$0xff] }
 0x20b   :  { %4723 = vmatpush1.bf16.msra.mxu1 %v5268_v51  ;;  %4519 = vmatprep.subr.bf16.mxu0 %v5275_v48  ;;  %v5306_v51 = vcombine.low %v451_v22, %v455_v24  ;;  %v5325_v5 = vcombine.high %v468_v62, %v472_v4  ;;  %v5324_v14 = vcombine.low %v468_v62, %v472_v4  ;;  %v527_v62 = vld [vmem:[%s7701_s1 + $0xff0] sm:$0xff]  ;;  %v524_v4 = vld [vmem:[%s7701_s1 + $0xfd8] sm:$0xff] }
 0x20c   :  { %4724 = vmatprep.subr.bf16.mxu1 %v5277_v52  ;;  %v5330_v22 = vcombine.low %v475_v6, %v479_v7  ;;  %v5332_v24 = vcombine.low %v476_v8, %v480_v11  ;;  %v535_v6 = vld [vmem:[%s7701_s1 + $0x1030] sm:$0xff]  ;;  %v532_v7 = vld [vmem:[%s7701_s1 + $0x1018] sm:$0xff] }
 0x20d   :  { %v536_v8 = vld [vmem:[%s7701_s1 + $0x1038] sm:$0xff] }
 0x20e   :  { %4520 = vmatpush1.bf16.msra.mxu0 %v5274_v10 }
 0x20f   :  { %4725 = vmatpush1.bf16.msra.mxu1 %v5276_v56  ;;  %4521 = vmatprep.subr.bf16.mxu0 %v5283_v57  ;;  %v5317_v56 = vcombine.high %v460_v38, %v464_v42  ;;  %v467_v57 = vld [vmem:[%s7701_s1 + $0xe10] sm:$0xff] }
 0x210   :  { %4726 = vmatprep.subr.bf16.mxu1 %v5285_v60  ;;  %v471_v60 = vld [vmem:[%s7701_s1 + $0xe30] sm:$0xff] }
 0x211   :  { %v5322_v13 = vcombine.low %v467_v57, %v471_v60 }
 0x212   :  { %4522 = vmatpush1.bf16.msra.mxu0 %v5282_v1  ;;  %v5314_v1 = vcombine.low %v459_v36, %v463_v37  ;;  %v500_v36 = vld [vmem:[%s7701_s1 + $0xf18] sm:$0xff] }
 0x213   :  { %4727 = vmatpush1.bf16.msra.mxu1 %v5284_v2  ;;  %4523 = vmatprep.subr.bf16.mxu0 %v5291_v28  ;;  %v5316_v28 = vcombine.low %v460_v38, %v464_v42  ;;  %v504_v37 = vld [vmem:[%s7701_s1 + $0xf38] sm:$0xff]  ;;  %v507_v42 = vld [vmem:[%s7701_s1 + $0xf50] sm:$0xff] }
 0x214   :  { %4728 = vmatprep.subr.bf16.mxu1 %v5293_v3  ;;  %v5323_v3 = vcombine.high %v467_v57, %v471_v60  ;;  %v5357_v38 = vcombine.high %v500_v36, %v504_v37 }
 0x216   :  { %4524 = vmatpush1.bf16.msra.mxu0 %v5290_v12 }
 0x217   :  { %4729 = vmatpush1.bf16.msra.mxu1 %v5292_v17  ;;  %4525 = vmatprep.subr.bf16.mxu0 %v5299_v20  ;;  %v483_v17 = vld [vmem:[%s7701_s1 + $0xe90] sm:$0xff]  ;;  %v484_v20 = vld [vmem:[%s7701_s1 + $0xe98] sm:$0xff] }
 0x218   :  { %v4180_v34 = vpop.f32.mrb[0].mxu0  ;;  %4730 = vmatprep.subr.bf16.mxu1 %v5301_v21  ;;  %v488_v21 = vld [vmem:[%s7701_s1 + $0xeb8] sm:$0xff] }
 0x219   :  { %v5510_v39 = vadd.f32 %v4180_v34, %v662_v25  ;;  %v4385_v40 = vpop.f32.mrb[0].mxu1  ;;  %v4182_v41 = vpop.f32.mrb[1].mxu0  ;;  %v5339_v25 = vcombine.high %v483_v17, %v487_v19  ;;  %v5341_v23 = vcombine.high %v484_v20, %v488_v21  ;;  %v499_v34 = vld [vmem:[%s7701_s1 + $0xf10] sm:$0xff] }
 0x21a   :  { %v5512_v44 = vadd.f32 %v4385_v40, %v670_v59  ;;  %v5511_v45 = vadd.f32 %v4182_v41, %v666_v29  ;;  %v4387_v49 = vpop.f32.mrb[1].mxu1  ;;  %v4184_v50 = vpop.f32.mrb[2].mxu0  ;;  %4526 = vmatpush1.bf16.msra.mxu0 %v5298_v30  ;;  %v495_v59 = vld [vmem:[%s7701_s1 + $0xef0] sm:$0xff]  ;;  %v492_v29 = vld [vmem:[%s7701_s1 + $0xed8] sm:$0xff]  ;;  %v5338_v30 = vcombine.low %v483_v17, %v487_v19 }
 0x21b   :  { %v5513_v48 = vadd.f32 %v4387_v49, %v674_v32  ;;  %v4389_v52 = vpop.f32.mrb[2].mxu1  ;;  %4731 = vmatpush1.bf16.msra.mxu1 %v5300_v33  ;;  %v4185_v54 = vpop.f32.mrb[3].mxu0  ;;  %4527 = vmatprep.subr.bf16.mxu0 %v5307_v31  ;;  %v5340_v32 = vcombine.low %v484_v20, %v488_v21  ;;  %v5347_v33 = vcombine.high %v491_v26, %v495_v59  ;;  %v512_v49 = vld [vmem:[%s7701_s1 + $0xf78] sm:$0xff] }
 0x21c   :  { %v4810_v53 = vcombine.low %v5510_v39, %v5511_v45  ;;  %v4390_v10 = vpop.f32.mrb[3].mxu1  ;;  %4732 = vmatprep.subr.bf16.mxu1 %v5309_v35  ;;  %v5349_v31 = vcombine.high %v492_v29, %v496_v63  ;;  %v503_v35 = vld [vmem:[%s7701_s1 + $0xf30] sm:$0xff]  ;;  %v5346_v39 = vcombine.low %v491_v26, %v495_v59  ;;  %v5348_v40 = vcombine.low %v492_v29, %v496_v63  ;;  %v508_v45 = vld [vmem:[%s7701_s1 + $0xf58] sm:$0xff] }
 0x21d   :  { %v4811_v61 = vcombine.low %v5512_v44, %v5513_v48  ;;  %v5355_v41 = vcombine.high %v499_v34, %v503_v35  ;;  %v511_v44 = vld [vmem:[%s7701_s1 + $0xf70] sm:$0xff]  ;;  %v5354_v50 = vcombine.low %v499_v34, %v503_v35  ;;  %v5365_v52 = vcombine.high %v508_v45, %v512_v49  ;;  %v540_v17 = vld [vmem:[%s7701_s1 + $0x1058] sm:$0xff] }
 0x21e   :  { %v4818_v0 = vrot.slane %v4810_v53, %v7380_v46  ;;  %4528 = vmatpush1.bf16.msra.mxu0 %v5306_v51  ;;  %v5356_v51 = vcombine.low %v500_v36, %v504_v37  ;;  %v5363_v48 = vcombine.high %v507_v42, %v511_v44  ;;  %v515_v54 = vld [vmem:[%s7701_s1 + $0xf90] sm:$0xff]  ;;  %v520_v53 = vld [vmem:[%s7701_s1 + $0xfb8] sm:$0xff]  ;;  %v5362_v10 = vcombine.low %v507_v42, %v511_v44 }
 0x21f   :  { %v4825_v2 = vrot.slane %v4811_v61, %v7380_v46  ;;  %4733 = vmatpush1.bf16.msra.mxu1 %v5308_v55  ;;  %4529 = vmatprep.subr.bf16.mxu0 %v5315_v58  ;;  %v519_v55 = vld [vmem:[%s7701_s1 + $0xfb0] sm:$0xff]  ;;  %v516_v58 = vld [vmem:[%s7701_s1 + $0xf98] sm:$0xff]  ;;  %v5388_v21 = vcombine.low %v532_v7, %v536_v8 }
 0x220   :  { %4734 = vmatprep.subr.bf16.mxu1 %v5317_v56  ;;  %v5364_v56 = vcombine.low %v508_v45, %v512_v49  ;;  %v5371_v57 = vcombine.high %v515_v54, %v519_v55  ;;  %v5373_v60 = vcombine.high %v516_v58, %v520_v53  ;;  %v523_v61 = vld [vmem:[%s7701_s1 + $0xfd0] sm:$0xff]  ;;  %v544_v19 = vld [vmem:[%s7701_s1 + $0x1078] sm:$0xff] }
 0x221   :  { %v4826_v12 = vcombine.low %v4818_v0, %v4825_v2  ;;  %v528_v0 = vld [vmem:[%s7701_s1 + $0xff8] sm:$0xff]  ;;  %v5372_v2 = vcombine.low %v516_v58, %v520_v53  ;;  %v5378_v11 = vcombine.low %v523_v61, %v527_v62  ;;  %v5396_v63 = vcombine.low %v540_v17, %v544_v19 }
 0x222   :  { %4530 = vmatpush1.bf16.msra.mxu0 %v5314_v1  ;;  %v5370_v1 = vcombine.low %v515_v54, %v519_v55  ;;  %v548_v26 = vld [vmem:[%s7701_s1 + $0x1098] sm:$0xff] }
 0x223   :  { %4735 = vmatpush1.bf16.msra.mxu1 %v5316_v28  ;;  %4531 = vmatprep.subr.bf16.mxu0 %v5323_v3  ;;  %4846 = vst [vmem:[#allocation2] sm:$0xff] %v4826_v12  ;;  %v5379_v28 = vcombine.high %v523_v61, %v527_v62  ;;  %v5381_v3 = vcombine.high %v524_v4, %v528_v0  ;;  %v552_v59 = vld [vmem:[%s7701_s1 + $0x10b8] sm:$0xff] }
 0x224   :  { %4736 = vmatprep.subr.bf16.mxu1 %v5325_v5  ;;  %v531_v5 = vld [vmem:[%s7701_s1 + $0x1010] sm:$0xff]  ;;  %v5380_v12 = vcombine.low %v524_v4, %v528_v0  ;;  %v560_v34 = vld [vmem:[%s7701_s1 + $0x10f8] sm:$0xff]  ;;  %v5404_v36 = vcombine.low %v548_v26, %v552_v59 }
 0x225   :  { %v5386_v20 = vcombine.low %v531_v5, %v535_v6 }
 0x226   :  { %4532 = vmatpush1.bf16.msra.mxu0 %v5322_v13  ;;  %v5387_v13 = vcombine.high %v531_v5, %v535_v6 }
 0x227   :  { %4737 = vmatpush1.bf16.msra.mxu1 %v5324_v14  ;;  %4533 = vmatprep.subr.bf16.mxu0 %v5331_v15  ;;  %v5389_v14 = vcombine.high %v532_v7, %v536_v8  ;;  %v539_v15 = vld [vmem:[%s7701_s1 + $0x1050] sm:$0xff] }
 0x228   :  { %4738 = vmatprep.subr.bf16.mxu1 %v5333_v16  ;;  %v543_v16 = vld [vmem:[%s7701_s1 + $0x1070] sm:$0xff] }
 0x229   :  { %v5394_v29 = vcombine.low %v539_v15, %v543_v16 }
 0x22a   :  { %4534 = vmatpush1.bf16.msra.mxu0 %v5330_v22  ;;  %v5395_v22 = vcombine.high %v539_v15, %v543_v16 }
 0x22b   :  { %4739 = vmatpush1.bf16.msra.mxu1 %v5332_v24  ;;  %4535 = vmatprep.subr.bf16.mxu0 %v5339_v25  ;;  %v5397_v24 = vcombine.high %v540_v17, %v544_v19  ;;  %v547_v25 = vld [vmem:[%s7701_s1 + $0x1090] sm:$0xff] }
 0x22c   :  { %4740 = vmatprep.subr.bf16.mxu1 %v5341_v23  ;;  %v551_v23 = vld [vmem:[%s7701_s1 + $0x10b0] sm:$0xff] }
 0x22d   :  { %v5402_v35 = vcombine.low %v547_v25, %v551_v23 }
 0x22e   :  { %4536 = vmatpush1.bf16.msra.mxu0 %v5338_v30  ;;  %v5403_v30 = vcombine.high %v547_v25, %v551_v23 }
 0x22f   :  { %4741 = vmatpush1.bf16.msra.mxu1 %v5340_v32  ;;  %4537 = vmatprep.subr.bf16.mxu0 %v5347_v33  ;;  %v5405_v32 = vcombine.high %v548_v26, %v552_v59  ;;  %v555_v33 = vld [vmem:[%s7701_s1 + $0x10d0] sm:$0xff] }
 0x230   :  { %4742 = vmatprep.subr.bf16.mxu1 %v5349_v31  ;;  %v559_v31 = vld [vmem:[%s7701_s1 + $0x10f0] sm:$0xff] }
 0x231   :  { %v5411_v37 = vcombine.high %v555_v33, %v559_v31  ;;  %v5410_v42 = vcombine.low %v555_v33, %v559_v31 }
 0x232   :  { %4538 = vmatpush1.bf16.msra.mxu0 %v5346_v39 }
 0x233   :  { %4743 = vmatpush1.bf16.msra.mxu1 %v5348_v40  ;;  %4539 = vmatprep.subr.bf16.mxu0 %v5355_v41  ;;  %v563_v40 = vld [vmem:[%s7701_s1 + $0x1110] sm:$0xff] }
 0x234   :  { %4744 = vmatprep.subr.bf16.mxu1 %v5357_v38  ;;  %v567_v41 = vld [vmem:[%s7701_s1 + $0x1130] sm:$0xff]  ;;  %v568_v38 = vld [vmem:[%s7701_s1 + $0x1138] sm:$0xff] }
 0x235   :  { %v5419_v45 = vcombine.high %v563_v40, %v567_v41  ;;  %v5418_v54 = vcombine.low %v563_v40, %v567_v41 }
 0x236   :  { %4540 = vmatpush1.bf16.msra.mxu0 %v5354_v50  ;;  %v571_v50 = vld [vmem:[%s7701_s1 + $0x1150] sm:$0xff] }
 0x237   :  { %4745 = vmatpush1.bf16.msra.mxu1 %v5356_v51  ;;  %4541 = vmatprep.subr.bf16.mxu0 %v5363_v48  ;;  %v575_v51 = vld [vmem:[%s7701_s1 + $0x1170] sm:$0xff]  ;;  %v572_v48 = vld [vmem:[%s7701_s1 + $0x1158] sm:$0xff] }
 0x238   :  { %4746 = vmatprep.subr.bf16.mxu1 %v5365_v52  ;;  %v576_v52 = vld [vmem:[%s7701_s1 + $0x1178] sm:$0xff]  ;;  %v5427_v58 = vcombine.high %v571_v50, %v575_v51  ;;  %v5426_v61 = vcombine.low %v571_v50, %v575_v51 }
 0x239   :  { %v5429_v53 = vcombine.high %v572_v48, %v576_v52  ;;  %v5428_v62 = vcombine.low %v572_v48, %v576_v52 }
 0x23a   :  { %4542 = vmatpush1.bf16.msra.mxu0 %v5362_v10  ;;  %v579_v10 = vld [vmem:[%s7701_s1 + $0x1190] sm:$0xff] }
 0x23b   :  { %4747 = vmatpush1.bf16.msra.mxu1 %v5364_v56  ;;  %4543 = vmatprep.subr.bf16.mxu0 %v5371_v57  ;;  %v583_v56 = vld [vmem:[%s7701_s1 + $0x11b0] sm:$0xff]  ;;  %v580_v57 = vld [vmem:[%s7701_s1 + $0x1198] sm:$0xff] }
 0x23c   :  { %4748 = vmatprep.subr.bf16.mxu1 %v5373_v60  ;;  %v584_v60 = vld [vmem:[%s7701_s1 + $0x11b8] sm:$0xff]  ;;  %v5435_v4 = vcombine.high %v579_v10, %v583_v56  ;;  %v5434_v5 = vcombine.low %v579_v10, %v583_v56 }
 0x23d   :  { %v5437_v0 = vcombine.high %v580_v57, %v584_v60  ;;  %v5436_v6 = vcombine.low %v580_v57, %v584_v60 }
 0x23e   :  { %4544 = vmatpush1.bf16.msra.mxu0 %v5370_v1  ;;  %v587_v1 = vld [vmem:[%s7701_s1 + $0x11d0] sm:$0xff] }
 0x23f   :  { %4749 = vmatpush1.bf16.msra.mxu1 %v5372_v2  ;;  %4545 = vmatprep.subr.bf16.mxu0 %v5379_v28  ;;  %v591_v2 = vld [vmem:[%s7701_s1 + $0x11f0] sm:$0xff]  ;;  %v588_v28 = vld [vmem:[%s7701_s1 + $0x11d8] sm:$0xff] }
 0x240   :  { %4750 = vmatprep.subr.bf16.mxu1 %v5381_v3  ;;  %v592_v3 = vld [vmem:[%s7701_s1 + $0x11f8] sm:$0xff]  ;;  %v5443_v7 = vcombine.high %v587_v1, %v591_v2  ;;  %v5442_v15 = vcombine.low %v587_v1, %v591_v2 }
 0x241   :  { %v5445_v8 = vcombine.high %v588_v28, %v592_v3  ;;  %v5444_v16 = vcombine.low %v588_v28, %v592_v3 }
 0x242   :  { %4546 = vmatpush1.bf16.msra.mxu0 %v5378_v11  ;;  %v595_v11 = vld [vmem:[%s7701_s1 + $0x1210] sm:$0xff] }
 0x243   :  { %4751 = vmatpush1.bf16.msra.mxu1 %v5380_v12  ;;  %4556 = vmatprep.subr.bf16.mxu0 %v5387_v13  ;;  %v599_v12 = vld [vmem:[%s7701_s1 + $0x1230] sm:$0xff]  ;;  %v596_v13 = vld [vmem:[%s7701_s1 + $0x1218] sm:$0xff] }
 0x244   :  { %4761 = vmatprep.subr.bf16.mxu1 %v5389_v14  ;;  %v600_v14 = vld [vmem:[%s7701_s1 + $0x1238] sm:$0xff]  ;;  %v5451_v17 = vcombine.high %v595_v11, %v599_v12  ;;  %v5450_v25 = vcombine.low %v595_v11, %v599_v12 }
 0x245   :  { %4548 = vmatmul.mubr.bf16.vlgmr.msra.gmra.mrb[4].mxu0 %v6491_v18  ;;  %v5453_v19 = vcombine.high %v596_v13, %v600_v14  ;;  %v5452_v23 = vcombine.low %v596_v13, %v600_v14 }
 0x246   :  { %4557 = vmatpush1.bf16.msra.mxu0 %v5386_v20  ;;  %4753 = vmatmul.mubr.bf16.vlgmr.msra.gmra.mrb[4].mxu1 %v6491_v18  ;;  %v556_v18 = vld [vmem:[%s7701_s1 + $0x10d8] sm:$0xff]  ;;  %v603_v20 = vld [vmem:[%s7701_s1 + $0x1250] sm:$0xff] }
 0x247   :  { %4762 = vmatpush1.bf16.msra.mxu1 %v5388_v21  ;;  %4558 = vmatprep.subr.bf16.mxu0 %v5395_v22  ;;  %v5413_v39 = vcombine.high %v556_v18, %v560_v34  ;;  %v5412_v44 = vcombine.low %v556_v18, %v560_v34  ;;  %v607_v21 = vld [vmem:[%s7701_s1 + $0x1270] sm:$0xff]  ;;  %v604_v22 = vld [vmem:[%s7701_s1 + $0x1258] sm:$0xff] }
 0x248   :  { %4763 = vmatprep.subr.bf16.mxu1 %v5397_v24  ;;  %4588 = vmatprep.mubr.bf16.mxu0 %v6506_v27  ;;  %v608_v24 = vld [vmem:[%s7701_s1 + $0x1278] sm:$0xff]  ;;  %v5459_v26 = vcombine.high %v603_v20, %v607_v21  ;;  %v5458_v33 = vcombine.low %v603_v20, %v607_v21  ;;  %v681_v20 = vsub.s32 5, %v5699_v43  ;;  %v689_v21 = vsub.s32 7, %v5699_v43 }
 0x249   :  { %4793 = vmatprep.mubr.bf16.mxu1 %v6506_v27  ;;  %v564_v27 = vld [vmem:[%s7701_s1 + $0x1118] sm:$0xff]  ;;  %v5461_v59 = vcombine.high %v604_v22, %v608_v24  ;;  %v5460_v31 = vcombine.low %v604_v22, %v608_v24 }
 0x24a   :  { %4559 = vmatpush1.bf16.msra.mxu0 %v5394_v29  ;;  %v5421_v49 = vcombine.high %v564_v27, %v568_v38  ;;  %v5420_v55 = vcombine.low %v564_v27, %v568_v38  ;;  %v611_v29 = vld [vmem:[%s7701_s1 + $0x1290] sm:$0xff] }
 0x24b   :  { %4764 = vmatpush1.bf16.msra.mxu1 %v5396_v63  ;;  %4560 = vmatprep.subr.bf16.mxu0 %v5403_v30  ;;  %v615_v63 = vld [vmem:[%s7701_s1 + $0x12b0] sm:$0xff]  ;;  %v612_v30 = vld [vmem:[%s7701_s1 + $0x1298] sm:$0xff] }
 0x24c   :  { %4765 = vmatprep.subr.bf16.mxu1 %v5405_v32  ;;  %v616_v32 = vld [vmem:[%s7701_s1 + $0x12b8] sm:$0xff]  ;;  %v5467_v18 = vcombine.high %v611_v29, %v615_v63  ;;  %v5466_v40 = vcombine.low %v611_v29, %v615_v63 }
 0x24d   :  { %v5469_v34 = vcombine.high %v612_v30, %v616_v32  ;;  %v5468_v41 = vcombine.low %v612_v30, %v616_v32 }
 0x24e   :  { %4561 = vmatpush1.bf16.msra.mxu0 %v5402_v35  ;;  %v619_v35 = vld [vmem:[%s7701_s1 + $0x12d0] sm:$0xff] }
 0x24f   :  { %4766 = vmatpush1.bf16.msra.mxu1 %v5404_v36  ;;  %4562 = vmatprep.subr.bf16.mxu0 %v5411_v37  ;;  %v623_v36 = vld [vmem:[%s7701_s1 + $0x12f0] sm:$0xff]  ;;  %v620_v37 = vld [vmem:[%s7701_s1 + $0x12d8] sm:$0xff] }
 0x250   :  { %4767 = vmatprep.subr.bf16.mxu1 %v5413_v39  ;;  %v624_v39 = vld [vmem:[%s7701_s1 + $0x12f8] sm:$0xff]  ;;  %v5475_v27 = vcombine.high %v619_v35, %v623_v36  ;;  %v5474_v50 = vcombine.low %v619_v35, %v623_v36 }
 0x251   :  { %v5477_v38 = vcombine.high %v620_v37, %v624_v39  ;;  %v5476_v51 = vcombine.low %v620_v37, %v624_v39 }
 0x252   :  { %4563 = vmatpush1.bf16.msra.mxu0 %v5410_v42  ;;  %v627_v42 = vld [vmem:[%s7701_s1 + $0x1310] sm:$0xff] }
 0x253   :  { %4768 = vmatpush1.bf16.msra.mxu1 %v5412_v44  ;;  %4564 = vmatprep.subr.bf16.mxu0 %v5419_v45  ;;  %v631_v44 = vld [vmem:[%s7701_s1 + $0x1330] sm:$0xff]  ;;  %v628_v45 = vld [vmem:[%s7701_s1 + $0x1318] sm:$0xff] }
 0x254   :  { %4769 = vmatprep.subr.bf16.mxu1 %v5421_v49  ;;  %v632_v49 = vld [vmem:[%s7701_s1 + $0x1338] sm:$0xff]  ;;  %v5483_v48 = vcombine.high %v627_v42, %v631_v44  ;;  %v5482_v10 = vcombine.low %v627_v42, %v631_v44 }
 0x255   :  { %v5485_v52 = vcombine.high %v628_v45, %v632_v49  ;;  %v5484_v56 = vcombine.low %v628_v45, %v632_v49 }
 0x256   :  { %4565 = vmatpush1.bf16.msra.mxu0 %v5418_v54  ;;  %v635_v54 = vld [vmem:[%s7701_s1 + $0x1350] sm:$0xff] }
 0x257   :  { %4770 = vmatpush1.bf16.msra.mxu1 %v5420_v55  ;;  %4566 = vmatprep.subr.bf16.mxu0 %v5427_v58  ;;  %v639_v55 = vld [vmem:[%s7701_s1 + $0x1370] sm:$0xff]  ;;  %v636_v58 = vld [vmem:[%s7701_s1 + $0x1358] sm:$0xff] }
 0x258   :  { %4771 = vmatprep.subr.bf16.mxu1 %v5429_v53  ;;  %v640_v53 = vld [vmem:[%s7701_s1 + $0x1378] sm:$0xff]  ;;  %v5491_v57 = vcombine.high %v635_v54, %v639_v55  ;;  %v5490_v1 = vcombine.low %v635_v54, %v639_v55 }
 0x259   :  { %v5493_v60 = vcombine.high %v636_v58, %v640_v53  ;;  %v5492_v2 = vcombine.low %v636_v58, %v640_v53 }
 0x25a   :  { %4567 = vmatpush1.bf16.msra.mxu0 %v5426_v61  ;;  %v643_v61 = vld [vmem:[%s7701_s1 + $0x1390] sm:$0xff] }
 0x25b   :  { %4772 = vmatpush1.bf16.msra.mxu1 %v5428_v62  ;;  %4568 = vmatprep.subr.bf16.mxu0 %v5435_v4  ;;  %v647_v62 = vld [vmem:[%s7701_s1 + $0x13b0] sm:$0xff]  ;;  %v644_v4 = vld [vmem:[%s7701_s1 + $0x1398] sm:$0xff] }
 0x25c   :  { %4773 = vmatprep.subr.bf16.mxu1 %v5437_v0  ;;  %v648_v0 = vld [vmem:[%s7701_s1 + $0x13b8] sm:$0xff]  ;;  %v5499_v28 = vcombine.high %v643_v61, %v647_v62  ;;  %v5498_v11 = vcombine.low %v643_v61, %v647_v62 }
 0x25d   :  { %v5501_v3 = vcombine.high %v644_v4, %v648_v0  ;;  %v5500_v12 = vcombine.low %v644_v4, %v648_v0 }
 0x25e   :  { %4569 = vmatpush1.bf16.msra.mxu0 %v5434_v5  ;;  %v651_v5 = vld [vmem:[%s7701_s1 + $0x13d0] sm:$0xff] }
 0x25f   :  { %4774 = vmatpush1.bf16.msra.mxu1 %v5436_v6  ;;  %4570 = vmatprep.subr.bf16.mxu0 %v5443_v7  ;;  %v655_v6 = vld [vmem:[%s7701_s1 + $0x13f0] sm:$0xff]  ;;  %v652_v7 = vld [vmem:[%s7701_s1 + $0x13d8] sm:$0xff] }
 0x260   :  { %4775 = vmatprep.subr.bf16.mxu1 %v5445_v8  ;;  %v656_v8 = vld [vmem:[%s7701_s1 + $0x13f8] sm:$0xff]  ;;  %v5507_v13 = vcombine.high %v651_v5, %v655_v6  ;;  %s5612_s1 = smov [#allocation2]  }
 0x261   :  { %v5509_v14 = vcombine.high %v652_v7, %v656_v8  ;;  %s4861_s21 = sshll.u32 %s5612_s1, 4  ;;  %s4862_s21 = int_to_ptr.vmem [resolvable:$true] %s4861_s21 }
 0x262   :  { %4571 = vmatpush1.bf16.msra.mxu0 %v5442_v15  ;;  %v5506_v15 = vcombine.low %v651_v5, %v655_v6  ;;  %s5586_s22 = scalar_lea.vmem %s4862_s21, 256  ;;  %p5591_p1 = scmp.lt.s32.totalorder %s4862_s21, %s4862_s21 }
 0x263   :  { %4776 = vmatpush1.bf16.msra.mxu1 %v5444_v16  ;;  %4572 = vmatprep.subr.bf16.mxu0 %v5451_v17  ;;  %v5508_v16 = vcombine.low %v652_v7, %v656_v8  ;;  %v677_v17 = vsub.s32 4, %v5699_v43  ;;  %p5587_p0 = scmp.ne.s32.totalorder %s4862_s21, %s5586_s22  ;;  %p5592_p2 = scmp.lt.s32.totalorder %s5586_s22, %s5586_s22 }
 0x264   :  { %4777 = vmatprep.subr.bf16.mxu1 %v5453_v19  ;;  %v685_v19 = vsub.s32 6, %v5699_v43 }
 0x265   :  { %v678_v22 = vrot.slane %v7346_v9, %v677_v17  ;;  %p5593_p3 = por %p5592_p2, %p5591_p1 }
 0x266   :  { %4573 = vmatpush1.bf16.msra.mxu0 %v5450_v25  ;;  %v686_v24 = vrot.slane %v7346_v9, %v685_v19  ;;  %v682_v25 = vrot.slane %v7346_v9, %v681_v20 }
 0x267   :  { %4778 = vmatpush1.bf16.msra.mxu1 %v5452_v23  ;;  %4574 = vmatprep.subr.bf16.mxu0 %v5459_v26  ;;  %v690_v23 = vrot.slane %v7346_v9, %v689_v21  ;;  %p5594_p4 = pnand %p5593_p3, %p5587_p0 }
 0x268   :  { %4779 = vmatprep.subr.bf16.mxu1 %v5461_v59 }
 0x26a   :  { %4575 = vmatpush1.bf16.msra.mxu0 %v5458_v33 }
 0x26b   :  { %4780 = vmatpush1.bf16.msra.mxu1 %v5460_v31  ;;  %4576 = vmatprep.subr.bf16.mxu0 %v5467_v18 }
 0x26c   :  { %4781 = vmatprep.subr.bf16.mxu1 %v5469_v34 }
 0x26e   :  { %4577 = vmatpush1.bf16.msra.mxu0 %v5466_v40 }
 0x26f   :  { %4782 = vmatpush1.bf16.msra.mxu1 %v5468_v41  ;;  %4578 = vmatprep.subr.bf16.mxu0 %v5475_v27 }
 0x270   :  { %4783 = vmatprep.subr.bf16.mxu1 %v5477_v38 }
 0x272   :  { %4579 = vmatpush1.bf16.msra.mxu0 %v5474_v50 }
 0x273   :  { %4784 = vmatpush1.bf16.msra.mxu1 %v5476_v51  ;;  %4580 = vmatprep.subr.bf16.mxu0 %v5483_v48 }
 0x274   :  { %4785 = vmatprep.subr.bf16.mxu1 %v5485_v52 }
 0x276   :  { %4581 = vmatpush1.bf16.msra.mxu0 %v5482_v10 }
 0x277   :  { %4786 = vmatpush1.bf16.msra.mxu1 %v5484_v56  ;;  %4582 = vmatprep.subr.bf16.mxu0 %v5491_v57 }
 0x278   :  { %4787 = vmatprep.subr.bf16.mxu1 %v5493_v60 }
 0x27a   :  { %4583 = vmatpush1.bf16.msra.mxu0 %v5490_v1 }
 0x27b   :  { %4788 = vmatpush1.bf16.msra.mxu1 %v5492_v2  ;;  %4584 = vmatprep.subr.bf16.mxu0 %v5499_v28 }
 0x27c   :  { %4789 = vmatprep.subr.bf16.mxu1 %v5501_v3 }
 0x27e   :  { %4585 = vmatpush1.bf16.msra.mxu0 %v5498_v11 }
 0x27f   :  { %4790 = vmatpush1.bf16.msra.mxu1 %v5500_v12  ;;  %4586 = vmatprep.subr.bf16.mxu0 %v5507_v13 }
 0x280   :  { %4791 = vmatprep.subr.bf16.mxu1 %v5509_v14 }
 0x282   :  { %4587 = vmatpush1.bf16.msra.mxu0 %v5506_v15 }
 0x283   :  { %4792 = vmatpush1.bf16.msra.mxu1 %v5508_v16 }
 0x285   :  { %4589 = vmatmul.mubr.bf16.vlgmr.msra.gmra.mrb[4].mxu0 %v6694_v47 }
 0x286   :  { %4794 = vmatmul.mubr.bf16.vlgmr.msra.gmra.mrb[4].mxu1 %v6694_v47 }
 0x358   :  { %v4590_v26 = vpop.f32.mrb[4].mxu0 }
 0x359   :  { %v5514_v47 = vadd.f32 %v4590_v26, %v678_v22  ;;  %v4795_v59 = vpop.f32.mrb[4].mxu1  ;;  %v4592_v29 = vpop.f32.mrb[5].mxu0 }
 0x35a   :  { %v5516_v63 = vadd.f32 %v4795_v59, %v686_v24  ;;  %v5515_v30 = vadd.f32 %v4592_v29, %v682_v25  ;;  %v4797_v32 = vpop.f32.mrb[5].mxu1  ;;  %v4594_v33 = vpop.f32.mrb[6].mxu0 }
 0x35b   :  { %v5517_v43 = vadd.f32 %v4797_v32, %v690_v23  ;;  %v4799_v31 = vpop.f32.mrb[6].mxu1  ;;  %v4595_v18 = vpop.f32.mrb[7].mxu0 }
 0x35c   :  { %v4827_v34 = vcombine.low %v5514_v47, %v5515_v30  ;;  %v4800_v35 = vpop.f32.mrb[7].mxu1 }
 0x35d   :  { %v4828_v36 = vcombine.low %v5516_v63, %v5517_v43 }
 0x35e   :  { %v4835_v9 = vrot.slane %v4827_v34, %v7380_v46 }
 0x35f   :  { %v4842_v37 = vrot.slane %v4828_v36, %v7380_v46 }
 0x361   :  { %v4843_v39 = vcombine.low %v4835_v9, %v4842_v37 }
 0x363   :  { %4854 = vst.msk [vmem:[#allocation2 + $0x8] sm:$0xff] %vm4853_vm6, %v4843_v39 }
 0x364   :  { %5597 = shalt.err (!%p5594_p4)
}
 0x365   :  { %s5598_s25 = scalar_lea.hbm %s7703_s3, 256 }
 0x366   :  { %p5599_p5 = scmp.ne.s32.totalorder %s7703_s3, %s5598_s25  ;;  %p5602_p6 = scmp.lt.u32.totalorder %s5598_s25, %s7703_s3 }
 0x368   :  { %p5604_p7 = pnand %p5602_p6, %p5599_p5 }
 0x36a   :  { %5607 = shalt.err (!%p5604_p7)
}
 0x36b   :  { %4864 = dma.vmem_to_hbm [thread:$0]  %s4862_s21, 256, %s7703_s3, [#allocation3]  }
 0x36c   :  { %5608 = dma.done.wait [#allocation3], 256  }
 0x36d   :  { %5609 = vsyncadd [#allocation3], 4294967040 }
 0x36e   :  { %4868 = vsyncpa [#allocation3], 1 }

</bundles_post_ra>
